<compile_context>
chip_gen: v7x
topology: tpu7x:2x2x1
jax: 0.10.0
libtpu: 0.0.40
codegen_flags: <defaults>
</compile_context>

<pallas_src>
import functools

import jax
import jax.numpy as jnp
from jax.experimental import pallas as pl
from jax.experimental.pallas import tpu as pltpu


# ---------------------------------------------------------------------------
# helpers
# ---------------------------------------------------------------------------
def _round_up(x, m):
    return ((x + m - 1) // m) * m


_VMEM_LIMIT = 32 * 1024 * 1024   # explicit scoped-VMEM budget, safe on v5e/v6e/v7x
_TP_ROWS = 2048                  # row-tile size for conv / pool kernels


# ---------------------------------------------------------------------------
# Kernel A: conv-as-matmul (bf16 MXU, f32 accum) + per-channel sum / sum-sq
#           (stats accumulate in a grid-resident output -> two-pass BatchNorm)
# ---------------------------------------------------------------------------
def _conv_stats_kernel(p_ref, w_ref, y_ref, s_ref):
    y = jnp.dot(p_ref[...], w_ref[...], preferred_element_type=jnp.float32)
    y_ref[...] = y

    @pl.when(pl.program_id(0) == 0)
    def _init():
        s_ref[...] = jnp.zeros_like(s_ref)

    ssum = jnp.sum(y, axis=0, keepdims=True)          # (1, Cout)
    ssq = jnp.sum(y * y, axis=0, keepdims=True)       # (1, Cout)
    s_ref[...] += jnp.concatenate([ssum, ssq], axis=0)


def conv_and_stats(patches, w, *, tile_rows=_TP_ROWS):
    """patches: (P, K) bf16, w: (K, Cout) bf16 -> conv_out (P, Cout) f32, stats (2, Cout)."""
    P, K = patches.shape
    Cout = w.shape[1]
    tp = min(tile_rows, _round_up(P, 8))
    p_pad = _round_up(P, tp)
    if p_pad != P:
        patches = jnp.pad(patches, ((0, p_pad - P), (0, 0)))   # zero rows: no effect on stats
    grid = (p_pad // tp,)

    y, stats = pl.pallas_call(
        _conv_stats_kernel,
        grid=grid,
        in_specs=[pl.BlockSpec((tp, K), lambda i: (i, 0)),
                  pl.BlockSpec((K, Cout), lambda i: (0, 0))],
        out_specs=(pl.BlockSpec((tp, Cout), lambda i: (i, 0)),
                   pl.BlockSpec((2, Cout), lambda i: (0, 0))),
        out_shape=(jax.ShapeDtypeStruct((p_pad, Cout), jnp.float32),
                   jax.ShapeDtypeStruct((2, Cout), jnp.float32)),
        compiler_params=pltpu.CompilerParams(
            dimension_semantics=("arbitrary",),          # stats accumulate across tiles
            vmem_limit_bytes=_VMEM_LIMIT),
    )(patches, w)
    return y[:P], stats


# ---------------------------------------------------------------------------
# Kernel B: fused BatchNorm-affine + ReLU + 2x2 max-pool (pure elementwise)
# ---------------------------------------------------------------------------
def _bn_relu_pool_kernel(a_ref, b_ref, c_ref, d_ref, sc_ref, sh_ref, o_ref):
    sc = sc_ref[...]
    sh = sh_ref[...]
    ya = a_ref[...] * sc + sh
    yb = b_ref[...] * sc + sh
    yc = c_ref[...] * sc + sh
    yd = d_ref[...] * sc + sh
    m = jnp.maximum(jnp.maximum(ya, yb), jnp.maximum(yc, yd))
    o_ref[...] = jnp.maximum(m, 0.0)


def bn_relu_maxpool(y, scale, shift, B, H, W, *, tile_rows=_TP_ROWS):
    """y: (B*H*W, C) conv output, rows in (b,h,w) order -> (B, H/2, W/2, C)."""
    C = y.shape[1]
    y4 = y.reshape(B, H, W, C)
    # The four 2x2-window positions (strided gathers stay in XLA; BN+ReLU+max fused here).
    views = [y4[:, 0::2, 0::2, :], y4[:, 0::2, 1::2, :],
             y4[:, 1::2, 0::2, :], y4[:, 1::2, 1::2, :]]
    views = [v.reshape(-1, C) for v in views]
    P = views[0].shape[0]                     # B * H/2 * W/2
    tp = min(tile_rows, _round_up(P, 8))
    p_pad = _round_up(P, tp)
    if p_pad != P:
        views = [jnp.pad(v, ((0, p_pad - P), (0, 0))) for v in views]
    grid = (p_pad // tp,)

    row_spec = pl.BlockSpec((tp, C), lambda i: (i, 0))
    vec_spec = pl.BlockSpec((1, C), lambda i: (0, 0))
    out = pl.pallas_call(
        _bn_relu_pool_kernel,
        grid=grid,
        in_specs=[row_spec, row_spec, row_spec, row_spec, vec_spec, vec_spec],
        out_specs=row_spec,
        out_shape=jax.ShapeDtypeStruct((p_pad, C), jnp.float32),
        compiler_params=pltpu.CompilerParams(
            dimension_semantics=("parallel",),
            vmem_limit_bytes=_VMEM_LIMIT),
    )(*views, scale.reshape(1, C), shift.reshape(1, C))
    return out[:P].reshape(B, H // 2, W // 2, C)


# ---------------------------------------------------------------------------
# Kernel C: final Linear (lane-dense: classes padded to 128)
# ---------------------------------------------------------------------------
def _linear_kernel(x_ref, w_ref, b_ref, o_ref):
    o_ref[...] = jnp.dot(x_ref[...], w_ref[...],
                         preferred_element_type=jnp.float32) + b_ref[...]


def linear(x, w, b, *, tile_rows=128):
    B, K = x.shape
    N = w.shape[1]
    tb = min(tile_rows, _round_up(B, 8))
    b_rows = _round_up(B, tb)
    if b_rows != B:
        x = jnp.pad(x, ((0, b_rows - B), (0, 0)))
    grid = (b_rows // tb,)
    out = pl.pallas_call(
        _linear_kernel,
        grid=grid,
        in_specs=[pl.BlockSpec((tb, K), lambda i: (i, 0)),
                  pl.BlockSpec((K, N), lambda i: (0, 0)),
                  pl.BlockSpec((1, N), lambda i: (0, 0))],
        out_specs=pl.BlockSpec((tb, N), lambda i: (i, 0)),
        out_shape=jax.ShapeDtypeStruct((b_rows, N), jnp.float32),
        compiler_params=pltpu.CompilerParams(
            dimension_semantics=("parallel",),
            vmem_limit_bytes=_VMEM_LIMIT),
    )(x, w, b.reshape(1, N))
    return out[:B]


# ---------------------------------------------------------------------------
# XLA-side glue
# ---------------------------------------------------------------------------
def im2col(x, k=5, pad=2, k_pad=None):
    # x: (B, H, W, C) bf16 -> (B*H*W, k*k*C) "same"-padded 5x5 patches (bf16).
    # TODO(synk): move patch extraction into the conv kernel (DMA a padded NHWC
    # tile + build shifted views in VMEM) to remove the 25x HBM patch blowup.
    B, H, W, C = x.shape
    xp = jnp.pad(x, ((0, 0), (pad, pad), (pad, pad), (0, 0)))
    views = [xp[:, dy:dy + H, dx:dx + W, :] for dy in range(k) for dx in range(k)]
    patches = jnp.stack(views, axis=3).reshape(B * H * W, k * k * C)
    if k_pad is not None and k_pad > k * k * C:
        patches = jnp.pad(patches, ((0, 0), (0, k_pad - k * k * C)))
    return patches


def conv_bn_relu_pool(x_nhwc, w_mat, gamma, beta, *, k_pad=None):
    """Conv(5x5,same) -> train-mode BatchNorm -> ReLU -> MaxPool(2). Bias omitted
    (it cancels exactly under BN mean subtraction)."""
    B, H, W, _ = x_nhwc.shape
    patches = im2col(x_nhwc.astype(jnp.bfloat16), k_pad=k_pad)
    y, stats = conv_and_stats(patches, w_mat)              # (B*H*W, Cout), (2, Cout)

    n = float(B * H * W)                                   # true pixel count
    mean = stats[0] / n
    var = jnp.maximum(stats[1] / n - mean * mean, 0.0)     # biased var (PyTorch train mode)
    scale = gamma * jax.lax.rsqrt(var + 1e-5)
    shift = beta - mean * scale
    return bn_relu_maxpool(y, scale, shift, B, H, W)


# ---------------------------------------------------------------------------
# Parameters (PyTorch layout) + one-time conversion to kernel-friendly layouts
# ---------------------------------------------------------------------------
def init_params(num_classes=10, key=jax.random.PRNGKey(42)):
    k1, k2, k3 = jax.random.split(key, 3)
    return {
        "conv1_w": 0.1 * jax.random.normal(k1, (16, 1, 5, 5), jnp.float32),
        "conv1_b": jnp.zeros((16,), jnp.float32),   # cancels under train-mode BN
        "bn1_g": jnp.ones((16,), jnp.float32),
        "bn1_b": jnp.zeros((16,), jnp.float32),
        "conv2_w": 0.1 * jax.random.normal(k2, (32, 16, 5, 5), jnp.float32),
        "conv2_b": jnp.zeros((32,), jnp.float32),   # cancels under train-mode BN
        "bn2_g": jnp.ones((32,), jnp.float32),
        "bn2_b": jnp.zeros((32,), jnp.float32),
        "fc_w": 0.05 * jax.random.normal(k3, (num_classes, 7 * 7 * 32), jnp.float32),
        "fc_b": jnp.zeros((num_classes,), jnp.float32),
    }


def prepare_params(p, num_classes):
    """One-time conversion: PyTorch layouts -> im2col matrices (bf16), folded fc perm."""
    def conv_to_mat(w, k_pad=None):
        cout, cin, kh, kw = w.shape
        m = jnp.transpose(w, (2, 3, 1, 0)).reshape(kh * kw * cin, cout)
        if k_pad is not None and k_pad > m.shape[0]:
            m = jnp.pad(m, ((0, k_pad - m.shape[0]), (0, 0)))
        return m.astype(jnp.bfloat16)

    n_pad = _round_up(num_classes, 128)                     # lane-dense fc output
    # Fold the PyTorch NCHW flatten (c,h,w) -> our NHWC flatten (h,w,c) into fc weights.
    fc_w = p["fc_w"].reshape(num_classes, 32, 7, 7)
    fc_w = jnp.transpose(fc_w, (2, 3, 1, 0)).reshape(7 * 7 * 32, num_classes)
    fc_w = jnp.pad(fc_w, ((0, 0), (0, n_pad - num_classes))).astype(jnp.bfloat16)
    fc_b = jnp.pad(p["fc_b"], (0, n_pad - num_classes))
    return {
        "w1": conv_to_mat(p["conv1_w"], k_pad=32),          # (32, 16): K padded 25 -> 32
        "g1": p["bn1_g"], "be1": p["bn1_b"],
        "w2": conv_to_mat(p["conv2_w"]),                    # (400, 32)
        "g2": p["bn2_g"], "be2": p["bn2_b"],
        "wf": fc_w, "bf": fc_b,
    }


# ---------------------------------------------------------------------------
# Full forward
# ---------------------------------------------------------------------------
@functools.partial(jax.jit, static_argnames=("num_classes",))
def my_model_forward(x_nchw, kp, *, num_classes):
    # x_nchw: (B, 1, 28, 28) float32 — same convention as the PyTorch module
    B = x_nchw.shape[0]
    x = jnp.transpose(x_nchw, (0, 2, 3, 1))                         # NHWC (B,28,28,1)

    h1 = conv_bn_relu_pool(x, kp["w1"], kp["g1"], kp["be1"], k_pad=32)   # (B,14,14,16)
    h2 = conv_bn_relu_pool(h1, kp["w2"], kp["g2"], kp["be2"])            # (B,7,7,32)

    flat = h2.reshape(B, 7 * 7 * 32).astype(jnp.bfloat16)           # (h,w,c); perm folded in wf
    logits = linear(flat, kp["wf"], kp["bf"])                       # (B, 128) lane-dense
    return logits[:, :num_classes]


if __name__ == "__main__":
    num_classes = 10
    raw_params = init_params(num_classes)
    params = prepare_params(raw_params, num_classes)

    x = jax.random.normal(jax.random.PRNGKey(0), (2, 1, 28, 28), jnp.float32)
    out = my_model_forward(x, params, num_classes=num_classes)
    out = jax.block_until_ready(out)

    assert out.shape == (2, num_classes), out.shape
    assert bool(jnp.all(jnp.isfinite(out))), "non-finite output"
    print("KERNEL_OK")
</pallas_src>

<mosaic_0001>
module attributes {stable_mosaic.version = 11 : i64} {
  func.func @_conv_stats_kernel(%arg0: i32, %arg1: memref<1568x32xbf16, #tpu.memory_space<vmem>>, %arg2: memref<32x16xbf16, #tpu.memory_space<vmem>>, %arg3: memref<1568x16xf32, #tpu.memory_space<vmem>>, %arg4: memref<2x16xf32, #tpu.memory_space<vmem>>) attributes {dimension_semantics = [#tpu.dimension_semantics<arbitrary>], iteration_bounds = array<i64: 1>, scalar_prefetch = 0 : i64, scratch_operands = 0 : i64, tpu.core_type = #tpu.core_type<tc>, window_params = [{transform_indices = @transform_0, window_bounds = array<i64: 1568, 32>}, {pipeline_mode = #tpu.pipeline_mode<synchronous>, transform_indices = @transform_1, window_bounds = array<i64: 32, 16>}, {transform_indices = @transform_2, window_bounds = array<i64: 1568, 16>}, {pipeline_mode = #tpu.pipeline_mode<synchronous>, transform_indices = @transform_3, window_bounds = array<i64: 2, 16>}]} {
    %c0 = arith.constant 0 : index
    %c0_0 = arith.constant 0 : index
    %0 = vector.load %arg1[%c0, %c0_0] : memref<1568x32xbf16, #tpu.memory_space<vmem>>, vector<1568x32xbf16>
    %c0_1 = arith.constant 0 : index
    %c0_2 = arith.constant 0 : index
    %1 = vector.load %arg2[%c0_1, %c0_2] : memref<32x16xbf16, #tpu.memory_space<vmem>>, vector<32x16xbf16>
    %cst = arith.constant dense<0.000000e+00> : vector<1568x16xf32>
    %2 = tpu.matmul %0, %1, %cst {dimension_numbers = #tpu.dot_dimension_numbers<[1], [0], [0], [1], [0, 0, 1, 1], [], []>} : vector<1568x32xbf16>, vector<32x16xbf16>, vector<1568x16xf32> -> vector<1568x16xf32>
    %c0_3 = arith.constant 0 : index
    %c0_4 = arith.constant 0 : index
    %3 = vector.load %arg3[%c0_3, %c0_4] : memref<1568x16xf32, #tpu.memory_space<vmem>>, vector<1568x16xf32>
    tpu.vector_store %arg3[%c0_3, %c0_4], %2 {strides = array<i32>} : memref<1568x16xf32, #tpu.memory_space<vmem>>, vector<1568x16xf32>,
    %c0_i32 = arith.constant 0 : i32
    %4 = arith.cmpi eq, %arg0, %c0_i32 : i32
    %5 = arith.extui %4 : i1 to i32
    %c0_i32_5 = arith.constant 0 : i32
    %6 = arith.cmpi ne, %5, %c0_i32_5 : i32
    scf.if %6 {
      %cst_12 = arith.constant 0.000000e+00 : f32
      %16 = vector.broadcast %cst_12 : f32 to vector<2x16xf32>
      %c0_13 = arith.constant 0 : index
      %c0_14 = arith.constant 0 : index
      %17 = vector.load %arg4[%c0_13, %c0_14] : memref<2x16xf32, #tpu.memory_space<vmem>>, vector<2x16xf32>
      tpu.vector_store %arg4[%c0_13, %c0_14], %16 {strides = array<i32>} : memref<2x16xf32, #tpu.memory_space<vmem>>, vector<2x16xf32>,
    } else {
    }
    %cst_6 = arith.constant dense<0.000000e+00> : vector<16xf32>
    %7 = vector.multi_reduction <add>, %2, %cst_6 [0] : vector<1568x16xf32> to vector<16xf32>
    %8 = vector.shape_cast %7 : vector<16xf32> to vector<1x16xf32>
    %9 = arith.mulf %2, %2 : vector<1568x16xf32>
    %cst_7 = arith.constant dense<0.000000e+00> : vector<16xf32>
    %10 = vector.multi_reduction <add>, %9, %cst_7 [0] : vector<1568x16xf32> to vector<16xf32>
    %11 = vector.shape_cast %10 : vector<16xf32> to vector<1x16xf32>
    %c0_8 = arith.constant 0 : index
    %c0_9 = arith.constant 0 : index
    %12 = vector.load %arg4[%c0_8, %c0_9] : memref<2x16xf32, #tpu.memory_space<vmem>>, vector<2x16xf32>
    %13 = tpu.concatenate %8, %11 in 0 : vector<1x16xf32>, vector<1x16xf32> -> vector<2x16xf32>
    %14 = arith.addf %12, %13 : vector<2x16xf32>
    %c0_10 = arith.constant 0 : index
    %c0_11 = arith.constant 0 : index
    %15 = vector.load %arg4[%c0_10, %c0_11] : memref<2x16xf32, #tpu.memory_space<vmem>>, vector<2x16xf32>
    tpu.vector_store %arg4[%c0_10, %c0_11], %14 {strides = array<i32>} : memref<2x16xf32, #tpu.memory_space<vmem>>, vector<2x16xf32>,
    return
  }
  func.func @transform_0(%arg0: i32) -> (i32, i32) {
    %c0_i32 = arith.constant 0 : i32
    %c0_i32_0 = arith.constant 0 : i32
    return %arg0, %c0_i32 : i32, i32
  }
  func.func @transform_1(%arg0: i32) -> (i32, i32) {
    %c0_i32 = arith.constant 0 : i32
    %c0_i32_0 = arith.constant 0 : i32
    %c0_i32_1 = arith.constant 0 : i32
    return %c0_i32, %c0_i32_0 : i32, i32
  }
  func.func @transform_2(%arg0: i32) -> (i32, i32) {
    %c0_i32 = arith.constant 0 : i32
    %c0_i32_0 = arith.constant 0 : i32
    return %arg0, %c0_i32 : i32, i32
  }
  func.func @transform_3(%arg0: i32) -> (i32, i32) {
    %c0_i32 = arith.constant 0 : i32
    %c0_i32_0 = arith.constant 0 : i32
    %c0_i32_1 = arith.constant 0 : i32
    return %c0_i32, %c0_i32_0 : i32, i32
  }
}

module attributes {stable_mosaic.version = 11 : i64} {
  func.func @_bn_relu_pool_kernel(%arg0: i32, %arg1: memref<392x16xf32, #tpu.memory_space<vmem>>, %arg2: memref<392x16xf32, #tpu.memory_space<vmem>>, %arg3: memref<392x16xf32, #tpu.memory_space<vmem>>, %arg4: memref<392x16xf32, #tpu.memory_space<vmem>>, %arg5: memref<1x16xf32, #tpu.memory_space<vmem>>, %arg6: memref<1x16xf32, #tpu.memory_space<vmem>>, %arg7: memref<392x16xf32, #tpu.memory_space<vmem>>) attributes {dimension_semantics = [#tpu.dimension_semantics<parallel>], iteration_bounds = array<i64: 1>, scalar_prefetch = 0 : i64, scratch_operands = 0 : i64, tpu.core_type = #tpu.core_type<tc>, window_params = [{transform_indices = @transform_0, window_bounds = array<i64: 392, 16>}, {transform_indices = @transform_1, window_bounds = array<i64: 392, 16>}, {transform_indices = @transform_2, window_bounds = array<i64: 392, 16>}, {transform_indices = @transform_3, window_bounds = array<i64: 392, 16>}, {pipeline_mode = #tpu.pipeline_mode<synchronous>, transform_indices = @transform_4, window_bounds = array<i64: 1, 16>}, {pipeline_mode = #tpu.pipeline_mode<synchronous>, transform_indices = @transform_5, window_bounds = array<i64: 1, 16>}, {transform_indices = @transform_6, window_bounds = array<i64: 392, 16>}]} {
    %c0 = arith.constant 0 : index
    %c0_0 = arith.constant 0 : index
    %0 = vector.load %arg5[%c0, %c0_0] : memref<1x16xf32, #tpu.memory_space<vmem>>, vector<1x16xf32>
    %c0_1 = arith.constant 0 : index
    %c0_2 = arith.constant 0 : index
    %1 = vector.load %arg6[%c0_1, %c0_2] : memref<1x16xf32, #tpu.memory_space<vmem>>, vector<1x16xf32>
    %c0_3 = arith.constant 0 : index
    %c0_4 = arith.constant 0 : index
    %2 = vector.load %arg1[%c0_3, %c0_4] : memref<392x16xf32, #tpu.memory_space<vmem>>, vector<392x16xf32>
    %3 = vector.broadcast %0 : vector<1x16xf32> to vector<392x16xf32>
    %4 = arith.mulf %2, %3 : vector<392x16xf32>
    %5 = vector.broadcast %1 : vector<1x16xf32> to vector<392x16xf32>
    %6 = arith.addf %4, %5 : vector<392x16xf32>
    %c0_5 = arith.constant 0 : index
    %c0_6 = arith.constant 0 : index
    %7 = vector.load %arg2[%c0_5, %c0_6] : memref<392x16xf32, #tpu.memory_space<vmem>>, vector<392x16xf32>
    %8 = vector.broadcast %0 : vector<1x16xf32> to vector<392x16xf32>
    %9 = arith.mulf %7, %8 : vector<392x16xf32>
    %10 = vector.broadcast %1 : vector<1x16xf32> to vector<392x16xf32>
    %11 = arith.addf %9, %10 : vector<392x16xf32>
    %c0_7 = arith.constant 0 : index
    %c0_8 = arith.constant 0 : index
    %12 = vector.load %arg3[%c0_7, %c0_8] : memref<392x16xf32, #tpu.memory_space<vmem>>, vector<392x16xf32>
    %13 = vector.broadcast %0 : vector<1x16xf32> to vector<392x16xf32>
    %14 = arith.mulf %12, %13 : vector<392x16xf32>
    %15 = vector.broadcast %1 : vector<1x16xf32> to vector<392x16xf32>
    %16 = arith.addf %14, %15 : vector<392x16xf32>
    %c0_9 = arith.constant 0 : index
    %c0_10 = arith.constant 0 : index
    %17 = vector.load %arg4[%c0_9, %c0_10] : memref<392x16xf32, #tpu.memory_space<vmem>>, vector<392x16xf32>
    %18 = vector.broadcast %0 : vector<1x16xf32> to vector<392x16xf32>
    %19 = arith.mulf %17, %18 : vector<392x16xf32>
    %20 = vector.broadcast %1 : vector<1x16xf32> to vector<392x16xf32>
    %21 = arith.addf %19, %20 : vector<392x16xf32>
    %22 = arith.maximumf %6, %11 : vector<392x16xf32>
    %23 = arith.maximumf %16, %21 : vector<392x16xf32>
    %24 = arith.maximumf %22, %23 : vector<392x16xf32>
    %cst = arith.constant 0.000000e+00 : f32
    %25 = vector.broadcast %cst : f32 to vector<392x16xf32>
    %26 = arith.maximumf %24, %25 : vector<392x16xf32>
    %c0_11 = arith.constant 0 : index
    %c0_12 = arith.constant 0 : index
    %27 = vector.load %arg7[%c0_11, %c0_12] : memref<392x16xf32, #tpu.memory_space<vmem>>, vector<392x16xf32>
    tpu.vector_store %arg7[%c0_11, %c0_12], %26 {strides = array<i32>} : memref<392x16xf32, #tpu.memory_space<vmem>>, vector<392x16xf32>,
    return
  }
  func.func @transform_0(%arg0: i32) -> (i32, i32) {
    %c0_i32 = arith.constant 0 : i32
    %c0_i32_0 = arith.constant 0 : i32
    return %arg0, %c0_i32 : i32, i32
  }
  func.func @transform_1(%arg0: i32) -> (i32, i32) {
    %c0_i32 = arith.constant 0 : i32
    %c0_i32_0 = arith.constant 0 : i32
    return %arg0, %c0_i32 : i32, i32
  }
  func.func @transform_2(%arg0: i32) -> (i32, i32) {
    %c0_i32 = arith.constant 0 : i32
    %c0_i32_0 = arith.constant 0 : i32
    return %arg0, %c0_i32 : i32, i32
  }
  func.func @transform_3(%arg0: i32) -> (i32, i32) {
    %c0_i32 = arith.constant 0 : i32
    %c0_i32_0 = arith.constant 0 : i32
    return %arg0, %c0_i32 : i32, i32
  }
  func.func @transform_4(%arg0: i32) -> (i32, i32) {
    %c0_i32 = arith.constant 0 : i32
    %c0_i32_0 = arith.constant 0 : i32
    %c0_i32_1 = arith.constant 0 : i32
    return %c0_i32, %c0_i32_0 : i32, i32
  }
  func.func @transform_5(%arg0: i32) -> (i32, i32) {
    %c0_i32 = arith.constant 0 : i32
    %c0_i32_0 = arith.constant 0 : i32
    %c0_i32_1 = arith.constant 0 : i32
    return %c0_i32, %c0_i32_0 : i32, i32
  }
  func.func @transform_6(%arg0: i32) -> (i32, i32) {
    %c0_i32 = arith.constant 0 : i32
    %c0_i32_0 = arith.constant 0 : i32
    return %arg0, %c0_i32 : i32, i32
  }
}

module attributes {stable_mosaic.version = 11 : i64} {
  func.func @_conv_stats_kernel(%arg0: i32, %arg1: memref<392x400xbf16, #tpu.memory_space<vmem>>, %arg2: memref<400x32xbf16, #tpu.memory_space<vmem>>, %arg3: memref<392x32xf32, #tpu.memory_space<vmem>>, %arg4: memref<2x32xf32, #tpu.memory_space<vmem>>) attributes {dimension_semantics = [#tpu.dimension_semantics<arbitrary>], iteration_bounds = array<i64: 1>, scalar_prefetch = 0 : i64, scratch_operands = 0 : i64, tpu.core_type = #tpu.core_type<tc>, window_params = [{transform_indices = @transform_0, window_bounds = array<i64: 392, 400>}, {pipeline_mode = #tpu.pipeline_mode<synchronous>, transform_indices = @transform_1, window_bounds = array<i64: 400, 32>}, {transform_indices = @transform_2, window_bounds = array<i64: 392, 32>}, {pipeline_mode = #tpu.pipeline_mode<synchronous>, transform_indices = @transform_3, window_bounds = array<i64: 2, 32>}]} {
    %c0 = arith.constant 0 : index
    %c0_0 = arith.constant 0 : index
    %0 = vector.load %arg1[%c0, %c0_0] : memref<392x400xbf16, #tpu.memory_space<vmem>>, vector<392x400xbf16>
    %c0_1 = arith.constant 0 : index
    %c0_2 = arith.constant 0 : index
    %1 = vector.load %arg2[%c0_1, %c0_2] : memref<400x32xbf16, #tpu.memory_space<vmem>>, vector<400x32xbf16>
    %cst = arith.constant dense<0.000000e+00> : vector<392x32xf32>
    %2 = tpu.matmul %0, %1, %cst {dimension_numbers = #tpu.dot_dimension_numbers<[1], [0], [0], [1], [0, 0, 1, 1], [], []>} : vector<392x400xbf16>, vector<400x32xbf16>, vector<392x32xf32> -> vector<392x32xf32>
    %c0_3 = arith.constant 0 : index
    %c0_4 = arith.constant 0 : index
    %3 = vector.load %arg3[%c0_3, %c0_4] : memref<392x32xf32, #tpu.memory_space<vmem>>, vector<392x32xf32>
    tpu.vector_store %arg3[%c0_3, %c0_4], %2 {strides = array<i32>} : memref<392x32xf32, #tpu.memory_space<vmem>>, vector<392x32xf32>,
    %c0_i32 = arith.constant 0 : i32
    %4 = arith.cmpi eq, %arg0, %c0_i32 : i32
    %5 = arith.extui %4 : i1 to i32
    %c0_i32_5 = arith.constant 0 : i32
    %6 = arith.cmpi ne, %5, %c0_i32_5 : i32
    scf.if %6 {
      %cst_12 = arith.constant 0.000000e+00 : f32
      %16 = vector.broadcast %cst_12 : f32 to vector<2x32xf32>
      %c0_13 = arith.constant 0 : index
      %c0_14 = arith.constant 0 : index
      %17 = vector.load %arg4[%c0_13, %c0_14] : memref<2x32xf32, #tpu.memory_space<vmem>>, vector<2x32xf32>
      tpu.vector_store %arg4[%c0_13, %c0_14], %16 {strides = array<i32>} : memref<2x32xf32, #tpu.memory_space<vmem>>, vector<2x32xf32>,
    } else {
    }
    %cst_6 = arith.constant dense<0.000000e+00> : vector<32xf32>
    %7 = vector.multi_reduction <add>, %2, %cst_6 [0] : vector<392x32xf32> to vector<32xf32>
    %8 = vector.shape_cast %7 : vector<32xf32> to vector<1x32xf32>
    %9 = arith.mulf %2, %2 : vector<392x32xf32>
    %cst_7 = arith.constant dense<0.000000e+00> : vector<32xf32>
    %10 = vector.multi_reduction <add>, %9, %cst_7 [0] : vector<392x32xf32> to vector<32xf32>
    %11 = vector.shape_cast %10 : vector<32xf32> to vector<1x32xf32>
    %c0_8 = arith.constant 0 : index
    %c0_9 = arith.constant 0 : index
    %12 = vector.load %arg4[%c0_8, %c0_9] : memref<2x32xf32, #tpu.memory_space<vmem>>, vector<2x32xf32>
    %13 = tpu.concatenate %8, %11 in 0 : vector<1x32xf32>, vector<1x32xf32> -> vector<2x32xf32>
    %14 = arith.addf %12, %13 : vector<2x32xf32>
    %c0_10 = arith.constant 0 : index
    %c0_11 = arith.constant 0 : index
    %15 = vector.load %arg4[%c0_10, %c0_11] : memref<2x32xf32, #tpu.memory_space<vmem>>, vector<2x32xf32>
    tpu.vector_store %arg4[%c0_10, %c0_11], %14 {strides = array<i32>} : memref<2x32xf32, #tpu.memory_space<vmem>>, vector<2x32xf32>,
    return
  }
  func.func @transform_0(%arg0: i32) -> (i32, i32) {
    %c0_i32 = arith.constant 0 : i32
    %c0_i32_0 = arith.constant 0 : i32
    return %arg0, %c0_i32 : i32, i32
  }
  func.func @transform_1(%arg0: i32) -> (i32, i32) {
    %c0_i32 = arith.constant 0 : i32
    %c0_i32_0 = arith.constant 0 : i32
    %c0_i32_1 = arith.constant 0 : i32
    return %c0_i32, %c0_i32_0 : i32, i32
  }
  func.func @transform_2(%arg0: i32) -> (i32, i32) {
    %c0_i32 = arith.constant 0 : i32
    %c0_i32_0 = arith.constant 0 : i32
    return %arg0, %c0_i32 : i32, i32
  }
  func.func @transform_3(%arg0: i32) -> (i32, i32) {
    %c0_i32 = arith.constant 0 : i32
    %c0_i32_0 = arith.constant 0 : i32
    %c0_i32_1 = arith.constant 0 : i32
    return %c0_i32, %c0_i32_0 : i32, i32
  }
}

module attributes {stable_mosaic.version = 11 : i64} {
  func.func @_bn_relu_pool_kernel(%arg0: i32, %arg1: memref<104x32xf32, #tpu.memory_space<vmem>>, %arg2: memref<104x32xf32, #tpu.memory_space<vmem>>, %arg3: memref<104x32xf32, #tpu.memory_space<vmem>>, %arg4: memref<104x32xf32, #tpu.memory_space<vmem>>, %arg5: memref<1x32xf32, #tpu.memory_space<vmem>>, %arg6: memref<1x32xf32, #tpu.memory_space<vmem>>, %arg7: memref<104x32xf32, #tpu.memory_space<vmem>>) attributes {dimension_semantics = [#tpu.dimension_semantics<parallel>], iteration_bounds = array<i64: 1>, scalar_prefetch = 0 : i64, scratch_operands = 0 : i64, tpu.core_type = #tpu.core_type<tc>, window_params = [{transform_indices = @transform_0, window_bounds = array<i64: 104, 32>}, {transform_indices = @transform_1, window_bounds = array<i64: 104, 32>}, {transform_indices = @transform_2, window_bounds = array<i64: 104, 32>}, {transform_indices = @transform_3, window_bounds = array<i64: 104, 32>}, {pipeline_mode = #tpu.pipeline_mode<synchronous>, transform_indices = @transform_4, window_bounds = array<i64: 1, 32>}, {pipeline_mode = #tpu.pipeline_mode<synchronous>, transform_indices = @transform_5, window_bounds = array<i64: 1, 32>}, {transform_indices = @transform_6, window_bounds = array<i64: 104, 32>}]} {
    %c0 = arith.constant 0 : index
    %c0_0 = arith.constant 0 : index
    %0 = vector.load %arg5[%c0, %c0_0] : memref<1x32xf32, #tpu.memory_space<vmem>>, vector<1x32xf32>
    %c0_1 = arith.constant 0 : index
    %c0_2 = arith.constant 0 : index
    %1 = vector.load %arg6[%c0_1, %c0_2] : memref<1x32xf32, #tpu.memory_space<vmem>>, vector<1x32xf32>
    %c0_3 = arith.constant 0 : index
    %c0_4 = arith.constant 0 : index
    %2 = vector.load %arg1[%c0_3, %c0_4] : memref<104x32xf32, #tpu.memory_space<vmem>>, vector<104x32xf32>
    %3 = vector.broadcast %0 : vector<1x32xf32> to vector<104x32xf32>
    %4 = arith.mulf %2, %3 : vector<104x32xf32>
    %5 = vector.broadcast %1 : vector<1x32xf32> to vector<104x32xf32>
    %6 = arith.addf %4, %5 : vector<104x32xf32>
    %c0_5 = arith.constant 0 : index
    %c0_6 = arith.constant 0 : index
    %7 = vector.load %arg2[%c0_5, %c0_6] : memref<104x32xf32, #tpu.memory_space<vmem>>, vector<104x32xf32>
    %8 = vector.broadcast %0 : vector<1x32xf32> to vector<104x32xf32>
    %9 = arith.mulf %7, %8 : vector<104x32xf32>
    %10 = vector.broadcast %1 : vector<1x32xf32> to vector<104x32xf32>
    %11 = arith.addf %9, %10 : vector<104x32xf32>
    %c0_7 = arith.constant 0 : index
    %c0_8 = arith.constant 0 : index
    %12 = vector.load %arg3[%c0_7, %c0_8] : memref<104x32xf32, #tpu.memory_space<vmem>>, vector<104x32xf32>
    %13 = vector.broadcast %0 : vector<1x32xf32> to vector<104x32xf32>
    %14 = arith.mulf %12, %13 : vector<104x32xf32>
    %15 = vector.broadcast %1 : vector<1x32xf32> to vector<104x32xf32>
    %16 = arith.addf %14, %15 : vector<104x32xf32>
    %c0_9 = arith.constant 0 : index
    %c0_10 = arith.constant 0 : index
    %17 = vector.load %arg4[%c0_9, %c0_10] : memref<104x32xf32, #tpu.memory_space<vmem>>, vector<104x32xf32>
    %18 = vector.broadcast %0 : vector<1x32xf32> to vector<104x32xf32>
    %19 = arith.mulf %17, %18 : vector<104x32xf32>
    %20 = vector.broadcast %1 : vector<1x32xf32> to vector<104x32xf32>
    %21 = arith.addf %19, %20 : vector<104x32xf32>
    %22 = arith.maximumf %6, %11 : vector<104x32xf32>
    %23 = arith.maximumf %16, %21 : vector<104x32xf32>
    %24 = arith.maximumf %22, %23 : vector<104x32xf32>
    %cst = arith.constant 0.000000e+00 : f32
    %25 = vector.broadcast %cst : f32 to vector<104x32xf32>
    %26 = arith.maximumf %24, %25 : vector<104x32xf32>
    %c0_11 = arith.constant 0 : index
    %c0_12 = arith.constant 0 : index
    %27 = vector.load %arg7[%c0_11, %c0_12] : memref<104x32xf32, #tpu.memory_space<vmem>>, vector<104x32xf32>
    tpu.vector_store %arg7[%c0_11, %c0_12], %26 {strides = array<i32>} : memref<104x32xf32, #tpu.memory_space<vmem>>, vector<104x32xf32>,
    return
  }
  func.func @transform_0(%arg0: i32) -> (i32, i32) {
    %c0_i32 = arith.constant 0 : i32
    %c0_i32_0 = arith.constant 0 : i32
    return %arg0, %c0_i32 : i32, i32
  }
  func.func @transform_1(%arg0: i32) -> (i32, i32) {
    %c0_i32 = arith.constant 0 : i32
    %c0_i32_0 = arith.constant 0 : i32
    return %arg0, %c0_i32 : i32, i32
  }
  func.func @transform_2(%arg0: i32) -> (i32, i32) {
    %c0_i32 = arith.constant 0 : i32
    %c0_i32_0 = arith.constant 0 : i32
    return %arg0, %c0_i32 : i32, i32
  }
  func.func @transform_3(%arg0: i32) -> (i32, i32) {
    %c0_i32 = arith.constant 0 : i32
    %c0_i32_0 = arith.constant 0 : i32
    return %arg0, %c0_i32 : i32, i32
  }
  func.func @transform_4(%arg0: i32) -> (i32, i32) {
    %c0_i32 = arith.constant 0 : i32
    %c0_i32_0 = arith.constant 0 : i32
    %c0_i32_1 = arith.constant 0 : i32
    return %c0_i32, %c0_i32_0 : i32, i32
  }
  func.func @transform_5(%arg0: i32) -> (i32, i32) {
    %c0_i32 = arith.constant 0 : i32
    %c0_i32_0 = arith.constant 0 : i32
    %c0_i32_1 = arith.constant 0 : i32
    return %c0_i32, %c0_i32_0 : i32, i32
  }
  func.func @transform_6(%arg0: i32) -> (i32, i32) {
    %c0_i32 = arith.constant 0 : i32
    %c0_i32_0 = arith.constant 0 : i32
    return %arg0, %c0_i32 : i32, i32
  }
}

module attributes {stable_mosaic.version = 11 : i64} {
  func.func @_linear_kernel(%arg0: i32, %arg1: memref<8x1568xbf16, #tpu.memory_space<vmem>>, %arg2: memref<1568x128xbf16, #tpu.memory_space<vmem>>, %arg3: memref<1x128xf32, #tpu.memory_space<vmem>>, %arg4: memref<8x128xf32, #tpu.memory_space<vmem>>) attributes {dimension_semantics = [#tpu.dimension_semantics<parallel>], iteration_bounds = array<i64: 1>, scalar_prefetch = 0 : i64, scratch_operands = 0 : i64, tpu.core_type = #tpu.core_type<tc>, window_params = [{transform_indices = @transform_0, window_bounds = array<i64: 8, 1568>}, {pipeline_mode = #tpu.pipeline_mode<synchronous>, transform_indices = @transform_1, window_bounds = array<i64: 1568, 128>}, {pipeline_mode = #tpu.pipeline_mode<synchronous>, transform_indices = @transform_2, window_bounds = array<i64: 1, 128>}, {transform_indices = @transform_3, window_bounds = array<i64: 8, 128>}]} {
    %c0 = arith.constant 0 : index
    %c0_0 = arith.constant 0 : index
    %0 = vector.load %arg1[%c0, %c0_0] : memref<8x1568xbf16, #tpu.memory_space<vmem>>, vector<8x1568xbf16>
    %c0_1 = arith.constant 0 : index
    %c0_2 = arith.constant 0 : index
    %1 = vector.load %arg2[%c0_1, %c0_2] : memref<1568x128xbf16, #tpu.memory_space<vmem>>, vector<1568x128xbf16>
    %cst = arith.constant dense<0.000000e+00> : vector<8x128xf32>
    %2 = tpu.matmul %0, %1, %cst {dimension_numbers = #tpu.dot_dimension_numbers<[1], [0], [0], [1], [0, 0, 1, 1], [], []>} : vector<8x1568xbf16>, vector<1568x128xbf16>, vector<8x128xf32> -> vector<8x128xf32>
    %c0_3 = arith.constant 0 : index
    %c0_4 = arith.constant 0 : index
    %3 = vector.load %arg3[%c0_3, %c0_4] : memref<1x128xf32, #tpu.memory_space<vmem>>, vector<1x128xf32>
    %4 = vector.broadcast %3 : vector<1x128xf32> to vector<8x128xf32>
    %5 = arith.addf %2, %4 : vector<8x128xf32>
    %c0_5 = arith.constant 0 : index
    %c0_6 = arith.constant 0 : index
    %6 = vector.load %arg4[%c0_5, %c0_6] : memref<8x128xf32, #tpu.memory_space<vmem>>, vector<8x128xf32>
    tpu.vector_store %arg4[%c0_5, %c0_6], %5 {strides = array<i32>} : memref<8x128xf32, #tpu.memory_space<vmem>>, vector<8x128xf32>,
    return
  }
  func.func @transform_0(%arg0: i32) -> (i32, i32) {
    %c0_i32 = arith.constant 0 : i32
    %c0_i32_0 = arith.constant 0 : i32
    return %arg0, %c0_i32 : i32, i32
  }
  func.func @transform_1(%arg0: i32) -> (i32, i32) {
    %c0_i32 = arith.constant 0 : i32
    %c0_i32_0 = arith.constant 0 : i32
    %c0_i32_1 = arith.constant 0 : i32
    return %c0_i32, %c0_i32_0 : i32, i32
  }
  func.func @transform_2(%arg0: i32) -> (i32, i32) {
    %c0_i32 = arith.constant 0 : i32
    %c0_i32_0 = arith.constant 0 : i32
    %c0_i32_1 = arith.constant 0 : i32
    return %c0_i32, %c0_i32_0 : i32, i32
  }
  func.func @transform_3(%arg0: i32) -> (i32, i32) {
    %c0_i32 = arith.constant 0 : i32
    %c0_i32_0 = arith.constant 0 : i32
    return %arg0, %c0_i32 : i32, i32
  }
}

</mosaic_0001>

<bundles_post_ra>
// kernel: my_model_forward.5
= control target key start
LH: loop header
LB: loop body
LE: loop exit
PB: predicated region body
PF: predicated region fallthrough
CT: control target
= control target key end

     0   :  { %vm716_vm0 = vcmask 261120   ;;  %vm1828_vm1 = vcmask 130048   ;;  %vm2029_vm2 = vcmask 123904   ;;  %vm3022_vm3 = vcmask 1040384   ;;  %s5820_s1 = inlined_call_operand.vmem [shape: bf16[32,16], index: 1, kind: input, shape index: {}]   ;;  %s5821_s0 = inlined_call_operand.vmem [shape: bf16[1568,32], index: 0, kind: input, shape index: {}]   ;;  %s5822_s2 = inlined_call_operand.vmem [shape: f32[1568,16], index: 2, kind: output, shape index: {0}]   ;;  %s5823_s3 = inlined_call_operand.vmem [shape: f32[2,16], index: 3, kind: output, shape index: {1}]  }
   0x1   :  { %v3538_v0 = vld [vmem:[%s5820_s1] sm:$0xff]   ;;  %v3539_v1 = vld [vmem:[%s5820_s1 + $0x8] sm:$0xff]   ;;  %v3542_v4 = vld [vmem:[%s5821_s0 + $0x10] sm:$0xff]  }
   0x2   :  { %3333 = vmatprep.subr.bf16.mxu0 %v3538_v0  ;;  %v3540_v2 = vld [vmem:[%s5821_s0] sm:$0xff]   ;;  %3533 = vmatprep.subr.bf16.mxu1 %v3538_v0  ;;  %v3541_v3 = vld [vmem:[%s5821_s0 + $0x8] sm:$0xff]   ;;  %v3543_v5 = vld [vmem:[%s5821_s0 + $0x18] sm:$0xff]  }
   0x3   :  { %3334 = vmatpush3.bf16.msra.mxu0 %v3538_v0  ;;  %3535 = vmatpush3.bf16.msra.mxu1 %v3538_v0  ;;  %v3544_v6 = vld [vmem:[%s5821_s0 + $0x20] sm:$0xff]   ;;  %v3545_v7 = vld [vmem:[%s5821_s0 + $0x28] sm:$0xff]   ;;  %v3546_v8 = vld [vmem:[%s5821_s0 + $0x30] sm:$0xff]  }
   0x4   :  { %3335 = vmatprep.subr.bf16.mxu0 %v3539_v1  ;;  %3337 = vmatprep.mubr.msk.bf16.mxu0 %vm716_vm0, %v3540_v2  ;;  %v3547_v9 = vld [vmem:[%s5821_s0 + $0x38] sm:$0xff]   ;;  %v3548_v10 = vld [vmem:[%s5821_s0 + $0x40] sm:$0xff]   ;;  %v3549_v11 = vld [vmem:[%s5821_s0 + $0x48] sm:$0xff]  }
   0x5   :  { %3534 = vmatprep.subr.bf16.mxu1 %v3539_v1  ;;  %v3550_v12 = vld [vmem:[%s5821_s0 + $0x50] sm:$0xff]   ;;  %v3551_v13 = vld [vmem:[%s5821_s0 + $0x58] sm:$0xff]   ;;  %v3552_v14 = vld [vmem:[%s5821_s0 + $0x60] sm:$0xff]  }
   0x6   :  { %v3553_v15 = vld [vmem:[%s5821_s0 + $0x68] sm:$0xff]   ;;  %v3554_v16 = vld [vmem:[%s5821_s0 + $0x70] sm:$0xff]   ;;  %v3555_v17 = vld [vmem:[%s5821_s0 + $0x78] sm:$0xff]  }
   0x7   :  { %3336 = vmatpush3.bf16.msra.mxu0 %v3539_v1  ;;  %3536 = vmatpush3.bf16.msra.mxu1 %v3539_v1  ;;  %v3556_v18 = vld [vmem:[%s5821_s0 + $0x80] sm:$0xff]   ;;  %v3557_v19 = vld [vmem:[%s5821_s0 + $0x88] sm:$0xff]   ;;  %v3558_v20 = vld [vmem:[%s5821_s0 + $0x90] sm:$0xff]  }
   0x8   :  { %v3590_v21 = vld [vmem:[%s5821_s0 + $0x190] sm:$0xff]   ;;  %v3591_v22 = vld [vmem:[%s5821_s0 + $0x198] sm:$0xff]   ;;  %v3592_v23 = vld [vmem:[%s5821_s0 + $0x1a0] sm:$0xff]  }
   0x9   :  { %v3559_v24 = vld [vmem:[%s5821_s0 + $0x98] sm:$0xff]   ;;  %3437 = vmatprep.mubr.msk.bf16.mxu1 %vm716_vm0, %v3590_v21  ;;  %v3560_v25 = vld [vmem:[%s5821_s0 + $0xa0] sm:$0xff]   ;;  %v3593_v26 = vld [vmem:[%s5821_s0 + $0x1a8] sm:$0xff]  }
   0xa   :  { %3338 = vmatmul.mubr.msk.bf16.vlgmr.msra.gmra.mrb[0].mxu0 %vm716_vm0, %v3541_v3  ;;  %3438 = vmatmul.mubr.msk.bf16.vlgmr.msra.gmra.mrb[0].mxu1 %vm716_vm0, %v3591_v22  ;;  %v3561_v27 = vld [vmem:[%s5821_s0 + $0xa8] sm:$0xff]   ;;  %v3562_v28 = vld [vmem:[%s5821_s0 + $0xb0] sm:$0xff]   ;;  %v3595_v30 = vld [vmem:[%s5821_s0 + $0x1b8] sm:$0xff]  }
   0xb   :  { %3341 = vmatprep.mubr.msk.bf16.mxu0 %vm716_vm0, %v3542_v4  ;;  %3441 = vmatprep.mubr.msk.bf16.mxu1 %vm716_vm0, %v3592_v23  ;;  %v3594_v29 = vld [vmem:[%s5821_s0 + $0x1b0] sm:$0xff]   ;;  %v3563_v31 = vld [vmem:[%s5821_s0 + $0xb8] sm:$0xff]   ;;  %v3564_v32 = vld [vmem:[%s5821_s0 + $0xc0] sm:$0xff]  }
   0xc   :  { %v3596_v33 = vld [vmem:[%s5821_s0 + $0x1c0] sm:$0xff]   ;;  %v3565_v34 = vld [vmem:[%s5821_s0 + $0xc8] sm:$0xff]   ;;  %v3566_v36 = vld [vmem:[%s5821_s0 + $0xd0] sm:$0xff]  }
   0xd   :  { %v3597_v35 = vld [vmem:[%s5821_s0 + $0x1c8] sm:$0xff]   ;;  %v3598_v37 = vld [vmem:[%s5821_s0 + $0x1d0] sm:$0xff]   ;;  %v3567_v38 = vld [vmem:[%s5821_s0 + $0xd8] sm:$0xff]  }
   0xe   :  { %v3599_v39 = vld [vmem:[%s5821_s0 + $0x1d8] sm:$0xff]   ;;  %v3568_v40 = vld [vmem:[%s5821_s0 + $0xe0] sm:$0xff]   ;;  %v3569_v42 = vld [vmem:[%s5821_s0 + $0xe8] sm:$0xff]  }
   0xf   :  { %v3600_v41 = vld [vmem:[%s5821_s0 + $0x1e0] sm:$0xff]   ;;  %v3601_v43 = vld [vmem:[%s5821_s0 + $0x1e8] sm:$0xff]   ;;  %v3570_v44 = vld [vmem:[%s5821_s0 + $0xf0] sm:$0xff]  }
  0x10   :  { %v3602_v45 = vld [vmem:[%s5821_s0 + $0x1f0] sm:$0xff]   ;;  %v3571_v46 = vld [vmem:[%s5821_s0 + $0xf8] sm:$0xff]   ;;  %v3572_v48 = vld [vmem:[%s5821_s0 + $0x100] sm:$0xff]  }
  0x11   :  { %v3603_v47 = vld [vmem:[%s5821_s0 + $0x1f8] sm:$0xff]   ;;  %v3604_v49 = vld [vmem:[%s5821_s0 + $0x200] sm:$0xff]   ;;  %v3573_v50 = vld [vmem:[%s5821_s0 + $0x108] sm:$0xff]  }
  0x12   :  { %3342 = vmatmul.mubr.msk.bf16.gmra.mrb[4].mxu0 %vm716_vm0, %v3543_v5  ;;  %3442 = vmatmul.mubr.msk.bf16.gmra.mrb[4].mxu1 %vm716_vm0, %v3593_v26  ;;  %v3605_v51 = vld [vmem:[%s5821_s0 + $0x208] sm:$0xff]   ;;  %v3574_v52 = vld [vmem:[%s5821_s0 + $0x110] sm:$0xff]   ;;  %v3575_v54 = vld [vmem:[%s5821_s0 + $0x118] sm:$0xff]  }
  0x13   :  { %3345 = vmatprep.mubr.msk.bf16.mxu0 %vm716_vm0, %v3544_v6  ;;  %3445 = vmatprep.mubr.msk.bf16.mxu1 %vm716_vm0, %v3594_v29  ;;  %v3606_v53 = vld [vmem:[%s5821_s0 + $0x210] sm:$0xff]   ;;  %v3607_v55 = vld [vmem:[%s5821_s0 + $0x218] sm:$0xff]   ;;  %v3576_v56 = vld [vmem:[%s5821_s0 + $0x120] sm:$0xff]  }
  0x14   :  { %v3608_v57 = vld [vmem:[%s5821_s0 + $0x220] sm:$0xff]   ;;  %v3577_v58 = vld [vmem:[%s5821_s0 + $0x128] sm:$0xff]   ;;  %v3578_v60 = vld [vmem:[%s5821_s0 + $0x130] sm:$0xff]  }
  0x15   :  { %v3609_v59 = vld [vmem:[%s5821_s0 + $0x228] sm:$0xff]   ;;  %v3610_v61 = vld [vmem:[%s5821_s0 + $0x230] sm:$0xff]   ;;  %v3579_v62 = vld [vmem:[%s5821_s0 + $0x138] sm:$0xff]  }
  0x16   :  { %v3611_v63 = vld [vmem:[%s5821_s0 + $0x238] sm:$0xff]   ;;  %v3580_v0 = vld [vmem:[%s5821_s0 + $0x140] sm:$0xff]   ;;  %v3581_v2 = vld [vmem:[%s5821_s0 + $0x148] sm:$0xff]  }
  0x17   :  { %v3612_v1 = vld [vmem:[%s5821_s0 + $0x240] sm:$0xff]   ;;  %v3613_v3 = vld [vmem:[%s5821_s0 + $0x248] sm:$0xff]   ;;  %v3582_v4 = vld [vmem:[%s5821_s0 + $0x150] sm:$0xff]  }
  0x18   :  { %v3614_v5 = vld [vmem:[%s5821_s0 + $0x250] sm:$0xff]   ;;  %v3583_v6 = vld [vmem:[%s5821_s0 + $0x158] sm:$0xff]   ;;  %v3624_v22 = vld [vmem:[%s5821_s0 + $0x2a0] sm:$0xff]  }
  0x19   :  { %v3623_v21 = vld [vmem:[%s5821_s0 + $0x298] sm:$0xff]   ;;  %v3625_v23 = vld [vmem:[%s5821_s0 + $0x2a8] sm:$0xff]  }
  0x1a   :  { %3346 = vmatmul.mubr.msk.bf16.gmra.mrb[8].mxu0 %vm716_vm0, %v3545_v7  ;;  %3446 = vmatmul.mubr.msk.bf16.gmra.mrb[8].mxu1 %vm716_vm0, %v3595_v30  ;;  %v3615_v7 = vld [vmem:[%s5821_s0 + $0x258] sm:$0xff]  }
  0x1b   :  { %3349 = vmatprep.mubr.msk.bf16.mxu0 %vm716_vm0, %v3546_v8  ;;  %3449 = vmatprep.mubr.msk.bf16.mxu1 %vm716_vm0, %v3596_v33  ;;  %v3584_v8 = vld [vmem:[%s5821_s0 + $0x160] sm:$0xff]  }
  0x22   :  { %3350 = vmatmul.mubr.msk.bf16.gmra.mrb[12].mxu0 %vm716_vm0, %v3547_v9  ;;  %3450 = vmatmul.mubr.msk.bf16.gmra.mrb[12].mxu1 %vm716_vm0, %v3597_v35  ;;  %v3616_v9 = vld [vmem:[%s5821_s0 + $0x260] sm:$0xff]  }
  0x23   :  { %3353 = vmatprep.mubr.msk.bf16.mxu0 %vm716_vm0, %v3548_v10  ;;  %3453 = vmatprep.mubr.msk.bf16.mxu1 %vm716_vm0, %v3598_v37  ;;  %v3585_v10 = vld [vmem:[%s5821_s0 + $0x168] sm:$0xff]  }
  0x2a   :  { %3354 = vmatmul.mubr.msk.bf16.gmra.mrb[16].mxu0 %vm716_vm0, %v3549_v11  ;;  %3454 = vmatmul.mubr.msk.bf16.gmra.mrb[16].mxu1 %vm716_vm0, %v3599_v39  ;;  %v3617_v11 = vld [vmem:[%s5821_s0 + $0x268] sm:$0xff]  }
  0x2b   :  { %3357 = vmatprep.mubr.msk.bf16.mxu0 %vm716_vm0, %v3550_v12  ;;  %3457 = vmatprep.mubr.msk.bf16.mxu1 %vm716_vm0, %v3600_v41  ;;  %v3586_v12 = vld [vmem:[%s5821_s0 + $0x170] sm:$0xff]  }
  0x32   :  { %3358 = vmatmul.mubr.msk.bf16.gmra.mrb[20].mxu0 %vm716_vm0, %v3551_v13  ;;  %3458 = vmatmul.mubr.msk.bf16.gmra.mrb[20].mxu1 %vm716_vm0, %v3601_v43  ;;  %v3618_v13 = vld [vmem:[%s5821_s0 + $0x270] sm:$0xff]  }
  0x33   :  { %3361 = vmatprep.mubr.msk.bf16.mxu0 %vm716_vm0, %v3552_v14  ;;  %3461 = vmatprep.mubr.msk.bf16.mxu1 %vm716_vm0, %v3602_v45  ;;  %v3587_v14 = vld [vmem:[%s5821_s0 + $0x178] sm:$0xff]   ;;  %v3628_v45 = vld [vmem:[%s5821_s0 + $0x2c0] sm:$0xff]  }
  0x3a   :  { %3362 = vmatmul.mubr.msk.bf16.gmra.mrb[24].mxu0 %vm716_vm0, %v3553_v15  ;;  %3462 = vmatmul.mubr.msk.bf16.gmra.mrb[24].mxu1 %vm716_vm0, %v3603_v47  ;;  %v3619_v15 = vld [vmem:[%s5821_s0 + $0x278] sm:$0xff]  }
  0x3b   :  { %3365 = vmatprep.mubr.msk.bf16.mxu0 %vm716_vm0, %v3554_v16  ;;  %3465 = vmatprep.mubr.msk.bf16.mxu1 %vm716_vm0, %v3604_v49  ;;  %v3588_v16 = vld [vmem:[%s5821_s0 + $0x180] sm:$0xff]   ;;  %v3629_v49 = vld [vmem:[%s5821_s0 + $0x2c8] sm:$0xff]  }
  0x42   :  { %3366 = vmatmul.mubr.msk.bf16.gmra.mrb[28].mxu0 %vm716_vm0, %v3555_v17  ;;  %3466 = vmatmul.mubr.msk.bf16.gmra.mrb[28].mxu1 %vm716_vm0, %v3605_v51  ;;  %v3620_v17 = vld [vmem:[%s5821_s0 + $0x280] sm:$0xff]  }
  0x43   :  { %3369 = vmatprep.mubr.msk.bf16.mxu0 %vm716_vm0, %v3556_v18  ;;  %3469 = vmatprep.mubr.msk.bf16.mxu1 %vm716_vm0, %v3606_v53  ;;  %v3589_v18 = vld [vmem:[%s5821_s0 + $0x188] sm:$0xff]  }
  0x4a   :  { %3370 = vmatmul.mubr.msk.bf16.gmra.mrb[32].mxu0 %vm716_vm0, %v3557_v19  ;;  %3470 = vmatmul.mubr.msk.bf16.gmra.mrb[32].mxu1 %vm716_vm0, %v3607_v55  ;;  %v3621_v19 = vld [vmem:[%s5821_s0 + $0x288] sm:$0xff]  }
  0x4b   :  { %3373 = vmatprep.mubr.msk.bf16.mxu0 %vm716_vm0, %v3558_v20  ;;  %3473 = vmatprep.mubr.msk.bf16.mxu1 %vm716_vm0, %v3608_v57  ;;  %v3622_v20 = vld [vmem:[%s5821_s0 + $0x290] sm:$0xff]  }
  0x52   :  { %3374 = vmatmul.mubr.msk.bf16.gmra.mrb[36].mxu0 %vm716_vm0, %v3559_v24  ;;  %3474 = vmatmul.mubr.msk.bf16.gmra.mrb[36].mxu1 %vm716_vm0, %v3609_v59 }
  0x53   :  { %3377 = vmatprep.mubr.msk.bf16.mxu0 %vm716_vm0, %v3560_v25  ;;  %3477 = vmatprep.mubr.msk.bf16.mxu1 %vm716_vm0, %v3610_v61  ;;  %v3626_v25 = vld [vmem:[%s5821_s0 + $0x2b0] sm:$0xff]  }
  0x5a   :  { %3378 = vmatmul.mubr.msk.bf16.gmra.mrb[40].mxu0 %vm716_vm0, %v3561_v27  ;;  %3478 = vmatmul.mubr.msk.bf16.gmra.mrb[40].mxu1 %vm716_vm0, %v3611_v63  ;;  %v3627_v27 = vld [vmem:[%s5821_s0 + $0x2b8] sm:$0xff]  }
  0x5b   :  { %3381 = vmatprep.mubr.msk.bf16.mxu0 %vm716_vm0, %v3562_v28  ;;  %3481 = vmatprep.mubr.msk.bf16.mxu1 %vm716_vm0, %v3612_v1 }
  0x62   :  { %3382 = vmatmul.mubr.msk.bf16.gmra.mrb[44].mxu0 %vm716_vm0, %v3563_v31  ;;  %3482 = vmatmul.mubr.msk.bf16.gmra.mrb[44].mxu1 %vm716_vm0, %v3613_v3 }
  0x63   :  { %3385 = vmatprep.mubr.msk.bf16.mxu0 %vm716_vm0, %v3564_v32  ;;  %3485 = vmatprep.mubr.msk.bf16.mxu1 %vm716_vm0, %v3614_v5 }
  0x6a   :  { %3386 = vmatmul.mubr.msk.bf16.gmra.mrb[48].mxu0 %vm716_vm0, %v3565_v34  ;;  %3486 = vmatmul.mubr.msk.bf16.gmra.mrb[48].mxu1 %vm716_vm0, %v3615_v7  ;;  %v3630_v7 = vld [vmem:[%s5821_s0 + $0x2d0] sm:$0xff]  }
  0x6b   :  { %3389 = vmatprep.mubr.msk.bf16.mxu0 %vm716_vm0, %v3566_v36  ;;  %3489 = vmatprep.mubr.msk.bf16.mxu1 %vm716_vm0, %v3616_v9 }
  0x72   :  { %3390 = vmatmul.mubr.msk.bf16.gmra.mrb[52].mxu0 %vm716_vm0, %v3567_v38  ;;  %3490 = vmatmul.mubr.msk.bf16.gmra.mrb[52].mxu1 %vm716_vm0, %v3617_v11  ;;  %v3631_v11 = vld [vmem:[%s5821_s0 + $0x2d8] sm:$0xff]  }
  0x73   :  { %3393 = vmatprep.mubr.msk.bf16.mxu0 %vm716_vm0, %v3568_v40  ;;  %3493 = vmatprep.mubr.msk.bf16.mxu1 %vm716_vm0, %v3618_v13 }
  0x7a   :  { %3394 = vmatmul.mubr.msk.bf16.gmra.mrb[56].mxu0 %vm716_vm0, %v3569_v42  ;;  %3494 = vmatmul.mubr.msk.bf16.gmra.mrb[56].mxu1 %vm716_vm0, %v3619_v15 }
  0x7b   :  { %3397 = vmatprep.mubr.msk.bf16.mxu0 %vm716_vm0, %v3570_v44  ;;  %3497 = vmatprep.mubr.msk.bf16.mxu1 %vm716_vm0, %v3620_v17 }
  0x82   :  { %3398 = vmatmul.mubr.msk.bf16.gmra.mrb[60].mxu0 %vm716_vm0, %v3571_v46  ;;  %3498 = vmatmul.mubr.msk.bf16.gmra.mrb[60].mxu1 %vm716_vm0, %v3621_v19 }
  0x83   :  { %3401 = vmatprep.mubr.msk.bf16.mxu0 %vm716_vm0, %v3572_v48  ;;  %3501 = vmatprep.mubr.msk.bf16.mxu1 %vm716_vm0, %v3622_v20 }
  0x8a   :  { %3402 = vmatmul.mubr.msk.bf16.gmra.mrb[64].mxu0 %vm716_vm0, %v3573_v50  ;;  %3502 = vmatmul.mubr.msk.bf16.gmra.mrb[64].mxu1 %vm716_vm0, %v3623_v21 }
  0x8b   :  { %3405 = vmatprep.mubr.msk.bf16.mxu0 %vm716_vm0, %v3574_v52  ;;  %3505 = vmatprep.mubr.msk.bf16.mxu1 %vm716_vm0, %v3624_v22 }
  0x92   :  { %3406 = vmatmul.mubr.msk.bf16.gmra.mrb[68].mxu0 %vm716_vm0, %v3575_v54  ;;  %3506 = vmatmul.mubr.msk.bf16.gmra.mrb[68].mxu1 %vm716_vm0, %v3625_v23 }
  0x93   :  { %3409 = vmatprep.mubr.msk.bf16.mxu0 %vm716_vm0, %v3576_v56  ;;  %3509 = vmatprep.mubr.msk.bf16.mxu1 %vm716_vm0, %v3626_v25 }
  0x9a   :  { %3410 = vmatmul.mubr.msk.bf16.gmra.mrb[72].mxu0 %vm716_vm0, %v3577_v58  ;;  %3510 = vmatmul.mubr.msk.bf16.gmra.mrb[72].mxu1 %vm716_vm0, %v3627_v27 }
  0x9b   :  { %3413 = vmatprep.mubr.msk.bf16.mxu0 %vm716_vm0, %v3578_v60  ;;  %3513 = vmatprep.mubr.msk.bf16.mxu1 %vm716_vm0, %v3628_v45 }
  0xa2   :  { %3414 = vmatmul.mubr.msk.bf16.gmra.mrb[76].mxu0 %vm716_vm0, %v3579_v62  ;;  %3514 = vmatmul.mubr.msk.bf16.gmra.mrb[76].mxu1 %vm716_vm0, %v3629_v49 }
  0xa3   :  { %3417 = vmatprep.mubr.msk.bf16.mxu0 %vm716_vm0, %v3580_v0  ;;  %3517 = vmatprep.mubr.msk.bf16.mxu1 %vm716_vm0, %v3630_v7 }
  0xaa   :  { %3418 = vmatmul.mubr.msk.bf16.gmra.mrb[80].mxu0 %vm716_vm0, %v3581_v2  ;;  %3518 = vmatmul.mubr.msk.bf16.gmra.mrb[80].mxu1 %vm716_vm0, %v3631_v11 }
  0xab   :  { %3421 = vmatprep.mubr.msk.bf16.mxu0 %vm716_vm0, %v3582_v4 }
  0xb2   :  { %3422 = vmatmul.mubr.msk.bf16.gmra.mrb[84].mxu0 %vm716_vm0, %v3583_v6 }
  0xb3   :  { %3425 = vmatprep.mubr.msk.bf16.mxu0 %vm716_vm0, %v3584_v8 }
  0xba   :  { %3426 = vmatmul.mubr.msk.bf16.gmra.mrb[88].mxu0 %vm716_vm0, %v3585_v10 }
  0xbb   :  { %3429 = vmatprep.mubr.msk.bf16.mxu0 %vm716_vm0, %v3586_v12 }
  0xc2   :  { %3430 = vmatmul.mubr.msk.bf16.gmra.mrb[92].mxu0 %vm716_vm0, %v3587_v14 }
  0xc3   :  { %3433 = vmatprep.mubr.msk.bf16.mxu0 %vm716_vm0, %v3588_v16 }
  0xca   :  { %3434 = vmatmul.mubr.msk.bf16.gmra.mrb[96].mxu0 %vm716_vm0, %v3589_v18 }
  0xdd   :  { %v3339_v24 = vpop.f32.mrb[0].mxu0 }
  0xde   :  { %1831 = vst.msk [vmem:[%s5822_s2 + $0x10] sm:$0xff] %vm1828_vm1, %v3339_v24  ;;  %v1045_v26 = vpop.f32.mrb[1].mxu0  ;;  %v2430_v31 = vmul.f32 %v3339_v24, %v3339_v24  ;;  %v2034_v36 = vsel %vm1828_vm1, %v3339_v24, 0.0 }
  0xdf   :  { %1829 = vst.msk [vmem:[%s5822_s2] sm:$0xff] %vm1828_vm1, %v1045_v26  ;;  %v2428_v28 = vmul.f32 %v1045_v26, %v1045_v26  ;;  %v3340_v29 = vpop.f32.mrb[2].mxu0  ;;  %v2031_v32 = vsel %vm1828_vm1, %v1045_v26, 0.0 }
  0xe0   :  { %1832 = vst.msk [vmem:[%s5822_s2 + $0x18] sm:$0xff] %vm1828_vm1, %v3340_v29  ;;  %v1048_v30 = vpop.f32.mrb[3].mxu0  ;;  %v2431_v38 = vmul.f32 %v3340_v29, %v3340_v29  ;;  %v2627_v42 = vsel %vm1828_vm1, %v2430_v31, 0.0  ;;  %v2036_v43 = vsel %vm1828_vm1, %v3340_v29, 0.0 }
  0xe1   :  { %1830 = vst.msk [vmem:[%s5822_s2 + $0x8] sm:$0xff] %vm1828_vm1, %v1048_v30  ;;  %v2032_v33 = vsel %vm1828_vm1, %v1048_v30, 0.0  ;;  %v2429_v34 = vmul.f32 %v1048_v30, %v1048_v30  ;;  %v2624_v37 = vsel %vm1828_vm1, %v2428_v28, 0.0 }
  0xe2   :  { %v2033_v35 = vadd.f32 %v2032_v33, %v2031_v32  ;;  %v2629_v50 = vsel %vm1828_vm1, %v2431_v38, 0.0  ;;  %v3632_v33 = vld [vmem:[%s5821_s0 + $0x2e0] sm:$0xff]  }
  0xe3   :  { %v2625_v39 = vsel %vm1828_vm1, %v2429_v34, 0.0  ;;  %3521 = vmatprep.mubr.msk.bf16.mxu1 %vm716_vm0, %v3632_v33 }
  0xe4   :  { %v2035_v40 = vadd.f32 %v2034_v36, %v2033_v35  ;;  %v2626_v41 = vadd.f32 %v2625_v39, %v2624_v37  ;;  %v3633_v37 = vld [vmem:[%s5821_s0 + $0x2e8] sm:$0xff]  }
  0xe5   :  { %v3343_v44 = vpop.f32.mrb[4].mxu0  ;;  %3522 = vmatmul.mubr.msk.bf16.gmra.mrb[84].mxu1 %vm716_vm0, %v3633_v37 }
  0xe6   :  { %v2037_v46 = vadd.f32 %v2036_v43, %v2035_v40  ;;  %v2628_v47 = vadd.f32 %v2627_v42, %v2626_v41  ;;  %1835 = vst.msk [vmem:[%s5822_s2 + $0x30] sm:$0xff] %vm1828_vm1, %v3343_v44  ;;  %v1061_v48 = vpop.f32.mrb[5].mxu0  ;;  %v2434_v57 = vmul.f32 %v3343_v44, %v3343_v44  ;;  %v2042_v63 = vsel %vm1828_vm1, %v3343_v44, 0.0 }
  0xe7   :  { %1833 = vst.msk [vmem:[%s5822_s2 + $0x20] sm:$0xff] %vm1828_vm1, %v1061_v48  ;;  %v2038_v51 = vsel %vm1828_vm1, %v1061_v48, 0.0  ;;  %v2432_v52 = vmul.f32 %v1061_v48, %v1061_v48  ;;  %v3344_v53 = vpop.f32.mrb[6].mxu0 }
  0xe8   :  { %v2630_v54 = vadd.f32 %v2629_v50, %v2628_v47  ;;  %v2039_v55 = vadd.f32 %v2038_v51, %v2037_v46  ;;  %1836 = vst.msk [vmem:[%s5822_s2 + $0x38] sm:$0xff] %vm1828_vm1, %v3344_v53  ;;  %v1064_v56 = vpop.f32.mrb[7].mxu0  ;;  %v2435_v0 = vmul.f32 %v3344_v53, %v3344_v53  ;;  %v2635_v4 = vsel %vm1828_vm1, %v2434_v57, 0.0 }
  0xe9   :  { %v2631_v58 = vsel %vm1828_vm1, %v2432_v52, 0.0  ;;  %1834 = vst.msk [vmem:[%s5822_s2 + $0x28] sm:$0xff] %vm1828_vm1, %v1064_v56  ;;  %v2040_v59 = vsel %vm1828_vm1, %v1064_v56, 0.0  ;;  %v2433_v60 = vmul.f32 %v1064_v56, %v1064_v56  ;;  %v2044_v5 = vsel %vm1828_vm1, %v3344_v53, 0.0 }
  0xea   :  { %v2632_v61 = vadd.f32 %v2631_v58, %v2630_v54  ;;  %v2041_v62 = vadd.f32 %v2040_v59, %v2039_v55  ;;  %v2637_v12 = vsel %vm1828_vm1, %v2435_v0, 0.0  ;;  %v3634_v59 = vld [vmem:[%s5821_s0 + $0x2f0] sm:$0xff]  }
  0xeb   :  { %v2633_v1 = vsel %vm1828_vm1, %v2433_v60, 0.0  ;;  %3525 = vmatprep.mubr.msk.bf16.mxu1 %vm716_vm0, %v3634_v59 }
  0xec   :  { %v2043_v2 = vadd.f32 %v2042_v63, %v2041_v62  ;;  %v2634_v3 = vadd.f32 %v2633_v1, %v2632_v61  ;;  %v3635_v63 = vld [vmem:[%s5821_s0 + $0x2f8] sm:$0xff]  }
  0xed   :  { %v3347_v6 = vpop.f32.mrb[8].mxu0  ;;  %3526 = vmatmul.mubr.msk.bf16.gmra.mrb[88].mxu1 %vm716_vm0, %v3635_v63 }
  0xee   :  { %v2045_v8 = vadd.f32 %v2044_v5, %v2043_v2  ;;  %v2636_v9 = vadd.f32 %v2635_v4, %v2634_v3  ;;  %1839 = vst.msk [vmem:[%s5822_s2 + $0x50] sm:$0xff] %vm1828_vm1, %v3347_v6  ;;  %v1077_v10 = vpop.f32.mrb[9].mxu0  ;;  %v2438_v19 = vmul.f32 %v3347_v6, %v3347_v6  ;;  %v2050_v25 = vsel %vm1828_vm1, %v3347_v6, 0.0 }
  0xef   :  { %1837 = vst.msk [vmem:[%s5822_s2 + $0x40] sm:$0xff] %vm1828_vm1, %v1077_v10  ;;  %v2046_v13 = vsel %vm1828_vm1, %v1077_v10, 0.0  ;;  %v2436_v14 = vmul.f32 %v1077_v10, %v1077_v10  ;;  %v3348_v15 = vpop.f32.mrb[10].mxu0 }
  0xf0   :  { %v2638_v16 = vadd.f32 %v2637_v12, %v2636_v9  ;;  %v2047_v17 = vadd.f32 %v2046_v13, %v2045_v8  ;;  %1840 = vst.msk [vmem:[%s5822_s2 + $0x58] sm:$0xff] %vm1828_vm1, %v3348_v15  ;;  %v1080_v18 = vpop.f32.mrb[11].mxu0  ;;  %v2439_v26 = vmul.f32 %v3348_v15, %v3348_v15  ;;  %v2643_v30 = vsel %vm1828_vm1, %v2438_v19, 0.0 }
  0xf1   :  { %v2639_v20 = vsel %vm1828_vm1, %v2436_v14, 0.0  ;;  %1838 = vst.msk [vmem:[%s5822_s2 + $0x48] sm:$0xff] %vm1828_vm1, %v1080_v18  ;;  %v2048_v21 = vsel %vm1828_vm1, %v1080_v18, 0.0  ;;  %v2437_v22 = vmul.f32 %v1080_v18, %v1080_v18  ;;  %v2052_v31 = vsel %vm1828_vm1, %v3348_v15, 0.0 }
  0xf2   :  { %v2640_v23 = vadd.f32 %v2639_v20, %v2638_v16  ;;  %v2049_v24 = vadd.f32 %v2048_v21, %v2047_v17  ;;  %v2645_v38 = vsel %vm1828_vm1, %v2439_v26, 0.0  ;;  %v3636_v21 = vld [vmem:[%s5821_s0 + $0x300] sm:$0xff]  }
  0xf3   :  { %v2641_v27 = vsel %vm1828_vm1, %v2437_v22, 0.0  ;;  %3529 = vmatprep.mubr.msk.bf16.mxu1 %vm716_vm0, %v3636_v21 }
  0xf4   :  { %v2051_v28 = vadd.f32 %v2050_v25, %v2049_v24  ;;  %v2642_v29 = vadd.f32 %v2641_v27, %v2640_v23  ;;  %v3637_v25 = vld [vmem:[%s5821_s0 + $0x308] sm:$0xff]  }
  0xf5   :  { %v3351_v32 = vpop.f32.mrb[12].mxu0  ;;  %3530 = vmatmul.mubr.msk.bf16.gmra.mrb[92].mxu1 %vm716_vm0, %v3637_v25 }
  0xf6   :  { %v2053_v34 = vadd.f32 %v2052_v31, %v2051_v28  ;;  %v2644_v35 = vadd.f32 %v2643_v30, %v2642_v29  ;;  %1843 = vst.msk [vmem:[%s5822_s2 + $0x70] sm:$0xff] %vm1828_vm1, %v3351_v32  ;;  %v1093_v36 = vpop.f32.mrb[13].mxu0  ;;  %v2442_v45 = vmul.f32 %v3351_v32, %v3351_v32  ;;  %v2058_v51 = vsel %vm1828_vm1, %v3351_v32, 0.0 }
  0xf7   :  { %1841 = vst.msk [vmem:[%s5822_s2 + $0x60] sm:$0xff] %vm1828_vm1, %v1093_v36  ;;  %v2054_v39 = vsel %vm1828_vm1, %v1093_v36, 0.0  ;;  %v2440_v40 = vmul.f32 %v1093_v36, %v1093_v36  ;;  %v3352_v41 = vpop.f32.mrb[14].mxu0 }
  0xf8   :  { %v2646_v42 = vadd.f32 %v2645_v38, %v2644_v35  ;;  %v2055_v43 = vadd.f32 %v2054_v39, %v2053_v34  ;;  %1844 = vst.msk [vmem:[%s5822_s2 + $0x78] sm:$0xff] %vm1828_vm1, %v3352_v41  ;;  %v1096_v44 = vpop.f32.mrb[15].mxu0  ;;  %v2443_v52 = vmul.f32 %v3352_v41, %v3352_v41  ;;  %v2651_v56 = vsel %vm1828_vm1, %v2442_v45, 0.0 }
  0xf9   :  { %v2647_v46 = vsel %vm1828_vm1, %v2440_v40, 0.0  ;;  %1842 = vst.msk [vmem:[%s5822_s2 + $0x68] sm:$0xff] %vm1828_vm1, %v1096_v44  ;;  %v2056_v47 = vsel %vm1828_vm1, %v1096_v44, 0.0  ;;  %v2441_v48 = vmul.f32 %v1096_v44, %v1096_v44  ;;  %v2060_v57 = vsel %vm1828_vm1, %v3352_v41, 0.0 }
  0xfa   :  { %v2648_v49 = vadd.f32 %v2647_v46, %v2646_v42  ;;  %v2057_v50 = vadd.f32 %v2056_v47, %v2055_v43  ;;  %v2653_v0 = vsel %vm1828_vm1, %v2443_v52, 0.0 }
  0xfb   :  { %v2649_v53 = vsel %vm1828_vm1, %v2441_v48, 0.0 }
  0xfc   :  { %v2059_v54 = vadd.f32 %v2058_v51, %v2057_v50  ;;  %v2650_v55 = vadd.f32 %v2649_v53, %v2648_v49 }
  0xfd   :  { %v3355_v58 = vpop.f32.mrb[16].mxu0 }
  0xfe   :  { %v2061_v60 = vadd.f32 %v2060_v57, %v2059_v54  ;;  %v2652_v61 = vadd.f32 %v2651_v56, %v2650_v55  ;;  %1847 = vst.msk [vmem:[%s5822_s2 + $0x90] sm:$0xff] %vm1828_vm1, %v3355_v58  ;;  %v1109_v62 = vpop.f32.mrb[17].mxu0  ;;  %v2446_v7 = vmul.f32 %v3355_v58, %v3355_v58  ;;  %v2066_v13 = vsel %vm1828_vm1, %v3355_v58, 0.0 }
  0xff   :  { %1845 = vst.msk [vmem:[%s5822_s2 + $0x80] sm:$0xff] %vm1828_vm1, %v1109_v62  ;;  %v2062_v1 = vsel %vm1828_vm1, %v1109_v62, 0.0  ;;  %v2444_v2 = vmul.f32 %v1109_v62, %v1109_v62  ;;  %v3356_v3 = vpop.f32.mrb[18].mxu0 }
 0x100   :  { %v2654_v4 = vadd.f32 %v2653_v0, %v2652_v61  ;;  %v2063_v5 = vadd.f32 %v2062_v1, %v2061_v60  ;;  %1848 = vst.msk [vmem:[%s5822_s2 + $0x98] sm:$0xff] %vm1828_vm1, %v3356_v3  ;;  %v1112_v6 = vpop.f32.mrb[19].mxu0  ;;  %v2447_v14 = vmul.f32 %v3356_v3, %v3356_v3  ;;  %v2659_v18 = vsel %vm1828_vm1, %v2446_v7, 0.0 }
 0x101   :  { %v2655_v8 = vsel %vm1828_vm1, %v2444_v2, 0.0  ;;  %1846 = vst.msk [vmem:[%s5822_s2 + $0x88] sm:$0xff] %vm1828_vm1, %v1112_v6  ;;  %v2064_v9 = vsel %vm1828_vm1, %v1112_v6, 0.0  ;;  %v2445_v10 = vmul.f32 %v1112_v6, %v1112_v6  ;;  %v2068_v19 = vsel %vm1828_vm1, %v3356_v3, 0.0 }
 0x102   :  { %v2656_v11 = vadd.f32 %v2655_v8, %v2654_v4  ;;  %v2065_v12 = vadd.f32 %v2064_v9, %v2063_v5  ;;  %v2661_v26 = vsel %vm1828_vm1, %v2447_v14, 0.0 }
 0x103   :  { %v2657_v15 = vsel %vm1828_vm1, %v2445_v10, 0.0 }
 0x104   :  { %v2067_v16 = vadd.f32 %v2066_v13, %v2065_v12  ;;  %v2658_v17 = vadd.f32 %v2657_v15, %v2656_v11 }
 0x105   :  { %v3359_v20 = vpop.f32.mrb[20].mxu0 }
 0x106   :  { %v2069_v22 = vadd.f32 %v2068_v19, %v2067_v16  ;;  %v2660_v23 = vadd.f32 %v2659_v18, %v2658_v17  ;;  %1851 = vst.msk [vmem:[%s5822_s2 + $0xb0] sm:$0xff] %vm1828_vm1, %v3359_v20  ;;  %v1125_v24 = vpop.f32.mrb[21].mxu0  ;;  %v2450_v33 = vmul.f32 %v3359_v20, %v3359_v20  ;;  %v2074_v39 = vsel %vm1828_vm1, %v3359_v20, 0.0 }
 0x107   :  { %1849 = vst.msk [vmem:[%s5822_s2 + $0xa0] sm:$0xff] %vm1828_vm1, %v1125_v24  ;;  %v2070_v27 = vsel %vm1828_vm1, %v1125_v24, 0.0  ;;  %v2448_v28 = vmul.f32 %v1125_v24, %v1125_v24  ;;  %v3360_v29 = vpop.f32.mrb[22].mxu0 }
 0x108   :  { %v2662_v30 = vadd.f32 %v2661_v26, %v2660_v23  ;;  %v2071_v31 = vadd.f32 %v2070_v27, %v2069_v22  ;;  %1852 = vst.msk [vmem:[%s5822_s2 + $0xb8] sm:$0xff] %vm1828_vm1, %v3360_v29  ;;  %v1128_v32 = vpop.f32.mrb[23].mxu0  ;;  %v2451_v40 = vmul.f32 %v3360_v29, %v3360_v29  ;;  %v2667_v44 = vsel %vm1828_vm1, %v2450_v33, 0.0 }
 0x109   :  { %v2663_v34 = vsel %vm1828_vm1, %v2448_v28, 0.0  ;;  %1850 = vst.msk [vmem:[%s5822_s2 + $0xa8] sm:$0xff] %vm1828_vm1, %v1128_v32  ;;  %v2072_v35 = vsel %vm1828_vm1, %v1128_v32, 0.0  ;;  %v2449_v36 = vmul.f32 %v1128_v32, %v1128_v32  ;;  %v2076_v45 = vsel %vm1828_vm1, %v3360_v29, 0.0 }
 0x10a   :  { %v2664_v37 = vadd.f32 %v2663_v34, %v2662_v30  ;;  %v2073_v38 = vadd.f32 %v2072_v35, %v2071_v31  ;;  %v2669_v50 = vsel %vm1828_vm1, %v2451_v40, 0.0 }
 0x10b   :  { %v2665_v41 = vsel %vm1828_vm1, %v2449_v36, 0.0 }
 0x10c   :  { %v2075_v42 = vadd.f32 %v2074_v39, %v2073_v38  ;;  %v2666_v43 = vadd.f32 %v2665_v41, %v2664_v37 }
 0x10d   :  { %v3363_v46 = vpop.f32.mrb[24].mxu0 }
 0x10e   :  { %v2077_v47 = vadd.f32 %v2076_v45, %v2075_v42  ;;  %v2668_v48 = vadd.f32 %v2667_v44, %v2666_v43  ;;  %1855 = vst.msk [vmem:[%s5822_s2 + $0xd0] sm:$0xff] %vm1828_vm1, %v3363_v46  ;;  %v1141_v49 = vpop.f32.mrb[25].mxu0  ;;  %v2454_v57 = vmul.f32 %v3363_v46, %v3363_v46  ;;  %v2082_v63 = vsel %vm1828_vm1, %v3363_v46, 0.0 }
 0x10f   :  { %1853 = vst.msk [vmem:[%s5822_s2 + $0xc0] sm:$0xff] %vm1828_vm1, %v1141_v49  ;;  %v2078_v51 = vsel %vm1828_vm1, %v1141_v49, 0.0  ;;  %v2452_v52 = vmul.f32 %v1141_v49, %v1141_v49  ;;  %v3364_v53 = vpop.f32.mrb[26].mxu0 }
 0x110   :  { %v2670_v54 = vadd.f32 %v2669_v50, %v2668_v48  ;;  %v2079_v55 = vadd.f32 %v2078_v51, %v2077_v47  ;;  %1856 = vst.msk [vmem:[%s5822_s2 + $0xd8] sm:$0xff] %vm1828_vm1, %v3364_v53  ;;  %v1144_v56 = vpop.f32.mrb[27].mxu0  ;;  %v2455_v0 = vmul.f32 %v3364_v53, %v3364_v53  ;;  %v2675_v4 = vsel %vm1828_vm1, %v2454_v57, 0.0  ;;  %v4270_v50 = vpop.f32.mrb[0].mxu1 }
 0x111   :  { %v2671_v58 = vsel %vm1828_vm1, %v2452_v52, 0.0  ;;  %1854 = vst.msk [vmem:[%s5822_s2 + $0xc8] sm:$0xff] %vm1828_vm1, %v1144_v56  ;;  %v2080_v59 = vsel %vm1828_vm1, %v1144_v56, 0.0  ;;  %v2453_v60 = vmul.f32 %v1144_v56, %v1144_v56  ;;  %v2084_v5 = vsel %vm1828_vm1, %v3364_v53, 0.0  ;;  %1931 = vst.msk [vmem:[%s5822_s2 + $0x330] sm:$0xff] %vm1828_vm1, %v4270_v50  ;;  %v4277_v53 = vpop.f32.mrb[1].mxu1 }
 0x112   :  { %v2672_v61 = vadd.f32 %v2671_v58, %v2670_v54  ;;  %v2081_v62 = vadd.f32 %v2080_v59, %v2079_v55  ;;  %v2677_v10 = vsel %vm1828_vm1, %v2455_v0, 0.0  ;;  %1929 = vst.msk [vmem:[%s5822_s2 + $0x320] sm:$0xff] %vm1828_vm1, %v4277_v53  ;;  %v4286_v57 = vpop.f32.mrb[2].mxu1 }
 0x113   :  { %v2673_v1 = vsel %vm1828_vm1, %v2453_v60, 0.0  ;;  %1932 = vst.msk [vmem:[%s5822_s2 + $0x338] sm:$0xff] %vm1828_vm1, %v4286_v57 }
 0x114   :  { %v2083_v2 = vadd.f32 %v2082_v63, %v2081_v62  ;;  %v2674_v3 = vadd.f32 %v2673_v1, %v2672_v61  ;;  %v4297_v61 = vpop.f32.mrb[3].mxu1 }
 0x115   :  { %v3367_v6 = vpop.f32.mrb[28].mxu0  ;;  %1930 = vst.msk [vmem:[%s5822_s2 + $0x328] sm:$0xff] %vm1828_vm1, %v4297_v61 }
 0x116   :  { %v2085_v7 = vadd.f32 %v2084_v5, %v2083_v2  ;;  %v2676_v8 = vadd.f32 %v2675_v4, %v2674_v3  ;;  %1859 = vst.msk [vmem:[%s5822_s2 + $0xf0] sm:$0xff] %vm1828_vm1, %v3367_v6  ;;  %v1157_v9 = vpop.f32.mrb[29].mxu0  ;;  %v2458_v17 = vmul.f32 %v3367_v6, %v3367_v6  ;;  %v2090_v23 = vsel %vm1828_vm1, %v3367_v6, 0.0 }
 0x117   :  { %1857 = vst.msk [vmem:[%s5822_s2 + $0xe0] sm:$0xff] %vm1828_vm1, %v1157_v9  ;;  %v2086_v11 = vsel %vm1828_vm1, %v1157_v9, 0.0  ;;  %v2456_v12 = vmul.f32 %v1157_v9, %v1157_v9  ;;  %v3368_v13 = vpop.f32.mrb[30].mxu0 }
 0x118   :  { %v2678_v14 = vadd.f32 %v2677_v10, %v2676_v8  ;;  %v2087_v15 = vadd.f32 %v2086_v11, %v2085_v7  ;;  %1860 = vst.msk [vmem:[%s5822_s2 + $0xf8] sm:$0xff] %vm1828_vm1, %v3368_v13  ;;  %v1160_v16 = vpop.f32.mrb[31].mxu0  ;;  %v2459_v24 = vmul.f32 %v3368_v13, %v3368_v13  ;;  %v2683_v28 = vsel %vm1828_vm1, %v2458_v17, 0.0 }
 0x119   :  { %v2679_v18 = vsel %vm1828_vm1, %v2456_v12, 0.0  ;;  %1858 = vst.msk [vmem:[%s5822_s2 + $0xe8] sm:$0xff] %vm1828_vm1, %v1160_v16  ;;  %v2088_v19 = vsel %vm1828_vm1, %v1160_v16, 0.0  ;;  %v2457_v20 = vmul.f32 %v1160_v16, %v1160_v16  ;;  %v2092_v29 = vsel %vm1828_vm1, %v3368_v13, 0.0 }
 0x11a   :  { %v2680_v21 = vadd.f32 %v2679_v18, %v2678_v14  ;;  %v2089_v22 = vadd.f32 %v2088_v19, %v2087_v15  ;;  %v2685_v34 = vsel %vm1828_vm1, %v2459_v24, 0.0  ;;  %v4322_v14 = vpop.f32.mrb[4].mxu1 }
 0x11b   :  { %v2681_v25 = vsel %vm1828_vm1, %v2457_v20, 0.0  ;;  %1935 = vst.msk [vmem:[%s5822_s2 + $0x350] sm:$0xff] %vm1828_vm1, %v4322_v14  ;;  %v4329_v17 = vpop.f32.mrb[5].mxu1 }
 0x11c   :  { %v2091_v26 = vadd.f32 %v2090_v23, %v2089_v22  ;;  %v2682_v27 = vadd.f32 %v2681_v25, %v2680_v21  ;;  %1933 = vst.msk [vmem:[%s5822_s2 + $0x340] sm:$0xff] %vm1828_vm1, %v4329_v17  ;;  %v4338_v21 = vpop.f32.mrb[6].mxu1 }
 0x11d   :  { %v3371_v30 = vpop.f32.mrb[32].mxu0  ;;  %1936 = vst.msk [vmem:[%s5822_s2 + $0x358] sm:$0xff] %vm1828_vm1, %v4338_v21  ;;  %v4349_v25 = vpop.f32.mrb[7].mxu1 }
 0x11e   :  { %v2093_v31 = vadd.f32 %v2092_v29, %v2091_v26  ;;  %v2684_v32 = vadd.f32 %v2683_v28, %v2682_v27  ;;  %1863 = vst.msk [vmem:[%s5822_s2 + $0x110] sm:$0xff] %vm1828_vm1, %v3371_v30  ;;  %v1173_v33 = vpop.f32.mrb[33].mxu0  ;;  %v2462_v41 = vmul.f32 %v3371_v30, %v3371_v30  ;;  %v2098_v47 = vsel %vm1828_vm1, %v3371_v30, 0.0  ;;  %1934 = vst.msk [vmem:[%s5822_s2 + $0x348] sm:$0xff] %vm1828_vm1, %v4349_v25 }
 0x11f   :  { %1861 = vst.msk [vmem:[%s5822_s2 + $0x100] sm:$0xff] %vm1828_vm1, %v1173_v33  ;;  %v2094_v35 = vsel %vm1828_vm1, %v1173_v33, 0.0  ;;  %v2460_v36 = vmul.f32 %v1173_v33, %v1173_v33  ;;  %v3372_v37 = vpop.f32.mrb[34].mxu0 }
 0x120   :  { %v2686_v38 = vadd.f32 %v2685_v34, %v2684_v32  ;;  %v2095_v39 = vadd.f32 %v2094_v35, %v2093_v31  ;;  %1864 = vst.msk [vmem:[%s5822_s2 + $0x118] sm:$0xff] %vm1828_vm1, %v3372_v37  ;;  %v1176_v40 = vpop.f32.mrb[35].mxu0  ;;  %v2463_v48 = vmul.f32 %v3372_v37, %v3372_v37  ;;  %v2691_v54 = vsel %vm1828_vm1, %v2462_v41, 0.0 }
 0x121   :  { %v2687_v42 = vsel %vm1828_vm1, %v2460_v36, 0.0  ;;  %1862 = vst.msk [vmem:[%s5822_s2 + $0x108] sm:$0xff] %vm1828_vm1, %v1176_v40  ;;  %v2096_v43 = vsel %vm1828_vm1, %v1176_v40, 0.0  ;;  %v2461_v44 = vmul.f32 %v1176_v40, %v1176_v40  ;;  %v2100_v55 = vsel %vm1828_vm1, %v3372_v37, 0.0 }
 0x122   :  { %v2688_v45 = vadd.f32 %v2687_v42, %v2686_v38  ;;  %v2097_v46 = vadd.f32 %v2096_v43, %v2095_v39  ;;  %v2693_v62 = vsel %vm1828_vm1, %v2463_v48, 0.0  ;;  %v4374_v42 = vpop.f32.mrb[8].mxu1 }
 0x123   :  { %v2689_v49 = vsel %vm1828_vm1, %v2461_v44, 0.0  ;;  %1939 = vst.msk [vmem:[%s5822_s2 + $0x370] sm:$0xff] %vm1828_vm1, %v4374_v42 }
 0x124   :  { %v2099_v51 = vadd.f32 %v2098_v47, %v2097_v46  ;;  %v2690_v52 = vadd.f32 %v2689_v49, %v2688_v45  ;;  %v4381_v45 = vpop.f32.mrb[9].mxu1 }
 0x125   :  { %v3375_v56 = vpop.f32.mrb[36].mxu0  ;;  %1937 = vst.msk [vmem:[%s5822_s2 + $0x360] sm:$0xff] %vm1828_vm1, %v4381_v45  ;;  %v4390_v49 = vpop.f32.mrb[10].mxu1 }
 0x126   :  { %v2101_v58 = vadd.f32 %v2100_v55, %v2099_v51  ;;  %v2692_v59 = vadd.f32 %v2691_v54, %v2690_v52  ;;  %1867 = vst.msk [vmem:[%s5822_s2 + $0x130] sm:$0xff] %vm1828_vm1, %v3375_v56  ;;  %v1189_v60 = vpop.f32.mrb[37].mxu0  ;;  %v2466_v5 = vmul.f32 %v3375_v56, %v3375_v56  ;;  %v2106_v11 = vsel %vm1828_vm1, %v3375_v56, 0.0  ;;  %1940 = vst.msk [vmem:[%s5822_s2 + $0x378] sm:$0xff] %vm1828_vm1, %v4390_v49  ;;  %v4401_v55 = vpop.f32.mrb[11].mxu1 }
 0x127   :  { %1865 = vst.msk [vmem:[%s5822_s2 + $0x120] sm:$0xff] %vm1828_vm1, %v1189_v60  ;;  %v2102_v63 = vsel %vm1828_vm1, %v1189_v60, 0.0  ;;  %v2464_v0 = vmul.f32 %v1189_v60, %v1189_v60  ;;  %v3376_v1 = vpop.f32.mrb[38].mxu0  ;;  %1938 = vst.msk [vmem:[%s5822_s2 + $0x368] sm:$0xff] %vm1828_vm1, %v4401_v55 }
 0x128   :  { %v2694_v2 = vadd.f32 %v2693_v62, %v2692_v59  ;;  %v2103_v3 = vadd.f32 %v2102_v63, %v2101_v58  ;;  %1868 = vst.msk [vmem:[%s5822_s2 + $0x138] sm:$0xff] %vm1828_vm1, %v3376_v1  ;;  %v1192_v4 = vpop.f32.mrb[39].mxu0  ;;  %v2467_v12 = vmul.f32 %v3376_v1, %v3376_v1  ;;  %v2699_v18 = vsel %vm1828_vm1, %v2466_v5, 0.0 }
 0x129   :  { %v2695_v6 = vsel %vm1828_vm1, %v2464_v0, 0.0  ;;  %1866 = vst.msk [vmem:[%s5822_s2 + $0x128] sm:$0xff] %vm1828_vm1, %v1192_v4  ;;  %v2104_v7 = vsel %vm1828_vm1, %v1192_v4, 0.0  ;;  %v2465_v8 = vmul.f32 %v1192_v4, %v1192_v4  ;;  %v2108_v19 = vsel %vm1828_vm1, %v3376_v1, 0.0 }
 0x12a   :  { %v2696_v9 = vadd.f32 %v2695_v6, %v2694_v2  ;;  %v2105_v10 = vadd.f32 %v2104_v7, %v2103_v3  ;;  %v2701_v26 = vsel %vm1828_vm1, %v2467_v12, 0.0 }
 0x12b   :  { %v2697_v13 = vsel %vm1828_vm1, %v2465_v8, 0.0 }
 0x12c   :  { %v2107_v15 = vadd.f32 %v2106_v11, %v2105_v10  ;;  %v2698_v16 = vadd.f32 %v2697_v13, %v2696_v9  ;;  %v4426_v10 = vpop.f32.mrb[12].mxu1 }
 0x12d   :  { %v3379_v20 = vpop.f32.mrb[40].mxu0  ;;  %1943 = vst.msk [vmem:[%s5822_s2 + $0x390] sm:$0xff] %vm1828_vm1, %v4426_v10  ;;  %v4433_v13 = vpop.f32.mrb[13].mxu1 }
 0x12e   :  { %v2700_v22 = vadd.f32 %v2699_v18, %v2698_v16  ;;  %1871 = vst.msk [vmem:[%s5822_s2 + $0x150] sm:$0xff] %vm1828_vm1, %v3379_v20  ;;  %v1205_v23 = vpop.f32.mrb[41].mxu0  ;;  %v2109_v24 = vadd.f32 %v2108_v19, %v2107_v15  ;;  %v2470_v33 = vmul.f32 %v3379_v20, %v3379_v20  ;;  %v2114_v39 = vsel %vm1828_vm1, %v3379_v20, 0.0  ;;  %1941 = vst.msk [vmem:[%s5822_s2 + $0x380] sm:$0xff] %vm1828_vm1, %v4433_v13  ;;  %v4442_v19 = vpop.f32.mrb[14].mxu1 }
 0x12f   :  { %1869 = vst.msk [vmem:[%s5822_s2 + $0x140] sm:$0xff] %vm1828_vm1, %v1205_v23  ;;  %v2110_v27 = vsel %vm1828_vm1, %v1205_v23, 0.0  ;;  %v2468_v28 = vmul.f32 %v1205_v23, %v1205_v23  ;;  %v3380_v29 = vpop.f32.mrb[42].mxu0  ;;  %1944 = vst.msk [vmem:[%s5822_s2 + $0x398] sm:$0xff] %vm1828_vm1, %v4442_v19 }
 0x130   :  { %v2111_v30 = vadd.f32 %v2110_v27, %v2109_v24  ;;  %v2702_v31 = vadd.f32 %v2701_v26, %v2700_v22  ;;  %1872 = vst.msk [vmem:[%s5822_s2 + $0x158] sm:$0xff] %vm1828_vm1, %v3380_v29  ;;  %v1208_v32 = vpop.f32.mrb[43].mxu0  ;;  %v2471_v40 = vmul.f32 %v3380_v29, %v3380_v29  ;;  %v2707_v46 = vsel %vm1828_vm1, %v2470_v33, 0.0  ;;  %v4453_v24 = vpop.f32.mrb[15].mxu1 }
 0x131   :  { %v2703_v34 = vsel %vm1828_vm1, %v2468_v28, 0.0  ;;  %1870 = vst.msk [vmem:[%s5822_s2 + $0x148] sm:$0xff] %vm1828_vm1, %v1208_v32  ;;  %v2112_v35 = vsel %vm1828_vm1, %v1208_v32, 0.0  ;;  %v2469_v36 = vmul.f32 %v1208_v32, %v1208_v32  ;;  %v2116_v47 = vsel %vm1828_vm1, %v3380_v29, 0.0  ;;  %1942 = vst.msk [vmem:[%s5822_s2 + $0x388] sm:$0xff] %vm1828_vm1, %v4453_v24 }
 0x132   :  { %v2704_v37 = vadd.f32 %v2703_v34, %v2702_v31  ;;  %v2113_v38 = vadd.f32 %v2112_v35, %v2111_v30  ;;  %v2709_v56 = vsel %vm1828_vm1, %v2471_v40, 0.0 }
 0x133   :  { %v2705_v41 = vsel %vm1828_vm1, %v2469_v36, 0.0 }
 0x134   :  { %v2115_v43 = vadd.f32 %v2114_v39, %v2113_v38  ;;  %v2706_v44 = vadd.f32 %v2705_v41, %v2704_v37 }
 0x135   :  { %v3383_v48 = vpop.f32.mrb[44].mxu0 }
 0x136   :  { %v2708_v51 = vadd.f32 %v2707_v46, %v2706_v44  ;;  %1875 = vst.msk [vmem:[%s5822_s2 + $0x170] sm:$0xff] %vm1828_vm1, %v3383_v48  ;;  %v1221_v52 = vpop.f32.mrb[45].mxu0  ;;  %v2117_v54 = vadd.f32 %v2116_v47, %v2115_v43  ;;  %v2474_v1 = vmul.f32 %v3383_v48, %v3383_v48  ;;  %v2122_v7 = vsel %vm1828_vm1, %v3383_v48, 0.0  ;;  %v4478_v43 = vpop.f32.mrb[16].mxu1 }
 0x137   :  { %1873 = vst.msk [vmem:[%s5822_s2 + $0x160] sm:$0xff] %vm1828_vm1, %v1221_v52  ;;  %v2118_v58 = vsel %vm1828_vm1, %v1221_v52, 0.0  ;;  %v2472_v59 = vmul.f32 %v1221_v52, %v1221_v52  ;;  %v3384_v60 = vpop.f32.mrb[46].mxu0  ;;  %1947 = vst.msk [vmem:[%s5822_s2 + $0x3b0] sm:$0xff] %vm1828_vm1, %v4478_v43  ;;  %v4485_v47 = vpop.f32.mrb[17].mxu1 }
 0x138   :  { %v2119_v62 = vadd.f32 %v2118_v58, %v2117_v54  ;;  %v2710_v63 = vadd.f32 %v2709_v56, %v2708_v51  ;;  %1876 = vst.msk [vmem:[%s5822_s2 + $0x178] sm:$0xff] %vm1828_vm1, %v3384_v60  ;;  %v1224_v0 = vpop.f32.mrb[47].mxu0  ;;  %v2475_v8 = vmul.f32 %v3384_v60, %v3384_v60  ;;  %v2715_v15 = vsel %vm1828_vm1, %v2474_v1, 0.0  ;;  %1945 = vst.msk [vmem:[%s5822_s2 + $0x3a0] sm:$0xff] %vm1828_vm1, %v4485_v47  ;;  %v4494_v54 = vpop.f32.mrb[18].mxu1 }
 0x139   :  { %v2711_v2 = vsel %vm1828_vm1, %v2472_v59, 0.0  ;;  %1874 = vst.msk [vmem:[%s5822_s2 + $0x168] sm:$0xff] %vm1828_vm1, %v1224_v0  ;;  %v2120_v3 = vsel %vm1828_vm1, %v1224_v0, 0.0  ;;  %v2473_v4 = vmul.f32 %v1224_v0, %v1224_v0  ;;  %v2124_v16 = vsel %vm1828_vm1, %v3384_v60, 0.0  ;;  %1948 = vst.msk [vmem:[%s5822_s2 + $0x3b8] sm:$0xff] %vm1828_vm1, %v4494_v54  ;;  %v4505_v60 = vpop.f32.mrb[19].mxu1 }
 0x13a   :  { %v2712_v5 = vadd.f32 %v2711_v2, %v2710_v63  ;;  %v2121_v6 = vadd.f32 %v2120_v3, %v2119_v62  ;;  %v2717_v26 = vsel %vm1828_vm1, %v2475_v8, 0.0  ;;  %1946 = vst.msk [vmem:[%s5822_s2 + $0x3a8] sm:$0xff] %vm1828_vm1, %v4505_v60 }
 0x13b   :  { %v2713_v9 = vsel %vm1828_vm1, %v2473_v4, 0.0 }
 0x13c   :  { %v2123_v11 = vadd.f32 %v2122_v7, %v2121_v6  ;;  %v2714_v12 = vadd.f32 %v2713_v9, %v2712_v5 }
 0x13d   :  { %v3387_v18 = vpop.f32.mrb[48].mxu0 }
 0x13e   :  { %v2716_v20 = vadd.f32 %v2715_v15, %v2714_v12  ;;  %1879 = vst.msk [vmem:[%s5822_s2 + $0x190] sm:$0xff] %vm1828_vm1, %v3387_v18  ;;  %v1237_v22 = vpop.f32.mrb[49].mxu0  ;;  %v2125_v23 = vadd.f32 %v2124_v16, %v2123_v11  ;;  %v2478_v33 = vmul.f32 %v3387_v18, %v3387_v18  ;;  %v2130_v39 = vsel %vm1828_vm1, %v3387_v18, 0.0  ;;  %v4530_v18 = vpop.f32.mrb[20].mxu1 }
 0x13f   :  { %1877 = vst.msk [vmem:[%s5822_s2 + $0x180] sm:$0xff] %vm1828_vm1, %v1237_v22  ;;  %v2126_v27 = vsel %vm1828_vm1, %v1237_v22, 0.0  ;;  %v2476_v28 = vmul.f32 %v1237_v22, %v1237_v22  ;;  %v3388_v29 = vpop.f32.mrb[50].mxu0  ;;  %1951 = vst.msk [vmem:[%s5822_s2 + $0x3d0] sm:$0xff] %vm1828_vm1, %v4530_v18 }
 0x140   :  { %v2127_v30 = vadd.f32 %v2126_v27, %v2125_v23  ;;  %v2718_v31 = vadd.f32 %v2717_v26, %v2716_v20  ;;  %1880 = vst.msk [vmem:[%s5822_s2 + $0x198] sm:$0xff] %vm1828_vm1, %v3388_v29  ;;  %v1240_v32 = vpop.f32.mrb[51].mxu0  ;;  %v2479_v40 = vmul.f32 %v3388_v29, %v3388_v29  ;;  %v2723_v48 = vsel %vm1828_vm1, %v2478_v33, 0.0  ;;  %v4537_v23 = vpop.f32.mrb[21].mxu1 }
 0x141   :  { %v2719_v34 = vsel %vm1828_vm1, %v2476_v28, 0.0  ;;  %1878 = vst.msk [vmem:[%s5822_s2 + $0x188] sm:$0xff] %vm1828_vm1, %v1240_v32  ;;  %v2128_v35 = vsel %vm1828_vm1, %v1240_v32, 0.0  ;;  %v2477_v36 = vmul.f32 %v1240_v32, %v1240_v32  ;;  %v2132_v51 = vsel %vm1828_vm1, %v3388_v29, 0.0  ;;  %1949 = vst.msk [vmem:[%s5822_s2 + $0x3c0] sm:$0xff] %vm1828_vm1, %v4537_v23  ;;  %v4546_v29 = vpop.f32.mrb[22].mxu1 }
 0x142   :  { %v2720_v37 = vadd.f32 %v2719_v34, %v2718_v31  ;;  %v2129_v38 = vadd.f32 %v2128_v35, %v2127_v30  ;;  %v2725_v62 = vsel %vm1828_vm1, %v2479_v40, 0.0  ;;  %1952 = vst.msk [vmem:[%s5822_s2 + $0x3d8] sm:$0xff] %vm1828_vm1, %v4546_v29  ;;  %v4557_v33 = vpop.f32.mrb[23].mxu1 }
 0x143   :  { %v2721_v41 = vsel %vm1828_vm1, %v2477_v36, 0.0  ;;  %1950 = vst.msk [vmem:[%s5822_s2 + $0x3c8] sm:$0xff] %vm1828_vm1, %v4557_v33 }
 0x144   :  { %v2131_v44 = vadd.f32 %v2130_v39, %v2129_v38  ;;  %v2722_v46 = vadd.f32 %v2721_v41, %v2720_v37 }
 0x145   :  { %v3391_v52 = vpop.f32.mrb[52].mxu0 }
 0x146   :  { %v2724_v56 = vadd.f32 %v2723_v48, %v2722_v46  ;;  %1883 = vst.msk [vmem:[%s5822_s2 + $0x1b0] sm:$0xff] %vm1828_vm1, %v3391_v52  ;;  %v1253_v58 = vpop.f32.mrb[53].mxu0  ;;  %v2133_v59 = vadd.f32 %v2132_v51, %v2131_v44  ;;  %v2482_v5 = vmul.f32 %v3391_v52, %v3391_v52  ;;  %v2138_v12 = vsel %vm1828_vm1, %v3391_v52, 0.0 }
 0x147   :  { %1881 = vst.msk [vmem:[%s5822_s2 + $0x1a0] sm:$0xff] %vm1828_vm1, %v1253_v58  ;;  %v2134_v63 = vsel %vm1828_vm1, %v1253_v58, 0.0  ;;  %v2480_v0 = vmul.f32 %v1253_v58, %v1253_v58  ;;  %v3392_v1 = vpop.f32.mrb[54].mxu0 }
 0x148   :  { %v2135_v2 = vadd.f32 %v2134_v63, %v2133_v59  ;;  %v2726_v3 = vadd.f32 %v2725_v62, %v2724_v56  ;;  %1884 = vst.msk [vmem:[%s5822_s2 + $0x1b8] sm:$0xff] %vm1828_vm1, %v3392_v1  ;;  %v1256_v4 = vpop.f32.mrb[55].mxu0  ;;  %v2483_v15 = vmul.f32 %v3392_v1, %v3392_v1  ;;  %v2731_v26 = vsel %vm1828_vm1, %v2482_v5, 0.0  ;;  %v4582_v62 = vpop.f32.mrb[24].mxu1 }
 0x149   :  { %v2727_v6 = vsel %vm1828_vm1, %v2480_v0, 0.0  ;;  %1882 = vst.msk [vmem:[%s5822_s2 + $0x1a8] sm:$0xff] %vm1828_vm1, %v1256_v4  ;;  %v2136_v7 = vsel %vm1828_vm1, %v1256_v4, 0.0  ;;  %v2481_v8 = vmul.f32 %v1256_v4, %v1256_v4  ;;  %v2140_v27 = vsel %vm1828_vm1, %v3392_v1, 0.0  ;;  %1955 = vst.msk [vmem:[%s5822_s2 + $0x3f0] sm:$0xff] %vm1828_vm1, %v4582_v62  ;;  %v4589_v1 = vpop.f32.mrb[25].mxu1 }
 0x14a   :  { %v2728_v9 = vadd.f32 %v2727_v6, %v2726_v3  ;;  %v2137_v11 = vadd.f32 %v2136_v7, %v2135_v2  ;;  %v2733_v34 = vsel %vm1828_vm1, %v2483_v15, 0.0  ;;  %1953 = vst.msk [vmem:[%s5822_s2 + $0x3e0] sm:$0xff] %vm1828_vm1, %v4589_v1  ;;  %v4598_v5 = vpop.f32.mrb[26].mxu1 }
 0x14b   :  { %v2729_v16 = vsel %vm1828_vm1, %v2481_v8, 0.0  ;;  %1956 = vst.msk [vmem:[%s5822_s2 + $0x3f8] sm:$0xff] %vm1828_vm1, %v4598_v5 }
 0x14c   :  { %v2139_v20 = vadd.f32 %v2138_v12, %v2137_v11  ;;  %v2730_v22 = vadd.f32 %v2729_v16, %v2728_v9  ;;  %v4609_v9 = vpop.f32.mrb[27].mxu1 }
 0x14d   :  { %v3395_v28 = vpop.f32.mrb[56].mxu0  ;;  %1954 = vst.msk [vmem:[%s5822_s2 + $0x3e8] sm:$0xff] %vm1828_vm1, %v4609_v9 }
 0x14e   :  { %v2732_v30 = vadd.f32 %v2731_v26, %v2730_v22  ;;  %1887 = vst.msk [vmem:[%s5822_s2 + $0x1d0] sm:$0xff] %vm1828_vm1, %v3395_v28  ;;  %v1269_v31 = vpop.f32.mrb[57].mxu0  ;;  %v2141_v32 = vadd.f32 %v2140_v27, %v2139_v20  ;;  %v2486_v41 = vmul.f32 %v3395_v28, %v3395_v28  ;;  %v2146_v56 = vsel %vm1828_vm1, %v3395_v28, 0.0 }
 0x14f   :  { %1885 = vst.msk [vmem:[%s5822_s2 + $0x1c0] sm:$0xff] %vm1828_vm1, %v1269_v31  ;;  %v2142_v35 = vsel %vm1828_vm1, %v1269_v31, 0.0  ;;  %v2484_v36 = vmul.f32 %v1269_v31, %v1269_v31  ;;  %v3396_v37 = vpop.f32.mrb[58].mxu0 }
 0x150   :  { %v2143_v38 = vadd.f32 %v2142_v35, %v2141_v32  ;;  %v2734_v39 = vadd.f32 %v2733_v34, %v2732_v30  ;;  %1888 = vst.msk [vmem:[%s5822_s2 + $0x1d8] sm:$0xff] %vm1828_vm1, %v3396_v37  ;;  %v1272_v40 = vpop.f32.mrb[59].mxu0  ;;  %v2487_v58 = vmul.f32 %v3396_v37, %v3396_v37  ;;  %v2739_v2 = vsel %vm1828_vm1, %v2486_v41, 0.0 }
 0x151   :  { %v2735_v44 = vsel %vm1828_vm1, %v2484_v36, 0.0  ;;  %1886 = vst.msk [vmem:[%s5822_s2 + $0x1c8] sm:$0xff] %vm1828_vm1, %v1272_v40  ;;  %v2144_v46 = vsel %vm1828_vm1, %v1272_v40, 0.0  ;;  %v2485_v48 = vmul.f32 %v1272_v40, %v1272_v40  ;;  %v2148_v3 = vsel %vm1828_vm1, %v3396_v37, 0.0 }
 0x152   :  { %v2736_v51 = vadd.f32 %v2735_v44, %v2734_v39  ;;  %v2145_v52 = vadd.f32 %v2144_v46, %v2143_v38  ;;  %v2741_v11 = vsel %vm1828_vm1, %v2487_v58, 0.0  ;;  %v4634_v38 = vpop.f32.mrb[28].mxu1 }
 0x153   :  { %v2737_v59 = vsel %vm1828_vm1, %v2485_v48, 0.0  ;;  %1959 = vst.msk [vmem:[%s5822_s2 + $0x410] sm:$0xff] %vm1828_vm1, %v4634_v38  ;;  %v4641_v41 = vpop.f32.mrb[29].mxu1 }
 0x154   :  { %v2147_v63 = vadd.f32 %v2146_v56, %v2145_v52  ;;  %v2738_v0 = vadd.f32 %v2737_v59, %v2736_v51  ;;  %1957 = vst.msk [vmem:[%s5822_s2 + $0x400] sm:$0xff] %vm1828_vm1, %v4641_v41  ;;  %v4650_v51 = vpop.f32.mrb[30].mxu1 }
 0x155   :  { %v3399_v4 = vpop.f32.mrb[60].mxu0  ;;  %1960 = vst.msk [vmem:[%s5822_s2 + $0x418] sm:$0xff] %vm1828_vm1, %v4650_v51  ;;  %v4661_v59 = vpop.f32.mrb[31].mxu1 }
 0x156   :  { %v2740_v6 = vadd.f32 %v2739_v2, %v2738_v0  ;;  %1891 = vst.msk [vmem:[%s5822_s2 + $0x1f0] sm:$0xff] %vm1828_vm1, %v3399_v4  ;;  %v1285_v7 = vpop.f32.mrb[61].mxu0  ;;  %v2149_v8 = vadd.f32 %v2148_v3, %v2147_v63  ;;  %v2490_v27 = vmul.f32 %v3399_v4, %v3399_v4  ;;  %v2154_v35 = vsel %vm1828_vm1, %v3399_v4, 0.0  ;;  %1958 = vst.msk [vmem:[%s5822_s2 + $0x408] sm:$0xff] %vm1828_vm1, %v4661_v59 }
 0x157   :  { %1889 = vst.msk [vmem:[%s5822_s2 + $0x1e0] sm:$0xff] %vm1828_vm1, %v1285_v7  ;;  %v2150_v12 = vsel %vm1828_vm1, %v1285_v7, 0.0  ;;  %v2488_v15 = vmul.f32 %v1285_v7, %v1285_v7  ;;  %v3400_v16 = vpop.f32.mrb[62].mxu0 }
 0x158   :  { %v2151_v20 = vadd.f32 %v2150_v12, %v2149_v8  ;;  %v2742_v22 = vadd.f32 %v2741_v11, %v2740_v6  ;;  %1892 = vst.msk [vmem:[%s5822_s2 + $0x1f8] sm:$0xff] %vm1828_vm1, %v3400_v16  ;;  %v1288_v26 = vpop.f32.mrb[63].mxu0  ;;  %v2491_v36 = vmul.f32 %v3400_v16, %v3400_v16  ;;  %v2747_v44 = vsel %vm1828_vm1, %v2490_v27, 0.0 }
 0x159   :  { %v2743_v28 = vsel %vm1828_vm1, %v2488_v15, 0.0  ;;  %1890 = vst.msk [vmem:[%s5822_s2 + $0x1e8] sm:$0xff] %vm1828_vm1, %v1288_v26  ;;  %v2152_v30 = vsel %vm1828_vm1, %v1288_v26, 0.0  ;;  %v2489_v31 = vmul.f32 %v1288_v26, %v1288_v26  ;;  %v2156_v46 = vsel %vm1828_vm1, %v3400_v16, 0.0 }
 0x15a   :  { %v2744_v32 = vadd.f32 %v2743_v28, %v2742_v22  ;;  %v2153_v34 = vadd.f32 %v2152_v30, %v2151_v20  ;;  %v2749_v63 = vsel %vm1828_vm1, %v2491_v36, 0.0  ;;  %v4686_v28 = vpop.f32.mrb[32].mxu1 }
 0x15b   :  { %v2745_v37 = vsel %vm1828_vm1, %v2489_v31, 0.0  ;;  %1963 = vst.msk [vmem:[%s5822_s2 + $0x430] sm:$0xff] %vm1828_vm1, %v4686_v28 }
 0x15c   :  { %v2155_v39 = vadd.f32 %v2154_v35, %v2153_v34  ;;  %v2746_v40 = vadd.f32 %v2745_v37, %v2744_v32  ;;  %v4693_v32 = vpop.f32.mrb[33].mxu1 }
 0x15d   :  { %v3403_v48 = vpop.f32.mrb[64].mxu0  ;;  %1961 = vst.msk [vmem:[%s5822_s2 + $0x420] sm:$0xff] %vm1828_vm1, %v4693_v32  ;;  %v4702_v37 = vpop.f32.mrb[34].mxu1 }
 0x15e   :  { %v2748_v52 = vadd.f32 %v2747_v44, %v2746_v40  ;;  %1895 = vst.msk [vmem:[%s5822_s2 + $0x210] sm:$0xff] %vm1828_vm1, %v3403_v48  ;;  %v1301_v56 = vpop.f32.mrb[65].mxu0  ;;  %v2157_v58 = vadd.f32 %v2156_v46, %v2155_v39  ;;  %v2494_v8 = vmul.f32 %v3403_v48, %v3403_v48  ;;  %v2162_v22 = vsel %vm1828_vm1, %v3403_v48, 0.0  ;;  %1964 = vst.msk [vmem:[%s5822_s2 + $0x438] sm:$0xff] %vm1828_vm1, %v4702_v37  ;;  %v4713_v46 = vpop.f32.mrb[35].mxu1 }
 0x15f   :  { %1893 = vst.msk [vmem:[%s5822_s2 + $0x200] sm:$0xff] %vm1828_vm1, %v1301_v56  ;;  %v2158_v0 = vsel %vm1828_vm1, %v1301_v56, 0.0  ;;  %v2492_v2 = vmul.f32 %v1301_v56, %v1301_v56  ;;  %v3404_v3 = vpop.f32.mrb[66].mxu0  ;;  %1962 = vst.msk [vmem:[%s5822_s2 + $0x428] sm:$0xff] %vm1828_vm1, %v4713_v46 }
 0x160   :  { %v2159_v4 = vadd.f32 %v2158_v0, %v2157_v58  ;;  %v2750_v6 = vadd.f32 %v2749_v63, %v2748_v52  ;;  %1896 = vst.msk [vmem:[%s5822_s2 + $0x218] sm:$0xff] %vm1828_vm1, %v3404_v3  ;;  %v1304_v7 = vpop.f32.mrb[67].mxu0  ;;  %v2495_v26 = vmul.f32 %v3404_v3, %v3404_v3  ;;  %v2755_v34 = vsel %vm1828_vm1, %v2494_v8, 0.0 }
 0x161   :  { %v2751_v11 = vsel %vm1828_vm1, %v2492_v2, 0.0  ;;  %1894 = vst.msk [vmem:[%s5822_s2 + $0x208] sm:$0xff] %vm1828_vm1, %v1304_v7  ;;  %v2160_v12 = vsel %vm1828_vm1, %v1304_v7, 0.0  ;;  %v2493_v15 = vmul.f32 %v1304_v7, %v1304_v7  ;;  %v2164_v35 = vsel %vm1828_vm1, %v3404_v3, 0.0 }
 0x162   :  { %v2752_v16 = vadd.f32 %v2751_v11, %v2750_v6  ;;  %v2161_v20 = vadd.f32 %v2160_v12, %v2159_v4  ;;  %v2757_v48 = vsel %vm1828_vm1, %v2495_v26, 0.0 }
 0x163   :  { %v2753_v27 = vsel %vm1828_vm1, %v2493_v15, 0.0 }
 0x164   :  { %v2163_v30 = vadd.f32 %v2162_v22, %v2161_v20  ;;  %v2754_v31 = vadd.f32 %v2753_v27, %v2752_v16  ;;  %v4738_v20 = vpop.f32.mrb[36].mxu1 }
 0x165   :  { %v3407_v36 = vpop.f32.mrb[68].mxu0  ;;  %1967 = vst.msk [vmem:[%s5822_s2 + $0x450] sm:$0xff] %vm1828_vm1, %v4738_v20  ;;  %v4745_v27 = vpop.f32.mrb[37].mxu1 }
 0x166   :  { %v2756_v39 = vadd.f32 %v2755_v34, %v2754_v31  ;;  %1899 = vst.msk [vmem:[%s5822_s2 + $0x230] sm:$0xff] %vm1828_vm1, %v3407_v36  ;;  %v1317_v40 = vpop.f32.mrb[69].mxu0  ;;  %v2165_v44 = vadd.f32 %v2164_v35, %v2163_v30  ;;  %v2498_v3 = vmul.f32 %v3407_v36, %v3407_v36  ;;  %v2170_v12 = vsel %vm1828_vm1, %v3407_v36, 0.0  ;;  %1965 = vst.msk [vmem:[%s5822_s2 + $0x440] sm:$0xff] %vm1828_vm1, %v4745_v27  ;;  %v4754_v35 = vpop.f32.mrb[38].mxu1 }
 0x167   :  { %1897 = vst.msk [vmem:[%s5822_s2 + $0x220] sm:$0xff] %vm1828_vm1, %v1317_v40  ;;  %v2166_v52 = vsel %vm1828_vm1, %v1317_v40, 0.0  ;;  %v2496_v56 = vmul.f32 %v1317_v40, %v1317_v40  ;;  %v3408_v58 = vpop.f32.mrb[70].mxu0  ;;  %1968 = vst.msk [vmem:[%s5822_s2 + $0x458] sm:$0xff] %vm1828_vm1, %v4754_v35 }
 0x168   :  { %v2167_v63 = vadd.f32 %v2166_v52, %v2165_v44  ;;  %v2758_v0 = vadd.f32 %v2757_v48, %v2756_v39  ;;  %1900 = vst.msk [vmem:[%s5822_s2 + $0x238] sm:$0xff] %vm1828_vm1, %v3408_v58  ;;  %v1320_v2 = vpop.f32.mrb[71].mxu0  ;;  %v2499_v15 = vmul.f32 %v3408_v58, %v3408_v58  ;;  %v2763_v30 = vsel %vm1828_vm1, %v2498_v3, 0.0  ;;  %v4765_v44 = vpop.f32.mrb[39].mxu1 }
 0x169   :  { %v2759_v4 = vsel %vm1828_vm1, %v2496_v56, 0.0  ;;  %1898 = vst.msk [vmem:[%s5822_s2 + $0x228] sm:$0xff] %vm1828_vm1, %v1320_v2  ;;  %v2168_v6 = vsel %vm1828_vm1, %v1320_v2, 0.0  ;;  %v2497_v7 = vmul.f32 %v1320_v2, %v1320_v2  ;;  %v2172_v31 = vsel %vm1828_vm1, %v3408_v58, 0.0  ;;  %1966 = vst.msk [vmem:[%s5822_s2 + $0x448] sm:$0xff] %vm1828_vm1, %v4765_v44 }
 0x16a   :  { %v2760_v8 = vadd.f32 %v2759_v4, %v2758_v0  ;;  %v2169_v11 = vadd.f32 %v2168_v6, %v2167_v63  ;;  %v2765_v48 = vsel %vm1828_vm1, %v2499_v15, 0.0 }
 0x16b   :  { %v2761_v16 = vsel %vm1828_vm1, %v2497_v7, 0.0 }
 0x16c   :  { %v2171_v22 = vadd.f32 %v2170_v12, %v2169_v11  ;;  %v2762_v26 = vadd.f32 %v2761_v16, %v2760_v8 }
 0x16d   :  { %v3411_v34 = vpop.f32.mrb[72].mxu0 }
 0x16e   :  { %v2764_v36 = vadd.f32 %v2763_v30, %v2762_v26  ;;  %1903 = vst.msk [vmem:[%s5822_s2 + $0x250] sm:$0xff] %vm1828_vm1, %v3411_v34  ;;  %v1333_v39 = vpop.f32.mrb[73].mxu0  ;;  %v2173_v40 = vadd.f32 %v2172_v31, %v2171_v22  ;;  %v2502_v3 = vmul.f32 %v3411_v34, %v3411_v34  ;;  %v2178_v12 = vsel %vm1828_vm1, %v3411_v34, 0.0  ;;  %v4790_v22 = vpop.f32.mrb[40].mxu1 }
 0x16f   :  { %1901 = vst.msk [vmem:[%s5822_s2 + $0x240] sm:$0xff] %vm1828_vm1, %v1333_v39  ;;  %v2174_v52 = vsel %vm1828_vm1, %v1333_v39, 0.0  ;;  %v2500_v56 = vmul.f32 %v1333_v39, %v1333_v39  ;;  %v3412_v58 = vpop.f32.mrb[74].mxu0  ;;  %1971 = vst.msk [vmem:[%s5822_s2 + $0x470] sm:$0xff] %vm1828_vm1, %v4790_v22  ;;  %v4797_v31 = vpop.f32.mrb[41].mxu1 }
 0x170   :  { %v2175_v63 = vadd.f32 %v2174_v52, %v2173_v40  ;;  %v2766_v0 = vadd.f32 %v2765_v48, %v2764_v36  ;;  %1904 = vst.msk [vmem:[%s5822_s2 + $0x258] sm:$0xff] %vm1828_vm1, %v3412_v58  ;;  %v1336_v2 = vpop.f32.mrb[75].mxu0  ;;  %v2503_v15 = vmul.f32 %v3412_v58, %v3412_v58  ;;  %v2771_v36 = vsel %vm1828_vm1, %v2502_v3, 0.0  ;;  %1969 = vst.msk [vmem:[%s5822_s2 + $0x460] sm:$0xff] %vm1828_vm1, %v4797_v31  ;;  %v4806_v40 = vpop.f32.mrb[42].mxu1 }
 0x171   :  { %v2767_v4 = vsel %vm1828_vm1, %v2500_v56, 0.0  ;;  %1902 = vst.msk [vmem:[%s5822_s2 + $0x248] sm:$0xff] %vm1828_vm1, %v1336_v2  ;;  %v2176_v6 = vsel %vm1828_vm1, %v1336_v2, 0.0  ;;  %v2501_v7 = vmul.f32 %v1336_v2, %v1336_v2  ;;  %v2180_v39 = vsel %vm1828_vm1, %v3412_v58, 0.0  ;;  %1972 = vst.msk [vmem:[%s5822_s2 + $0x478] sm:$0xff] %vm1828_vm1, %v4806_v40  ;;  %v4817_v58 = vpop.f32.mrb[43].mxu1 }
 0x172   :  { %v2768_v8 = vadd.f32 %v2767_v4, %v2766_v0  ;;  %v2177_v11 = vadd.f32 %v2176_v6, %v2175_v63  ;;  %v2773_v63 = vsel %vm1828_vm1, %v2503_v15, 0.0  ;;  %1970 = vst.msk [vmem:[%s5822_s2 + $0x468] sm:$0xff] %vm1828_vm1, %v4817_v58 }
 0x173   :  { %v2769_v16 = vsel %vm1828_vm1, %v2501_v7, 0.0 }
 0x174   :  { %v2179_v26 = vadd.f32 %v2178_v12, %v2177_v11  ;;  %v2770_v30 = vadd.f32 %v2769_v16, %v2768_v8 }
 0x175   :  { %v3415_v34 = vpop.f32.mrb[76].mxu0 }
 0x176   :  { %v2772_v48 = vadd.f32 %v2771_v36, %v2770_v30  ;;  %1907 = vst.msk [vmem:[%s5822_s2 + $0x270] sm:$0xff] %vm1828_vm1, %v3415_v34  ;;  %v1349_v52 = vpop.f32.mrb[77].mxu0  ;;  %v2181_v56 = vadd.f32 %v2180_v39, %v2179_v26  ;;  %v2506_v8 = vmul.f32 %v3415_v34, %v3415_v34  ;;  %v2186_v30 = vsel %vm1828_vm1, %v3415_v34, 0.0 }
 0x177   :  { %1905 = vst.msk [vmem:[%s5822_s2 + $0x260] sm:$0xff] %vm1828_vm1, %v1349_v52  ;;  %v2182_v0 = vsel %vm1828_vm1, %v1349_v52, 0.0  ;;  %v2504_v2 = vmul.f32 %v1349_v52, %v1349_v52  ;;  %v3416_v3 = vpop.f32.mrb[78].mxu0 }
 0x178   :  { %v2183_v4 = vadd.f32 %v2182_v0, %v2181_v56  ;;  %v2774_v6 = vadd.f32 %v2773_v63, %v2772_v48  ;;  %1908 = vst.msk [vmem:[%s5822_s2 + $0x278] sm:$0xff] %vm1828_vm1, %v3416_v3  ;;  %v1352_v7 = vpop.f32.mrb[79].mxu0  ;;  %v2507_v36 = vmul.f32 %v3416_v3, %v3416_v3  ;;  %v4842_v48 = vpop.f32.mrb[44].mxu1  ;;  %v2779_v0 = vsel %vm1828_vm1, %v2506_v8, 0.0 }
 0x179   :  { %v2775_v11 = vsel %vm1828_vm1, %v2504_v2, 0.0  ;;  %1906 = vst.msk [vmem:[%s5822_s2 + $0x268] sm:$0xff] %vm1828_vm1, %v1352_v7  ;;  %v2184_v12 = vsel %vm1828_vm1, %v1352_v7, 0.0  ;;  %v2505_v15 = vmul.f32 %v1352_v7, %v1352_v7  ;;  %5862 = vst [vmem:[#allocation2_spill] sm:$0xff] %v4842_v48  ;;  %v4849_v63 = vpop.f32.mrb[45].mxu1  ;;  %v2188_v2 = vsel %vm1828_vm1, %v3416_v3, 0.0 }
 0x17a   :  { %v2776_v16 = vadd.f32 %v2775_v11, %v2774_v6  ;;  %v2185_v26 = vadd.f32 %v2184_v12, %v2183_v4  ;;  %1975 = vst.msk [vmem:[%s5822_s2 + $0x490] sm:$0xff] %vm1828_vm1, %v4842_v48  ;;  %1973 = vst.msk [vmem:[%s5822_s2 + $0x480] sm:$0xff] %vm1828_vm1, %v4849_v63  ;;  %v4858_v4 = vpop.f32.mrb[46].mxu1  ;;  %v2781_v8 = vsel %vm1828_vm1, %v2507_v36, 0.0 }
 0x17b   :  { %v2777_v39 = vsel %vm1828_vm1, %v2505_v15, 0.0  ;;  %5863 = vst [vmem:[#allocation3_spill] sm:$0xff] %v4858_v4  ;;  %1976 = vst.msk [vmem:[%s5822_s2 + $0x498] sm:$0xff] %vm1828_vm1, %v4858_v4  ;;  %v4869_v3 = vpop.f32.mrb[47].mxu1 }
 0x17c   :  { %v2187_v52 = vadd.f32 %v2186_v30, %v2185_v26  ;;  %v2778_v56 = vadd.f32 %v2777_v39, %v2776_v16  ;;  %1974 = vst.msk [vmem:[%s5822_s2 + $0x488] sm:$0xff] %vm1828_vm1, %v4869_v3 }
 0x17d   :  { %v3419_v34 = vpop.f32.mrb[80].mxu0 }
 0x17e   :  { %v2780_v6 = vadd.f32 %v2779_v0, %v2778_v56  ;;  %1911 = vst.msk [vmem:[%s5822_s2 + $0x290] sm:$0xff] %vm1828_vm1, %v3419_v34  ;;  %v1365_v7 = vpop.f32.mrb[81].mxu0  ;;  %v2189_v11 = vadd.f32 %v2188_v2, %v2187_v52  ;;  %v2510_v39 = vmul.f32 %v3419_v34, %v3419_v34 }
 0x17f   :  { %1909 = vst.msk [vmem:[%s5822_s2 + $0x280] sm:$0xff] %vm1828_vm1, %v1365_v7  ;;  %v2190_v12 = vsel %vm1828_vm1, %v1365_v7, 0.0  ;;  %v2508_v15 = vmul.f32 %v1365_v7, %v1365_v7  ;;  %v3420_v16 = vpop.f32.mrb[82].mxu0 }
 0x180   :  { %v2191_v26 = vadd.f32 %v2190_v12, %v2189_v11  ;;  %v2782_v30 = vadd.f32 %v2781_v8, %v2780_v6  ;;  %1912 = vst.msk [vmem:[%s5822_s2 + $0x298] sm:$0xff] %vm1828_vm1, %v3420_v16  ;;  %v1368_v36 = vpop.f32.mrb[83].mxu0  ;;  %v2194_v6 = vsel %vm1828_vm1, %v3419_v34, 0.0  ;;  %v2511_v11 = vmul.f32 %v3420_v16, %v3420_v16  ;;  %v4894_v12 = vpop.f32.mrb[48].mxu1 }
 0x181   :  { %v2783_v52 = vsel %vm1828_vm1, %v2508_v15, 0.0  ;;  %1910 = vst.msk [vmem:[%s5822_s2 + $0x288] sm:$0xff] %vm1828_vm1, %v1368_v36  ;;  %v2192_v56 = vsel %vm1828_vm1, %v1368_v36, 0.0  ;;  %v2509_v0 = vmul.f32 %v1368_v36, %v1368_v36  ;;  %5864 = vst [vmem:[#allocation4_spill] sm:$0xff] %v4894_v12  ;;  %v4901_v15 = vpop.f32.mrb[49].mxu1 }
 0x182   :  { %v2784_v2 = vadd.f32 %v2783_v52, %v2782_v30  ;;  %v2193_v7 = vadd.f32 %v2192_v56, %v2191_v26  ;;  %1979 = vst.msk [vmem:[%s5822_s2 + $0x4b0] sm:$0xff] %vm1828_vm1, %v4894_v12  ;;  %5865 = vst [vmem:[#allocation5_spill] sm:$0xff] %v4901_v15  ;;  %v2787_v30 = vsel %vm1828_vm1, %v2510_v39, 0.0  ;;  %v2196_v26 = vsel %vm1828_vm1, %v3420_v16, 0.0  ;;  %v4910_v36 = vpop.f32.mrb[50].mxu1 }
 0x183   :  { %v2785_v8 = vsel %vm1828_vm1, %v2509_v0, 0.0  ;;  %1977 = vst.msk [vmem:[%s5822_s2 + $0x4a0] sm:$0xff] %vm1828_vm1, %v4901_v15  ;;  %5866 = vst [vmem:[#allocation6_spill] sm:$0xff] %v4910_v36  ;;  %v4921_v16 = vpop.f32.mrb[51].mxu1  ;;  %v2789_v39 = vsel %vm1828_vm1, %v2511_v11, 0.0 }
 0x184   :  { %v2195_v4 = vadd.f32 %v2194_v6, %v2193_v7  ;;  %v2786_v48 = vadd.f32 %v2785_v8, %v2784_v2  ;;  %1980 = vst.msk [vmem:[%s5822_s2 + $0x4b8] sm:$0xff] %vm1828_vm1, %v4910_v36  ;;  %5867 = vst [vmem:[#allocation7_spill] sm:$0xff] %v4921_v16  ;;  %v4946_v12 = vpop.f32.mrb[52].mxu1 }
 0x185   :  { %v3423_v34 = vpop.f32.mrb[84].mxu0  ;;  %1978 = vst.msk [vmem:[%s5822_s2 + $0x4a8] sm:$0xff] %vm1828_vm1, %v4921_v16  ;;  %5868 = vst [vmem:[#allocation8_spill] sm:$0xff] %v4946_v12 }
 0x186   :  { %v2788_v52 = vadd.f32 %v2787_v30, %v2786_v48  ;;  %1915 = vst.msk [vmem:[%s5822_s2 + $0x2b0] sm:$0xff] %vm1828_vm1, %v3423_v34  ;;  %v1381_v56 = vpop.f32.mrb[85].mxu0  ;;  %v2197_v0 = vadd.f32 %v2196_v26, %v2195_v4  ;;  %v2514_v8 = vmul.f32 %v3423_v34, %v3423_v34  ;;  %1983 = vst.msk [vmem:[%s5822_s2 + $0x4d0] sm:$0xff] %vm1828_vm1, %v4946_v12 }
 0x187   :  { %1913 = vst.msk [vmem:[%s5822_s2 + $0x2a0] sm:$0xff] %vm1828_vm1, %v1381_v56  ;;  %v2198_v48 = vsel %vm1828_vm1, %v1381_v56, 0.0  ;;  %v2512_v2 = vmul.f32 %v1381_v56, %v1381_v56  ;;  %v3424_v7 = vpop.f32.mrb[86].mxu0 }
 0x188   :  { %v2199_v4 = vadd.f32 %v2198_v48, %v2197_v0  ;;  %v2790_v6 = vadd.f32 %v2789_v39, %v2788_v52  ;;  %1916 = vst.msk [vmem:[%s5822_s2 + $0x2b8] sm:$0xff] %vm1828_vm1, %v3424_v7  ;;  %v1384_v11 = vpop.f32.mrb[87].mxu0  ;;  %v2202_v52 = vsel %vm1828_vm1, %v3423_v34, 0.0  ;;  %v2515_v39 = vmul.f32 %v3424_v7, %v3424_v7 }
 0x189   :  { %v2791_v30 = vsel %vm1828_vm1, %v2512_v2, 0.0  ;;  %1914 = vst.msk [vmem:[%s5822_s2 + $0x2a8] sm:$0xff] %vm1828_vm1, %v1384_v11  ;;  %v2200_v26 = vsel %vm1828_vm1, %v1384_v11, 0.0  ;;  %v2513_v56 = vmul.f32 %v1384_v11, %v1384_v11  ;;  %v4953_v2 = vpop.f32.mrb[53].mxu1 }
 0x18a   :  { %v2792_v36 = vadd.f32 %v2791_v30, %v2790_v6  ;;  %v2201_v0 = vadd.f32 %v2200_v26, %v2199_v4  ;;  %5869 = vst [vmem:[#allocation9_spill] sm:$0xff] %v4953_v2  ;;  %v2795_v6 = vsel %vm1828_vm1, %v2514_v8, 0.0  ;;  %v2204_v4 = vsel %vm1828_vm1, %v3424_v7, 0.0  ;;  %1981 = vst.msk [vmem:[%s5822_s2 + $0x4c0] sm:$0xff] %vm1828_vm1, %v4953_v2 }
 0x18b   :  { %v2793_v48 = vsel %vm1828_vm1, %v2513_v56, 0.0  ;;  %v2797_v8 = vsel %vm1828_vm1, %v2515_v39, 0.0 }
 0x18c   :  { %v2203_v16 = vadd.f32 %v2202_v52, %v2201_v0  ;;  %v2794_v15 = vadd.f32 %v2793_v48, %v2792_v36  ;;  %v4962_v36 = vpop.f32.mrb[54].mxu1 }
 0x18d   :  { %v3427_v34 = vpop.f32.mrb[88].mxu0  ;;  %5870 = vst [vmem:[#allocation10_spill] sm:$0xff] %v4962_v36  ;;  %1984 = vst.msk [vmem:[%s5822_s2 + $0x4d8] sm:$0xff] %vm1828_vm1, %v4962_v36  ;;  %v4973_v7 = vpop.f32.mrb[55].mxu1 }
 0x18e   :  { %v2796_v11 = vadd.f32 %v2795_v6, %v2794_v15  ;;  %1919 = vst.msk [vmem:[%s5822_s2 + $0x2d0] sm:$0xff] %vm1828_vm1, %v3427_v34  ;;  %v1397_v30 = vpop.f32.mrb[89].mxu0  ;;  %v2205_v26 = vadd.f32 %v2204_v4, %v2203_v16  ;;  %5871 = vst [vmem:[#allocation11_spill] sm:$0xff] %v4973_v7  ;;  %v2518_v48 = vmul.f32 %v3427_v34, %v3427_v34  ;;  %v4998_v12 = vpop.f32.mrb[56].mxu1 }
 0x18f   :  { %1917 = vst.msk [vmem:[%s5822_s2 + $0x2c0] sm:$0xff] %vm1828_vm1, %v1397_v30  ;;  %v2206_v15 = vsel %vm1828_vm1, %v1397_v30, 0.0  ;;  %v2516_v56 = vmul.f32 %v1397_v30, %v1397_v30  ;;  %v3428_v0 = vpop.f32.mrb[90].mxu0  ;;  %1982 = vst.msk [vmem:[%s5822_s2 + $0x4c8] sm:$0xff] %vm1828_vm1, %v4973_v7 }
 0x190   :  { %v2207_v16 = vadd.f32 %v2206_v15, %v2205_v26  ;;  %v2798_v52 = vadd.f32 %v2797_v8, %v2796_v11  ;;  %1920 = vst.msk [vmem:[%s5822_s2 + $0x2d8] sm:$0xff] %vm1828_vm1, %v3428_v0  ;;  %v1400_v39 = vpop.f32.mrb[91].mxu0  ;;  %v2210_v11 = vsel %vm1828_vm1, %v3427_v34, 0.0  ;;  %v2519_v8 = vmul.f32 %v3428_v0, %v3428_v0  ;;  %5872 = vst [vmem:[#allocation12_spill] sm:$0xff] %v4998_v12 }
 0x191   :  { %v2799_v6 = vsel %vm1828_vm1, %v2516_v56, 0.0  ;;  %1918 = vst.msk [vmem:[%s5822_s2 + $0x2c8] sm:$0xff] %vm1828_vm1, %v1400_v39  ;;  %v2208_v4 = vsel %vm1828_vm1, %v1400_v39, 0.0  ;;  %v2517_v30 = vmul.f32 %v1400_v39, %v1400_v39  ;;  %1987 = vst.msk [vmem:[%s5822_s2 + $0x4f0] sm:$0xff] %vm1828_vm1, %v4998_v12  ;;  %v5005_v56 = vpop.f32.mrb[57].mxu1 }
 0x192   :  { %v2800_v36 = vadd.f32 %v2799_v6, %v2798_v52  ;;  %v2209_v26 = vadd.f32 %v2208_v4, %v2207_v16  ;;  %5873 = vst [vmem:[#allocation13_spill] sm:$0xff] %v5005_v56  ;;  %v2803_v52 = vsel %vm1828_vm1, %v2518_v48, 0.0  ;;  %v2212_v16 = vsel %vm1828_vm1, %v3428_v0, 0.0  ;;  %1985 = vst.msk [vmem:[%s5822_s2 + $0x4e0] sm:$0xff] %vm1828_vm1, %v5005_v56 }
 0x193   :  { %v2801_v15 = vsel %vm1828_vm1, %v2517_v30, 0.0  ;;  %v2805_v48 = vsel %vm1828_vm1, %v2519_v8, 0.0 }
 0x194   :  { %v2211_v7 = vadd.f32 %v2210_v11, %v2209_v26  ;;  %v2802_v2 = vadd.f32 %v2801_v15, %v2800_v36  ;;  %v5014_v36 = vpop.f32.mrb[58].mxu1 }
 0x195   :  { %v3431_v34 = vpop.f32.mrb[92].mxu0  ;;  %5874 = vst [vmem:[#allocation14_spill] sm:$0xff] %v5014_v36  ;;  %1988 = vst.msk [vmem:[%s5822_s2 + $0x4f8] sm:$0xff] %vm1828_vm1, %v5014_v36  ;;  %v5025_v0 = vpop.f32.mrb[59].mxu1 }
 0x196   :  { %v2804_v39 = vadd.f32 %v2803_v52, %v2802_v2  ;;  %1923 = vst.msk [vmem:[%s5822_s2 + $0x2f0] sm:$0xff] %vm1828_vm1, %v3431_v34  ;;  %v1413_v6 = vpop.f32.mrb[93].mxu0  ;;  %v2213_v4 = vadd.f32 %v2212_v16, %v2211_v7  ;;  %5875 = vst [vmem:[#allocation15_spill] sm:$0xff] %v5025_v0  ;;  %v2522_v15 = vmul.f32 %v3431_v34, %v3431_v34  ;;  %v5050_v12 = vpop.f32.mrb[60].mxu1 }
 0x197   :  { %1921 = vst.msk [vmem:[%s5822_s2 + $0x2e0] sm:$0xff] %vm1828_vm1, %v1413_v6  ;;  %v2214_v2 = vsel %vm1828_vm1, %v1413_v6, 0.0  ;;  %v2520_v30 = vmul.f32 %v1413_v6, %v1413_v6  ;;  %v3432_v26 = vpop.f32.mrb[94].mxu0  ;;  %1986 = vst.msk [vmem:[%s5822_s2 + $0x4e8] sm:$0xff] %vm1828_vm1, %v5025_v0 }
 0x198   :  { %v2215_v7 = vadd.f32 %v2214_v2, %v2213_v4  ;;  %v2806_v11 = vadd.f32 %v2805_v48, %v2804_v39  ;;  %1924 = vst.msk [vmem:[%s5822_s2 + $0x2f8] sm:$0xff] %vm1828_vm1, %v3432_v26  ;;  %v1416_v8 = vpop.f32.mrb[95].mxu0  ;;  %v2218_v39 = vsel %vm1828_vm1, %v3431_v34, 0.0  ;;  %v2523_v48 = vmul.f32 %v3432_v26, %v3432_v26  ;;  %5876 = vst [vmem:[#allocation16_spill] sm:$0xff] %v5050_v12 }
 0x199   :  { %v2807_v52 = vsel %vm1828_vm1, %v2520_v30, 0.0  ;;  %1922 = vst.msk [vmem:[%s5822_s2 + $0x2e8] sm:$0xff] %vm1828_vm1, %v1416_v8  ;;  %v2216_v16 = vsel %vm1828_vm1, %v1416_v8, 0.0  ;;  %v2521_v6 = vmul.f32 %v1416_v8, %v1416_v8  ;;  %1991 = vst.msk [vmem:[%s5822_s2 + $0x510] sm:$0xff] %vm1828_vm1, %v5050_v12  ;;  %v5057_v30 = vpop.f32.mrb[61].mxu1  ;;  %v2528_v12 = vmul.f32 %v4277_v53, %v4277_v53 }
 0x19a   :  { %v2808_v36 = vadd.f32 %v2807_v52, %v2806_v11  ;;  %v2217_v4 = vadd.f32 %v2216_v16, %v2215_v7  ;;  %5877 = vst [vmem:[#allocation17_spill] sm:$0xff] %v5057_v30  ;;  %v2811_v11 = vsel %vm1828_vm1, %v2522_v15, 0.0  ;;  %v2220_v7 = vsel %vm1828_vm1, %v3432_v26, 0.0  ;;  %1989 = vst.msk [vmem:[%s5822_s2 + $0x500] sm:$0xff] %vm1828_vm1, %v5057_v30 }
 0x19b   :  { %v2809_v2 = vsel %vm1828_vm1, %v2521_v6, 0.0  ;;  %v2813_v15 = vsel %vm1828_vm1, %v2523_v48, 0.0 }
 0x19c   :  { %v2219_v0 = vadd.f32 %v2218_v39, %v2217_v4  ;;  %v2810_v56 = vadd.f32 %v2809_v2, %v2808_v36  ;;  %v5066_v36 = vpop.f32.mrb[62].mxu1 }
 0x19d   :  { %v3435_v34 = vpop.f32.mrb[96].mxu0  ;;  %5878 = vst [vmem:[#allocation18_spill] sm:$0xff] %v5066_v36  ;;  %1992 = vst.msk [vmem:[%s5822_s2 + $0x518] sm:$0xff] %vm1828_vm1, %v5066_v36  ;;  %v5077_v26 = vpop.f32.mrb[63].mxu1 }
 0x19e   :  { %v2812_v8 = vadd.f32 %v2811_v11, %v2810_v56  ;;  %1927 = vst.msk [vmem:[%s5822_s2 + $0x310] sm:$0xff] %vm1828_vm1, %v3435_v34  ;;  %v1429_v52 = vpop.f32.mrb[97].mxu0  ;;  %v2221_v16 = vadd.f32 %v2220_v7, %v2219_v0  ;;  %5879 = vst [vmem:[#allocation19_spill] sm:$0xff] %v5077_v26  ;;  %v2526_v2 = vmul.f32 %v3435_v34, %v3435_v34 }
 0x19f   :  { %1925 = vst.msk [vmem:[%s5822_s2 + $0x300] sm:$0xff] %vm1828_vm1, %v1429_v52  ;;  %v2222_v56 = vsel %vm1828_vm1, %v1429_v52, 0.0  ;;  %v2524_v6 = vmul.f32 %v1429_v52, %v1429_v52  ;;  %v3436_v4 = vpop.f32.mrb[98].mxu0  ;;  %1990 = vst.msk [vmem:[%s5822_s2 + $0x508] sm:$0xff] %vm1828_vm1, %v5077_v26  ;;  %v5104_v26 = vpop.f32.mrb[64].mxu1 }
 0x1a0   :  { %v2223_v0 = vadd.f32 %v2222_v56, %v2221_v16  ;;  %v2814_v39 = vadd.f32 %v2813_v15, %v2812_v8  ;;  %1928 = vst.msk [vmem:[%s5822_s2 + $0x318] sm:$0xff] %vm1828_vm1, %v3436_v4  ;;  %v1432_v48 = vpop.f32.mrb[99].mxu0  ;;  %v2226_v8 = vsel %vm1828_vm1, %v3435_v34, 0.0  ;;  %v2527_v15 = vmul.f32 %v3436_v4, %v3436_v4  ;;  %1995 = vst.msk [vmem:[%s5822_s2 + $0x530] sm:$0xff] %vm1828_vm1, %v5104_v26 }
 0x1a1   :  { %v2815_v11 = vsel %vm1828_vm1, %v2524_v6, 0.0  ;;  %1926 = vst.msk [vmem:[%s5822_s2 + $0x308] sm:$0xff] %vm1828_vm1, %v1432_v48  ;;  %v2224_v7 = vsel %vm1828_vm1, %v1432_v48, 0.0  ;;  %v2525_v52 = vmul.f32 %v1432_v48, %v1432_v48  ;;  %v2819_v34 = vsel %vm1828_vm1, %v2526_v2, 0.0 }
 0x1a2   :  { %v2816_v36 = vadd.f32 %v2815_v11, %v2814_v39  ;;  %v2225_v16 = vadd.f32 %v2224_v7, %v2223_v0  ;;  %v5111_v39 = vpop.f32.mrb[65].mxu1  ;;  %v2228_v0 = vsel %vm1828_vm1, %v3436_v4, 0.0  ;;  %v2230_v48 = vsel %vm1828_vm1, %v4277_v53, 0.0 }
 0x1a3   :  { %v2817_v56 = vsel %vm1828_vm1, %v2525_v52, 0.0  ;;  %1993 = vst.msk [vmem:[%s5822_s2 + $0x520] sm:$0xff] %vm1828_vm1, %v5111_v39  ;;  %v2821_v53 = vsel %vm1828_vm1, %v2527_v15, 0.0  ;;  %v2823_v2 = vsel %vm1828_vm1, %v2528_v12, 0.0  ;;  %v2529_v52 = vmul.f32 %v4297_v61, %v4297_v61 }
 0x1a4   :  { %v2227_v6 = vadd.f32 %v2226_v8, %v2225_v16  ;;  %v2818_v30 = vadd.f32 %v2817_v56, %v2816_v36  ;;  %v5122_v36 = vpop.f32.mrb[66].mxu1  ;;  %v2530_v8 = vmul.f32 %v4270_v50, %v4270_v50  ;;  %v2232_v56 = vsel %vm1828_vm1, %v4297_v61, 0.0 }
 0x1a5   :  { %1996 = vst.msk [vmem:[%s5822_s2 + $0x538] sm:$0xff] %vm1828_vm1, %v5122_v36  ;;  %v5129_v4 = vpop.f32.mrb[67].mxu1  ;;  %v2234_v12 = vsel %vm1828_vm1, %v4270_v50, 0.0 }
 0x1a6   :  { %v2229_v11 = vadd.f32 %v2228_v0, %v2227_v6  ;;  %v2820_v7 = vadd.f32 %v2819_v34, %v2818_v30  ;;  %1994 = vst.msk [vmem:[%s5822_s2 + $0x528] sm:$0xff] %vm1828_vm1, %v5129_v4  ;;  %v2531_v34 = vmul.f32 %v4286_v57, %v4286_v57  ;;  %v2825_v0 = vsel %vm1828_vm1, %v2529_v52, 0.0 }
 0x1a7   :  { %v2827_v50 = vsel %vm1828_vm1, %v2530_v8, 0.0  ;;  %v2238_v52 = vsel %vm1828_vm1, %v4329_v17, 0.0 }
 0x1a8   :  { %v2822_v30 = vadd.f32 %v2821_v53, %v2820_v7  ;;  %v2231_v16 = vadd.f32 %v2230_v48, %v2229_v11  ;;  %v2532_v7 = vmul.f32 %v4329_v17, %v4329_v17  ;;  %v5151_v48 = vpop.f32.mrb[68].mxu1  ;;  %v2829_v17 = vsel %vm1828_vm1, %v2531_v34, 0.0 }
 0x1a9   :  { %1999 = vst.msk [vmem:[%s5822_s2 + $0x550] sm:$0xff] %vm1828_vm1, %v5151_v48  ;;  %v5158_v61 = vpop.f32.mrb[69].mxu1 }
 0x1aa   :  { %v2824_v15 = vadd.f32 %v2823_v2, %v2822_v30  ;;  %v2233_v6 = vadd.f32 %v2232_v56, %v2231_v16  ;;  %v2236_v2 = vsel %vm1828_vm1, %v4286_v57, 0.0  ;;  %1997 = vst.msk [vmem:[%s5822_s2 + $0x540] sm:$0xff] %vm1828_vm1, %v5158_v61  ;;  %v5170_v30 = vpop.f32.mrb[70].mxu1  ;;  %v2831_v8 = vsel %vm1828_vm1, %v2532_v7, 0.0 }
 0x1ab   :  { %2000 = vst.msk [vmem:[%s5822_s2 + $0x558] sm:$0xff] %vm1828_vm1, %v5170_v30  ;;  %v5177_v57 = vpop.f32.mrb[71].mxu1  ;;  %v2242_v7 = vsel %vm1828_vm1, %v4322_v14, 0.0 }
 0x1ac   :  { %v2235_v11 = vadd.f32 %v2234_v12, %v2233_v6  ;;  %v2826_v53 = vadd.f32 %v2825_v0, %v2824_v15  ;;  %v2533_v15 = vmul.f32 %v4349_v25, %v4349_v25  ;;  %1998 = vst.msk [vmem:[%s5822_s2 + $0x548] sm:$0xff] %vm1828_vm1, %v5177_v57  ;;  %v2534_v0 = vmul.f32 %v4322_v14, %v4322_v14 }
 0x1ae   :  { %v2237_v16 = vadd.f32 %v2236_v2, %v2235_v11  ;;  %v2828_v56 = vadd.f32 %v2827_v50, %v2826_v53  ;;  %v2240_v11 = vsel %vm1828_vm1, %v4349_v25, 0.0  ;;  %v2535_v50 = vmul.f32 %v4338_v21, %v4338_v21 }
 0x1af   :  { %v2833_v2 = vsel %vm1828_vm1, %v2533_v15, 0.0  ;;  %v2835_v14 = vsel %vm1828_vm1, %v2534_v0, 0.0  ;;  %v2246_v15 = vsel %vm1828_vm1, %v4381_v45, 0.0 }
 0x1b0   :  { %v2830_v6 = vadd.f32 %v2829_v17, %v2828_v56  ;;  %v2239_v12 = vadd.f32 %v2238_v52, %v2237_v16  ;;  %v2536_v56 = vmul.f32 %v4381_v45, %v4381_v45  ;;  %v5199_v52 = vpop.f32.mrb[72].mxu1  ;;  %v2837_v45 = vsel %vm1828_vm1, %v2535_v50, 0.0 }
 0x1b1   :  { %2003 = vst.msk [vmem:[%s5822_s2 + $0x570] sm:$0xff] %vm1828_vm1, %v5199_v52  ;;  %v5206_v25 = vpop.f32.mrb[73].mxu1 }
 0x1b2   :  { %v2832_v34 = vadd.f32 %v2831_v8, %v2830_v6  ;;  %v2241_v53 = vadd.f32 %v2240_v11, %v2239_v12  ;;  %v2244_v8 = vsel %vm1828_vm1, %v4338_v21, 0.0  ;;  %2001 = vst.msk [vmem:[%s5822_s2 + $0x560] sm:$0xff] %vm1828_vm1, %v5206_v25  ;;  %v5218_v6 = vpop.f32.mrb[74].mxu1  ;;  %v2839_v0 = vsel %vm1828_vm1, %v2536_v56, 0.0 }
 0x1b3   :  { %2004 = vst.msk [vmem:[%s5822_s2 + $0x578] sm:$0xff] %vm1828_vm1, %v5218_v6  ;;  %v5225_v21 = vpop.f32.mrb[75].mxu1  ;;  %v2250_v56 = vsel %vm1828_vm1, %v4374_v42, 0.0 }
 0x1b4   :  { %v2243_v16 = vadd.f32 %v2242_v7, %v2241_v53  ;;  %v2834_v17 = vadd.f32 %v2833_v2, %v2832_v34  ;;  %v2537_v34 = vmul.f32 %v4401_v55, %v4401_v55  ;;  %2002 = vst.msk [vmem:[%s5822_s2 + $0x568] sm:$0xff] %vm1828_vm1, %v5225_v21  ;;  %v2538_v2 = vmul.f32 %v4374_v42, %v4374_v42 }
 0x1b6   :  { %v2245_v12 = vadd.f32 %v2244_v8, %v2243_v16  ;;  %v2836_v11 = vadd.f32 %v2835_v14, %v2834_v17  ;;  %v2248_v16 = vsel %vm1828_vm1, %v4401_v55, 0.0  ;;  %v2539_v14 = vmul.f32 %v4390_v49, %v4390_v49 }
 0x1b7   :  { %v2841_v8 = vsel %vm1828_vm1, %v2537_v34, 0.0  ;;  %v2843_v42 = vsel %vm1828_vm1, %v2538_v2, 0.0  ;;  %v2254_v34 = vsel %vm1828_vm1, %v4433_v13, 0.0 }
 0x1b8   :  { %v2838_v53 = vadd.f32 %v2837_v45, %v2836_v11  ;;  %v2247_v7 = vadd.f32 %v2246_v15, %v2245_v12  ;;  %v2540_v11 = vmul.f32 %v4433_v13, %v4433_v13  ;;  %v5247_v15 = vpop.f32.mrb[76].mxu1  ;;  %v2845_v13 = vsel %vm1828_vm1, %v2539_v14, 0.0 }
 0x1b9   :  { %2007 = vst.msk [vmem:[%s5822_s2 + $0x590] sm:$0xff] %vm1828_vm1, %v5247_v15  ;;  %v5254_v55 = vpop.f32.mrb[77].mxu1 }
 0x1ba   :  { %v2840_v50 = vadd.f32 %v2839_v0, %v2838_v53  ;;  %v2249_v17 = vadd.f32 %v2248_v16, %v2247_v7  ;;  %v2252_v0 = vsel %vm1828_vm1, %v4390_v49, 0.0  ;;  %2005 = vst.msk [vmem:[%s5822_s2 + $0x580] sm:$0xff] %vm1828_vm1, %v5254_v55  ;;  %v5266_v53 = vpop.f32.mrb[78].mxu1  ;;  %v2847_v2 = vsel %vm1828_vm1, %v2540_v11, 0.0 }
 0x1bb   :  { %2008 = vst.msk [vmem:[%s5822_s2 + $0x598] sm:$0xff] %vm1828_vm1, %v5266_v53  ;;  %v5273_v49 = vpop.f32.mrb[79].mxu1  ;;  %v2258_v11 = vsel %vm1828_vm1, %v4426_v10, 0.0 }
 0x1bc   :  { %v2251_v12 = vadd.f32 %v2250_v56, %v2249_v17  ;;  %v2842_v45 = vadd.f32 %v2841_v8, %v2840_v50  ;;  %v2541_v50 = vmul.f32 %v4453_v24, %v4453_v24  ;;  %2006 = vst.msk [vmem:[%s5822_s2 + $0x588] sm:$0xff] %vm1828_vm1, %v5273_v49  ;;  %v2542_v8 = vmul.f32 %v4426_v10, %v4426_v10 }
 0x1be   :  { %v2253_v7 = vadd.f32 %v2252_v0, %v2251_v12  ;;  %v2844_v16 = vadd.f32 %v2843_v42, %v2842_v45  ;;  %v2256_v12 = vsel %vm1828_vm1, %v4453_v24, 0.0  ;;  %v2543_v42 = vmul.f32 %v4442_v19, %v4442_v19 }
 0x1bf   :  { %v2849_v0 = vsel %vm1828_vm1, %v2541_v50, 0.0  ;;  %v2851_v10 = vsel %vm1828_vm1, %v2542_v8, 0.0  ;;  %v2262_v50 = vsel %vm1828_vm1, %v4485_v47, 0.0 }
 0x1c0   :  { %v2846_v17 = vadd.f32 %v2845_v13, %v2844_v16  ;;  %v2255_v56 = vadd.f32 %v2254_v34, %v2253_v7  ;;  %v2544_v16 = vmul.f32 %v4485_v47, %v4485_v47  ;;  %v5295_v34 = vpop.f32.mrb[80].mxu1  ;;  %v2853_v47 = vsel %vm1828_vm1, %v2543_v42, 0.0 }
 0x1c1   :  { %2011 = vst.msk [vmem:[%s5822_s2 + $0x5b0] sm:$0xff] %vm1828_vm1, %v5295_v34  ;;  %v5302_v24 = vpop.f32.mrb[81].mxu1 }
 0x1c2   :  { %v2848_v14 = vadd.f32 %v2847_v2, %v2846_v17  ;;  %v2257_v45 = vadd.f32 %v2256_v12, %v2255_v56  ;;  %v2260_v2 = vsel %vm1828_vm1, %v4442_v19, 0.0  ;;  %2009 = vst.msk [vmem:[%s5822_s2 + $0x5a0] sm:$0xff] %vm1828_vm1, %v5302_v24  ;;  %v5314_v17 = vpop.f32.mrb[82].mxu1  ;;  %v2855_v8 = vsel %vm1828_vm1, %v2544_v16, 0.0 }
 0x1c3   :  { %2012 = vst.msk [vmem:[%s5822_s2 + $0x5b8] sm:$0xff] %vm1828_vm1, %v5314_v17  ;;  %v5321_v19 = vpop.f32.mrb[83].mxu1  ;;  %v2266_v16 = vsel %vm1828_vm1, %v4478_v43, 0.0 }
 0x1c4   :  { %v2259_v7 = vadd.f32 %v2258_v11, %v2257_v45  ;;  %v2850_v13 = vadd.f32 %v2849_v0, %v2848_v14  ;;  %v2545_v14 = vmul.f32 %v4505_v60, %v4505_v60  ;;  %2010 = vst.msk [vmem:[%s5822_s2 + $0x5a8] sm:$0xff] %vm1828_vm1, %v5321_v19  ;;  %v2546_v0 = vmul.f32 %v4478_v43, %v4478_v43 }
 0x1c6   :  { %v2261_v56 = vadd.f32 %v2260_v2, %v2259_v7  ;;  %v2852_v12 = vadd.f32 %v2851_v10, %v2850_v13  ;;  %v2264_v7 = vsel %vm1828_vm1, %v4505_v60, 0.0  ;;  %v2547_v10 = vmul.f32 %v4494_v54, %v4494_v54 }
 0x1c7   :  { %v2857_v2 = vsel %vm1828_vm1, %v2545_v14, 0.0  ;;  %v2859_v43 = vsel %vm1828_vm1, %v2546_v0, 0.0  ;;  %v2270_v14 = vsel %vm1828_vm1, %v4537_v23, 0.0 }
 0x1c8   :  { %v2854_v45 = vadd.f32 %v2853_v47, %v2852_v12  ;;  %v2263_v11 = vadd.f32 %v2262_v50, %v2261_v56  ;;  %v2548_v12 = vmul.f32 %v4537_v23, %v4537_v23  ;;  %v5343_v50 = vpop.f32.mrb[84].mxu1  ;;  %v2861_v23 = vsel %vm1828_vm1, %v2547_v10, 0.0 }
 0x1c9   :  { %2015 = vst.msk [vmem:[%s5822_s2 + $0x5d0] sm:$0xff] %vm1828_vm1, %v5343_v50  ;;  %v5350_v60 = vpop.f32.mrb[85].mxu1 }
 0x1ca   :  { %v2856_v42 = vadd.f32 %v2855_v8, %v2854_v45  ;;  %v2265_v13 = vadd.f32 %v2264_v7, %v2263_v11  ;;  %v2268_v8 = vsel %vm1828_vm1, %v4494_v54, 0.0  ;;  %2013 = vst.msk [vmem:[%s5822_s2 + $0x5c0] sm:$0xff] %vm1828_vm1, %v5350_v60  ;;  %v5362_v45 = vpop.f32.mrb[86].mxu1  ;;  %v2863_v0 = vsel %vm1828_vm1, %v2548_v12, 0.0 }
 0x1cb   :  { %2016 = vst.msk [vmem:[%s5822_s2 + $0x5d8] sm:$0xff] %vm1828_vm1, %v5362_v45  ;;  %v5369_v54 = vpop.f32.mrb[87].mxu1  ;;  %v2274_v12 = vsel %vm1828_vm1, %v4530_v18, 0.0 }
 0x1cc   :  { %v2267_v56 = vadd.f32 %v2266_v16, %v2265_v13  ;;  %v2858_v47 = vadd.f32 %v2857_v2, %v2856_v42  ;;  %v2549_v42 = vmul.f32 %v4557_v33, %v4557_v33  ;;  %2014 = vst.msk [vmem:[%s5822_s2 + $0x5c8] sm:$0xff] %vm1828_vm1, %v5369_v54  ;;  %v2550_v2 = vmul.f32 %v4530_v18, %v4530_v18 }
 0x1ce   :  { %v2269_v11 = vadd.f32 %v2268_v8, %v2267_v56  ;;  %v2860_v7 = vadd.f32 %v2859_v43, %v2858_v47  ;;  %v2272_v56 = vsel %vm1828_vm1, %v4557_v33, 0.0  ;;  %v2551_v43 = vmul.f32 %v4546_v29, %v4546_v29 }
 0x1cf   :  { %v2865_v8 = vsel %vm1828_vm1, %v2549_v42, 0.0  ;;  %v2867_v18 = vsel %vm1828_vm1, %v2550_v2, 0.0  ;;  %v2278_v42 = vsel %vm1828_vm1, %v4589_v1, 0.0 }
 0x1d0   :  { %v2862_v13 = vadd.f32 %v2861_v23, %v2860_v7  ;;  %v2271_v16 = vadd.f32 %v2270_v14, %v2269_v11  ;;  %v2552_v7 = vmul.f32 %v4589_v1, %v4589_v1  ;;  %v5391_v14 = vpop.f32.mrb[88].mxu1  ;;  %v2869_v1 = vsel %vm1828_vm1, %v2551_v43, 0.0 }
 0x1d1   :  { %2019 = vst.msk [vmem:[%s5822_s2 + $0x5f0] sm:$0xff] %vm1828_vm1, %v5391_v14  ;;  %v5398_v33 = vpop.f32.mrb[89].mxu1 }
 0x1d2   :  { %v2864_v10 = vadd.f32 %v2863_v0, %v2862_v13  ;;  %v2273_v47 = vadd.f32 %v2272_v56, %v2271_v16  ;;  %v2276_v0 = vsel %vm1828_vm1, %v4546_v29, 0.0  ;;  %2017 = vst.msk [vmem:[%s5822_s2 + $0x5e0] sm:$0xff] %vm1828_vm1, %v5398_v33  ;;  %v5410_v13 = vpop.f32.mrb[90].mxu1  ;;  %v2871_v2 = vsel %vm1828_vm1, %v2552_v7, 0.0 }
 0x1d3   :  { %2020 = vst.msk [vmem:[%s5822_s2 + $0x5f8] sm:$0xff] %vm1828_vm1, %v5410_v13  ;;  %v5417_v29 = vpop.f32.mrb[91].mxu1  ;;  %v2282_v7 = vsel %vm1828_vm1, %v4582_v62, 0.0 }
 0x1d4   :  { %v2275_v11 = vadd.f32 %v2274_v12, %v2273_v47  ;;  %v2866_v23 = vadd.f32 %v2865_v8, %v2864_v10  ;;  %v2553_v10 = vmul.f32 %v4609_v9, %v4609_v9  ;;  %2018 = vst.msk [vmem:[%s5822_s2 + $0x5e8] sm:$0xff] %vm1828_vm1, %v5417_v29  ;;  %v2554_v8 = vmul.f32 %v4582_v62, %v4582_v62 }
 0x1d6   :  { %v2277_v16 = vadd.f32 %v2276_v0, %v2275_v11  ;;  %v2868_v56 = vadd.f32 %v2867_v18, %v2866_v23  ;;  %v2280_v11 = vsel %vm1828_vm1, %v4609_v9, 0.0  ;;  %v2555_v18 = vmul.f32 %v4598_v5, %v4598_v5 }
 0x1d7   :  { %v2873_v0 = vsel %vm1828_vm1, %v2553_v10, 0.0  ;;  %v2875_v62 = vsel %vm1828_vm1, %v2554_v8, 0.0  ;;  %v2286_v10 = vsel %vm1828_vm1, %v4641_v41, 0.0 }
 0x1d8   :  { %v2870_v47 = vadd.f32 %v2869_v1, %v2868_v56  ;;  %v2279_v12 = vadd.f32 %v2278_v42, %v2277_v16  ;;  %v2556_v56 = vmul.f32 %v4641_v41, %v4641_v41  ;;  %v5439_v42 = vpop.f32.mrb[92].mxu1  ;;  %v2877_v41 = vsel %vm1828_vm1, %v2555_v18, 0.0 }
 0x1d9   :  { %2023 = vst.msk [vmem:[%s5822_s2 + $0x610] sm:$0xff] %vm1828_vm1, %v5439_v42  ;;  %v5446_v9 = vpop.f32.mrb[93].mxu1 }
 0x1da   :  { %v2872_v43 = vadd.f32 %v2871_v2, %v2870_v47  ;;  %v2281_v23 = vadd.f32 %v2280_v11, %v2279_v12  ;;  %v2284_v2 = vsel %vm1828_vm1, %v4598_v5, 0.0  ;;  %2021 = vst.msk [vmem:[%s5822_s2 + $0x600] sm:$0xff] %vm1828_vm1, %v5446_v9  ;;  %v5458_v47 = vpop.f32.mrb[94].mxu1  ;;  %v2879_v8 = vsel %vm1828_vm1, %v2556_v56, 0.0 }
 0x1db   :  { %5880 = vst [vmem:[#allocation20_spill] sm:$0xff] %v5458_v47  ;;  %2024 = vst.msk [vmem:[%s5822_s2 + $0x618] sm:$0xff] %vm1828_vm1, %v5458_v47  ;;  %v5465_v5 = vpop.f32.mrb[95].mxu1  ;;  %v2290_v56 = vsel %vm1828_vm1, %v4634_v38, 0.0  ;;  %v2561_v47 = vmul.f32 %v4713_v46, %v4713_v46 }
 0x1dc   :  { %v2283_v16 = vadd.f32 %v2282_v7, %v2281_v23  ;;  %v2874_v1 = vadd.f32 %v2873_v0, %v2872_v43  ;;  %v2557_v43 = vmul.f32 %v4661_v59, %v4661_v59  ;;  %2022 = vst.msk [vmem:[%s5822_s2 + $0x608] sm:$0xff] %vm1828_vm1, %v5465_v5  ;;  %v2558_v0 = vmul.f32 %v4634_v38, %v4634_v38 }
 0x1dd   :  { %v2292_v38 = vsel %vm1828_vm1, %v4650_v51, 0.0 }
 0x1de   :  { %v2285_v12 = vadd.f32 %v2284_v2, %v2283_v16  ;;  %v2876_v11 = vadd.f32 %v2875_v62, %v2874_v1  ;;  %v2288_v16 = vsel %vm1828_vm1, %v4661_v59, 0.0  ;;  %v2559_v62 = vmul.f32 %v4650_v51, %v4650_v51 }
 0x1df   :  { %v2881_v2 = vsel %vm1828_vm1, %v2557_v43, 0.0  ;;  %v2296_v51 = vsel %vm1828_vm1, %v4713_v46, 0.0  ;;  %v2300_v46 = vsel %vm1828_vm1, %v4702_v37, 0.0 }
 0x1e0   :  { %v2878_v23 = vadd.f32 %v2877_v41, %v2876_v11  ;;  %v2287_v7 = vadd.f32 %v2286_v10, %v2285_v12  ;;  %v2560_v10 = vmul.f32 %v4693_v32, %v4693_v32  ;;  %v3638_v12 = vmov 0.0  }
 0x1e1   :  { %2030 = vst.msk [vmem:[%s5823_s3] sm:$0x3] %vm2029_vm2, %v3638_v12  ;;  %v2883_v41 = vsel %vm1828_vm1, %v2558_v0, 0.0  ;;  %v2562_v0 = vmul.f32 %v4686_v28, %v4686_v28 }
 0x1e2   :  { %v2880_v18 = vadd.f32 %v2879_v8, %v2878_v23  ;;  %v2289_v1 = vadd.f32 %v2288_v16, %v2287_v7  ;;  %v2294_v8 = vsel %vm1828_vm1, %v4693_v32, 0.0  ;;  %v2885_v7 = vsel %vm1828_vm1, %v2559_v62, 0.0 }
 0x1e3   :  { %v2887_v16 = vsel %vm1828_vm1, %v2560_v10, 0.0  ;;  %v2298_v32 = vsel %vm1828_vm1, %v4686_v28, 0.0  ;;  %v2563_v62 = vmul.f32 %v4702_v37, %v4702_v37  ;;  %v2564_v10 = vmul.f32 %v4745_v27, %v4745_v27 }
 0x1e4   :  { %v2291_v59 = vadd.f32 %v2290_v56, %v2289_v1  ;;  %v2882_v11 = vadd.f32 %v2881_v2, %v2880_v18  ;;  %v2889_v2 = vsel %vm1828_vm1, %v2561_v47, 0.0  ;;  %v2565_v47 = vmul.f32 %v4765_v44, %v4765_v44 }
 0x1e5   :  { %v2304_v37 = vsel %vm1828_vm1, %v4765_v44, 0.0  ;;  %v2308_v44 = vsel %vm1828_vm1, %v4754_v35, 0.0 }
 0x1e6   :  { %v2293_v43 = vadd.f32 %v2292_v38, %v2291_v59  ;;  %v2884_v23 = vadd.f32 %v2883_v41, %v2882_v11  ;;  %v2891_v41 = vsel %vm1828_vm1, %v2562_v0, 0.0  ;;  %v2302_v38 = vsel %vm1828_vm1, %v4745_v27, 0.0 }
 0x1e7   :  { %v2306_v27 = vsel %vm1828_vm1, %v4738_v20, 0.0 }
 0x1e8   :  { %v2886_v12 = vadd.f32 %v2885_v7, %v2884_v23  ;;  %v2295_v1 = vadd.f32 %v2294_v8, %v2293_v43  ;;  %v2893_v43 = vsel %vm1828_vm1, %v2563_v62, 0.0  ;;  %v2895_v23 = vsel %vm1828_vm1, %v2564_v10, 0.0 }
 0x1e9   :  { %v2310_v10 = vsel %vm1828_vm1, %v4797_v31, 0.0 }
 0x1ea   :  { %v2888_v18 = vadd.f32 %v2887_v16, %v2886_v12  ;;  %v2297_v56 = vadd.f32 %v2296_v51, %v2295_v1  ;;  %v2566_v12 = vmul.f32 %v4738_v20, %v4738_v20  ;;  %v2567_v51 = vmul.f32 %v4754_v35, %v4754_v35 }
 0x1eb   :  { %v2312_v35 = vsel %vm1828_vm1, %v4817_v58, 0.0 }
 0x1ec   :  { %v2299_v59 = vadd.f32 %v2298_v32, %v2297_v56  ;;  %v2890_v11 = vadd.f32 %v2889_v2, %v2888_v18  ;;  %v2897_v18 = vsel %vm1828_vm1, %v2565_v47, 0.0  ;;  %v2568_v56 = vmul.f32 %v4797_v31, %v4797_v31 }
 0x1ed   :  { %v2899_v2 = vsel %vm1828_vm1, %v2566_v12, 0.0  ;;  %v2314_v31 = vsel %vm1828_vm1, %v4790_v22, 0.0  ;;  %v2571_v47 = vmul.f32 %v4806_v40, %v4806_v40 }
 0x1ee   :  { %v2892_v8 = vadd.f32 %v2891_v41, %v2890_v11  ;;  %v2301_v28 = vadd.f32 %v2300_v46, %v2299_v59  ;;  %v2901_v11 = vsel %vm1828_vm1, %v2567_v51, 0.0  ;;  %v2903_v41 = vsel %vm1828_vm1, %v2568_v56, 0.0 }
 0x1ef   :  { %v2569_v46 = vmul.f32 %v4817_v58, %v4817_v58  ;;  %v2316_v58 = vsel %vm1828_vm1, %v4806_v40, 0.0  ;;  %v2909_v51 = vsel %vm1828_vm1, %v2571_v47, 0.0  ;;  %v2573_v56 = vmul.f32 %v4869_v3, %v4869_v3 }
 0x1f0   :  { %v2303_v7 = vadd.f32 %v2302_v38, %v2301_v28  ;;  %v2894_v16 = vadd.f32 %v2893_v43, %v2892_v8  ;;  %v2570_v28 = vmul.f32 %v4790_v22, %v4790_v22  ;;  %v2320_v40 = vsel %vm1828_vm1, %v4869_v3, 0.0 }
 0x1f2   :  { %v2896_v1 = vadd.f32 %v2895_v23, %v2894_v16  ;;  %v2305_v0 = vadd.f32 %v2304_v37, %v2303_v7  ;;  %v2905_v7 = vsel %vm1828_vm1, %v2569_v46, 0.0  ;;  %v2572_v16 = vmul.f32 %v4849_v63, %v4849_v63  ;;  %v5883_v46 = vld [vmem:[#allocation5_spill] sm:$0xff] }
 0x1f4   :  { %v2307_v32 = vadd.f32 %v2306_v27, %v2305_v0  ;;  %v2898_v62 = vadd.f32 %v2897_v18, %v2896_v1  ;;  %v2907_v1 = vsel %vm1828_vm1, %v2570_v28, 0.0  ;;  %v2318_v0 = vsel %vm1828_vm1, %v4849_v63, 0.0 }
 0x1f5   :  { %v2911_v18 = vsel %vm1828_vm1, %v2572_v16, 0.0  ;;  %v5884_v16 = vld [vmem:[#allocation7_spill] sm:$0xff] }
 0x1f6   :  { %v2900_v59 = vadd.f32 %v2899_v2, %v2898_v62  ;;  %v2309_v20 = vadd.f32 %v2308_v44, %v2307_v32  ;;  %v5881_v2 = vld [vmem:[#allocation2_spill] sm:$0xff] }
 0x1f7   :  { %v2574_v44 = vmul.f32 %v5881_v2, %v5881_v2  ;;  %v2322_v63 = vsel %vm1828_vm1, %v5881_v2, 0.0  ;;  %v5887_v2 = vld [vmem:[#allocation9_spill] sm:$0xff] }
 0x1f8   :  { %v2311_v38 = vadd.f32 %v2310_v10, %v2309_v20  ;;  %v2902_v8 = vadd.f32 %v2901_v11, %v2900_v59  ;;  %v5882_v20 = vld [vmem:[#allocation3_spill] sm:$0xff] }
 0x1f9   :  { %v2575_v11 = vmul.f32 %v5882_v20, %v5882_v20  ;;  %v2324_v3 = vsel %vm1828_vm1, %v5882_v20, 0.0  ;;  %v2334_v20 = vsel %vm1828_vm1, %v5887_v2, 0.0 }
 0x1fa   :  { %v2904_v43 = vadd.f32 %v2903_v41, %v2902_v8  ;;  %v2313_v23 = vadd.f32 %v2312_v35, %v2311_v38  ;;  %v2913_v41 = vsel %vm1828_vm1, %v2573_v56, 0.0  ;;  %v2576_v38 = vmul.f32 %v5883_v46, %v5883_v46  ;;  %v5886_v56 = vld [vmem:[#allocation6_spill] sm:$0xff] }
 0x1fb   :  { %v2915_v35 = vsel %vm1828_vm1, %v2574_v44, 0.0  ;;  %v2917_v47 = vsel %vm1828_vm1, %v2575_v11, 0.0  ;;  %v2580_v44 = vmul.f32 %v5887_v2, %v5887_v2 }
 0x1fc   :  { %v2315_v12 = vadd.f32 %v2314_v31, %v2313_v23  ;;  %v2906_v37 = vadd.f32 %v2905_v7, %v2904_v43  ;;  %v2326_v43 = vsel %vm1828_vm1, %v5883_v46, 0.0  ;;  %v2919_v7 = vsel %vm1828_vm1, %v2576_v38, 0.0 }
 0x1fd   :  { %v2927_v38 = vsel %vm1828_vm1, %v2580_v44, 0.0 }
 0x1fe   :  { %v2908_v27 = vadd.f32 %v2907_v1, %v2906_v37  ;;  %v2317_v22 = vadd.f32 %v2316_v58, %v2315_v12  ;;  %v2577_v12 = vmul.f32 %v5884_v16, %v5884_v16  ;;  %v5885_v58 = vld [vmem:[#allocation4_spill] sm:$0xff] }
 0x200   :  { %v2319_v32 = vadd.f32 %v2318_v0, %v2317_v22  ;;  %v2910_v62 = vadd.f32 %v2909_v51, %v2908_v27  ;;  %v2578_v0 = vmul.f32 %v5885_v58, %v5885_v58  ;;  %v2328_v27 = vsel %vm1828_vm1, %v5884_v16, 0.0 }
 0x202   :  { %v2912_v10 = vadd.f32 %v2911_v18, %v2910_v62  ;;  %v2321_v59 = vadd.f32 %v2320_v40, %v2319_v32  ;;  %v2330_v18 = vsel %vm1828_vm1, %v5885_v58, 0.0  ;;  %v2579_v32 = vmul.f32 %v5886_v56, %v5886_v56  ;;  %v5891_v58 = vld [vmem:[#allocation13_spill] sm:$0xff] }
 0x203   :  { %v2921_v62 = vsel %vm1828_vm1, %v2577_v12, 0.0  ;;  %v5890_v12 = vld [vmem:[#allocation10_spill] sm:$0xff] }
 0x204   :  { %v2323_v8 = vadd.f32 %v2322_v63, %v2321_v59  ;;  %v2914_v28 = vadd.f32 %v2913_v41, %v2912_v10  ;;  %v2923_v59 = vsel %vm1828_vm1, %v2578_v0, 0.0  ;;  %v2332_v63 = vsel %vm1828_vm1, %v5886_v56, 0.0 }
 0x205   :  { %v2925_v46 = vsel %vm1828_vm1, %v2579_v32, 0.0  ;;  %v2584_v0 = vmul.f32 %v5891_v58, %v5891_v58  ;;  %v2342_v56 = vsel %vm1828_vm1, %v5891_v58, 0.0 }
 0x206   :  { %v2916_v23 = vadd.f32 %v2915_v35, %v2914_v28  ;;  %v2325_v31 = vadd.f32 %v2324_v3, %v2323_v8  ;;  %v5888_v8 = vld [vmem:[#allocation11_spill] sm:$0xff] }
 0x207   :  { %v2581_v28 = vmul.f32 %v5888_v8, %v5888_v8  ;;  %v2935_v44 = vsel %vm1828_vm1, %v2584_v0, 0.0 }
 0x208   :  { %v2327_v37 = vadd.f32 %v2326_v43, %v2325_v31  ;;  %v2918_v1 = vadd.f32 %v2917_v47, %v2916_v23  ;;  %v5889_v43 = vld [vmem:[#allocation8_spill] sm:$0xff]  ;;  %v2336_v31 = vsel %vm1828_vm1, %v5888_v8, 0.0 }
 0x209   :  { %v2582_v23 = vmul.f32 %v5889_v43, %v5889_v43  ;;  %v2338_v16 = vsel %vm1828_vm1, %v5889_v43, 0.0  ;;  %v5895_v43 = vld [vmem:[#allocation17_spill] sm:$0xff] }
 0x20a   :  { %v2920_v22 = vadd.f32 %v2919_v7, %v2918_v1  ;;  %v2329_v51 = vadd.f32 %v2328_v27, %v2327_v37  ;;  %v2583_v37 = vmul.f32 %v5890_v12, %v5890_v12  ;;  %v2929_v1 = vsel %vm1828_vm1, %v2581_v28, 0.0  ;;  %v5894_v28 = vld [vmem:[#allocation14_spill] sm:$0xff] }
 0x20c   :  { %v2331_v40 = vadd.f32 %v2330_v18, %v2329_v51  ;;  %v2922_v10 = vadd.f32 %v2921_v62, %v2920_v22  ;;  %v2931_v51 = vsel %vm1828_vm1, %v2582_v23, 0.0  ;;  %v2340_v18 = vsel %vm1828_vm1, %v5890_v12, 0.0 }
 0x20d   :  { %v2933_v2 = vsel %vm1828_vm1, %v2583_v37, 0.0  ;;  %v2588_v23 = vmul.f32 %v5895_v43, %v5895_v43  ;;  %v2350_v12 = vsel %vm1828_vm1, %v5895_v43, 0.0 }
 0x20e   :  { %v2924_v11 = vadd.f32 %v2923_v59, %v2922_v10  ;;  %v2333_v41 = vadd.f32 %v2332_v63, %v2331_v40  ;;  %v5892_v40 = vld [vmem:[#allocation15_spill] sm:$0xff] }
 0x20f   :  { %v2585_v10 = vmul.f32 %v5892_v40, %v5892_v40  ;;  %v2943_v0 = vsel %vm1828_vm1, %v2588_v23, 0.0  ;;  %v2593_v23 = vmul.f32 %v5129_v4, %v5129_v4 }
 0x210   :  { %v2335_v35 = vadd.f32 %v2334_v20, %v2333_v41  ;;  %v2926_v3 = vadd.f32 %v2925_v46, %v2924_v11  ;;  %v5893_v20 = vld [vmem:[#allocation12_spill] sm:$0xff]  ;;  %v2344_v41 = vsel %vm1828_vm1, %v5892_v40, 0.0 }
 0x211   :  { %v2586_v11 = vmul.f32 %v5893_v20, %v5893_v20  ;;  %v2346_v8 = vsel %vm1828_vm1, %v5893_v20, 0.0  ;;  %v2592_v20 = vmul.f32 %v5111_v39, %v5111_v39 }
 0x212   :  { %v2928_v47 = vadd.f32 %v2927_v38, %v2926_v3  ;;  %v2337_v7 = vadd.f32 %v2336_v31, %v2335_v35  ;;  %v2587_v35 = vmul.f32 %v5894_v28, %v5894_v28  ;;  %v2937_v3 = vsel %vm1828_vm1, %v2585_v10, 0.0  ;;  %v5898_v10 = vld [vmem:[#allocation18_spill] sm:$0xff] }
 0x213   :  { %v2951_v43 = vsel %vm1828_vm1, %v2592_v20, 0.0  ;;  %v2599_v20 = vmul.f32 %v5170_v30, %v5170_v30 }
 0x214   :  { %v2339_v27 = vadd.f32 %v2338_v16, %v2337_v7  ;;  %v2930_v22 = vadd.f32 %v2929_v1, %v2928_v47  ;;  %v2939_v7 = vsel %vm1828_vm1, %v2586_v11, 0.0  ;;  %v2348_v16 = vsel %vm1828_vm1, %v5894_v28, 0.0 }
 0x215   :  { %v2941_v58 = vsel %vm1828_vm1, %v2587_v35, 0.0 }
 0x216   :  { %v2932_v32 = vadd.f32 %v2931_v51, %v2930_v22  ;;  %v2341_v62 = vadd.f32 %v2340_v18, %v2339_v27  ;;  %v5896_v27 = vld [vmem:[#allocation19_spill] sm:$0xff] }
 0x217   :  { %v2589_v22 = vmul.f32 %v5896_v27, %v5896_v27 }
 0x218   :  { %v2343_v59 = vadd.f32 %v2342_v56, %v2341_v62  ;;  %v2934_v63 = vadd.f32 %v2933_v2, %v2932_v32  ;;  %v5897_v56 = vld [vmem:[#allocation16_spill] sm:$0xff]  ;;  %v2352_v62 = vsel %vm1828_vm1, %v5896_v27, 0.0 }
 0x219   :  { %v2590_v32 = vmul.f32 %v5897_v56, %v5897_v56  ;;  %v2354_v40 = vsel %vm1828_vm1, %v5897_v56, 0.0 }
 0x21a   :  { %v2936_v46 = vadd.f32 %v2935_v44, %v2934_v63  ;;  %v2345_v38 = vadd.f32 %v2344_v41, %v2343_v59  ;;  %v2591_v59 = vmul.f32 %v5898_v10, %v5898_v10  ;;  %v2945_v63 = vsel %vm1828_vm1, %v2589_v22, 0.0 }
 0x21c   :  { %v2347_v31 = vadd.f32 %v2346_v8, %v2345_v38  ;;  %v2938_v47 = vadd.f32 %v2937_v3, %v2936_v46  ;;  %v2947_v46 = vsel %vm1828_vm1, %v2590_v32, 0.0  ;;  %v2356_v38 = vsel %vm1828_vm1, %v5898_v10, 0.0 }
 0x21d   :  { %v2358_v8 = vsel %vm1828_vm1, %v5111_v39, 0.0  ;;  %v2949_v3 = vsel %vm1828_vm1, %v2591_v59, 0.0  ;;  %v2362_v39 = vsel %vm1828_vm1, %v5104_v26, 0.0  ;;  %v2598_v10 = vmul.f32 %v5151_v48, %v5151_v48 }
 0x21e   :  { %v2940_v37 = vadd.f32 %v2939_v7, %v2938_v47  ;;  %v2349_v1 = vadd.f32 %v2348_v16, %v2347_v31  ;;  %v2594_v7 = vmul.f32 %v5104_v26, %v5104_v26  ;;  %v2360_v16 = vsel %vm1828_vm1, %v5129_v4, 0.0 }
 0x21f   :  { %v2364_v4 = vsel %vm1828_vm1, %v5122_v36, 0.0 }
 0x220   :  { %v2351_v51 = vadd.f32 %v2350_v12, %v2349_v1  ;;  %v2942_v18 = vadd.f32 %v2941_v58, %v2940_v37  ;;  %v2595_v1 = vmul.f32 %v5122_v36, %v5122_v36  ;;  %v2953_v58 = vsel %vm1828_vm1, %v2593_v23, 0.0 }
 0x221   :  { %v2368_v36 = vsel %vm1828_vm1, %v5177_v57, 0.0  ;;  %v2601_v23 = vmul.f32 %v5225_v21, %v5225_v21 }
 0x222   :  { %v2944_v2 = vadd.f32 %v2943_v0, %v2942_v18  ;;  %v2353_v44 = vadd.f32 %v2352_v62, %v2351_v51  ;;  %v2596_v0 = vmul.f32 %v5158_v61, %v5158_v61  ;;  %v2955_v51 = vsel %vm1828_vm1, %v2594_v7, 0.0 }
 0x223   :  { %v2366_v18 = vsel %vm1828_vm1, %v5158_v61, 0.0  ;;  %v2957_v32 = vsel %vm1828_vm1, %v2595_v1, 0.0  ;;  %v2370_v61 = vsel %vm1828_vm1, %v5151_v48, 0.0  ;;  %v2602_v7 = vmul.f32 %v5199_v52, %v5199_v52 }
 0x224   :  { %v2355_v11 = vadd.f32 %v2354_v40, %v2353_v44  ;;  %v2946_v41 = vadd.f32 %v2945_v63, %v2944_v2  ;;  %v2959_v62 = vsel %vm1828_vm1, %v2596_v0, 0.0  ;;  %v2597_v2 = vmul.f32 %v5177_v57, %v5177_v57 }
 0x225   :  { %v2372_v57 = vsel %vm1828_vm1, %v5170_v30, 0.0  ;;  %v2376_v30 = vsel %vm1828_vm1, %v5225_v21, 0.0  ;;  %v2604_v1 = vmul.f32 %v5254_v55, %v5254_v55  ;;  %v2380_v21 = vsel %vm1828_vm1, %v5218_v6, 0.0 }
 0x226   :  { %v2948_v28 = vadd.f32 %v2947_v46, %v2946_v41  ;;  %v2357_v35 = vadd.f32 %v2356_v38, %v2355_v11  ;;  %v2961_v11 = vsel %vm1828_vm1, %v2597_v2, 0.0  ;;  %v2600_v41 = vmul.f32 %v5206_v25, %v5206_v25 }
 0x228   :  { %v2359_v31 = vadd.f32 %v2358_v8, %v2357_v35  ;;  %v2950_v47 = vadd.f32 %v2949_v3, %v2948_v28  ;;  %v2963_v8 = vsel %vm1828_vm1, %v2598_v10, 0.0  ;;  %v2374_v28 = vsel %vm1828_vm1, %v5206_v25, 0.0 }
 0x229   :  { %v2965_v3 = vsel %vm1828_vm1, %v2599_v20, 0.0  ;;  %v2378_v25 = vsel %vm1828_vm1, %v5199_v52, 0.0  ;;  %v2390_v20 = vsel %vm1828_vm1, %v5302_v24, 0.0 }
 0x22a   :  { %v2952_v12 = vadd.f32 %v2951_v43, %v2950_v47  ;;  %v2361_v37 = vadd.f32 %v2360_v16, %v2359_v31  ;;  %v2967_v43 = vsel %vm1828_vm1, %v2600_v41, 0.0 }
 0x22c   :  { %v2363_v27 = vadd.f32 %v2362_v39, %v2361_v37  ;;  %v2954_v22 = vadd.f32 %v2953_v58, %v2952_v12  ;;  %v2603_v37 = vmul.f32 %v5218_v6, %v5218_v6  ;;  %v2969_v39 = vsel %vm1828_vm1, %v2601_v23, 0.0 }
 0x22d   :  { %v2384_v6 = vsel %vm1828_vm1, %v5273_v49, 0.0  ;;  %v2612_v23 = vmul.f32 %v5350_v60, %v5350_v60 }
 0x22e   :  { %v2956_v56 = vadd.f32 %v2955_v51, %v2954_v22  ;;  %v2365_v26 = vadd.f32 %v2364_v4, %v2363_v27  ;;  %v2971_v27 = vsel %vm1828_vm1, %v2602_v7, 0.0  ;;  %v2382_v22 = vsel %vm1828_vm1, %v5254_v55, 0.0 }
 0x22f   :  { %v2973_v4 = vsel %vm1828_vm1, %v2603_v37, 0.0  ;;  %v2386_v55 = vsel %vm1828_vm1, %v5247_v15, 0.0  ;;  %v2613_v37 = vmul.f32 %v5369_v54, %v5369_v54 }
 0x230   :  { %v2367_v44 = vadd.f32 %v2366_v18, %v2365_v26  ;;  %v2958_v40 = vadd.f32 %v2957_v32, %v2956_v56  ;;  %v2975_v18 = vsel %vm1828_vm1, %v2604_v1, 0.0  ;;  %v2605_v56 = vmul.f32 %v5273_v49, %v5273_v49 }
 0x231   :  { %v2388_v49 = vsel %vm1828_vm1, %v5266_v53, 0.0 }
 0x232   :  { %v2960_v59 = vadd.f32 %v2959_v62, %v2958_v40  ;;  %v2369_v63 = vadd.f32 %v2368_v36, %v2367_v44  ;;  %v2606_v62 = vmul.f32 %v5247_v15, %v5247_v15  ;;  %v2607_v40 = vmul.f32 %v5266_v53, %v5266_v53 }
 0x233   :  { %v2977_v10 = vsel %vm1828_vm1, %v2605_v56, 0.0  ;;  %v2608_v36 = vmul.f32 %v5302_v24, %v5302_v24  ;;  %v2392_v53 = vsel %vm1828_vm1, %v5321_v19, 0.0  ;;  %v2394_v24 = vsel %vm1828_vm1, %v5295_v34, 0.0 }
 0x234   :  { %v2371_v46 = vadd.f32 %v2370_v61, %v2369_v63  ;;  %v2962_v38 = vadd.f32 %v2961_v11, %v2960_v59  ;;  %v2979_v61 = vsel %vm1828_vm1, %v2606_v62, 0.0  ;;  %v2981_v41 = vsel %vm1828_vm1, %v2607_v40, 0.0 }
 0x235   :  { %v2406_v56 = vsel %vm1828_vm1, %v5398_v33, 0.0 }
 0x236   :  { %v2964_v35 = vadd.f32 %v2963_v8, %v2962_v38  ;;  %v2373_v48 = vadd.f32 %v2372_v57, %v2371_v46  ;;  %v2983_v46 = vsel %vm1828_vm1, %v2608_v36, 0.0  ;;  %v2609_v38 = vmul.f32 %v5321_v19, %v5321_v19 }
 0x237   :  { %v2396_v19 = vsel %vm1828_vm1, %v5314_v17, 0.0  ;;  %v2619_v36 = vmul.f32 %v5410_v13, %v5410_v13 }
 0x238   :  { %v2375_v31 = vadd.f32 %v2374_v28, %v2373_v48  ;;  %v2966_v47 = vadd.f32 %v2965_v3, %v2964_v35  ;;  %v2610_v28 = vmul.f32 %v5295_v34, %v5295_v34  ;;  %v2611_v3 = vmul.f32 %v5314_v17, %v5314_v17 }
 0x239   :  { %v2400_v17 = vsel %vm1828_vm1, %v5369_v54, 0.0  ;;  %v2404_v54 = vsel %vm1828_vm1, %v5362_v45, 0.0 }
 0x23a   :  { %v2968_v16 = vadd.f32 %v2967_v43, %v2966_v47  ;;  %v2377_v12 = vadd.f32 %v2376_v30, %v2375_v31  ;;  %v2985_v43 = vsel %vm1828_vm1, %v2609_v38, 0.0  ;;  %v2987_v7 = vsel %vm1828_vm1, %v2610_v28, 0.0 }
 0x23b   :  { %v2398_v30 = vsel %vm1828_vm1, %v5350_v60, 0.0  ;;  %v2402_v60 = vsel %vm1828_vm1, %v5343_v50, 0.0  ;;  %v2621_v38 = vmul.f32 %v5465_v5, %v5465_v5  ;;  %v2622_v28 = vmul.f32 %v5439_v42, %v5439_v42 }
 0x23c   :  { %v2379_v58 = vadd.f32 %v2378_v25, %v2377_v12  ;;  %v2970_v0 = vadd.f32 %v2969_v39, %v2968_v16  ;;  %v2989_v12 = vsel %vm1828_vm1, %v2611_v3, 0.0  ;;  %v2991_v25 = vsel %vm1828_vm1, %v2612_v23, 0.0 }
 0x23d   :  { %v3009_v3 = vsel %vm1828_vm1, %v2621_v38, 0.0 }
 0x23e   :  { %v2972_v51 = vadd.f32 %v2971_v27, %v2970_v0  ;;  %v2381_v52 = vadd.f32 %v2380_v21, %v2379_v58  ;;  %v2614_v58 = vmul.f32 %v5343_v50, %v5343_v50  ;;  %v2615_v21 = vmul.f32 %v5362_v45, %v5362_v45 }
 0x23f   :  { %v2408_v45 = vsel %vm1828_vm1, %v5417_v29, 0.0 }
 0x240   :  { %v2383_v26 = vadd.f32 %v2382_v22, %v2381_v52  ;;  %v2974_v32 = vadd.f32 %v2973_v4, %v2972_v51  ;;  %v2993_v22 = vsel %vm1828_vm1, %v2613_v37, 0.0  ;;  %v2616_v51 = vmul.f32 %v5398_v33, %v5398_v33 }
 0x241   :  { %v2410_v33 = vsel %vm1828_vm1, %v5391_v14, 0.0 }
 0x242   :  { %v2976_v2 = vadd.f32 %v2975_v18, %v2974_v32  ;;  %v2385_v44 = vadd.f32 %v2384_v6, %v2383_v26  ;;  %v2995_v18 = vsel %vm1828_vm1, %v2614_v58, 0.0  ;;  %v2997_v32 = vsel %vm1828_vm1, %v2615_v21, 0.0 }
 0x243   :  { %v2999_v62 = vsel %vm1828_vm1, %v2616_v51, 0.0  ;;  %v2617_v6 = vmul.f32 %v5417_v29, %v5417_v29  ;;  %v2412_v29 = vsel %vm1828_vm1, %v5410_v13, 0.0  ;;  %v2416_v13 = vsel %vm1828_vm1, %v5465_v5, 0.0 }
 0x244   :  { %v2387_v59 = vadd.f32 %v2386_v55, %v2385_v44  ;;  %v2978_v63 = vadd.f32 %v2977_v10, %v2976_v2  ;;  %v2618_v55 = vmul.f32 %v5391_v14, %v5391_v14 }
 0x246   :  { %v2980_v11 = vadd.f32 %v2979_v61, %v2978_v63  ;;  %v2389_v15 = vadd.f32 %v2388_v49, %v2387_v59  ;;  %v3001_v59 = vsel %vm1828_vm1, %v2617_v6, 0.0  ;;  %v2620_v63 = vmul.f32 %v5446_v9, %v5446_v9 }
 0x248   :  { %v2391_v8 = vadd.f32 %v2390_v20, %v2389_v15  ;;  %v2982_v57 = vadd.f32 %v2981_v41, %v2980_v11  ;;  %v3003_v20 = vsel %vm1828_vm1, %v2618_v55, 0.0  ;;  %v2414_v11 = vsel %vm1828_vm1, %v5446_v9, 0.0 }
 0x249   :  { %v3005_v41 = vsel %vm1828_vm1, %v2619_v36, 0.0  ;;  %v2418_v9 = vsel %vm1828_vm1, %v5439_v42, 0.0 }
 0x24a   :  { %v2984_v35 = vadd.f32 %v2983_v46, %v2982_v57  ;;  %v2393_v48 = vadd.f32 %v2392_v53, %v2391_v8  ;;  %v3007_v46 = vsel %vm1828_vm1, %v2620_v63, 0.0 }
 0x24c   :  { %v2395_v31 = vadd.f32 %v2394_v24, %v2393_v48  ;;  %v2986_v47 = vadd.f32 %v2985_v43, %v2984_v35  ;;  %v5899_v48 = vld [vmem:[#allocation20_spill] sm:$0xff] }
 0x24d   :  { %v2623_v24 = vmul.f32 %v5899_v48, %v5899_v48 }
 0x24e   :  { %v2988_v16 = vadd.f32 %v2987_v7, %v2986_v47  ;;  %v2397_v34 = vadd.f32 %v2396_v19, %v2395_v31  ;;  %v3011_v31 = vsel %vm1828_vm1, %v2622_v28, 0.0  ;;  %v2420_v47 = vsel %vm1828_vm1, %v5899_v48, 0.0 }
 0x24f   :  { %v3013_v5 = vsel %vm1828_vm1, %v2623_v24, 0.0 }
 0x250   :  { %v2399_v39 = vadd.f32 %v2398_v30, %v2397_v34  ;;  %v2990_v1 = vadd.f32 %v2989_v12, %v2988_v16 }
 0x252   :  { %v2992_v0 = vadd.f32 %v2991_v25, %v2990_v1  ;;  %v2401_v27 = vadd.f32 %v2400_v17, %v2399_v39 }
 0x254   :  { %v2403_v52 = vadd.f32 %v2402_v60, %v2401_v27  ;;  %v2994_v4 = vadd.f32 %v2993_v22, %v2992_v0  ;;  %v3021_v60 = vld [vmem:[%s5823_s3] sm:$0x3] }
 0x256   :  { %v2996_v26 = vadd.f32 %v2995_v18, %v2994_v4  ;;  %v2405_v50 = vadd.f32 %v2404_v54, %v2403_v52 }
 0x258   :  { %v2407_v2 = vadd.f32 %v2406_v56, %v2405_v50  ;;  %v2998_v44 = vadd.f32 %v2997_v32, %v2996_v26 }
 0x25a   :  { %v3000_v40 = vadd.f32 %v2999_v62, %v2998_v44  ;;  %v2409_v10 = vadd.f32 %v2408_v45, %v2407_v2 }
 0x25c   :  { %v2411_v61 = vadd.f32 %v2410_v33, %v2409_v10  ;;  %v3002_v49 = vadd.f32 %v3001_v59, %v3000_v40 }
 0x25e   :  { %v3004_v15 = vadd.f32 %v3003_v20, %v3002_v49  ;;  %v2413_v14 = vadd.f32 %v2412_v29, %v2411_v61 }
 0x260   :  { %v2415_v8 = vadd.f32 %v2414_v11, %v2413_v14  ;;  %v3006_v57 = vadd.f32 %v3005_v41, %v3004_v15 }
 0x262   :  { %v3008_v53 = vadd.f32 %v3007_v46, %v3006_v57  ;;  %v2417_v35 = vadd.f32 %v2416_v13, %v2415_v8 }
 0x264   :  { %v2419_v43 = vadd.f32 %v2418_v9, %v2417_v35  ;;  %v3010_v23 = vadd.f32 %v3009_v3, %v3008_v53 }
 0x266   :  { %v2421_v7 = vadd.f32 %v2420_v47, %v2419_v43  ;;  %v3012_v19 = vadd.f32 %v3011_v31, %v3010_v23 }
 0x268   :  { %v2422_v30 = vrot.slane %v2421_v7, 4  ;;  %v3014_v16 = vadd.f32 %v3013_v5, %v3012_v19 }
 0x26a   :  { %v2423_v34 = vadd.f32 %v2422_v30, %v2421_v7  ;;  %v3015_v42 = vrot.slane %v3014_v16, 4 }
 0x26c   :  { %v2424_v12 = vrot.slane %v2423_v34, 2  ;;  %v3016_v25 = vadd.f32 %v3015_v42, %v3014_v16 }
 0x26e   :  { %v2425_v37 = vadd.f32 %v2424_v12, %v2423_v34  ;;  %v3017_v39 = vrot.slane %v3016_v25, 2 }
 0x270   :  { %v2426_v1 = vrot.slane %v2425_v37, 1  ;;  %v3018_v58 = vadd.f32 %v3017_v39, %v3016_v25 }
 0x272   :  { %v3019_v17 = vrot.slane %v3018_v58, 1  ;;  %v2427_v0 = vadd.f32 %v2426_v1, %v2425_v37 }
 0x274   :  { %v3020_v27 = vadd.f32 %v3019_v17, %v3018_v58 }
 0x276   :  { %v3023_v21 = vsel %vm3022_vm3, %v2427_v0, %v3020_v27 }
 0x277   :  { %v3024_v22 = vadd.f32 %v3023_v21, %v3021_v60 }
 0x279   :  { %3026 = vst.msk [vmem:[%s5823_s3] sm:$0x3] %vm2029_vm2, %v3024_v22 }

// kernel: my_model_forward.6
= control target key start
LH: loop header
LB: loop body
LE: loop exit
PB: predicated region body
PF: predicated region fallthrough
CT: control target
= control target key end

     0   :  { %vm821_vm0 = vcmask 130048   ;;  %s2110_s0 = inlined_call_operand.vmem [shape: f32[392,16], index: 0, kind: input, shape index: {}]   ;;  %s2111_s1 = inlined_call_operand.vmem [shape: f32[392,16], index: 1, kind: input, shape index: {}]   ;;  %s2112_s2 = inlined_call_operand.vmem [shape: f32[392,16], index: 2, kind: input, shape index: {}]   ;;  %s2113_s3 = inlined_call_operand.vmem [shape: f32[392,16], index: 3, kind: input, shape index: {}]   ;;  %s2114_s4 = inlined_call_operand.vmem [shape: f32[1,16], index: 4, kind: input, shape index: {}]   ;;  %s2115_s5 = inlined_call_operand.vmem [shape: f32[1,16], index: 5, kind: input, shape index: {}]   ;;  %s2116_s6 = inlined_call_operand.vmem [shape: f32[392,16], index: 6, kind: output, shape index: {}]  }
   0x1   :  { %v917_v0 = vld [vmem:[%s2114_s4] ss:$0 sm:$0xff]  ;;  %v26_v10 = vld [vmem:[%s2110_s0 + $0x8] sm:$0xff]  ;;  %v27_v18 = vld [vmem:[%s2110_s0 + $0x10] sm:$0xff] }
   0x2   :  { %v922_v1 = vld [vmem:[%s2115_s5] ss:$0 sm:$0xff]  ;;  %v185_v11 = vld [vmem:[%s2111_s1 + $0x8] sm:$0xff]  ;;  %v81_v14 = vmul.f32 %v917_v0, %v26_v10  ;;  %v186_v19 = vld [vmem:[%s2111_s1 + $0x10] sm:$0xff]  ;;  %v82_v29 = vmul.f32 %v917_v0, %v27_v18 }
   0x3   :  { %v25_v2 = vld [vmem:[%s2110_s0] sm:$0xff]  ;;  %v332_v12 = vld [vmem:[%s2112_s2 + $0x8] sm:$0xff]  ;;  %v234_v15 = vmul.f32 %v917_v0, %v185_v11  ;;  %v333_v24 = vld [vmem:[%s2112_s2 + $0x10] sm:$0xff]  ;;  %v235_v34 = vmul.f32 %v917_v0, %v186_v19 }
   0x4   :  { %v80_v3 = vmul.f32 %v917_v0, %v25_v2  ;;  %v184_v4 = vld [vmem:[%s2111_s1] sm:$0xff]  ;;  %v381_v16 = vmul.f32 %v917_v0, %v332_v12  ;;  %v479_v17 = vld [vmem:[%s2113_s3 + $0x8] sm:$0xff]  ;;  %v480_v25 = vld [vmem:[%s2113_s3 + $0x10] sm:$0xff]  ;;  %v136_v26 = vadd.f32 %v922_v1, %v81_v14  ;;  %v137_v38 = vadd.f32 %v922_v1, %v82_v29 }
   0x5   :  { %v331_v5 = vld [vmem:[%s2112_s2] sm:$0xff]  ;;  %v233_v7 = vmul.f32 %v917_v0, %v184_v4  ;;  %v528_v23 = vmul.f32 %v917_v0, %v479_v17  ;;  %v283_v27 = vadd.f32 %v922_v1, %v234_v15  ;;  %v28_v30 = vld [vmem:[%s2110_s0 + $0x18] sm:$0xff]  ;;  %v382_v39 = vmul.f32 %v917_v0, %v333_v24  ;;  %v30_v62 = vld [vmem:[%s2110_s0 + $0x28] sm:$0xff] }
   0x6   :  { %v478_v6 = vld [vmem:[%s2113_s3] sm:$0xff]  ;;  %v380_v8 = vmul.f32 %v917_v0, %v331_v5  ;;  %v135_v13 = vadd.f32 %v922_v1, %v80_v3  ;;  %v430_v28 = vadd.f32 %v922_v1, %v381_v16  ;;  %v187_v35 = vld [vmem:[%s2111_s1 + $0x18] sm:$0xff]  ;;  %v529_v40 = vmul.f32 %v917_v0, %v480_v25  ;;  %v189_v5 = vld [vmem:[%s2111_s1 + $0x28] sm:$0xff] }
   0x7   :  { %v527_v9 = vmul.f32 %v917_v0, %v478_v6  ;;  %v282_v20 = vadd.f32 %v922_v1, %v233_v7  ;;  %v577_v33 = vadd.f32 %v922_v1, %v528_v23  ;;  %v334_v36 = vld [vmem:[%s2112_s2 + $0x18] sm:$0xff]  ;;  %v626_v37 = vmax.f32 %v136_v26, %v283_v27  ;;  %v29_v50 = vld [vmem:[%s2110_s0 + $0x20] sm:$0xff]  ;;  %v336_v10 = vld [vmem:[%s2112_s2 + $0x28] sm:$0xff] }
   0x8   :  { %v429_v21 = vadd.f32 %v922_v1, %v380_v8  ;;  %v284_v43 = vadd.f32 %v922_v1, %v235_v34  ;;  %v83_v44 = vmul.f32 %v917_v0, %v28_v30  ;;  %v481_v45 = vld [vmem:[%s2113_s3 + $0x18] sm:$0xff]  ;;  %v431_v46 = vadd.f32 %v922_v1, %v382_v39  ;;  %v188_v51 = vld [vmem:[%s2111_s1 + $0x20] sm:$0xff]  ;;  %v483_v11 = vld [vmem:[%s2113_s3 + $0x28] sm:$0xff] }
   0x9   :  { %v576_v22 = vadd.f32 %v922_v1, %v527_v9  ;;  %v625_v31 = vmax.f32 %v135_v13, %v282_v20  ;;  %v675_v42 = vmax.f32 %v430_v28, %v577_v33  ;;  %v578_v47 = vadd.f32 %v922_v1, %v529_v40  ;;  %v335_v52 = vld [vmem:[%s2112_s2 + $0x20] sm:$0xff]  ;;  %v31_v16 = vld [vmem:[%s2110_s0 + $0x30] sm:$0xff] }
   0xa   :  { %v236_v48 = vmul.f32 %v917_v0, %v187_v35  ;;  %v383_v49 = vmul.f32 %v917_v0, %v334_v36  ;;  %v627_v55 = vmax.f32 %v137_v38, %v284_v43  ;;  %v138_v56 = vadd.f32 %v922_v1, %v83_v44  ;;  %v482_v57 = vld [vmem:[%s2113_s3 + $0x20] sm:$0xff]  ;;  %v32_v36 = vld [vmem:[%s2110_s0 + $0x38] sm:$0xff] }
   0xb   :  { %v674_v32 = vmax.f32 %v429_v21, %v576_v22  ;;  %v724_v54 = vmax.f32 %v626_v37, %v675_v42  ;;  %v676_v58 = vmax.f32 %v431_v46, %v578_v47  ;;  %v530_v61 = vmul.f32 %v917_v0, %v481_v45  ;;  %v190_v21 = vld [vmem:[%s2111_s1 + $0x30] sm:$0xff]  ;;  %v191_v37 = vld [vmem:[%s2111_s1 + $0x38] sm:$0xff] }
   0xc   :  { %v285_v59 = vadd.f32 %v922_v1, %v236_v48  ;;  %v432_v60 = vadd.f32 %v922_v1, %v383_v49  ;;  %v84_v2 = vmul.f32 %v917_v0, %v29_v50  ;;  %v237_v3 = vmul.f32 %v917_v0, %v188_v51  ;;  %v337_v22 = vld [vmem:[%s2112_s2 + $0x30] sm:$0xff]  ;;  %v338_v38 = vld [vmem:[%s2112_s2 + $0x38] sm:$0xff]  ;;  %v33_v48 = vld [vmem:[%s2110_s0 + $0x40] sm:$0xff] }
   0xd   :  { %v723_v41 = vmax.f32 %v625_v31, %v674_v32  ;;  %v773_v63 = vmax.f32 %v724_v54, 0.0  ;;  %v384_v4 = vmul.f32 %v917_v0, %v335_v52  ;;  %v725_v6 = vmax.f32 %v627_v55, %v676_v58  ;;  %v484_v31 = vld [vmem:[%s2113_s3 + $0x30] sm:$0xff]  ;;  %v485_v43 = vld [vmem:[%s2113_s3 + $0x38] sm:$0xff]  ;;  %v339_v58 = vld [vmem:[%s2112_s2 + $0x40] sm:$0xff] }
   0xe   :  { %v579_v7 = vadd.f32 %v922_v1, %v530_v61  ;;  %v628_v8 = vmax.f32 %v138_v56, %v285_v59  ;;  %v531_v9 = vmul.f32 %v917_v0, %v482_v57  ;;  %v139_v12 = vadd.f32 %v922_v1, %v84_v2  ;;  %v486_v59 = vld [vmem:[%s2113_s3 + $0x40] sm:$0xff]  ;;  %v34_v2 = vld [vmem:[%s2110_s0 + $0x48] sm:$0xff] }
   0xf   :  { %v772_v53 = vmax.f32 %v723_v41, 0.0  ;;  %823 = vst.msk [vmem:[%s2116_s6 + $0x8] sm:$0xff] %vm821_vm0, %v773_v63  ;;  %v286_v13 = vadd.f32 %v922_v1, %v237_v3  ;;  %v433_v14 = vadd.f32 %v922_v1, %v384_v4  ;;  %v85_v15 = vmul.f32 %v917_v0, %v30_v62 }
  0x10   :  { %v774_v17 = vmax.f32 %v725_v6, 0.0  ;;  %v677_v18 = vmax.f32 %v432_v60, %v579_v7  ;;  %v580_v19 = vadd.f32 %v922_v1, %v531_v9  ;;  %v238_v20 = vmul.f32 %v917_v0, %v189_v5  ;;  %v193_v7 = vld [vmem:[%s2111_s1 + $0x48] sm:$0xff] }
  0x11   :  { %822 = vst.msk [vmem:[%s2116_s6] sm:$0xff] %vm821_vm0, %v772_v53  ;;  %v629_v23 = vmax.f32 %v139_v12, %v286_v13  ;;  %v140_v24 = vadd.f32 %v922_v1, %v85_v15  ;;  %v385_v25 = vmul.f32 %v917_v0, %v336_v10  ;;  %v532_v26 = vmul.f32 %v917_v0, %v483_v11  ;;  %v192_v53 = vld [vmem:[%s2111_s1 + $0x40] sm:$0xff] }
  0x12   :  { %824 = vst.msk [vmem:[%s2116_s6 + $0x10] sm:$0xff] %vm821_vm0, %v774_v17  ;;  %v726_v27 = vmax.f32 %v628_v8, %v677_v18  ;;  %v678_v28 = vmax.f32 %v433_v14, %v580_v19  ;;  %v287_v29 = vadd.f32 %v922_v1, %v238_v20  ;;  %v86_v30 = vmul.f32 %v917_v0, %v31_v16  ;;  %v340_v8 = vld [vmem:[%s2112_s2 + $0x48] sm:$0xff] }
  0x13   :  { %v434_v32 = vadd.f32 %v922_v1, %v385_v25  ;;  %v581_v33 = vadd.f32 %v922_v1, %v532_v26  ;;  %v239_v34 = vmul.f32 %v917_v0, %v190_v21  ;;  %v386_v35 = vmul.f32 %v917_v0, %v337_v22  ;;  %v487_v17 = vld [vmem:[%s2113_s3 + $0x48] sm:$0xff]  ;;  %v35_v22 = vld [vmem:[%s2110_s0 + $0x50] sm:$0xff] }
  0x14   :  { %v775_v39 = vmax.f32 %v726_v27, 0.0  ;;  %v727_v40 = vmax.f32 %v629_v23, %v678_v28  ;;  %v630_v41 = vmax.f32 %v140_v24, %v287_v29  ;;  %v141_v42 = vadd.f32 %v922_v1, %v86_v30  ;;  %v194_v23 = vld [vmem:[%s2111_s1 + $0x50] sm:$0xff] }
  0x15   :  { %v679_v44 = vmax.f32 %v434_v32, %v581_v33  ;;  %v288_v45 = vadd.f32 %v922_v1, %v239_v34  ;;  %v435_v46 = vadd.f32 %v922_v1, %v386_v35  ;;  %v533_v47 = vmul.f32 %v917_v0, %v484_v31  ;;  %v341_v24 = vld [vmem:[%s2112_s2 + $0x50] sm:$0xff]  ;;  %v36_v34 = vld [vmem:[%s2110_s0 + $0x58] sm:$0xff] }
  0x16   :  { %825 = vst.msk [vmem:[%s2116_s6 + $0x18] sm:$0xff] %vm821_vm0, %v775_v39  ;;  %v776_v49 = vmax.f32 %v727_v40, 0.0  ;;  %v87_v50 = vmul.f32 %v917_v0, %v32_v36  ;;  %v240_v51 = vmul.f32 %v917_v0, %v191_v37  ;;  %v387_v52 = vmul.f32 %v917_v0, %v338_v38  ;;  %v488_v29 = vld [vmem:[%s2113_s3 + $0x50] sm:$0xff]  ;;  %v195_v39 = vld [vmem:[%s2111_s1 + $0x58] sm:$0xff] }
  0x17   :  { %v728_v54 = vmax.f32 %v630_v41, %v679_v44  ;;  %v582_v55 = vadd.f32 %v922_v1, %v533_v47  ;;  %v631_v56 = vmax.f32 %v141_v42, %v288_v45  ;;  %v534_v57 = vmul.f32 %v917_v0, %v485_v43  ;;  %v342_v44 = vld [vmem:[%s2112_s2 + $0x58] sm:$0xff] }
  0x18   :  { %826 = vst.msk [vmem:[%s2116_s6 + $0x20] sm:$0xff] %vm821_vm0, %v776_v49  ;;  %v142_v60 = vadd.f32 %v922_v1, %v87_v50  ;;  %v289_v61 = vadd.f32 %v922_v1, %v240_v51  ;;  %v436_v62 = vadd.f32 %v922_v1, %v387_v52  ;;  %v88_v63 = vmul.f32 %v917_v0, %v33_v48  ;;  %v489_v45 = vld [vmem:[%s2113_s3 + $0x58] sm:$0xff]  ;;  %v37_v50 = vld [vmem:[%s2110_s0 + $0x60] sm:$0xff] }
  0x19   :  { %v777_v3 = vmax.f32 %v728_v54, 0.0  ;;  %v680_v4 = vmax.f32 %v435_v46, %v582_v55  ;;  %v583_v5 = vadd.f32 %v922_v1, %v534_v57  ;;  %v241_v6 = vmul.f32 %v917_v0, %v192_v53  ;;  %v196_v55 = vld [vmem:[%s2111_s1 + $0x60] sm:$0xff] }
  0x1a   :  { %v632_v9 = vmax.f32 %v142_v60, %v289_v61  ;;  %v143_v10 = vadd.f32 %v922_v1, %v88_v63  ;;  %v388_v11 = vmul.f32 %v917_v0, %v339_v58  ;;  %v535_v12 = vmul.f32 %v917_v0, %v486_v59 }
  0x1b   :  { %827 = vst.msk [vmem:[%s2116_s6 + $0x28] sm:$0xff] %vm821_vm0, %v777_v3  ;;  %v729_v13 = vmax.f32 %v631_v56, %v680_v4  ;;  %v681_v14 = vmax.f32 %v436_v62, %v583_v5  ;;  %v290_v15 = vadd.f32 %v922_v1, %v241_v6  ;;  %v89_v16 = vmul.f32 %v917_v0, %v34_v2  ;;  %v343_v56 = vld [vmem:[%s2112_s2 + $0x60] sm:$0xff] }
  0x1c   :  { %v437_v18 = vadd.f32 %v922_v1, %v388_v11  ;;  %v584_v19 = vadd.f32 %v922_v1, %v535_v12  ;;  %v242_v20 = vmul.f32 %v917_v0, %v193_v7  ;;  %v389_v21 = vmul.f32 %v917_v0, %v340_v8  ;;  %v490_v3 = vld [vmem:[%s2113_s3 + $0x60] sm:$0xff]  ;;  %v38_v8 = vld [vmem:[%s2110_s0 + $0x68] sm:$0xff] }
  0x1d   :  { %v778_v25 = vmax.f32 %v729_v13, 0.0  ;;  %v730_v26 = vmax.f32 %v632_v9, %v681_v14  ;;  %v633_v27 = vmax.f32 %v143_v10, %v290_v15  ;;  %v144_v28 = vadd.f32 %v922_v1, %v89_v16  ;;  %v197_v9 = vld [vmem:[%s2111_s1 + $0x68] sm:$0xff] }
  0x1e   :  { %v682_v30 = vmax.f32 %v437_v18, %v584_v19  ;;  %v291_v31 = vadd.f32 %v922_v1, %v242_v20  ;;  %v438_v32 = vadd.f32 %v922_v1, %v389_v21  ;;  %v536_v33 = vmul.f32 %v917_v0, %v487_v17  ;;  %v344_v10 = vld [vmem:[%s2112_s2 + $0x68] sm:$0xff]  ;;  %v39_v20 = vld [vmem:[%s2110_s0 + $0x70] sm:$0xff] }
  0x1f   :  { %828 = vst.msk [vmem:[%s2116_s6 + $0x30] sm:$0xff] %vm821_vm0, %v778_v25  ;;  %v779_v35 = vmax.f32 %v730_v26, 0.0  ;;  %v90_v36 = vmul.f32 %v917_v0, %v35_v22  ;;  %v243_v37 = vmul.f32 %v917_v0, %v194_v23  ;;  %v390_v38 = vmul.f32 %v917_v0, %v341_v24  ;;  %v491_v15 = vld [vmem:[%s2113_s3 + $0x68] sm:$0xff]  ;;  %v198_v25 = vld [vmem:[%s2111_s1 + $0x70] sm:$0xff] }
  0x20   :  { %v731_v40 = vmax.f32 %v633_v27, %v682_v30  ;;  %v585_v41 = vadd.f32 %v922_v1, %v536_v33  ;;  %v634_v42 = vmax.f32 %v144_v28, %v291_v31  ;;  %v537_v43 = vmul.f32 %v917_v0, %v488_v29  ;;  %v345_v30 = vld [vmem:[%s2112_s2 + $0x70] sm:$0xff] }
  0x21   :  { %829 = vst.msk [vmem:[%s2116_s6 + $0x38] sm:$0xff] %vm821_vm0, %v779_v35  ;;  %v145_v46 = vadd.f32 %v922_v1, %v90_v36  ;;  %v292_v47 = vadd.f32 %v922_v1, %v243_v37  ;;  %v439_v48 = vadd.f32 %v922_v1, %v390_v38  ;;  %v91_v49 = vmul.f32 %v917_v0, %v36_v34  ;;  %v492_v31 = vld [vmem:[%s2113_s3 + $0x70] sm:$0xff]  ;;  %v40_v36 = vld [vmem:[%s2110_s0 + $0x78] sm:$0xff] }
  0x22   :  { %v780_v51 = vmax.f32 %v731_v40, 0.0  ;;  %v683_v52 = vmax.f32 %v438_v32, %v585_v41  ;;  %v586_v53 = vadd.f32 %v922_v1, %v537_v43  ;;  %v244_v54 = vmul.f32 %v917_v0, %v195_v39  ;;  %v199_v41 = vld [vmem:[%s2111_s1 + $0x78] sm:$0xff] }
  0x23   :  { %v635_v57 = vmax.f32 %v145_v46, %v292_v47  ;;  %v146_v58 = vadd.f32 %v922_v1, %v91_v49  ;;  %v391_v59 = vmul.f32 %v917_v0, %v342_v44  ;;  %v538_v60 = vmul.f32 %v917_v0, %v489_v45 }
  0x24   :  { %830 = vst.msk [vmem:[%s2116_s6 + $0x40] sm:$0xff] %vm821_vm0, %v780_v51  ;;  %v732_v61 = vmax.f32 %v634_v42, %v683_v52  ;;  %v684_v62 = vmax.f32 %v439_v48, %v586_v53  ;;  %v293_v63 = vadd.f32 %v922_v1, %v244_v54  ;;  %v92_v2 = vmul.f32 %v917_v0, %v37_v50  ;;  %v346_v42 = vld [vmem:[%s2112_s2 + $0x78] sm:$0xff] }
  0x25   :  { %v440_v4 = vadd.f32 %v922_v1, %v391_v59  ;;  %v587_v5 = vadd.f32 %v922_v1, %v538_v60  ;;  %v245_v6 = vmul.f32 %v917_v0, %v196_v55  ;;  %v392_v7 = vmul.f32 %v917_v0, %v343_v56  ;;  %v493_v51 = vld [vmem:[%s2113_s3 + $0x78] sm:$0xff]  ;;  %v41_v56 = vld [vmem:[%s2110_s0 + $0x80] sm:$0xff] }
  0x26   :  { %v781_v11 = vmax.f32 %v732_v61, 0.0  ;;  %v733_v12 = vmax.f32 %v635_v57, %v684_v62  ;;  %v636_v13 = vmax.f32 %v146_v58, %v293_v63  ;;  %v147_v14 = vadd.f32 %v922_v1, %v92_v2  ;;  %v200_v57 = vld [vmem:[%s2111_s1 + $0x80] sm:$0xff] }
  0x27   :  { %v685_v16 = vmax.f32 %v440_v4, %v587_v5  ;;  %v294_v17 = vadd.f32 %v922_v1, %v245_v6  ;;  %v441_v18 = vadd.f32 %v922_v1, %v392_v7  ;;  %v539_v19 = vmul.f32 %v917_v0, %v490_v3  ;;  %v347_v58 = vld [vmem:[%s2112_s2 + $0x80] sm:$0xff]  ;;  %v42_v6 = vld [vmem:[%s2110_s0 + $0x88] sm:$0xff] }
  0x28   :  { %831 = vst.msk [vmem:[%s2116_s6 + $0x48] sm:$0xff] %vm821_vm0, %v781_v11  ;;  %v782_v21 = vmax.f32 %v733_v12, 0.0  ;;  %v93_v22 = vmul.f32 %v917_v0, %v38_v8  ;;  %v246_v23 = vmul.f32 %v917_v0, %v197_v9  ;;  %v393_v24 = vmul.f32 %v917_v0, %v344_v10  ;;  %v494_v63 = vld [vmem:[%s2113_s3 + $0x80] sm:$0xff]  ;;  %v201_v11 = vld [vmem:[%s2111_s1 + $0x88] sm:$0xff] }
  0x29   :  { %v734_v26 = vmax.f32 %v636_v13, %v685_v16  ;;  %v588_v27 = vadd.f32 %v922_v1, %v539_v19  ;;  %v637_v28 = vmax.f32 %v147_v14, %v294_v17  ;;  %v540_v29 = vmul.f32 %v917_v0, %v491_v15  ;;  %v348_v16 = vld [vmem:[%s2112_s2 + $0x88] sm:$0xff] }
  0x2a   :  { %832 = vst.msk [vmem:[%s2116_s6 + $0x50] sm:$0xff] %vm821_vm0, %v782_v21  ;;  %v148_v32 = vadd.f32 %v922_v1, %v93_v22  ;;  %v295_v33 = vadd.f32 %v922_v1, %v246_v23  ;;  %v442_v34 = vadd.f32 %v922_v1, %v393_v24  ;;  %v94_v35 = vmul.f32 %v917_v0, %v39_v20  ;;  %v495_v17 = vld [vmem:[%s2113_s3 + $0x88] sm:$0xff]  ;;  %v43_v22 = vld [vmem:[%s2110_s0 + $0x90] sm:$0xff] }
  0x2b   :  { %v783_v37 = vmax.f32 %v734_v26, 0.0  ;;  %v686_v38 = vmax.f32 %v441_v18, %v588_v27  ;;  %v589_v39 = vadd.f32 %v922_v1, %v540_v29  ;;  %v247_v40 = vmul.f32 %v917_v0, %v198_v25  ;;  %v202_v27 = vld [vmem:[%s2111_s1 + $0x90] sm:$0xff] }
  0x2c   :  { %v638_v43 = vmax.f32 %v148_v32, %v295_v33  ;;  %v149_v44 = vadd.f32 %v922_v1, %v94_v35  ;;  %v394_v45 = vmul.f32 %v917_v0, %v345_v30  ;;  %v541_v46 = vmul.f32 %v917_v0, %v492_v31 }
  0x2d   :  { %833 = vst.msk [vmem:[%s2116_s6 + $0x58] sm:$0xff] %vm821_vm0, %v783_v37  ;;  %v735_v47 = vmax.f32 %v637_v28, %v686_v38  ;;  %v687_v48 = vmax.f32 %v442_v34, %v589_v39  ;;  %v296_v49 = vadd.f32 %v922_v1, %v247_v40  ;;  %v95_v50 = vmul.f32 %v917_v0, %v40_v36  ;;  %v349_v28 = vld [vmem:[%s2112_s2 + $0x90] sm:$0xff] }
  0x2e   :  { %v443_v52 = vadd.f32 %v922_v1, %v394_v45  ;;  %v590_v53 = vadd.f32 %v922_v1, %v541_v46  ;;  %v248_v54 = vmul.f32 %v917_v0, %v199_v41  ;;  %v395_v55 = vmul.f32 %v917_v0, %v346_v42  ;;  %v496_v37 = vld [vmem:[%s2113_s3 + $0x90] sm:$0xff]  ;;  %v44_v42 = vld [vmem:[%s2110_s0 + $0x98] sm:$0xff] }
  0x2f   :  { %v784_v59 = vmax.f32 %v735_v47, 0.0  ;;  %v736_v60 = vmax.f32 %v638_v43, %v687_v48  ;;  %v639_v61 = vmax.f32 %v149_v44, %v296_v49  ;;  %v150_v62 = vadd.f32 %v922_v1, %v95_v50  ;;  %v203_v43 = vld [vmem:[%s2111_s1 + $0x98] sm:$0xff] }
  0x30   :  { %v688_v2 = vmax.f32 %v443_v52, %v590_v53  ;;  %v297_v3 = vadd.f32 %v922_v1, %v248_v54  ;;  %v444_v4 = vadd.f32 %v922_v1, %v395_v55  ;;  %v542_v5 = vmul.f32 %v917_v0, %v493_v51  ;;  %v350_v44 = vld [vmem:[%s2112_s2 + $0x98] sm:$0xff]  ;;  %v45_v54 = vld [vmem:[%s2110_s0 + $0xa0] sm:$0xff] }
  0x31   :  { %834 = vst.msk [vmem:[%s2116_s6 + $0x60] sm:$0xff] %vm821_vm0, %v784_v59  ;;  %v785_v7 = vmax.f32 %v736_v60, 0.0  ;;  %v96_v8 = vmul.f32 %v917_v0, %v41_v56  ;;  %v249_v9 = vmul.f32 %v917_v0, %v200_v57  ;;  %v396_v10 = vmul.f32 %v917_v0, %v347_v58  ;;  %v497_v49 = vld [vmem:[%s2113_s3 + $0x98] sm:$0xff]  ;;  %v204_v59 = vld [vmem:[%s2111_s1 + $0xa0] sm:$0xff] }
  0x32   :  { %v737_v12 = vmax.f32 %v639_v61, %v688_v2  ;;  %v591_v13 = vadd.f32 %v922_v1, %v542_v5  ;;  %v640_v14 = vmax.f32 %v150_v62, %v297_v3  ;;  %v543_v15 = vmul.f32 %v917_v0, %v494_v63  ;;  %v351_v2 = vld [vmem:[%s2112_s2 + $0xa0] sm:$0xff] }
  0x33   :  { %835 = vst.msk [vmem:[%s2116_s6 + $0x68] sm:$0xff] %vm821_vm0, %v785_v7  ;;  %v151_v18 = vadd.f32 %v922_v1, %v96_v8  ;;  %v298_v19 = vadd.f32 %v922_v1, %v249_v9  ;;  %v445_v20 = vadd.f32 %v922_v1, %v396_v10  ;;  %v97_v21 = vmul.f32 %v917_v0, %v42_v6  ;;  %v498_v3 = vld [vmem:[%s2113_s3 + $0xa0] sm:$0xff]  ;;  %v46_v8 = vld [vmem:[%s2110_s0 + $0xa8] sm:$0xff] }
  0x34   :  { %v786_v23 = vmax.f32 %v737_v12, 0.0  ;;  %v689_v24 = vmax.f32 %v444_v4, %v591_v13  ;;  %v592_v25 = vadd.f32 %v922_v1, %v543_v15  ;;  %v250_v26 = vmul.f32 %v917_v0, %v201_v11  ;;  %v205_v13 = vld [vmem:[%s2111_s1 + $0xa8] sm:$0xff] }
  0x35   :  { %v641_v29 = vmax.f32 %v151_v18, %v298_v19  ;;  %v152_v30 = vadd.f32 %v922_v1, %v97_v21  ;;  %v397_v31 = vmul.f32 %v917_v0, %v348_v16  ;;  %v544_v32 = vmul.f32 %v917_v0, %v495_v17 }
  0x36   :  { %836 = vst.msk [vmem:[%s2116_s6 + $0x70] sm:$0xff] %vm821_vm0, %v786_v23  ;;  %v738_v33 = vmax.f32 %v640_v14, %v689_v24  ;;  %v690_v34 = vmax.f32 %v445_v20, %v592_v25  ;;  %v299_v35 = vadd.f32 %v922_v1, %v250_v26  ;;  %v98_v36 = vmul.f32 %v917_v0, %v43_v22  ;;  %v352_v14 = vld [vmem:[%s2112_s2 + $0xa8] sm:$0xff] }
  0x37   :  { %v446_v38 = vadd.f32 %v922_v1, %v397_v31  ;;  %v593_v39 = vadd.f32 %v922_v1, %v544_v32  ;;  %v251_v40 = vmul.f32 %v917_v0, %v202_v27  ;;  %v398_v41 = vmul.f32 %v917_v0, %v349_v28  ;;  %v499_v23 = vld [vmem:[%s2113_s3 + $0xa8] sm:$0xff]  ;;  %v47_v28 = vld [vmem:[%s2110_s0 + $0xb0] sm:$0xff] }
  0x38   :  { %v787_v45 = vmax.f32 %v738_v33, 0.0  ;;  %v739_v46 = vmax.f32 %v641_v29, %v690_v34  ;;  %v642_v47 = vmax.f32 %v152_v30, %v299_v35  ;;  %v153_v48 = vadd.f32 %v922_v1, %v98_v36  ;;  %v206_v29 = vld [vmem:[%s2111_s1 + $0xb0] sm:$0xff] }
  0x39   :  { %v691_v50 = vmax.f32 %v446_v38, %v593_v39  ;;  %v300_v51 = vadd.f32 %v922_v1, %v251_v40  ;;  %v447_v52 = vadd.f32 %v922_v1, %v398_v41  ;;  %v545_v53 = vmul.f32 %v917_v0, %v496_v37  ;;  %v353_v30 = vld [vmem:[%s2112_s2 + $0xb0] sm:$0xff]  ;;  %v48_v40 = vld [vmem:[%s2110_s0 + $0xb8] sm:$0xff] }
  0x3a   :  { %837 = vst.msk [vmem:[%s2116_s6 + $0x78] sm:$0xff] %vm821_vm0, %v787_v45  ;;  %v788_v55 = vmax.f32 %v739_v46, 0.0  ;;  %v99_v56 = vmul.f32 %v917_v0, %v44_v42  ;;  %v252_v57 = vmul.f32 %v917_v0, %v203_v43  ;;  %v399_v58 = vmul.f32 %v917_v0, %v350_v44  ;;  %v500_v35 = vld [vmem:[%s2113_s3 + $0xb0] sm:$0xff]  ;;  %v207_v45 = vld [vmem:[%s2111_s1 + $0xb8] sm:$0xff] }
  0x3b   :  { %v740_v60 = vmax.f32 %v642_v47, %v691_v50  ;;  %v594_v61 = vadd.f32 %v922_v1, %v545_v53  ;;  %v643_v62 = vmax.f32 %v153_v48, %v300_v51  ;;  %v546_v63 = vmul.f32 %v917_v0, %v497_v49  ;;  %v354_v50 = vld [vmem:[%s2112_s2 + $0xb8] sm:$0xff] }
  0x3c   :  { %838 = vst.msk [vmem:[%s2116_s6 + $0x80] sm:$0xff] %vm821_vm0, %v788_v55  ;;  %v154_v4 = vadd.f32 %v922_v1, %v99_v56  ;;  %v301_v5 = vadd.f32 %v922_v1, %v252_v57  ;;  %v448_v6 = vadd.f32 %v922_v1, %v399_v58  ;;  %v100_v7 = vmul.f32 %v917_v0, %v45_v54  ;;  %v501_v51 = vld [vmem:[%s2113_s3 + $0xb8] sm:$0xff]  ;;  %v49_v56 = vld [vmem:[%s2110_s0 + $0xc0] sm:$0xff] }
  0x3d   :  { %v789_v9 = vmax.f32 %v740_v60, 0.0  ;;  %v692_v10 = vmax.f32 %v447_v52, %v594_v61  ;;  %v595_v11 = vadd.f32 %v922_v1, %v546_v63  ;;  %v253_v12 = vmul.f32 %v917_v0, %v204_v59  ;;  %v208_v61 = vld [vmem:[%s2111_s1 + $0xc0] sm:$0xff] }
  0x3e   :  { %v644_v15 = vmax.f32 %v154_v4, %v301_v5  ;;  %v155_v16 = vadd.f32 %v922_v1, %v100_v7  ;;  %v400_v17 = vmul.f32 %v917_v0, %v351_v2  ;;  %v547_v18 = vmul.f32 %v917_v0, %v498_v3 }
  0x3f   :  { %839 = vst.msk [vmem:[%s2116_s6 + $0x88] sm:$0xff] %vm821_vm0, %v789_v9  ;;  %v741_v19 = vmax.f32 %v643_v62, %v692_v10  ;;  %v693_v20 = vmax.f32 %v448_v6, %v595_v11  ;;  %v302_v21 = vadd.f32 %v922_v1, %v253_v12  ;;  %v101_v22 = vmul.f32 %v917_v0, %v46_v8  ;;  %v355_v62 = vld [vmem:[%s2112_s2 + $0xc0] sm:$0xff] }
  0x40   :  { %v449_v24 = vadd.f32 %v922_v1, %v400_v17  ;;  %v596_v25 = vadd.f32 %v922_v1, %v547_v18  ;;  %v254_v26 = vmul.f32 %v917_v0, %v205_v13  ;;  %v401_v27 = vmul.f32 %v917_v0, %v352_v14  ;;  %v502_v9 = vld [vmem:[%s2113_s3 + $0xc0] sm:$0xff]  ;;  %v50_v14 = vld [vmem:[%s2110_s0 + $0xc8] sm:$0xff] }
  0x41   :  { %v790_v31 = vmax.f32 %v741_v19, 0.0  ;;  %v742_v32 = vmax.f32 %v644_v15, %v693_v20  ;;  %v645_v33 = vmax.f32 %v155_v16, %v302_v21  ;;  %v156_v34 = vadd.f32 %v922_v1, %v101_v22  ;;  %v209_v15 = vld [vmem:[%s2111_s1 + $0xc8] sm:$0xff] }
  0x42   :  { %v694_v36 = vmax.f32 %v449_v24, %v596_v25  ;;  %v303_v37 = vadd.f32 %v922_v1, %v254_v26  ;;  %v450_v38 = vadd.f32 %v922_v1, %v401_v27  ;;  %v548_v39 = vmul.f32 %v917_v0, %v499_v23  ;;  %v356_v16 = vld [vmem:[%s2112_s2 + $0xc8] sm:$0xff]  ;;  %v51_v26 = vld [vmem:[%s2110_s0 + $0xd0] sm:$0xff] }
  0x43   :  { %840 = vst.msk [vmem:[%s2116_s6 + $0x90] sm:$0xff] %vm821_vm0, %v790_v31  ;;  %v791_v41 = vmax.f32 %v742_v32, 0.0  ;;  %v102_v42 = vmul.f32 %v917_v0, %v47_v28  ;;  %v255_v43 = vmul.f32 %v917_v0, %v206_v29  ;;  %v402_v44 = vmul.f32 %v917_v0, %v353_v30  ;;  %v503_v21 = vld [vmem:[%s2113_s3 + $0xc8] sm:$0xff]  ;;  %v210_v31 = vld [vmem:[%s2111_s1 + $0xd0] sm:$0xff] }
  0x44   :  { %v743_v46 = vmax.f32 %v645_v33, %v694_v36  ;;  %v597_v47 = vadd.f32 %v922_v1, %v548_v39  ;;  %v646_v48 = vmax.f32 %v156_v34, %v303_v37  ;;  %v549_v49 = vmul.f32 %v917_v0, %v500_v35  ;;  %v357_v36 = vld [vmem:[%s2112_s2 + $0xd0] sm:$0xff] }
  0x45   :  { %841 = vst.msk [vmem:[%s2116_s6 + $0x98] sm:$0xff] %vm821_vm0, %v791_v41  ;;  %v157_v52 = vadd.f32 %v922_v1, %v102_v42  ;;  %v304_v53 = vadd.f32 %v922_v1, %v255_v43  ;;  %v451_v54 = vadd.f32 %v922_v1, %v402_v44  ;;  %v103_v55 = vmul.f32 %v917_v0, %v48_v40  ;;  %v504_v37 = vld [vmem:[%s2113_s3 + $0xd0] sm:$0xff]  ;;  %v52_v42 = vld [vmem:[%s2110_s0 + $0xd8] sm:$0xff] }
  0x46   :  { %v792_v57 = vmax.f32 %v743_v46, 0.0  ;;  %v695_v58 = vmax.f32 %v450_v38, %v597_v47  ;;  %v598_v59 = vadd.f32 %v922_v1, %v549_v49  ;;  %v256_v60 = vmul.f32 %v917_v0, %v207_v45  ;;  %v211_v47 = vld [vmem:[%s2111_s1 + $0xd8] sm:$0xff] }
  0x47   :  { %v647_v63 = vmax.f32 %v157_v52, %v304_v53  ;;  %v158_v2 = vadd.f32 %v922_v1, %v103_v55  ;;  %v403_v3 = vmul.f32 %v917_v0, %v354_v50  ;;  %v550_v4 = vmul.f32 %v917_v0, %v501_v51 }
  0x48   :  { %842 = vst.msk [vmem:[%s2116_s6 + $0xa0] sm:$0xff] %vm821_vm0, %v792_v57  ;;  %v744_v5 = vmax.f32 %v646_v48, %v695_v58  ;;  %v696_v6 = vmax.f32 %v451_v54, %v598_v59  ;;  %v305_v7 = vadd.f32 %v922_v1, %v256_v60  ;;  %v104_v8 = vmul.f32 %v917_v0, %v49_v56  ;;  %v358_v48 = vld [vmem:[%s2112_s2 + $0xd8] sm:$0xff] }
  0x49   :  { %v452_v10 = vadd.f32 %v922_v1, %v403_v3  ;;  %v599_v11 = vadd.f32 %v922_v1, %v550_v4  ;;  %v257_v12 = vmul.f32 %v917_v0, %v208_v61  ;;  %v404_v13 = vmul.f32 %v917_v0, %v355_v62  ;;  %v505_v57 = vld [vmem:[%s2113_s3 + $0xd8] sm:$0xff]  ;;  %v53_v62 = vld [vmem:[%s2110_s0 + $0xe0] sm:$0xff] }
  0x4a   :  { %v793_v17 = vmax.f32 %v744_v5, 0.0  ;;  %v745_v18 = vmax.f32 %v647_v63, %v696_v6  ;;  %v648_v19 = vmax.f32 %v158_v2, %v305_v7  ;;  %v159_v20 = vadd.f32 %v922_v1, %v104_v8  ;;  %v212_v63 = vld [vmem:[%s2111_s1 + $0xe0] sm:$0xff] }
  0x4b   :  { %v697_v22 = vmax.f32 %v452_v10, %v599_v11  ;;  %v306_v23 = vadd.f32 %v922_v1, %v257_v12  ;;  %v453_v24 = vadd.f32 %v922_v1, %v404_v13  ;;  %v551_v25 = vmul.f32 %v917_v0, %v502_v9  ;;  %v359_v2 = vld [vmem:[%s2112_s2 + $0xe0] sm:$0xff]  ;;  %v54_v12 = vld [vmem:[%s2110_s0 + $0xe8] sm:$0xff] }
  0x4c   :  { %843 = vst.msk [vmem:[%s2116_s6 + $0xa8] sm:$0xff] %vm821_vm0, %v793_v17  ;;  %v794_v27 = vmax.f32 %v745_v18, 0.0  ;;  %v105_v28 = vmul.f32 %v917_v0, %v50_v14  ;;  %v258_v29 = vmul.f32 %v917_v0, %v209_v15  ;;  %v405_v30 = vmul.f32 %v917_v0, %v356_v16  ;;  %v506_v7 = vld [vmem:[%s2113_s3 + $0xe0] sm:$0xff]  ;;  %v213_v17 = vld [vmem:[%s2111_s1 + $0xe8] sm:$0xff] }
  0x4d   :  { %v746_v32 = vmax.f32 %v648_v19, %v697_v22  ;;  %v600_v33 = vadd.f32 %v922_v1, %v551_v25  ;;  %v649_v34 = vmax.f32 %v159_v20, %v306_v23  ;;  %v552_v35 = vmul.f32 %v917_v0, %v503_v21  ;;  %v360_v22 = vld [vmem:[%s2112_s2 + $0xe8] sm:$0xff] }
  0x4e   :  { %844 = vst.msk [vmem:[%s2116_s6 + $0xb0] sm:$0xff] %vm821_vm0, %v794_v27  ;;  %v160_v38 = vadd.f32 %v922_v1, %v105_v28  ;;  %v307_v39 = vadd.f32 %v922_v1, %v258_v29  ;;  %v454_v40 = vadd.f32 %v922_v1, %v405_v30  ;;  %v106_v41 = vmul.f32 %v917_v0, %v51_v26  ;;  %v507_v23 = vld [vmem:[%s2113_s3 + $0xe8] sm:$0xff]  ;;  %v55_v28 = vld [vmem:[%s2110_s0 + $0xf0] sm:$0xff] }
  0x4f   :  { %v795_v43 = vmax.f32 %v746_v32, 0.0  ;;  %v698_v44 = vmax.f32 %v453_v24, %v600_v33  ;;  %v601_v45 = vadd.f32 %v922_v1, %v552_v35  ;;  %v259_v46 = vmul.f32 %v917_v0, %v210_v31  ;;  %v214_v33 = vld [vmem:[%s2111_s1 + $0xf0] sm:$0xff] }
  0x50   :  { %v650_v49 = vmax.f32 %v160_v38, %v307_v39  ;;  %v161_v50 = vadd.f32 %v922_v1, %v106_v41  ;;  %v406_v51 = vmul.f32 %v917_v0, %v357_v36  ;;  %v553_v52 = vmul.f32 %v917_v0, %v504_v37 }
  0x51   :  { %845 = vst.msk [vmem:[%s2116_s6 + $0xb8] sm:$0xff] %vm821_vm0, %v795_v43  ;;  %v747_v53 = vmax.f32 %v649_v34, %v698_v44  ;;  %v699_v54 = vmax.f32 %v454_v40, %v601_v45  ;;  %v308_v55 = vadd.f32 %v922_v1, %v259_v46  ;;  %v107_v56 = vmul.f32 %v917_v0, %v52_v42  ;;  %v361_v34 = vld [vmem:[%s2112_s2 + $0xf0] sm:$0xff] }
  0x52   :  { %v455_v58 = vadd.f32 %v922_v1, %v406_v51  ;;  %v602_v59 = vadd.f32 %v922_v1, %v553_v52  ;;  %v260_v60 = vmul.f32 %v917_v0, %v211_v47  ;;  %v407_v61 = vmul.f32 %v917_v0, %v358_v48  ;;  %v508_v43 = vld [vmem:[%s2113_s3 + $0xf0] sm:$0xff]  ;;  %v56_v48 = vld [vmem:[%s2110_s0 + $0xf8] sm:$0xff] }
  0x53   :  { %v796_v3 = vmax.f32 %v747_v53, 0.0  ;;  %v748_v4 = vmax.f32 %v650_v49, %v699_v54  ;;  %v651_v5 = vmax.f32 %v161_v50, %v308_v55  ;;  %v162_v6 = vadd.f32 %v922_v1, %v107_v56  ;;  %v215_v49 = vld [vmem:[%s2111_s1 + $0xf8] sm:$0xff] }
  0x54   :  { %v700_v8 = vmax.f32 %v455_v58, %v602_v59  ;;  %v309_v9 = vadd.f32 %v922_v1, %v260_v60  ;;  %v456_v10 = vadd.f32 %v922_v1, %v407_v61  ;;  %v554_v11 = vmul.f32 %v917_v0, %v505_v57  ;;  %v362_v50 = vld [vmem:[%s2112_s2 + $0xf8] sm:$0xff]  ;;  %v1670_v58 = vld [vmem:[%s2114_s4] ss:$0 sm:$0xff] }
  0x55   :  { %846 = vst.msk [vmem:[%s2116_s6 + $0xc0] sm:$0xff] %vm821_vm0, %v796_v3  ;;  %v797_v13 = vmax.f32 %v748_v4, 0.0  ;;  %v108_v14 = vmul.f32 %v917_v0, %v53_v62  ;;  %v261_v15 = vmul.f32 %v917_v0, %v212_v63  ;;  %v408_v16 = vmul.f32 %v917_v0, %v359_v2  ;;  %v509_v54 = vld [vmem:[%s2113_s3 + $0xf8] sm:$0xff]  ;;  %v57_v60 = vld [vmem:[%s2110_s0 + $0x100] sm:$0xff] }
  0x56   :  { %v749_v18 = vmax.f32 %v651_v5, %v700_v8  ;;  %v603_v19 = vadd.f32 %v922_v1, %v554_v11  ;;  %v652_v20 = vmax.f32 %v162_v6, %v309_v9  ;;  %v555_v21 = vmul.f32 %v917_v0, %v506_v7  ;;  %v216_v3 = vld [vmem:[%s2111_s1 + $0x100] sm:$0xff] }
  0x57   :  { %847 = vst.msk [vmem:[%s2116_s6 + $0xc8] sm:$0xff] %vm821_vm0, %v797_v13  ;;  %v163_v24 = vadd.f32 %v922_v1, %v108_v14  ;;  %v310_v25 = vadd.f32 %v922_v1, %v261_v15  ;;  %v457_v26 = vadd.f32 %v922_v1, %v408_v16  ;;  %v109_v27 = vmul.f32 %v917_v0, %v54_v12  ;;  %v363_v8 = vld [vmem:[%s2112_s2 + $0x100] sm:$0xff]  ;;  %v58_v14 = vld [vmem:[%s2110_s0 + $0x108] sm:$0xff] }
  0x58   :  { %v798_v29 = vmax.f32 %v749_v18, 0.0  ;;  %v701_v30 = vmax.f32 %v456_v10, %v603_v19  ;;  %v604_v31 = vadd.f32 %v922_v1, %v555_v21  ;;  %v262_v32 = vmul.f32 %v917_v0, %v213_v17  ;;  %v510_v9 = vld [vmem:[%s2113_s3 + $0x100] sm:$0xff]  ;;  %v217_v19 = vld [vmem:[%s2111_s1 + $0x108] sm:$0xff] }
  0x59   :  { %v653_v35 = vmax.f32 %v163_v24, %v310_v25  ;;  %v164_v36 = vadd.f32 %v922_v1, %v109_v27  ;;  %v409_v37 = vmul.f32 %v917_v0, %v360_v22  ;;  %v556_v38 = vmul.f32 %v917_v0, %v507_v23 }
  0x5a   :  { %848 = vst.msk [vmem:[%s2116_s6 + $0xd0] sm:$0xff] %vm821_vm0, %v798_v29  ;;  %v750_v39 = vmax.f32 %v652_v20, %v701_v30  ;;  %v702_v40 = vmax.f32 %v457_v26, %v604_v31  ;;  %v311_v41 = vadd.f32 %v922_v1, %v262_v32  ;;  %v110_v42 = vmul.f32 %v917_v0, %v55_v28  ;;  %v364_v20 = vld [vmem:[%s2112_s2 + $0x108] sm:$0xff] }
  0x5b   :  { %v458_v44 = vadd.f32 %v922_v1, %v409_v37  ;;  %v605_v45 = vadd.f32 %v922_v1, %v556_v38  ;;  %v263_v46 = vmul.f32 %v917_v0, %v214_v33  ;;  %v410_v47 = vmul.f32 %v917_v0, %v361_v34  ;;  %v1659_v1 = vld [vmem:[%s2115_s5] ss:$0 sm:$0xff]  ;;  %v511_v29 = vld [vmem:[%s2113_s3 + $0x108] sm:$0xff]  ;;  %v59_v34 = vld [vmem:[%s2110_s0 + $0x110] sm:$0xff] }
  0x5c   :  { %v799_v51 = vmax.f32 %v750_v39, 0.0  ;;  %v751_v52 = vmax.f32 %v653_v35, %v702_v40  ;;  %v654_v53 = vmax.f32 %v164_v36, %v311_v41  ;;  %v165_v0 = vadd.f32 %v1659_v1, %v110_v42  ;;  %v218_v35 = vld [vmem:[%s2111_s1 + $0x110] sm:$0xff] }
  0x5d   :  { %v703_v55 = vmax.f32 %v458_v44, %v605_v45  ;;  %v312_v56 = vadd.f32 %v1659_v1, %v263_v46  ;;  %v459_v57 = vadd.f32 %v1659_v1, %v410_v47  ;;  %v557_v59 = vmul.f32 %v1670_v58, %v508_v43  ;;  %v365_v36 = vld [vmem:[%s2112_s2 + $0x110] sm:$0xff]  ;;  %v60_v46 = vld [vmem:[%s2110_s0 + $0x118] sm:$0xff] }
  0x5e   :  { %849 = vst.msk [vmem:[%s2116_s6 + $0xd8] sm:$0xff] %vm821_vm0, %v799_v51  ;;  %v800_v61 = vmax.f32 %v751_v52, 0.0  ;;  %v111_v62 = vmul.f32 %v1670_v58, %v56_v48  ;;  %v264_v63 = vmul.f32 %v1670_v58, %v215_v49  ;;  %v411_v2 = vmul.f32 %v1670_v58, %v362_v50  ;;  %v512_v41 = vld [vmem:[%s2113_s3 + $0x110] sm:$0xff]  ;;  %v219_v51 = vld [vmem:[%s2111_s1 + $0x118] sm:$0xff] }
  0x5f   :  { %v752_v4 = vmax.f32 %v654_v53, %v703_v55  ;;  %v606_v5 = vadd.f32 %v1659_v1, %v557_v59  ;;  %v655_v6 = vmax.f32 %v165_v0, %v312_v56  ;;  %v558_v7 = vmul.f32 %v1670_v58, %v509_v54  ;;  %v366_v55 = vld [vmem:[%s2112_s2 + $0x118] sm:$0xff] }
  0x60   :  { %850 = vst.msk [vmem:[%s2116_s6 + $0xe0] sm:$0xff] %vm821_vm0, %v800_v61  ;;  %v166_v10 = vadd.f32 %v1659_v1, %v111_v62  ;;  %v313_v11 = vadd.f32 %v1659_v1, %v264_v63  ;;  %v460_v12 = vadd.f32 %v1659_v1, %v411_v2  ;;  %v112_v13 = vmul.f32 %v1670_v58, %v57_v60  ;;  %v513_v56 = vld [vmem:[%s2113_s3 + $0x118] sm:$0xff]  ;;  %v61_v62 = vld [vmem:[%s2110_s0 + $0x120] sm:$0xff] }
  0x61   :  { %v801_v15 = vmax.f32 %v752_v4, 0.0  ;;  %v704_v16 = vmax.f32 %v459_v57, %v606_v5  ;;  %v607_v17 = vadd.f32 %v1659_v1, %v558_v7  ;;  %v265_v18 = vmul.f32 %v1670_v58, %v216_v3  ;;  %v220_v5 = vld [vmem:[%s2111_s1 + $0x120] sm:$0xff] }
  0x62   :  { %v656_v21 = vmax.f32 %v166_v10, %v313_v11  ;;  %v167_v22 = vadd.f32 %v1659_v1, %v112_v13  ;;  %v412_v23 = vmul.f32 %v1670_v58, %v363_v8  ;;  %v559_v24 = vmul.f32 %v1670_v58, %v510_v9 }
  0x63   :  { %851 = vst.msk [vmem:[%s2116_s6 + $0xe8] sm:$0xff] %vm821_vm0, %v801_v15  ;;  %v753_v25 = vmax.f32 %v655_v6, %v704_v16  ;;  %v705_v26 = vmax.f32 %v460_v12, %v607_v17  ;;  %v314_v27 = vadd.f32 %v1659_v1, %v265_v18  ;;  %v113_v28 = vmul.f32 %v1670_v58, %v58_v14  ;;  %v367_v6 = vld [vmem:[%s2112_s2 + $0x120] sm:$0xff] }
  0x64   :  { %v461_v30 = vadd.f32 %v1659_v1, %v412_v23  ;;  %v608_v31 = vadd.f32 %v1659_v1, %v559_v24  ;;  %v266_v32 = vmul.f32 %v1670_v58, %v217_v19  ;;  %v413_v33 = vmul.f32 %v1670_v58, %v364_v20  ;;  %v514_v15 = vld [vmem:[%s2113_s3 + $0x120] sm:$0xff]  ;;  %v62_v20 = vld [vmem:[%s2110_s0 + $0x128] sm:$0xff] }
  0x65   :  { %v802_v37 = vmax.f32 %v753_v25, 0.0  ;;  %v754_v38 = vmax.f32 %v656_v21, %v705_v26  ;;  %v657_v39 = vmax.f32 %v167_v22, %v314_v27  ;;  %v168_v40 = vadd.f32 %v1659_v1, %v113_v28  ;;  %v221_v21 = vld [vmem:[%s2111_s1 + $0x128] sm:$0xff] }
  0x66   :  { %v706_v42 = vmax.f32 %v461_v30, %v608_v31  ;;  %v315_v43 = vadd.f32 %v1659_v1, %v266_v32  ;;  %v462_v44 = vadd.f32 %v1659_v1, %v413_v33  ;;  %v560_v45 = vmul.f32 %v1670_v58, %v511_v29  ;;  %v368_v22 = vld [vmem:[%s2112_s2 + $0x128] sm:$0xff]  ;;  %v63_v32 = vld [vmem:[%s2110_s0 + $0x130] sm:$0xff] }
  0x67   :  { %852 = vst.msk [vmem:[%s2116_s6 + $0xf0] sm:$0xff] %vm821_vm0, %v802_v37  ;;  %v803_v47 = vmax.f32 %v754_v38, 0.0  ;;  %v114_v48 = vmul.f32 %v1670_v58, %v59_v34  ;;  %v267_v49 = vmul.f32 %v1670_v58, %v218_v35  ;;  %v414_v50 = vmul.f32 %v1670_v58, %v365_v36  ;;  %v515_v27 = vld [vmem:[%s2113_s3 + $0x128] sm:$0xff]  ;;  %v222_v37 = vld [vmem:[%s2111_s1 + $0x130] sm:$0xff] }
  0x68   :  { %v755_v52 = vmax.f32 %v657_v39, %v706_v42  ;;  %v609_v53 = vadd.f32 %v1659_v1, %v560_v45  ;;  %v658_v0 = vmax.f32 %v168_v40, %v315_v43  ;;  %v561_v54 = vmul.f32 %v1670_v58, %v512_v41  ;;  %v369_v42 = vld [vmem:[%s2112_s2 + $0x130] sm:$0xff] }
  0x69   :  { %853 = vst.msk [vmem:[%s2116_s6 + $0xf8] sm:$0xff] %vm821_vm0, %v803_v47  ;;  %v169_v57 = vadd.f32 %v1659_v1, %v114_v48  ;;  %v316_v59 = vadd.f32 %v1659_v1, %v267_v49  ;;  %v463_v60 = vadd.f32 %v1659_v1, %v414_v50  ;;  %v115_v61 = vmul.f32 %v1670_v58, %v60_v46  ;;  %v516_v43 = vld [vmem:[%s2113_s3 + $0x130] sm:$0xff]  ;;  %v64_v48 = vld [vmem:[%s2110_s0 + $0x138] sm:$0xff] }
  0x6a   :  { %v804_v63 = vmax.f32 %v755_v52, 0.0  ;;  %v707_v2 = vmax.f32 %v462_v44, %v609_v53  ;;  %v610_v3 = vadd.f32 %v1659_v1, %v561_v54  ;;  %v268_v4 = vmul.f32 %v1670_v58, %v219_v51  ;;  %v223_v53 = vld [vmem:[%s2111_s1 + $0x138] sm:$0xff] }
  0x6b   :  { %v659_v7 = vmax.f32 %v169_v57, %v316_v59  ;;  %v170_v8 = vadd.f32 %v1659_v1, %v115_v61  ;;  %v415_v9 = vmul.f32 %v1670_v58, %v366_v55  ;;  %v562_v10 = vmul.f32 %v1670_v58, %v513_v56 }
  0x6c   :  { %854 = vst.msk [vmem:[%s2116_s6 + $0x100] sm:$0xff] %vm821_vm0, %v804_v63  ;;  %v756_v11 = vmax.f32 %v658_v0, %v707_v2  ;;  %v708_v12 = vmax.f32 %v463_v60, %v610_v3  ;;  %v317_v13 = vadd.f32 %v1659_v1, %v268_v4  ;;  %v116_v14 = vmul.f32 %v1670_v58, %v61_v62  ;;  %v370_v0 = vld [vmem:[%s2112_s2 + $0x138] sm:$0xff] }
  0x6d   :  { %v464_v16 = vadd.f32 %v1659_v1, %v415_v9  ;;  %v611_v17 = vadd.f32 %v1659_v1, %v562_v10  ;;  %v269_v18 = vmul.f32 %v1670_v58, %v220_v5  ;;  %v416_v19 = vmul.f32 %v1670_v58, %v367_v6  ;;  %v517_v63 = vld [vmem:[%s2113_s3 + $0x138] sm:$0xff]  ;;  %v65_v6 = vld [vmem:[%s2110_s0 + $0x140] sm:$0xff] }
  0x6e   :  { %v805_v23 = vmax.f32 %v756_v11, 0.0  ;;  %v757_v24 = vmax.f32 %v659_v7, %v708_v12  ;;  %v660_v25 = vmax.f32 %v170_v8, %v317_v13  ;;  %v171_v26 = vadd.f32 %v1659_v1, %v116_v14  ;;  %v224_v7 = vld [vmem:[%s2111_s1 + $0x140] sm:$0xff] }
  0x6f   :  { %v709_v28 = vmax.f32 %v464_v16, %v611_v17  ;;  %v318_v29 = vadd.f32 %v1659_v1, %v269_v18  ;;  %v465_v30 = vadd.f32 %v1659_v1, %v416_v19  ;;  %v563_v31 = vmul.f32 %v1670_v58, %v514_v15  ;;  %v371_v8 = vld [vmem:[%s2112_s2 + $0x140] sm:$0xff]  ;;  %v66_v18 = vld [vmem:[%s2110_s0 + $0x148] sm:$0xff] }
  0x70   :  { %855 = vst.msk [vmem:[%s2116_s6 + $0x108] sm:$0xff] %vm821_vm0, %v805_v23  ;;  %v806_v33 = vmax.f32 %v757_v24, 0.0  ;;  %v117_v34 = vmul.f32 %v1670_v58, %v62_v20  ;;  %v270_v35 = vmul.f32 %v1670_v58, %v221_v21  ;;  %v417_v36 = vmul.f32 %v1670_v58, %v368_v22  ;;  %v518_v13 = vld [vmem:[%s2113_s3 + $0x140] sm:$0xff]  ;;  %v225_v23 = vld [vmem:[%s2111_s1 + $0x148] sm:$0xff] }
  0x71   :  { %v758_v38 = vmax.f32 %v660_v25, %v709_v28  ;;  %v612_v39 = vadd.f32 %v1659_v1, %v563_v31  ;;  %v661_v40 = vmax.f32 %v171_v26, %v318_v29  ;;  %v564_v41 = vmul.f32 %v1670_v58, %v515_v27  ;;  %v372_v28 = vld [vmem:[%s2112_s2 + $0x148] sm:$0xff] }
  0x72   :  { %856 = vst.msk [vmem:[%s2116_s6 + $0x110] sm:$0xff] %vm821_vm0, %v806_v33  ;;  %v172_v44 = vadd.f32 %v1659_v1, %v117_v34  ;;  %v319_v45 = vadd.f32 %v1659_v1, %v270_v35  ;;  %v466_v46 = vadd.f32 %v1659_v1, %v417_v36  ;;  %v118_v47 = vmul.f32 %v1670_v58, %v63_v32  ;;  %v519_v29 = vld [vmem:[%s2113_s3 + $0x148] sm:$0xff]  ;;  %v67_v34 = vld [vmem:[%s2110_s0 + $0x150] sm:$0xff] }
  0x73   :  { %v807_v49 = vmax.f32 %v758_v38, 0.0  ;;  %v710_v50 = vmax.f32 %v465_v30, %v612_v39  ;;  %v613_v51 = vadd.f32 %v1659_v1, %v564_v41  ;;  %v271_v52 = vmul.f32 %v1670_v58, %v222_v37  ;;  %v226_v39 = vld [vmem:[%s2111_s1 + $0x150] sm:$0xff] }
  0x74   :  { %v662_v54 = vmax.f32 %v172_v44, %v319_v45  ;;  %v173_v55 = vadd.f32 %v1659_v1, %v118_v47  ;;  %v418_v56 = vmul.f32 %v1670_v58, %v369_v42  ;;  %v565_v57 = vmul.f32 %v1670_v58, %v516_v43 }
  0x75   :  { %857 = vst.msk [vmem:[%s2116_s6 + $0x118] sm:$0xff] %vm821_vm0, %v807_v49  ;;  %v759_v59 = vmax.f32 %v661_v40, %v710_v50  ;;  %v711_v60 = vmax.f32 %v466_v46, %v613_v51  ;;  %v320_v61 = vadd.f32 %v1659_v1, %v271_v52  ;;  %v119_v62 = vmul.f32 %v1670_v58, %v64_v48  ;;  %v373_v40 = vld [vmem:[%s2112_s2 + $0x150] sm:$0xff] }
  0x76   :  { %v467_v2 = vadd.f32 %v1659_v1, %v418_v56  ;;  %v614_v3 = vadd.f32 %v1659_v1, %v565_v57  ;;  %v272_v4 = vmul.f32 %v1670_v58, %v223_v53  ;;  %v419_v5 = vmul.f32 %v1670_v58, %v370_v0  ;;  %v520_v49 = vld [vmem:[%s2113_s3 + $0x150] sm:$0xff]  ;;  %v68_v0 = vld [vmem:[%s2110_s0 + $0x158] sm:$0xff] }
  0x77   :  { %v808_v9 = vmax.f32 %v759_v59, 0.0  ;;  %v760_v10 = vmax.f32 %v662_v54, %v711_v60  ;;  %v663_v11 = vmax.f32 %v173_v55, %v320_v61  ;;  %v174_v12 = vadd.f32 %v1659_v1, %v119_v62  ;;  %v227_v54 = vld [vmem:[%s2111_s1 + $0x158] sm:$0xff] }
  0x78   :  { %v712_v14 = vmax.f32 %v467_v2, %v614_v3  ;;  %v321_v15 = vadd.f32 %v1659_v1, %v272_v4  ;;  %v468_v16 = vadd.f32 %v1659_v1, %v419_v5  ;;  %v566_v17 = vmul.f32 %v1670_v58, %v517_v63  ;;  %v374_v55 = vld [vmem:[%s2112_s2 + $0x158] sm:$0xff]  ;;  %v69_v4 = vld [vmem:[%s2110_s0 + $0x160] sm:$0xff] }
  0x79   :  { %858 = vst.msk [vmem:[%s2116_s6 + $0x120] sm:$0xff] %vm821_vm0, %v808_v9  ;;  %v809_v19 = vmax.f32 %v760_v10, 0.0  ;;  %v120_v20 = vmul.f32 %v1670_v58, %v65_v6  ;;  %v273_v21 = vmul.f32 %v1670_v58, %v224_v7  ;;  %v420_v22 = vmul.f32 %v1670_v58, %v371_v8  ;;  %v521_v61 = vld [vmem:[%s2113_s3 + $0x158] sm:$0xff]  ;;  %v228_v9 = vld [vmem:[%s2111_s1 + $0x160] sm:$0xff] }
  0x7a   :  { %v761_v24 = vmax.f32 %v663_v11, %v712_v14  ;;  %v615_v25 = vadd.f32 %v1659_v1, %v566_v17  ;;  %v664_v26 = vmax.f32 %v174_v12, %v321_v15  ;;  %v567_v27 = vmul.f32 %v1670_v58, %v518_v13  ;;  %v375_v14 = vld [vmem:[%s2112_s2 + $0x160] sm:$0xff] }
  0x7b   :  { %859 = vst.msk [vmem:[%s2116_s6 + $0x128] sm:$0xff] %vm821_vm0, %v809_v19  ;;  %v175_v30 = vadd.f32 %v1659_v1, %v120_v20  ;;  %v322_v31 = vadd.f32 %v1659_v1, %v273_v21  ;;  %v469_v32 = vadd.f32 %v1659_v1, %v420_v22  ;;  %v121_v33 = vmul.f32 %v1670_v58, %v66_v18  ;;  %v522_v15 = vld [vmem:[%s2113_s3 + $0x160] sm:$0xff]  ;;  %v70_v20 = vld [vmem:[%s2110_s0 + $0x168] sm:$0xff] }
  0x7c   :  { %v810_v35 = vmax.f32 %v761_v24, 0.0  ;;  %v713_v36 = vmax.f32 %v468_v16, %v615_v25  ;;  %v616_v37 = vadd.f32 %v1659_v1, %v567_v27  ;;  %v274_v38 = vmul.f32 %v1670_v58, %v225_v23  ;;  %v229_v25 = vld [vmem:[%s2111_s1 + $0x168] sm:$0xff] }
  0x7d   :  { %v665_v41 = vmax.f32 %v175_v30, %v322_v31  ;;  %v176_v42 = vadd.f32 %v1659_v1, %v121_v33  ;;  %v421_v43 = vmul.f32 %v1670_v58, %v372_v28  ;;  %v568_v44 = vmul.f32 %v1670_v58, %v519_v29 }
  0x7e   :  { %860 = vst.msk [vmem:[%s2116_s6 + $0x130] sm:$0xff] %vm821_vm0, %v810_v35  ;;  %v762_v45 = vmax.f32 %v664_v26, %v713_v36  ;;  %v714_v46 = vmax.f32 %v469_v32, %v616_v37  ;;  %v323_v47 = vadd.f32 %v1659_v1, %v274_v38  ;;  %v122_v48 = vmul.f32 %v1670_v58, %v67_v34  ;;  %v376_v26 = vld [vmem:[%s2112_s2 + $0x168] sm:$0xff] }
  0x7f   :  { %v470_v50 = vadd.f32 %v1659_v1, %v421_v43  ;;  %v617_v51 = vadd.f32 %v1659_v1, %v568_v44  ;;  %v275_v52 = vmul.f32 %v1670_v58, %v226_v39  ;;  %v422_v53 = vmul.f32 %v1670_v58, %v373_v40  ;;  %v523_v35 = vld [vmem:[%s2113_s3 + $0x168] sm:$0xff]  ;;  %v71_v40 = vld [vmem:[%s2110_s0 + $0x170] sm:$0xff] }
  0x80   :  { %v811_v56 = vmax.f32 %v762_v45, 0.0  ;;  %v763_v57 = vmax.f32 %v665_v41, %v714_v46  ;;  %v666_v59 = vmax.f32 %v176_v42, %v323_v47  ;;  %v177_v60 = vadd.f32 %v1659_v1, %v122_v48  ;;  %v230_v41 = vld [vmem:[%s2111_s1 + $0x170] sm:$0xff] }
  0x81   :  { %v715_v62 = vmax.f32 %v470_v50, %v617_v51  ;;  %v324_v63 = vadd.f32 %v1659_v1, %v275_v52  ;;  %v471_v2 = vadd.f32 %v1659_v1, %v422_v53  ;;  %v569_v3 = vmul.f32 %v1670_v58, %v520_v49  ;;  %v377_v42 = vld [vmem:[%s2112_s2 + $0x170] sm:$0xff]  ;;  %v72_v52 = vld [vmem:[%s2110_s0 + $0x178] sm:$0xff] }
  0x82   :  { %861 = vst.msk [vmem:[%s2116_s6 + $0x138] sm:$0xff] %vm821_vm0, %v811_v56  ;;  %v812_v5 = vmax.f32 %v763_v57, 0.0  ;;  %v123_v6 = vmul.f32 %v1670_v58, %v68_v0  ;;  %v276_v7 = vmul.f32 %v1670_v58, %v227_v54  ;;  %v423_v8 = vmul.f32 %v1670_v58, %v374_v55  ;;  %v524_v47 = vld [vmem:[%s2113_s3 + $0x170] sm:$0xff]  ;;  %v231_v56 = vld [vmem:[%s2111_s1 + $0x178] sm:$0xff] }
  0x83   :  { %v764_v10 = vmax.f32 %v666_v59, %v715_v62  ;;  %v618_v11 = vadd.f32 %v1659_v1, %v569_v3  ;;  %v667_v12 = vmax.f32 %v177_v60, %v324_v63  ;;  %v570_v13 = vmul.f32 %v1670_v58, %v521_v61  ;;  %v378_v62 = vld [vmem:[%s2112_s2 + $0x178] sm:$0xff] }
  0x84   :  { %862 = vst.msk [vmem:[%s2116_s6 + $0x140] sm:$0xff] %vm821_vm0, %v812_v5  ;;  %v178_v16 = vadd.f32 %v1659_v1, %v123_v6  ;;  %v325_v17 = vadd.f32 %v1659_v1, %v276_v7  ;;  %v472_v18 = vadd.f32 %v1659_v1, %v423_v8  ;;  %v124_v19 = vmul.f32 %v1670_v58, %v69_v4  ;;  %v525_v63 = vld [vmem:[%s2113_s3 + $0x178] sm:$0xff]  ;;  %v73_v6 = vld [vmem:[%s2110_s0 + $0x180] sm:$0xff] }
  0x85   :  { %v813_v21 = vmax.f32 %v764_v10, 0.0  ;;  %v716_v22 = vmax.f32 %v471_v2, %v618_v11  ;;  %v619_v23 = vadd.f32 %v1659_v1, %v570_v13  ;;  %v277_v24 = vmul.f32 %v1670_v58, %v228_v9  ;;  %v232_v11 = vld [vmem:[%s2111_s1 + $0x180] sm:$0xff] }
  0x86   :  { %v668_v27 = vmax.f32 %v178_v16, %v325_v17  ;;  %v179_v28 = vadd.f32 %v1659_v1, %v124_v19  ;;  %v424_v29 = vmul.f32 %v1670_v58, %v375_v14  ;;  %v571_v30 = vmul.f32 %v1670_v58, %v522_v15 }
  0x87   :  { %863 = vst.msk [vmem:[%s2116_s6 + $0x148] sm:$0xff] %vm821_vm0, %v813_v21  ;;  %v765_v31 = vmax.f32 %v667_v12, %v716_v22  ;;  %v717_v32 = vmax.f32 %v472_v18, %v619_v23  ;;  %v326_v33 = vadd.f32 %v1659_v1, %v277_v24  ;;  %v125_v34 = vmul.f32 %v1670_v58, %v70_v20  ;;  %v379_v12 = vld [vmem:[%s2112_s2 + $0x180] sm:$0xff] }
  0x88   :  { %v473_v36 = vadd.f32 %v1659_v1, %v424_v29  ;;  %v620_v37 = vadd.f32 %v1659_v1, %v571_v30  ;;  %v278_v38 = vmul.f32 %v1670_v58, %v229_v25  ;;  %v425_v39 = vmul.f32 %v1670_v58, %v376_v26  ;;  %v526_v21 = vld [vmem:[%s2113_s3 + $0x180] sm:$0xff] }
  0x89   :  { %v814_v43 = vmax.f32 %v765_v31, 0.0  ;;  %v766_v44 = vmax.f32 %v668_v27, %v717_v32  ;;  %v669_v45 = vmax.f32 %v179_v28, %v326_v33  ;;  %v180_v46 = vadd.f32 %v1659_v1, %v125_v34 }
  0x8a   :  { %v718_v48 = vmax.f32 %v473_v36, %v620_v37  ;;  %v327_v49 = vadd.f32 %v1659_v1, %v278_v38  ;;  %v474_v50 = vadd.f32 %v1659_v1, %v425_v39  ;;  %v572_v51 = vmul.f32 %v1670_v58, %v523_v35 }
  0x8b   :  { %864 = vst.msk [vmem:[%s2116_s6 + $0x150] sm:$0xff] %vm821_vm0, %v814_v43  ;;  %v815_v53 = vmax.f32 %v766_v44, 0.0  ;;  %v126_v0 = vmul.f32 %v1670_v58, %v71_v40  ;;  %v279_v54 = vmul.f32 %v1670_v58, %v230_v41  ;;  %v426_v55 = vmul.f32 %v1670_v58, %v377_v42 }
  0x8c   :  { %v767_v57 = vmax.f32 %v669_v45, %v718_v48  ;;  %v621_v59 = vadd.f32 %v1659_v1, %v572_v51  ;;  %v670_v60 = vmax.f32 %v180_v46, %v327_v49  ;;  %v573_v61 = vmul.f32 %v1670_v58, %v524_v47 }
  0x8d   :  { %865 = vst.msk [vmem:[%s2116_s6 + $0x158] sm:$0xff] %vm821_vm0, %v815_v53  ;;  %v181_v2 = vadd.f32 %v1659_v1, %v126_v0  ;;  %v328_v3 = vadd.f32 %v1659_v1, %v279_v54  ;;  %v475_v4 = vadd.f32 %v1659_v1, %v426_v55  ;;  %v127_v5 = vmul.f32 %v1670_v58, %v72_v52 }
  0x8e   :  { %v816_v7 = vmax.f32 %v767_v57, 0.0  ;;  %v719_v8 = vmax.f32 %v474_v50, %v621_v59  ;;  %v622_v9 = vadd.f32 %v1659_v1, %v573_v61  ;;  %v280_v10 = vmul.f32 %v1670_v58, %v231_v56 }
  0x8f   :  { %v671_v13 = vmax.f32 %v181_v2, %v328_v3  ;;  %v182_v14 = vadd.f32 %v1659_v1, %v127_v5  ;;  %v427_v15 = vmul.f32 %v1670_v58, %v378_v62  ;;  %v574_v16 = vmul.f32 %v1670_v58, %v525_v63 }
  0x90   :  { %866 = vst.msk [vmem:[%s2116_s6 + $0x160] sm:$0xff] %vm821_vm0, %v816_v7  ;;  %v768_v17 = vmax.f32 %v670_v60, %v719_v8  ;;  %v720_v18 = vmax.f32 %v475_v4, %v622_v9  ;;  %v329_v19 = vadd.f32 %v1659_v1, %v280_v10  ;;  %v128_v20 = vmul.f32 %v1670_v58, %v73_v6 }
  0x91   :  { %v476_v22 = vadd.f32 %v1659_v1, %v427_v15  ;;  %v623_v23 = vadd.f32 %v1659_v1, %v574_v16  ;;  %v281_v24 = vmul.f32 %v1670_v58, %v232_v11  ;;  %v428_v25 = vmul.f32 %v1670_v58, %v379_v12 }
  0x92   :  { %v817_v26 = vmax.f32 %v768_v17, 0.0  ;;  %v769_v27 = vmax.f32 %v671_v13, %v720_v18  ;;  %v672_v28 = vmax.f32 %v182_v14, %v329_v19  ;;  %v183_v29 = vadd.f32 %v1659_v1, %v128_v20 }
  0x93   :  { %v721_v30 = vmax.f32 %v476_v22, %v623_v23  ;;  %v330_v31 = vadd.f32 %v1659_v1, %v281_v24  ;;  %v477_v32 = vadd.f32 %v1659_v1, %v428_v25  ;;  %v575_v33 = vmul.f32 %v1670_v58, %v526_v21 }
  0x94   :  { %867 = vst.msk [vmem:[%s2116_s6 + $0x168] sm:$0xff] %vm821_vm0, %v817_v26  ;;  %v818_v34 = vmax.f32 %v769_v27, 0.0 }
  0x95   :  { %v770_v35 = vmax.f32 %v672_v28, %v721_v30  ;;  %v624_v36 = vadd.f32 %v1659_v1, %v575_v33  ;;  %v673_v37 = vmax.f32 %v183_v29, %v330_v31 }
  0x96   :  { %868 = vst.msk [vmem:[%s2116_s6 + $0x170] sm:$0xff] %vm821_vm0, %v818_v34 }
  0x97   :  { %v819_v38 = vmax.f32 %v770_v35, 0.0  ;;  %v722_v39 = vmax.f32 %v477_v32, %v624_v36 }
  0x99   :  { %869 = vst.msk [vmem:[%s2116_s6 + $0x178] sm:$0xff] %vm821_vm0, %v819_v38  ;;  %v771_v58 = vmax.f32 %v673_v37, %v722_v39 }
  0x9b   :  { %v820_v40 = vmax.f32 %v771_v58, 0.0 }
  0x9d   :  { %870 = vst.msk [vmem:[%s2116_s6 + $0x180] sm:$0xff] %vm821_vm0, %v820_v40 }

// kernel: my_model_forward.7
= control target key start
LH: loop header
LB: loop body
LE: loop exit
PB: predicated region body
PF: predicated region fallthrough
CT: control target
= control target key end

     0   :  { %v2020_v0 = vmov 0   ;;  %vm781_vm0 = vcmask 130048   ;;  %vm1321_vm1 = vcmask 261120   ;;  %vm1375_vm2 = vcmask 254976   ;;  %s2766_s1 = inlined_call_operand.vmem [shape: bf16[400,32], index: 1, kind: input, shape index: {}]   ;;  %s2767_s0 = inlined_call_operand.vmem [shape: bf16[392,400], index: 0, kind: input, shape index: {}]   ;;  %s2768_s2 = inlined_call_operand.vmem [shape: f32[392,32], index: 2, kind: output, shape index: {0}]   ;;  %s2769_s3 = inlined_call_operand.vmem [shape: f32[2,32], index: 3, kind: output, shape index: {1}]  }
   0x1   :  { %857 = vmatprep.subr.bf16.mxu1 %v2020_v0  ;;  %v1847_v1 = vld [vmem:[%s2766_s1] sm:$0xff]   ;;  %1089 = vmatprep.subr.bf16.mxu0 %v2020_v0  ;;  %v1848_v2 = vld [vmem:[%s2766_s1 + $0x8] sm:$0xff]   ;;  %v1849_v3 = vld [vmem:[%s2766_s1 + $0x10] sm:$0xff]   ;;  %vm1633_vm3 = vcmask 1040384  }
   0x2   :  { %858 = vmatpush1.bf16.msra.mxu1 %v1847_v1  ;;  %v1854_v4 = vld [vmem:[%s2766_s1 + $0x80] sm:$0xff]   ;;  %v1856_v5 = vld [vmem:[%s2766_s1 + $0x88] sm:$0xff]   ;;  %v1850_v6 = vld [vmem:[%s2766_s1 + $0x18] sm:$0xff]  }
   0x3   :  { %859 = vmatprep.subr.bf16.mxu1 %v2020_v0  ;;  %1090 = vmatpush1.bf16.msra.mxu0 %v1854_v4  ;;  %v1858_v7 = vld [vmem:[%s2766_s1 + $0x90] sm:$0xff]   ;;  %v1851_v8 = vld [vmem:[%s2766_s1 + $0x20] sm:$0xff]   ;;  %v1860_v9 = vld [vmem:[%s2766_s1 + $0x98] sm:$0xff]  }
   0x4   :  { %1091 = vmatprep.subr.bf16.mxu0 %v2020_v0  ;;  %v1852_v10 = vld [vmem:[%s2766_s1 + $0x28] sm:$0xff]   ;;  %v1862_v11 = vld [vmem:[%s2766_s1 + $0xa0] sm:$0xff]   ;;  %v1853_v12 = vld [vmem:[%s2766_s1 + $0x30] sm:$0xff]  }
   0x5   :  { %v1864_v13 = vld [vmem:[%s2766_s1 + $0xa8] sm:$0xff]   ;;  %v1855_v15 = vld [vmem:[%s2766_s1 + $0x38] sm:$0xff]   ;;  %v1877_v16 = vld [vmem:[%s2767_s0 + $0x4] ss:$16 sps:$4 sm:$0xff]  }
   0x6   :  { %860 = vmatpush1.bf16.msra.mxu1 %v1848_v2  ;;  %v1873_v14 = vld [vmem:[%s2767_s0 + $0xc] ss:$16 sps:$4 sm:$0xff]   ;;  %v1866_v17 = vld [vmem:[%s2766_s1 + $0xb0] sm:$0xff]   ;;  %889 = vmatprep.mubr.bf16.mxu1 %v1877_v16  ;;  %v1857_v18 = vld [vmem:[%s2766_s1 + $0x40] sm:$0xff]  }
   0x7   :  { %861 = vmatprep.subr.bf16.mxu1 %v2020_v0  ;;  %1092 = vmatpush1.bf16.msra.mxu0 %v1856_v5  ;;  %v1868_v19 = vld [vmem:[%s2766_s1 + $0xb8] sm:$0xff]   ;;  %v1859_v20 = vld [vmem:[%s2766_s1 + $0x48] sm:$0xff]   ;;  %v1870_v21 = vld [vmem:[%s2766_s1 + $0xc0] sm:$0xff]  }
   0x8   :  { %1093 = vmatprep.subr.bf16.mxu0 %v2020_v0  ;;  %1771 = vmatprep.mubr.msk.bf16.mxu0 %vm781_vm0, %v1873_v14  ;;  %v1861_v22 = vld [vmem:[%s2766_s1 + $0x50] sm:$0xff]   ;;  %v1871_v23 = vld [vmem:[%s2767_s0 + $0x8] ss:$16 sps:$4 sm:$0xff]   ;;  %v1878_v24 = vld [vmem:[%s2767_s0 + $0x2c] ss:$16 sps:$4 sm:$0xff]  }
   0x9   :  { %v1863_v25 = vld [vmem:[%s2766_s1 + $0x58] sm:$0xff]   ;;  %v1865_v26 = vld [vmem:[%s2766_s1 + $0x60] sm:$0xff]   ;;  %v1867_v29 = vld [vmem:[%s2766_s1 + $0x68] sm:$0xff]  }
   0xa   :  { %862 = vmatpush1.bf16.msra.mxu1 %v1849_v3  ;;  %v1880_v27 = vld [vmem:[%s2767_s0 + $0x28] ss:$16 sps:$4 sm:$0xff]   ;;  %v1884_v28 = vld [vmem:[%s2767_s0 + $0x4c] ss:$16 sps:$4 sm:$0xff]   ;;  %v1869_v30 = vld [vmem:[%s2766_s1 + $0x70] sm:$0xff]  }
   0xb   :  { %863 = vmatprep.subr.bf16.mxu1 %v2020_v0  ;;  %1094 = vmatpush1.bf16.msra.mxu0 %v1858_v7  ;;  %v1886_v31 = vld [vmem:[%s2767_s0 + $0x48] ss:$16 sps:$4 sm:$0xff]   ;;  %v1890_v32 = vld [vmem:[%s2767_s0 + $0x6c] ss:$16 sps:$4 sm:$0xff]   ;;  %v1875_v34 = vld [vmem:[%s2767_s0] ss:$16 sps:$4 sm:$0xff]  }
   0xc   :  { %1095 = vmatprep.subr.bf16.mxu0 %v2020_v0  ;;  %v1874_v33 = vld [vmem:[%s2766_s1 + $0x78] sm:$0xff]   ;;  %v1881_v35 = vld [vmem:[%s2767_s0 + $0x24] ss:$16 sps:$4 sm:$0xff]   ;;  %v1883_v38 = vld [vmem:[%s2767_s0 + $0x20] ss:$16 sps:$4 sm:$0xff]  }
   0xd   :  { %v1892_v36 = vld [vmem:[%s2767_s0 + $0x68] ss:$16 sps:$4 sm:$0xff]   ;;  %v1896_v37 = vld [vmem:[%s2767_s0 + $0x8c] ss:$16 sps:$4 sm:$0xff]   ;;  %v1887_v39 = vld [vmem:[%s2767_s0 + $0x44] ss:$16 sps:$4 sm:$0xff]  }
   0xe   :  { %864 = vmatpush1.bf16.msra.mxu1 %v1850_v6  ;;  %v1898_v40 = vld [vmem:[%s2767_s0 + $0x88] ss:$16 sps:$4 sm:$0xff]   ;;  %v1902_v41 = vld [vmem:[%s2767_s0 + $0xac] ss:$16 sps:$4 sm:$0xff]   ;;  %v1889_v42 = vld [vmem:[%s2767_s0 + $0x40] ss:$16 sps:$4 sm:$0xff]  }
   0xf   :  { %865 = vmatprep.subr.bf16.mxu1 %v2020_v0  ;;  %1096 = vmatpush1.bf16.msra.mxu0 %v1860_v9  ;;  %v1893_v43 = vld [vmem:[%s2767_s0 + $0x64] ss:$16 sps:$4 sm:$0xff]   ;;  %v1904_v44 = vld [vmem:[%s2767_s0 + $0xa8] ss:$16 sps:$4 sm:$0xff]   ;;  %v1908_v45 = vld [vmem:[%s2767_s0 + $0xcc] ss:$16 sps:$4 sm:$0xff]  }
  0x10   :  { %1097 = vmatprep.subr.bf16.mxu0 %v2020_v0  ;;  %v1895_v46 = vld [vmem:[%s2767_s0 + $0x60] ss:$16 sps:$4 sm:$0xff]   ;;  %v1899_v47 = vld [vmem:[%s2767_s0 + $0x84] ss:$16 sps:$4 sm:$0xff]   ;;  %v1910_v48 = vld [vmem:[%s2767_s0 + $0xc8] ss:$16 sps:$4 sm:$0xff]  }
  0x11   :  { %v1914_v49 = vld [vmem:[%s2767_s0 + $0xec] ss:$16 sps:$4 sm:$0xff]   ;;  %v1901_v50 = vld [vmem:[%s2767_s0 + $0x80] ss:$16 sps:$4 sm:$0xff]   ;;  %v1905_v51 = vld [vmem:[%s2767_s0 + $0xa4] ss:$16 sps:$4 sm:$0xff]  }
  0x12   :  { %866 = vmatpush1.bf16.msra.mxu1 %v1851_v8  ;;  %v1916_v52 = vld [vmem:[%s2767_s0 + $0xe8] ss:$16 sps:$4 sm:$0xff]   ;;  %v1920_v53 = vld [vmem:[%s2767_s0 + $0x10c] ss:$16 sps:$4 sm:$0xff]   ;;  %v1907_v54 = vld [vmem:[%s2767_s0 + $0xa0] ss:$16 sps:$4 sm:$0xff]  }
  0x13   :  { %867 = vmatprep.subr.bf16.mxu1 %v2020_v0  ;;  %1098 = vmatpush1.bf16.msra.mxu0 %v1862_v11  ;;  %v1911_v55 = vld [vmem:[%s2767_s0 + $0xc4] ss:$16 sps:$4 sm:$0xff]   ;;  %v1922_v56 = vld [vmem:[%s2767_s0 + $0x108] ss:$16 sps:$4 sm:$0xff]   ;;  %v1926_v57 = vld [vmem:[%s2767_s0 + $0x12c] ss:$16 sps:$4 sm:$0xff]  }
  0x14   :  { %1099 = vmatprep.subr.bf16.mxu0 %v2020_v0  ;;  %v1913_v58 = vld [vmem:[%s2767_s0 + $0xc0] ss:$16 sps:$4 sm:$0xff]   ;;  %v1917_v59 = vld [vmem:[%s2767_s0 + $0xe4] ss:$16 sps:$4 sm:$0xff]   ;;  %v1928_v60 = vld [vmem:[%s2767_s0 + $0x128] ss:$16 sps:$4 sm:$0xff]  }
  0x15   :  { %v1932_v61 = vld [vmem:[%s2767_s0 + $0x14c] ss:$16 sps:$4 sm:$0xff]   ;;  %v1919_v62 = vld [vmem:[%s2767_s0 + $0xe0] ss:$16 sps:$4 sm:$0xff]   ;;  %v1923_v63 = vld [vmem:[%s2767_s0 + $0x104] ss:$16 sps:$4 sm:$0xff]  }
  0x16   :  { %868 = vmatpush1.bf16.msra.mxu1 %v1852_v10  ;;  %v1938_v1 = vld [vmem:[%s2767_s0 + $0x16c] ss:$16 sps:$4 sm:$0xff]   ;;  %v1925_v2 = vld [vmem:[%s2767_s0 + $0x100] ss:$16 sps:$4 sm:$0xff]   ;;  %v1929_v3 = vld [vmem:[%s2767_s0 + $0x124] ss:$16 sps:$4 sm:$0xff]  }
  0x17   :  { %869 = vmatprep.subr.bf16.mxu1 %v2020_v0  ;;  %1100 = vmatpush1.bf16.msra.mxu0 %v1864_v13  ;;  %v1940_v4 = vld [vmem:[%s2767_s0 + $0x168] ss:$16 sps:$4 sm:$0xff]   ;;  %v1944_v5 = vld [vmem:[%s2767_s0 + $0x18c] ss:$16 sps:$4 sm:$0xff]   ;;  %v1931_v6 = vld [vmem:[%s2767_s0 + $0x120] ss:$16 sps:$4 sm:$0xff]  }
  0x18   :  { %1101 = vmatprep.subr.bf16.mxu0 %v2020_v0  ;;  %v1935_v7 = vld [vmem:[%s2767_s0 + $0x144] ss:$16 sps:$4 sm:$0xff]   ;;  %v1946_v8 = vld [vmem:[%s2767_s0 + $0x188] ss:$16 sps:$4 sm:$0xff]   ;;  %v1950_v9 = vld [vmem:[%s2767_s0 + $0x1ac] ss:$16 sps:$4 sm:$0xff]  }
  0x19   :  { %v1937_v10 = vld [vmem:[%s2767_s0 + $0x140] ss:$16 sps:$4 sm:$0xff]   ;;  %v1941_v11 = vld [vmem:[%s2767_s0 + $0x164] ss:$16 sps:$4 sm:$0xff]   ;;  %v1956_v13 = vld [vmem:[%s2767_s0 + $0x1cc] ss:$16 sps:$4 sm:$0xff]  }
  0x1a   :  { %870 = vmatpush1.bf16.msra.mxu1 %v1853_v12  ;;  %v1952_v12 = vld [vmem:[%s2767_s0 + $0x1a8] ss:$16 sps:$4 sm:$0xff]   ;;  %v1943_v14 = vld [vmem:[%s2767_s0 + $0x160] ss:$16 sps:$4 sm:$0xff]  }
  0x1b   :  { %871 = vmatprep.subr.bf16.mxu1 %v2020_v0  ;;  %1102 = vmatpush1.bf16.msra.mxu0 %v1866_v17  ;;  %v1958_v16 = vld [vmem:[%s2767_s0 + $0x1c8] ss:$16 sps:$4 sm:$0xff]   ;;  %v1962_v17 = vld [vmem:[%s2767_s0 + $0x1ec] ss:$16 sps:$4 sm:$0xff]  }
  0x1c   :  { %1103 = vmatprep.subr.bf16.mxu0 %v2020_v0 }
  0x1e   :  { %872 = vmatpush1.bf16.msra.mxu1 %v1855_v15  ;;  %v1947_v15 = vld [vmem:[%s2767_s0 + $0x184] ss:$16 sps:$4 sm:$0xff]  }
  0x1f   :  { %873 = vmatprep.subr.bf16.mxu1 %v2020_v0  ;;  %1104 = vmatpush1.bf16.msra.mxu0 %v1868_v19  ;;  %v1953_v19 = vld [vmem:[%s2767_s0 + $0x1a4] ss:$16 sps:$4 sm:$0xff]  }
  0x20   :  { %1105 = vmatprep.subr.bf16.mxu0 %v2020_v0 }
  0x22   :  { %874 = vmatpush1.bf16.msra.mxu1 %v1857_v18  ;;  %v1949_v18 = vld [vmem:[%s2767_s0 + $0x180] ss:$16 sps:$4 sm:$0xff]  }
  0x23   :  { %875 = vmatprep.subr.bf16.mxu1 %v2020_v0  ;;  %1106 = vmatpush1.bf16.msra.mxu0 %v1870_v21  ;;  %v1968_v21 = vld [vmem:[%s2767_s0 + $0x20c] ss:$16 sps:$4 sm:$0xff]  }
  0x26   :  { %876 = vmatpush1.bf16.msra.mxu1 %v1859_v20  ;;  %1122 = vmatmul.mubr.bf16.vlgmr.msra.gmra.mrb[0].mxu0 %v1871_v23  ;;  %v1964_v20 = vld [vmem:[%s2767_s0 + $0x1e8] ss:$16 sps:$4 sm:$0xff]   ;;  %v1959_v23 = vld [vmem:[%s2767_s0 + $0x1c4] ss:$16 sps:$4 sm:$0xff]  }
  0x27   :  { %877 = vmatprep.subr.bf16.mxu1 %v2020_v0  ;;  %1772 = vmatprep.mubr.msk.bf16.mxu0 %vm781_vm0, %v1878_v24  ;;  %v1970_v24 = vld [vmem:[%s2767_s0 + $0x208] ss:$16 sps:$4 sm:$0xff]  }
  0x2a   :  { %878 = vmatpush1.bf16.msra.mxu1 %v1861_v22  ;;  %v1955_v22 = vld [vmem:[%s2767_s0 + $0x1a0] ss:$16 sps:$4 sm:$0xff]  }
  0x2b   :  { %879 = vmatprep.subr.bf16.mxu1 %v2020_v0 }
  0x2e   :  { %880 = vmatpush1.bf16.msra.mxu1 %v1863_v25  ;;  %1130 = vmatmul.mubr.bf16.gmra.mrb[4].mxu0 %v1880_v27  ;;  %v1974_v25 = vld [vmem:[%s2767_s0 + $0x22c] ss:$16 sps:$4 sm:$0xff]   ;;  %v1965_v27 = vld [vmem:[%s2767_s0 + $0x1e4] ss:$16 sps:$4 sm:$0xff]  }
  0x2f   :  { %881 = vmatprep.subr.bf16.mxu1 %v2020_v0  ;;  %1773 = vmatprep.mubr.msk.bf16.mxu0 %vm781_vm0, %v1884_v28  ;;  %v1976_v28 = vld [vmem:[%s2767_s0 + $0x228] ss:$16 sps:$4 sm:$0xff]  }
  0x32   :  { %882 = vmatpush1.bf16.msra.mxu1 %v1865_v26  ;;  %v1961_v26 = vld [vmem:[%s2767_s0 + $0x1c0] ss:$16 sps:$4 sm:$0xff]  }
  0x33   :  { %883 = vmatprep.subr.bf16.mxu1 %v2020_v0 }
  0x36   :  { %884 = vmatpush1.bf16.msra.mxu1 %v1867_v29  ;;  %1138 = vmatmul.mubr.bf16.gmra.mrb[8].mxu0 %v1886_v31  ;;  %v1980_v29 = vld [vmem:[%s2767_s0 + $0x24c] ss:$16 sps:$4 sm:$0xff]   ;;  %v1971_v31 = vld [vmem:[%s2767_s0 + $0x204] ss:$16 sps:$4 sm:$0xff]  }
  0x37   :  { %885 = vmatprep.subr.bf16.mxu1 %v2020_v0  ;;  %1774 = vmatprep.mubr.msk.bf16.mxu0 %vm781_vm0, %v1890_v32  ;;  %v1982_v32 = vld [vmem:[%s2767_s0 + $0x248] ss:$16 sps:$4 sm:$0xff]  }
  0x3a   :  { %886 = vmatpush1.bf16.msra.mxu1 %v1869_v30  ;;  %v1967_v30 = vld [vmem:[%s2767_s0 + $0x1e0] ss:$16 sps:$4 sm:$0xff]  }
  0x3b   :  { %887 = vmatprep.subr.bf16.mxu1 %v2020_v0  ;;  %v1934_v0 = vld [vmem:[%s2767_s0 + $0x148] ss:$16 sps:$4 sm:$0xff]  }
  0x3e   :  { %888 = vmatpush1.bf16.msra.mxu1 %v1874_v33  ;;  %1146 = vmatmul.mubr.bf16.gmra.mrb[12].mxu0 %v1892_v36  ;;  %v1986_v33 = vld [vmem:[%s2767_s0 + $0x26c] ss:$16 sps:$4 sm:$0xff]   ;;  %v1988_v36 = vld [vmem:[%s2767_s0 + $0x268] ss:$16 sps:$4 sm:$0xff]  }
  0x3f   :  { %1775 = vmatprep.mubr.msk.bf16.mxu0 %vm781_vm0, %v1896_v37  ;;  %v1992_v37 = vld [vmem:[%s2767_s0 + $0x28c] ss:$16 sps:$4 sm:$0xff]  }
  0x41   :  { %890 = vmatmul.mubr.bf16.vlgmr.msra.gmra.mrb[0].mxu1 %v1875_v34  ;;  %v1973_v34 = vld [vmem:[%s2767_s0 + $0x200] ss:$16 sps:$4 sm:$0xff]  }
  0x42   :  { %897 = vmatprep.mubr.bf16.mxu1 %v1881_v35  ;;  %v1977_v35 = vld [vmem:[%s2767_s0 + $0x224] ss:$16 sps:$4 sm:$0xff]  }
  0x46   :  { %1154 = vmatmul.mubr.bf16.gmra.mrb[16].mxu0 %v1898_v40  ;;  %v1994_v40 = vld [vmem:[%s2767_s0 + $0x288] ss:$16 sps:$4 sm:$0xff]  }
  0x47   :  { %1776 = vmatprep.mubr.msk.bf16.mxu0 %vm781_vm0, %v1902_v41  ;;  %v1998_v41 = vld [vmem:[%s2767_s0 + $0x2ac] ss:$16 sps:$4 sm:$0xff]  }
  0x49   :  { %898 = vmatmul.mubr.bf16.gmra.mrb[4].mxu1 %v1883_v38  ;;  %v1979_v38 = vld [vmem:[%s2767_s0 + $0x220] ss:$16 sps:$4 sm:$0xff]  }
  0x4a   :  { %905 = vmatprep.mubr.bf16.mxu1 %v1887_v39  ;;  %v1983_v39 = vld [vmem:[%s2767_s0 + $0x244] ss:$16 sps:$4 sm:$0xff]  }
  0x4e   :  { %1162 = vmatmul.mubr.bf16.gmra.mrb[20].mxu0 %v1904_v44  ;;  %v2000_v44 = vld [vmem:[%s2767_s0 + $0x2a8] ss:$16 sps:$4 sm:$0xff]  }
  0x4f   :  { %1777 = vmatprep.mubr.msk.bf16.mxu0 %vm781_vm0, %v1908_v45  ;;  %v2004_v45 = vld [vmem:[%s2767_s0 + $0x2cc] ss:$16 sps:$4 sm:$0xff]  }
  0x51   :  { %906 = vmatmul.mubr.bf16.gmra.mrb[8].mxu1 %v1889_v42  ;;  %v1985_v42 = vld [vmem:[%s2767_s0 + $0x240] ss:$16 sps:$4 sm:$0xff]  }
  0x52   :  { %913 = vmatprep.mubr.bf16.mxu1 %v1893_v43  ;;  %v1989_v43 = vld [vmem:[%s2767_s0 + $0x264] ss:$16 sps:$4 sm:$0xff]  }
  0x56   :  { %1170 = vmatmul.mubr.bf16.gmra.mrb[24].mxu0 %v1910_v48  ;;  %v2006_v48 = vld [vmem:[%s2767_s0 + $0x2c8] ss:$16 sps:$4 sm:$0xff]  }
  0x57   :  { %1778 = vmatprep.mubr.msk.bf16.mxu0 %vm781_vm0, %v1914_v49  ;;  %v2010_v49 = vld [vmem:[%s2767_s0 + $0x2ec] ss:$16 sps:$4 sm:$0xff]  }
  0x59   :  { %914 = vmatmul.mubr.bf16.gmra.mrb[12].mxu1 %v1895_v46  ;;  %v1991_v46 = vld [vmem:[%s2767_s0 + $0x260] ss:$16 sps:$4 sm:$0xff]  }
  0x5a   :  { %921 = vmatprep.mubr.bf16.mxu1 %v1899_v47  ;;  %v1995_v47 = vld [vmem:[%s2767_s0 + $0x284] ss:$16 sps:$4 sm:$0xff]  }
  0x5e   :  { %1178 = vmatmul.mubr.bf16.gmra.mrb[28].mxu0 %v1916_v52  ;;  %v111_v52 = vld [vmem:[%s2767_s0 + $0x308] sm:$0xff] }
  0x5f   :  { %1779 = vmatprep.mubr.msk.bf16.mxu0 %vm781_vm0, %v1920_v53  ;;  %v2012_v53 = vld [vmem:[%s2767_s0 + $0x2e8] ss:$16 sps:$4 sm:$0xff]  }
  0x61   :  { %922 = vmatmul.mubr.bf16.gmra.mrb[16].mxu1 %v1901_v50  ;;  %v1997_v50 = vld [vmem:[%s2767_s0 + $0x280] ss:$16 sps:$4 sm:$0xff]  }
  0x62   :  { %929 = vmatprep.mubr.bf16.mxu1 %v1905_v51  ;;  %v2001_v51 = vld [vmem:[%s2767_s0 + $0x2a4] ss:$16 sps:$4 sm:$0xff]  }
  0x66   :  { %1186 = vmatmul.mubr.bf16.gmra.mrb[32].mxu0 %v1922_v56  ;;  %v2007_v56 = vld [vmem:[%s2767_s0 + $0x2c4] ss:$16 sps:$4 sm:$0xff]  }
  0x67   :  { %1780 = vmatprep.mubr.msk.bf16.mxu0 %vm781_vm0, %v1926_v57  ;;  %v1744_v57 = vcombine.low %v111_v52, %v111_v52 }
  0x69   :  { %930 = vmatmul.mubr.bf16.gmra.mrb[20].mxu1 %v1907_v54  ;;  %v1745_v54 = vcombine.high %v111_v52, %v111_v52 }
  0x6a   :  { %937 = vmatprep.mubr.bf16.mxu1 %v1911_v55  ;;  %v2003_v55 = vld [vmem:[%s2767_s0 + $0x2a0] ss:$16 sps:$4 sm:$0xff]  }
  0x6e   :  { %1194 = vmatmul.mubr.bf16.gmra.mrb[36].mxu0 %v1928_v60  ;;  %v110_v60 = vld [vmem:[%s2767_s0 + $0x300] sm:$0xff] }
  0x6f   :  { %1781 = vmatprep.mubr.msk.bf16.mxu0 %vm781_vm0, %v1932_v61  ;;  %v2015_v61 = vld [vmem:[%s2767_s0 + $0x2e0] ss:$16 sps:$4 sm:$0xff]  }
  0x71   :  { %938 = vmatmul.mubr.bf16.gmra.mrb[24].mxu1 %v1913_v58  ;;  %v2009_v58 = vld [vmem:[%s2767_s0 + $0x2c0] ss:$16 sps:$4 sm:$0xff]  }
  0x72   :  { %945 = vmatprep.mubr.bf16.mxu1 %v1917_v59  ;;  %v2013_v59 = vld [vmem:[%s2767_s0 + $0x2e4] ss:$16 sps:$4 sm:$0xff]  }
  0x76   :  { %1202 = vmatmul.mubr.bf16.gmra.mrb[40].mxu0 %v1934_v0 }
  0x77   :  { %1782 = vmatprep.mubr.msk.bf16.mxu0 %vm781_vm0, %v1938_v1 }
  0x79   :  { %946 = vmatmul.mubr.bf16.gmra.mrb[28].mxu1 %v1919_v62  ;;  %v1743_v62 = vcombine.high %v110_v60, %v110_v60 }
  0x7a   :  { %953 = vmatprep.mubr.bf16.mxu1 %v1923_v63  ;;  %v1742_v63 = vcombine.low %v110_v60, %v110_v60 }
  0x7e   :  { %1210 = vmatmul.mubr.bf16.gmra.mrb[44].mxu0 %v1940_v4 }
  0x7f   :  { %1783 = vmatprep.mubr.msk.bf16.mxu0 %vm781_vm0, %v1944_v5 }
  0x81   :  { %954 = vmatmul.mubr.bf16.gmra.mrb[32].mxu1 %v1925_v2 }
  0x82   :  { %961 = vmatprep.mubr.bf16.mxu1 %v1929_v3 }
  0x86   :  { %1218 = vmatmul.mubr.bf16.gmra.mrb[48].mxu0 %v1946_v8 }
  0x87   :  { %1784 = vmatprep.mubr.msk.bf16.mxu0 %vm781_vm0, %v1950_v9 }
  0x89   :  { %962 = vmatmul.mubr.bf16.gmra.mrb[36].mxu1 %v1931_v6 }
  0x8a   :  { %969 = vmatprep.mubr.bf16.mxu1 %v1935_v7 }
  0x8e   :  { %1226 = vmatmul.mubr.bf16.gmra.mrb[52].mxu0 %v1952_v12 }
  0x8f   :  { %1785 = vmatprep.mubr.msk.bf16.mxu0 %vm781_vm0, %v1956_v13 }
  0x91   :  { %970 = vmatmul.mubr.bf16.gmra.mrb[40].mxu1 %v1937_v10 }
  0x92   :  { %977 = vmatprep.mubr.bf16.mxu1 %v1941_v11 }
  0x96   :  { %1234 = vmatmul.mubr.bf16.gmra.mrb[56].mxu0 %v1958_v16 }
  0x97   :  { %1786 = vmatprep.mubr.msk.bf16.mxu0 %vm781_vm0, %v1962_v17 }
  0x99   :  { %978 = vmatmul.mubr.bf16.gmra.mrb[44].mxu1 %v1943_v14 }
  0x9a   :  { %985 = vmatprep.mubr.bf16.mxu1 %v1947_v15 }
  0x9e   :  { %1242 = vmatmul.mubr.bf16.gmra.mrb[60].mxu0 %v1964_v20 }
  0x9f   :  { %1787 = vmatprep.mubr.msk.bf16.mxu0 %vm781_vm0, %v1968_v21 }
  0xa1   :  { %986 = vmatmul.mubr.bf16.gmra.mrb[48].mxu1 %v1949_v18 }
  0xa2   :  { %993 = vmatprep.mubr.bf16.mxu1 %v1953_v19 }
  0xa6   :  { %1250 = vmatmul.mubr.bf16.gmra.mrb[64].mxu0 %v1970_v24 }
  0xa7   :  { %1788 = vmatprep.mubr.msk.bf16.mxu0 %vm781_vm0, %v1974_v25 }
  0xa9   :  { %994 = vmatmul.mubr.bf16.gmra.mrb[52].mxu1 %v1955_v22 }
  0xaa   :  { %1001 = vmatprep.mubr.bf16.mxu1 %v1959_v23 }
  0xae   :  { %1258 = vmatmul.mubr.bf16.gmra.mrb[68].mxu0 %v1976_v28 }
  0xaf   :  { %1789 = vmatprep.mubr.msk.bf16.mxu0 %vm781_vm0, %v1980_v29 }
  0xb1   :  { %1002 = vmatmul.mubr.bf16.gmra.mrb[56].mxu1 %v1961_v26 }
  0xb2   :  { %1009 = vmatprep.mubr.bf16.mxu1 %v1965_v27 }
  0xb6   :  { %1266 = vmatmul.mubr.bf16.gmra.mrb[72].mxu0 %v1982_v32 }
  0xb7   :  { %1790 = vmatprep.mubr.msk.bf16.mxu0 %vm781_vm0, %v1986_v33 }
  0xb9   :  { %1010 = vmatmul.mubr.bf16.gmra.mrb[60].mxu1 %v1967_v30 }
  0xba   :  { %1017 = vmatprep.mubr.bf16.mxu1 %v1971_v31 }
  0xbe   :  { %1274 = vmatmul.mubr.bf16.gmra.mrb[76].mxu0 %v1988_v36 }
  0xbf   :  { %1791 = vmatprep.mubr.msk.bf16.mxu0 %vm781_vm0, %v1992_v37 }
  0xc1   :  { %1018 = vmatmul.mubr.bf16.gmra.mrb[64].mxu1 %v1973_v34 }
  0xc2   :  { %1025 = vmatprep.mubr.bf16.mxu1 %v1977_v35 }
  0xc6   :  { %1282 = vmatmul.mubr.bf16.gmra.mrb[80].mxu0 %v1994_v40 }
  0xc7   :  { %1792 = vmatprep.mubr.msk.bf16.mxu0 %vm781_vm0, %v1998_v41 }
  0xc9   :  { %1026 = vmatmul.mubr.bf16.gmra.mrb[68].mxu1 %v1979_v38 }
  0xca   :  { %1033 = vmatprep.mubr.bf16.mxu1 %v1983_v39 }
  0xce   :  { %1290 = vmatmul.mubr.bf16.gmra.mrb[84].mxu0 %v2000_v44 }
  0xcf   :  { %1793 = vmatprep.mubr.msk.bf16.mxu0 %vm781_vm0, %v2004_v45 }
  0xd1   :  { %1034 = vmatmul.mubr.bf16.gmra.mrb[72].mxu1 %v1985_v42 }
  0xd2   :  { %1041 = vmatprep.mubr.bf16.mxu1 %v1989_v43 }
  0xd6   :  { %1298 = vmatmul.mubr.bf16.gmra.mrb[88].mxu0 %v2006_v48 }
  0xd7   :  { %1794 = vmatprep.mubr.msk.bf16.mxu0 %vm781_vm0, %v2010_v49 }
  0xd9   :  { %1042 = vmatmul.mubr.bf16.gmra.mrb[76].mxu1 %v1991_v46 }
  0xda   :  { %1049 = vmatprep.mubr.bf16.mxu1 %v1995_v47 }
  0xde   :  { %1306 = vmatmul.mubr.bf16.gmra.mrb[92].mxu0 %v2012_v53 }
  0xdf   :  { %1795 = vmatprep.mubr.msk.bf16.mxu0 %vm781_vm0, %v1745_v54 }
  0xe1   :  { %1050 = vmatmul.mubr.bf16.gmra.mrb[80].mxu1 %v1997_v50 }
  0xe2   :  { %1057 = vmatprep.mubr.bf16.mxu1 %v2001_v51 }
  0xe6   :  { %1314 = vmatmul.mubr.bf16.gmra.mrb[96].mxu0 %v1744_v57 }
  0xe9   :  { %1058 = vmatmul.mubr.bf16.gmra.mrb[84].mxu1 %v2003_v55 }
  0xea   :  { %1065 = vmatprep.mubr.bf16.mxu1 %v2007_v56 }
  0xf1   :  { %1066 = vmatmul.mubr.bf16.gmra.mrb[88].mxu1 %v2009_v58 }
  0xf2   :  { %1073 = vmatprep.mubr.bf16.mxu1 %v2013_v59 }
  0xf9   :  { %1074 = vmatmul.mubr.bf16.gmra.mrb[92].mxu1 %v2015_v61  ;;  %v1123_v0 = vpop.f32.mrb[0].mxu0 }
  0xfa   :  { %1081 = vmatprep.mubr.bf16.mxu1 %v1743_v62  ;;  %v1125_v1 = vpop.f32.mrb[1].mxu0 }
  0xfb   :  { %v1126_v2 = vpop.f32.mrb[2].mxu0 }
  0xfc   :  { %v1128_v3 = vpop.f32.mrb[3].mxu0 }
 0x101   :  { %1082 = vmatmul.mubr.bf16.gmra.mrb[96].mxu1 %v1742_v63  ;;  %v1131_v4 = vpop.f32.mrb[4].mxu0 }
 0x102   :  { %v1133_v5 = vpop.f32.mrb[5].mxu0 }
 0x103   :  { %v1134_v6 = vpop.f32.mrb[6].mxu0 }
 0x104   :  { %v1136_v7 = vpop.f32.mrb[7].mxu0 }
 0x109   :  { %v1139_v8 = vpop.f32.mrb[8].mxu0 }
 0x10a   :  { %v1141_v9 = vpop.f32.mrb[9].mxu0 }
 0x10b   :  { %v1142_v10 = vpop.f32.mrb[10].mxu0 }
 0x10c   :  { %v1144_v11 = vpop.f32.mrb[11].mxu0 }
 0x111   :  { %v1147_v19 = vpop.f32.mrb[12].mxu0 }
 0x112   :  { %v1149_v20 = vpop.f32.mrb[13].mxu0 }
 0x113   :  { %v1150_v24 = vpop.f32.mrb[14].mxu0 }
 0x114   :  { %v891_v12 = vpop.f32.mrb[0].mxu1  ;;  %v1152_v26 = vpop.f32.mrb[15].mxu0 }
 0x115   :  { %v1124_v13 = vadd.f32 %v1123_v0, %v891_v12  ;;  %v893_v14 = vpop.f32.mrb[1].mxu1 }
 0x116   :  { %v894_v15 = vpop.f32.mrb[2].mxu1 }
 0x117   :  { %1322 = vst.msk [vmem:[%s2768_s2] sm:$0xff] %vm1321_vm1, %v1124_v13  ;;  %v1480_v16 = vmul.f32 %v1124_v13, %v1124_v13  ;;  %v1127_v17 = vadd.f32 %v1126_v2, %v894_v15  ;;  %v896_v18 = vpop.f32.mrb[3].mxu1  ;;  %v1377_v21 = vsel %vm1321_vm1, %v1124_v13, 0.0 }
 0x119   :  { %1323 = vst.msk [vmem:[%s2768_s2 + $0x8] sm:$0xff] %vm1321_vm1, %v1127_v17  ;;  %v1378_v22 = vsel %vm1321_vm1, %v1127_v17, 0.0  ;;  %v1481_v23 = vmul.f32 %v1127_v17, %v1127_v17  ;;  %v1529_v27 = vsel %vm1321_vm1, %v1480_v16, 0.0  ;;  %v1155_v38 = vpop.f32.mrb[16].mxu0 }
 0x11a   :  { %v1379_v25 = vadd.f32 %v1378_v22, %v1377_v21  ;;  %v1157_v40 = vpop.f32.mrb[17].mxu0 }
 0x11b   :  { %v1530_v28 = vsel %vm1321_vm1, %v1481_v23, 0.0  ;;  %v1158_v44 = vpop.f32.mrb[18].mxu0 }
 0x11c   :  { %v1531_v29 = vadd.f32 %v1530_v28, %v1529_v27  ;;  %v899_v30 = vpop.f32.mrb[4].mxu1  ;;  %v1160_v47 = vpop.f32.mrb[19].mxu0 }
 0x11d   :  { %v1132_v31 = vadd.f32 %v1131_v4, %v899_v30  ;;  %v901_v32 = vpop.f32.mrb[5].mxu1 }
 0x11e   :  { %v902_v33 = vpop.f32.mrb[6].mxu1 }
 0x11f   :  { %1324 = vst.msk [vmem:[%s2768_s2 + $0x10] sm:$0xff] %vm1321_vm1, %v1132_v31  ;;  %v1380_v34 = vsel %vm1321_vm1, %v1132_v31, 0.0  ;;  %v1482_v35 = vmul.f32 %v1132_v31, %v1132_v31  ;;  %v1135_v36 = vadd.f32 %v1134_v6, %v902_v33  ;;  %v904_v37 = vpop.f32.mrb[7].mxu1 }
 0x120   :  { %v1381_v39 = vadd.f32 %v1380_v34, %v1379_v25 }
 0x121   :  { %v1532_v41 = vsel %vm1321_vm1, %v1482_v35, 0.0  ;;  %1325 = vst.msk [vmem:[%s2768_s2 + $0x18] sm:$0xff] %vm1321_vm1, %v1135_v36  ;;  %v1382_v42 = vsel %vm1321_vm1, %v1135_v36, 0.0  ;;  %v1483_v43 = vmul.f32 %v1135_v36, %v1135_v36  ;;  %v1163_v58 = vpop.f32.mrb[20].mxu0 }
 0x122   :  { %v1533_v45 = vadd.f32 %v1532_v41, %v1531_v29  ;;  %v1383_v46 = vadd.f32 %v1382_v42, %v1381_v39  ;;  %v1165_v60 = vpop.f32.mrb[21].mxu0 }
 0x123   :  { %v1534_v48 = vsel %vm1321_vm1, %v1483_v43, 0.0  ;;  %v1166_v0 = vpop.f32.mrb[22].mxu0 }
 0x124   :  { %v1535_v49 = vadd.f32 %v1534_v48, %v1533_v45  ;;  %v907_v50 = vpop.f32.mrb[8].mxu1  ;;  %v1168_v3 = vpop.f32.mrb[23].mxu0 }
 0x125   :  { %v1140_v51 = vadd.f32 %v1139_v8, %v907_v50  ;;  %v909_v52 = vpop.f32.mrb[9].mxu1 }
 0x126   :  { %v910_v53 = vpop.f32.mrb[10].mxu1 }
 0x127   :  { %1326 = vst.msk [vmem:[%s2768_s2 + $0x20] sm:$0xff] %vm1321_vm1, %v1140_v51  ;;  %v1384_v54 = vsel %vm1321_vm1, %v1140_v51, 0.0  ;;  %v1484_v55 = vmul.f32 %v1140_v51, %v1140_v51  ;;  %v1143_v56 = vadd.f32 %v1142_v10, %v910_v53  ;;  %v912_v57 = vpop.f32.mrb[11].mxu1 }
 0x128   :  { %v1385_v59 = vadd.f32 %v1384_v54, %v1383_v46 }
 0x129   :  { %v1536_v61 = vsel %vm1321_vm1, %v1484_v55, 0.0  ;;  %1327 = vst.msk [vmem:[%s2768_s2 + $0x28] sm:$0xff] %vm1321_vm1, %v1143_v56  ;;  %v1386_v62 = vsel %vm1321_vm1, %v1143_v56, 0.0  ;;  %v1485_v63 = vmul.f32 %v1143_v56, %v1143_v56  ;;  %v1171_v14 = vpop.f32.mrb[24].mxu0 }
 0x12a   :  { %v1537_v1 = vadd.f32 %v1536_v61, %v1535_v49  ;;  %v1387_v2 = vadd.f32 %v1386_v62, %v1385_v59  ;;  %v1173_v16 = vpop.f32.mrb[25].mxu0 }
 0x12b   :  { %v1538_v4 = vsel %vm1321_vm1, %v1485_v63, 0.0  ;;  %v1174_v20 = vpop.f32.mrb[26].mxu0 }
 0x12c   :  { %v1539_v5 = vadd.f32 %v1538_v4, %v1537_v1  ;;  %v915_v6 = vpop.f32.mrb[12].mxu1  ;;  %v1176_v23 = vpop.f32.mrb[27].mxu0 }
 0x12d   :  { %v1148_v7 = vadd.f32 %v1147_v19, %v915_v6  ;;  %v917_v8 = vpop.f32.mrb[13].mxu1 }
 0x12e   :  { %v918_v9 = vpop.f32.mrb[14].mxu1 }
 0x12f   :  { %1328 = vst.msk [vmem:[%s2768_s2 + $0x30] sm:$0xff] %vm1321_vm1, %v1148_v7  ;;  %v1388_v10 = vsel %vm1321_vm1, %v1148_v7, 0.0  ;;  %v1486_v11 = vmul.f32 %v1148_v7, %v1148_v7  ;;  %v1151_v12 = vadd.f32 %v1150_v24, %v918_v9  ;;  %v920_v13 = vpop.f32.mrb[15].mxu1 }
 0x130   :  { %v1389_v15 = vadd.f32 %v1388_v10, %v1387_v2 }
 0x131   :  { %v1540_v17 = vsel %vm1321_vm1, %v1486_v11, 0.0  ;;  %1329 = vst.msk [vmem:[%s2768_s2 + $0x38] sm:$0xff] %vm1321_vm1, %v1151_v12  ;;  %v1390_v18 = vsel %vm1321_vm1, %v1151_v12, 0.0  ;;  %v1487_v19 = vmul.f32 %v1151_v12, %v1151_v12  ;;  %v1179_v34 = vpop.f32.mrb[28].mxu0 }
 0x132   :  { %v1541_v21 = vadd.f32 %v1540_v17, %v1539_v5  ;;  %v1391_v22 = vadd.f32 %v1390_v18, %v1389_v15  ;;  %v1181_v36 = vpop.f32.mrb[29].mxu0 }
 0x133   :  { %v1542_v24 = vsel %vm1321_vm1, %v1487_v19, 0.0  ;;  %v1182_v40 = vpop.f32.mrb[30].mxu0 }
 0x134   :  { %v1543_v25 = vadd.f32 %v1542_v24, %v1541_v21  ;;  %v923_v26 = vpop.f32.mrb[16].mxu1  ;;  %v1184_v43 = vpop.f32.mrb[31].mxu0 }
 0x135   :  { %v1156_v27 = vadd.f32 %v1155_v38, %v923_v26  ;;  %v925_v28 = vpop.f32.mrb[17].mxu1 }
 0x136   :  { %v926_v29 = vpop.f32.mrb[18].mxu1 }
 0x137   :  { %1330 = vst.msk [vmem:[%s2768_s2 + $0x40] sm:$0xff] %vm1321_vm1, %v1156_v27  ;;  %v1392_v30 = vsel %vm1321_vm1, %v1156_v27, 0.0  ;;  %v1488_v31 = vmul.f32 %v1156_v27, %v1156_v27  ;;  %v1159_v32 = vadd.f32 %v1158_v44, %v926_v29  ;;  %v928_v33 = vpop.f32.mrb[19].mxu1 }
 0x138   :  { %v1393_v35 = vadd.f32 %v1392_v30, %v1391_v22 }
 0x139   :  { %v1544_v37 = vsel %vm1321_vm1, %v1488_v31, 0.0  ;;  %1331 = vst.msk [vmem:[%s2768_s2 + $0x48] sm:$0xff] %vm1321_vm1, %v1159_v32  ;;  %v1394_v38 = vsel %vm1321_vm1, %v1159_v32, 0.0  ;;  %v1489_v39 = vmul.f32 %v1159_v32, %v1159_v32  ;;  %v1187_v54 = vpop.f32.mrb[32].mxu0 }
 0x13a   :  { %v1545_v41 = vadd.f32 %v1544_v37, %v1543_v25  ;;  %v1395_v42 = vadd.f32 %v1394_v38, %v1393_v35  ;;  %v1189_v56 = vpop.f32.mrb[33].mxu0 }
 0x13b   :  { %v1546_v44 = vsel %vm1321_vm1, %v1489_v39, 0.0  ;;  %v1190_v60 = vpop.f32.mrb[34].mxu0 }
 0x13c   :  { %v1547_v45 = vadd.f32 %v1546_v44, %v1545_v41  ;;  %v931_v46 = vpop.f32.mrb[20].mxu1  ;;  %v1192_v63 = vpop.f32.mrb[35].mxu0 }
 0x13d   :  { %v1164_v47 = vadd.f32 %v1163_v58, %v931_v46  ;;  %v933_v48 = vpop.f32.mrb[21].mxu1 }
 0x13e   :  { %v934_v49 = vpop.f32.mrb[22].mxu1 }
 0x13f   :  { %1332 = vst.msk [vmem:[%s2768_s2 + $0x50] sm:$0xff] %vm1321_vm1, %v1164_v47  ;;  %v1396_v50 = vsel %vm1321_vm1, %v1164_v47, 0.0  ;;  %v1490_v51 = vmul.f32 %v1164_v47, %v1164_v47  ;;  %v1167_v52 = vadd.f32 %v1166_v0, %v934_v49  ;;  %v936_v53 = vpop.f32.mrb[23].mxu1 }
 0x140   :  { %v1397_v55 = vadd.f32 %v1396_v50, %v1395_v42 }
 0x141   :  { %v1548_v57 = vsel %vm1321_vm1, %v1490_v51, 0.0  ;;  %1333 = vst.msk [vmem:[%s2768_s2 + $0x58] sm:$0xff] %vm1321_vm1, %v1167_v52  ;;  %v1398_v58 = vsel %vm1321_vm1, %v1167_v52, 0.0  ;;  %v1491_v59 = vmul.f32 %v1167_v52, %v1167_v52  ;;  %v1195_v10 = vpop.f32.mrb[36].mxu0 }
 0x142   :  { %v1549_v61 = vadd.f32 %v1548_v57, %v1547_v45  ;;  %v1399_v62 = vadd.f32 %v1398_v58, %v1397_v55  ;;  %v1197_v12 = vpop.f32.mrb[37].mxu0  ;;  %v2021_v57 = vmov 0.0  }
 0x143   :  { %v1550_v0 = vsel %vm1321_vm1, %v1491_v59, 0.0  ;;  %v1198_v16 = vpop.f32.mrb[38].mxu0  ;;  %1376 = vst.msk [vmem:[%s2769_s3] sm:$0x3] %vm1375_vm2, %v2021_v57 }
 0x144   :  { %v1551_v1 = vadd.f32 %v1550_v0, %v1549_v61  ;;  %v939_v2 = vpop.f32.mrb[24].mxu1  ;;  %v1200_v19 = vpop.f32.mrb[39].mxu0 }
 0x145   :  { %v1172_v3 = vadd.f32 %v1171_v14, %v939_v2  ;;  %v941_v4 = vpop.f32.mrb[25].mxu1 }
 0x146   :  { %v942_v5 = vpop.f32.mrb[26].mxu1 }
 0x147   :  { %1334 = vst.msk [vmem:[%s2768_s2 + $0x60] sm:$0xff] %vm1321_vm1, %v1172_v3  ;;  %v1400_v6 = vsel %vm1321_vm1, %v1172_v3, 0.0  ;;  %v1492_v7 = vmul.f32 %v1172_v3, %v1172_v3  ;;  %v1175_v8 = vadd.f32 %v1174_v20, %v942_v5  ;;  %v944_v9 = vpop.f32.mrb[27].mxu1 }
 0x148   :  { %v1401_v11 = vadd.f32 %v1400_v6, %v1399_v62 }
 0x149   :  { %v1552_v13 = vsel %vm1321_vm1, %v1492_v7, 0.0  ;;  %1335 = vst.msk [vmem:[%s2768_s2 + $0x68] sm:$0xff] %vm1321_vm1, %v1175_v8  ;;  %v1402_v14 = vsel %vm1321_vm1, %v1175_v8, 0.0  ;;  %v1493_v15 = vmul.f32 %v1175_v8, %v1175_v8  ;;  %v1203_v30 = vpop.f32.mrb[40].mxu0 }
 0x14a   :  { %v1553_v17 = vadd.f32 %v1552_v13, %v1551_v1  ;;  %v1403_v18 = vadd.f32 %v1402_v14, %v1401_v11  ;;  %v1205_v32 = vpop.f32.mrb[41].mxu0 }
 0x14b   :  { %v1554_v20 = vsel %vm1321_vm1, %v1493_v15, 0.0  ;;  %v1206_v36 = vpop.f32.mrb[42].mxu0 }
 0x14c   :  { %v1555_v21 = vadd.f32 %v1554_v20, %v1553_v17  ;;  %v947_v22 = vpop.f32.mrb[28].mxu1  ;;  %v1208_v39 = vpop.f32.mrb[43].mxu0 }
 0x14d   :  { %v1180_v23 = vadd.f32 %v1179_v34, %v947_v22  ;;  %v949_v24 = vpop.f32.mrb[29].mxu1 }
 0x14e   :  { %v950_v25 = vpop.f32.mrb[30].mxu1 }
 0x14f   :  { %1336 = vst.msk [vmem:[%s2768_s2 + $0x70] sm:$0xff] %vm1321_vm1, %v1180_v23  ;;  %v1404_v26 = vsel %vm1321_vm1, %v1180_v23, 0.0  ;;  %v1494_v27 = vmul.f32 %v1180_v23, %v1180_v23  ;;  %v1183_v28 = vadd.f32 %v1182_v40, %v950_v25  ;;  %v952_v29 = vpop.f32.mrb[31].mxu1 }
 0x150   :  { %v1405_v31 = vadd.f32 %v1404_v26, %v1403_v18 }
 0x151   :  { %v1556_v33 = vsel %vm1321_vm1, %v1494_v27, 0.0  ;;  %1337 = vst.msk [vmem:[%s2768_s2 + $0x78] sm:$0xff] %vm1321_vm1, %v1183_v28  ;;  %v1406_v34 = vsel %vm1321_vm1, %v1183_v28, 0.0  ;;  %v1495_v35 = vmul.f32 %v1183_v28, %v1183_v28  ;;  %v1211_v50 = vpop.f32.mrb[44].mxu0 }
 0x152   :  { %v1557_v37 = vadd.f32 %v1556_v33, %v1555_v21  ;;  %v1407_v38 = vadd.f32 %v1406_v34, %v1405_v31  ;;  %v1213_v52 = vpop.f32.mrb[45].mxu0 }
 0x153   :  { %v1558_v40 = vsel %vm1321_vm1, %v1495_v35, 0.0  ;;  %v1214_v56 = vpop.f32.mrb[46].mxu0 }
 0x154   :  { %v1559_v41 = vadd.f32 %v1558_v40, %v1557_v37  ;;  %v955_v42 = vpop.f32.mrb[32].mxu1 }
 0x155   :  { %v1188_v43 = vadd.f32 %v1187_v54, %v955_v42  ;;  %v957_v44 = vpop.f32.mrb[33].mxu1 }
 0x156   :  { %v958_v45 = vpop.f32.mrb[34].mxu1 }
 0x157   :  { %1338 = vst.msk [vmem:[%s2768_s2 + $0x80] sm:$0xff] %vm1321_vm1, %v1188_v43  ;;  %v1408_v46 = vsel %vm1321_vm1, %v1188_v43, 0.0  ;;  %v1496_v47 = vmul.f32 %v1188_v43, %v1188_v43  ;;  %v1191_v48 = vadd.f32 %v1190_v60, %v958_v45  ;;  %v960_v49 = vpop.f32.mrb[35].mxu1  ;;  %v1216_v60 = vpop.f32.mrb[47].mxu0 }
 0x158   :  { %v1409_v51 = vadd.f32 %v1408_v46, %v1407_v38 }
 0x159   :  { %v1560_v53 = vsel %vm1321_vm1, %v1496_v47, 0.0  ;;  %1339 = vst.msk [vmem:[%s2768_s2 + $0x88] sm:$0xff] %vm1321_vm1, %v1191_v48  ;;  %v1410_v54 = vsel %vm1321_vm1, %v1191_v48, 0.0  ;;  %v1497_v55 = vmul.f32 %v1191_v48, %v1191_v48  ;;  %v1219_v7 = vpop.f32.mrb[48].mxu0 }
 0x15a   :  { %v1561_v58 = vadd.f32 %v1560_v53, %v1559_v41  ;;  %v1411_v59 = vadd.f32 %v1410_v54, %v1409_v51  ;;  %v1221_v9 = vpop.f32.mrb[49].mxu0 }
 0x15b   :  { %v1562_v61 = vsel %vm1321_vm1, %v1497_v55, 0.0  ;;  %v1222_v13 = vpop.f32.mrb[50].mxu0 }
 0x15c   :  { %v1563_v62 = vadd.f32 %v1562_v61, %v1561_v58  ;;  %v963_v63 = vpop.f32.mrb[36].mxu1  ;;  %v1224_v17 = vpop.f32.mrb[51].mxu0 }
 0x15d   :  { %v1196_v0 = vadd.f32 %v1195_v10, %v963_v63  ;;  %v965_v1 = vpop.f32.mrb[37].mxu1 }
 0x15e   :  { %v966_v2 = vpop.f32.mrb[38].mxu1 }
 0x15f   :  { %1340 = vst.msk [vmem:[%s2768_s2 + $0x90] sm:$0xff] %vm1321_vm1, %v1196_v0  ;;  %v1412_v3 = vsel %vm1321_vm1, %v1196_v0, 0.0  ;;  %v1498_v4 = vmul.f32 %v1196_v0, %v1196_v0  ;;  %v1199_v5 = vadd.f32 %v1198_v16, %v966_v2  ;;  %v968_v6 = vpop.f32.mrb[39].mxu1 }
 0x160   :  { %v1413_v8 = vadd.f32 %v1412_v3, %v1411_v59 }
 0x161   :  { %v1564_v11 = vsel %vm1321_vm1, %v1498_v4, 0.0  ;;  %1341 = vst.msk [vmem:[%s2768_s2 + $0x98] sm:$0xff] %vm1321_vm1, %v1199_v5  ;;  %v1414_v10 = vsel %vm1321_vm1, %v1199_v5, 0.0  ;;  %v1499_v12 = vmul.f32 %v1199_v5, %v1199_v5  ;;  %v1227_v27 = vpop.f32.mrb[52].mxu0 }
 0x162   :  { %v1565_v14 = vadd.f32 %v1564_v11, %v1563_v62  ;;  %v1415_v15 = vadd.f32 %v1414_v10, %v1413_v8  ;;  %v1229_v29 = vpop.f32.mrb[53].mxu0 }
 0x163   :  { %v1566_v16 = vsel %vm1321_vm1, %v1499_v12, 0.0  ;;  %v1230_v33 = vpop.f32.mrb[54].mxu0 }
 0x164   :  { %v1567_v18 = vadd.f32 %v1566_v16, %v1565_v14  ;;  %v971_v19 = vpop.f32.mrb[40].mxu1  ;;  %v1232_v37 = vpop.f32.mrb[55].mxu0 }
 0x165   :  { %v1204_v20 = vadd.f32 %v1203_v30, %v971_v19  ;;  %v973_v21 = vpop.f32.mrb[41].mxu1 }
 0x166   :  { %v974_v22 = vpop.f32.mrb[42].mxu1 }
 0x167   :  { %1342 = vst.msk [vmem:[%s2768_s2 + $0xa0] sm:$0xff] %vm1321_vm1, %v1204_v20  ;;  %v1416_v23 = vsel %vm1321_vm1, %v1204_v20, 0.0  ;;  %v1500_v24 = vmul.f32 %v1204_v20, %v1204_v20  ;;  %v1207_v25 = vadd.f32 %v1206_v36, %v974_v22  ;;  %v976_v26 = vpop.f32.mrb[43].mxu1 }
 0x168   :  { %v1417_v28 = vadd.f32 %v1416_v23, %v1415_v15 }
 0x169   :  { %v1568_v31 = vsel %vm1321_vm1, %v1500_v24, 0.0  ;;  %1343 = vst.msk [vmem:[%s2768_s2 + $0xa8] sm:$0xff] %vm1321_vm1, %v1207_v25  ;;  %v1418_v30 = vsel %vm1321_vm1, %v1207_v25, 0.0  ;;  %v1501_v32 = vmul.f32 %v1207_v25, %v1207_v25  ;;  %v1235_v47 = vpop.f32.mrb[56].mxu0 }
 0x16a   :  { %v1569_v34 = vadd.f32 %v1568_v31, %v1567_v18  ;;  %v1419_v35 = vadd.f32 %v1418_v30, %v1417_v28  ;;  %v1237_v49 = vpop.f32.mrb[57].mxu0 }
 0x16b   :  { %v1570_v36 = vsel %vm1321_vm1, %v1501_v32, 0.0  ;;  %v1238_v53 = vpop.f32.mrb[58].mxu0 }
 0x16c   :  { %v1571_v38 = vadd.f32 %v1570_v36, %v1569_v34  ;;  %v979_v39 = vpop.f32.mrb[44].mxu1  ;;  %v1240_v57 = vpop.f32.mrb[59].mxu0 }
 0x16d   :  { %v1212_v40 = vadd.f32 %v1211_v50, %v979_v39  ;;  %v981_v41 = vpop.f32.mrb[45].mxu1 }
 0x16e   :  { %v982_v42 = vpop.f32.mrb[46].mxu1 }
 0x16f   :  { %1344 = vst.msk [vmem:[%s2768_s2 + $0xb0] sm:$0xff] %vm1321_vm1, %v1212_v40  ;;  %v1420_v43 = vsel %vm1321_vm1, %v1212_v40, 0.0  ;;  %v1502_v44 = vmul.f32 %v1212_v40, %v1212_v40  ;;  %v1215_v45 = vadd.f32 %v1214_v56, %v982_v42  ;;  %v984_v46 = vpop.f32.mrb[47].mxu1 }
 0x170   :  { %v1421_v48 = vadd.f32 %v1420_v43, %v1419_v35 }
 0x171   :  { %v1572_v51 = vsel %vm1321_vm1, %v1502_v44, 0.0  ;;  %1345 = vst.msk [vmem:[%s2768_s2 + $0xb8] sm:$0xff] %vm1321_vm1, %v1215_v45  ;;  %v1422_v50 = vsel %vm1321_vm1, %v1215_v45, 0.0  ;;  %v1503_v52 = vmul.f32 %v1215_v45, %v1215_v45  ;;  %v1243_v3 = vpop.f32.mrb[60].mxu0 }
 0x172   :  { %v1573_v54 = vadd.f32 %v1572_v51, %v1571_v38  ;;  %v1423_v55 = vadd.f32 %v1422_v50, %v1421_v48  ;;  %v1245_v5 = vpop.f32.mrb[61].mxu0 }
 0x173   :  { %v1574_v56 = vsel %vm1321_vm1, %v1503_v52, 0.0  ;;  %v1246_v9 = vpop.f32.mrb[62].mxu0 }
 0x174   :  { %v1575_v58 = vadd.f32 %v1574_v56, %v1573_v54  ;;  %v987_v59 = vpop.f32.mrb[48].mxu1  ;;  %v1248_v12 = vpop.f32.mrb[63].mxu0 }
 0x175   :  { %v1220_v60 = vadd.f32 %v1219_v7, %v987_v59  ;;  %v989_v61 = vpop.f32.mrb[49].mxu1 }
 0x176   :  { %v990_v62 = vpop.f32.mrb[50].mxu1 }
 0x177   :  { %1346 = vst.msk [vmem:[%s2768_s2 + $0xc0] sm:$0xff] %vm1321_vm1, %v1220_v60  ;;  %v1424_v63 = vsel %vm1321_vm1, %v1220_v60, 0.0  ;;  %v1504_v0 = vmul.f32 %v1220_v60, %v1220_v60  ;;  %v1223_v1 = vadd.f32 %v1222_v13, %v990_v62  ;;  %v992_v2 = vpop.f32.mrb[51].mxu1 }
 0x178   :  { %v1425_v4 = vadd.f32 %v1424_v63, %v1423_v55 }
 0x179   :  { %v1576_v6 = vsel %vm1321_vm1, %v1504_v0, 0.0  ;;  %1347 = vst.msk [vmem:[%s2768_s2 + $0xc8] sm:$0xff] %vm1321_vm1, %v1223_v1  ;;  %v1426_v7 = vsel %vm1321_vm1, %v1223_v1, 0.0  ;;  %v1505_v8 = vmul.f32 %v1223_v1, %v1223_v1  ;;  %v1251_v23 = vpop.f32.mrb[64].mxu0 }
 0x17a   :  { %v1577_v11 = vadd.f32 %v1576_v6, %v1575_v58  ;;  %v1427_v10 = vadd.f32 %v1426_v7, %v1425_v4  ;;  %v1253_v25 = vpop.f32.mrb[65].mxu0 }
 0x17b   :  { %v1578_v13 = vsel %vm1321_vm1, %v1505_v8, 0.0  ;;  %v1254_v29 = vpop.f32.mrb[66].mxu0 }
 0x17c   :  { %v1579_v14 = vadd.f32 %v1578_v13, %v1577_v11  ;;  %v995_v15 = vpop.f32.mrb[52].mxu1  ;;  %v1256_v32 = vpop.f32.mrb[67].mxu0 }
 0x17d   :  { %v1228_v17 = vadd.f32 %v1227_v27, %v995_v15  ;;  %v997_v16 = vpop.f32.mrb[53].mxu1 }
 0x17e   :  { %v998_v18 = vpop.f32.mrb[54].mxu1 }
 0x17f   :  { %1348 = vst.msk [vmem:[%s2768_s2 + $0xd0] sm:$0xff] %vm1321_vm1, %v1228_v17  ;;  %v1428_v19 = vsel %vm1321_vm1, %v1228_v17, 0.0  ;;  %v1506_v20 = vmul.f32 %v1228_v17, %v1228_v17  ;;  %v1231_v21 = vadd.f32 %v1230_v33, %v998_v18  ;;  %v1000_v22 = vpop.f32.mrb[55].mxu1 }
 0x180   :  { %v1429_v24 = vadd.f32 %v1428_v19, %v1427_v10 }
 0x181   :  { %v1580_v26 = vsel %vm1321_vm1, %v1506_v20, 0.0  ;;  %1349 = vst.msk [vmem:[%s2768_s2 + $0xd8] sm:$0xff] %vm1321_vm1, %v1231_v21  ;;  %v1430_v27 = vsel %vm1321_vm1, %v1231_v21, 0.0  ;;  %v1507_v28 = vmul.f32 %v1231_v21, %v1231_v21  ;;  %v1259_v43 = vpop.f32.mrb[68].mxu0 }
 0x182   :  { %v1581_v31 = vadd.f32 %v1580_v26, %v1579_v14  ;;  %v1431_v30 = vadd.f32 %v1430_v27, %v1429_v24  ;;  %v1261_v45 = vpop.f32.mrb[69].mxu0 }
 0x183   :  { %v1582_v33 = vsel %vm1321_vm1, %v1507_v28, 0.0  ;;  %v1262_v49 = vpop.f32.mrb[70].mxu0 }
 0x184   :  { %v1583_v34 = vadd.f32 %v1582_v33, %v1581_v31  ;;  %v1003_v35 = vpop.f32.mrb[56].mxu1  ;;  %v1264_v52 = vpop.f32.mrb[71].mxu0 }
 0x185   :  { %v1236_v37 = vadd.f32 %v1235_v47, %v1003_v35  ;;  %v1005_v36 = vpop.f32.mrb[57].mxu1 }
 0x186   :  { %v1006_v38 = vpop.f32.mrb[58].mxu1 }
 0x187   :  { %1350 = vst.msk [vmem:[%s2768_s2 + $0xe0] sm:$0xff] %vm1321_vm1, %v1236_v37  ;;  %v1432_v39 = vsel %vm1321_vm1, %v1236_v37, 0.0  ;;  %v1508_v40 = vmul.f32 %v1236_v37, %v1236_v37  ;;  %v1239_v41 = vadd.f32 %v1238_v53, %v1006_v38  ;;  %v1008_v42 = vpop.f32.mrb[59].mxu1 }
 0x188   :  { %v1433_v44 = vadd.f32 %v1432_v39, %v1431_v30 }
 0x189   :  { %v1584_v46 = vsel %vm1321_vm1, %v1508_v40, 0.0  ;;  %1351 = vst.msk [vmem:[%s2768_s2 + $0xe8] sm:$0xff] %vm1321_vm1, %v1239_v41  ;;  %v1434_v47 = vsel %vm1321_vm1, %v1239_v41, 0.0  ;;  %v1509_v48 = vmul.f32 %v1239_v41, %v1239_v41  ;;  %v1267_v63 = vpop.f32.mrb[72].mxu0 }
 0x18a   :  { %v1585_v51 = vadd.f32 %v1584_v46, %v1583_v34  ;;  %v1435_v50 = vadd.f32 %v1434_v47, %v1433_v44  ;;  %v1269_v1 = vpop.f32.mrb[73].mxu0 }
 0x18b   :  { %v1586_v53 = vsel %vm1321_vm1, %v1509_v48, 0.0  ;;  %v1270_v5 = vpop.f32.mrb[74].mxu0 }
 0x18c   :  { %v1587_v54 = vadd.f32 %v1586_v53, %v1585_v51  ;;  %v1011_v55 = vpop.f32.mrb[60].mxu1  ;;  %v1272_v8 = vpop.f32.mrb[75].mxu0 }
 0x18d   :  { %v1244_v57 = vadd.f32 %v1243_v3, %v1011_v55  ;;  %v1013_v56 = vpop.f32.mrb[61].mxu1 }
 0x18e   :  { %v1014_v58 = vpop.f32.mrb[62].mxu1 }
 0x18f   :  { %1352 = vst.msk [vmem:[%s2768_s2 + $0xf0] sm:$0xff] %vm1321_vm1, %v1244_v57  ;;  %v1436_v59 = vsel %vm1321_vm1, %v1244_v57, 0.0  ;;  %v1510_v60 = vmul.f32 %v1244_v57, %v1244_v57  ;;  %v1247_v61 = vadd.f32 %v1246_v9, %v1014_v58  ;;  %v1016_v62 = vpop.f32.mrb[63].mxu1 }
 0x190   :  { %v1437_v0 = vadd.f32 %v1436_v59, %v1435_v50 }
 0x191   :  { %v1588_v2 = vsel %vm1321_vm1, %v1510_v60, 0.0  ;;  %1353 = vst.msk [vmem:[%s2768_s2 + $0xf8] sm:$0xff] %vm1321_vm1, %v1247_v61  ;;  %v1438_v3 = vsel %vm1321_vm1, %v1247_v61, 0.0  ;;  %v1511_v4 = vmul.f32 %v1247_v61, %v1247_v61  ;;  %v1275_v19 = vpop.f32.mrb[76].mxu0 }
 0x192   :  { %v1589_v6 = vadd.f32 %v1588_v2, %v1587_v54  ;;  %v1439_v7 = vadd.f32 %v1438_v3, %v1437_v0  ;;  %v1277_v21 = vpop.f32.mrb[77].mxu0 }
 0x193   :  { %v1590_v9 = vsel %vm1321_vm1, %v1511_v4, 0.0  ;;  %v1278_v25 = vpop.f32.mrb[78].mxu0 }
 0x194   :  { %v1591_v11 = vadd.f32 %v1590_v9, %v1589_v6  ;;  %v1019_v10 = vpop.f32.mrb[64].mxu1  ;;  %v1280_v28 = vpop.f32.mrb[79].mxu0 }
 0x195   :  { %v1252_v12 = vadd.f32 %v1251_v23, %v1019_v10  ;;  %v1021_v13 = vpop.f32.mrb[65].mxu1 }
 0x196   :  { %v1022_v14 = vpop.f32.mrb[66].mxu1 }
 0x197   :  { %1354 = vst.msk [vmem:[%s2768_s2 + $0x100] sm:$0xff] %vm1321_vm1, %v1252_v12  ;;  %v1440_v15 = vsel %vm1321_vm1, %v1252_v12, 0.0  ;;  %v1512_v17 = vmul.f32 %v1252_v12, %v1252_v12  ;;  %v1255_v16 = vadd.f32 %v1254_v29, %v1022_v14  ;;  %v1024_v18 = vpop.f32.mrb[67].mxu1 }
 0x198   :  { %v1441_v20 = vadd.f32 %v1440_v15, %v1439_v7 }
 0x199   :  { %v1592_v22 = vsel %vm1321_vm1, %v1512_v17, 0.0  ;;  %1355 = vst.msk [vmem:[%s2768_s2 + $0x108] sm:$0xff] %vm1321_vm1, %v1255_v16  ;;  %v1442_v23 = vsel %vm1321_vm1, %v1255_v16, 0.0  ;;  %v1513_v24 = vmul.f32 %v1255_v16, %v1255_v16  ;;  %v1283_v39 = vpop.f32.mrb[80].mxu0 }
 0x19a   :  { %v1593_v26 = vadd.f32 %v1592_v22, %v1591_v11  ;;  %v1443_v27 = vadd.f32 %v1442_v23, %v1441_v20  ;;  %v1285_v41 = vpop.f32.mrb[81].mxu0 }
 0x19b   :  { %v1594_v29 = vsel %vm1321_vm1, %v1513_v24, 0.0  ;;  %v1286_v45 = vpop.f32.mrb[82].mxu0 }
 0x19c   :  { %v1595_v31 = vadd.f32 %v1594_v29, %v1593_v26  ;;  %v1027_v30 = vpop.f32.mrb[68].mxu1  ;;  %v1288_v48 = vpop.f32.mrb[83].mxu0 }
 0x19d   :  { %v1260_v32 = vadd.f32 %v1259_v43, %v1027_v30  ;;  %v1029_v33 = vpop.f32.mrb[69].mxu1 }
 0x19e   :  { %v1030_v34 = vpop.f32.mrb[70].mxu1 }
 0x19f   :  { %1356 = vst.msk [vmem:[%s2768_s2 + $0x110] sm:$0xff] %vm1321_vm1, %v1260_v32  ;;  %v1444_v35 = vsel %vm1321_vm1, %v1260_v32, 0.0  ;;  %v1514_v37 = vmul.f32 %v1260_v32, %v1260_v32  ;;  %v1263_v36 = vadd.f32 %v1262_v49, %v1030_v34  ;;  %v1032_v38 = vpop.f32.mrb[71].mxu1 }
 0x1a0   :  { %v1445_v40 = vadd.f32 %v1444_v35, %v1443_v27 }
 0x1a1   :  { %v1596_v42 = vsel %vm1321_vm1, %v1514_v37, 0.0  ;;  %1357 = vst.msk [vmem:[%s2768_s2 + $0x118] sm:$0xff] %vm1321_vm1, %v1263_v36  ;;  %v1446_v43 = vsel %vm1321_vm1, %v1263_v36, 0.0  ;;  %v1515_v44 = vmul.f32 %v1263_v36, %v1263_v36  ;;  %v1291_v59 = vpop.f32.mrb[84].mxu0 }
 0x1a2   :  { %v1597_v46 = vadd.f32 %v1596_v42, %v1595_v31  ;;  %v1447_v47 = vadd.f32 %v1446_v43, %v1445_v40  ;;  %v1293_v61 = vpop.f32.mrb[85].mxu0 }
 0x1a3   :  { %v1598_v49 = vsel %vm1321_vm1, %v1515_v44, 0.0  ;;  %v1294_v1 = vpop.f32.mrb[86].mxu0 }
 0x1a4   :  { %v1599_v51 = vadd.f32 %v1598_v49, %v1597_v46  ;;  %v1035_v50 = vpop.f32.mrb[72].mxu1  ;;  %v1296_v4 = vpop.f32.mrb[87].mxu0 }
 0x1a5   :  { %v1268_v52 = vadd.f32 %v1267_v63, %v1035_v50  ;;  %v1037_v53 = vpop.f32.mrb[73].mxu1 }
 0x1a6   :  { %v1038_v54 = vpop.f32.mrb[74].mxu1 }
 0x1a7   :  { %1358 = vst.msk [vmem:[%s2768_s2 + $0x120] sm:$0xff] %vm1321_vm1, %v1268_v52  ;;  %v1448_v55 = vsel %vm1321_vm1, %v1268_v52, 0.0  ;;  %v1516_v57 = vmul.f32 %v1268_v52, %v1268_v52  ;;  %v1271_v56 = vadd.f32 %v1270_v5, %v1038_v54  ;;  %v1040_v58 = vpop.f32.mrb[75].mxu1 }
 0x1a8   :  { %v1449_v60 = vadd.f32 %v1448_v55, %v1447_v47 }
 0x1a9   :  { %v1600_v62 = vsel %vm1321_vm1, %v1516_v57, 0.0  ;;  %1359 = vst.msk [vmem:[%s2768_s2 + $0x128] sm:$0xff] %vm1321_vm1, %v1271_v56  ;;  %v1450_v63 = vsel %vm1321_vm1, %v1271_v56, 0.0  ;;  %v1517_v0 = vmul.f32 %v1271_v56, %v1271_v56  ;;  %v1299_v15 = vpop.f32.mrb[88].mxu0 }
 0x1aa   :  { %v1601_v2 = vadd.f32 %v1600_v62, %v1599_v51  ;;  %v1451_v3 = vadd.f32 %v1450_v63, %v1449_v60  ;;  %v1301_v16 = vpop.f32.mrb[89].mxu0 }
 0x1ab   :  { %v1602_v5 = vsel %vm1321_vm1, %v1517_v0, 0.0  ;;  %v1302_v21 = vpop.f32.mrb[90].mxu0 }
 0x1ac   :  { %v1603_v6 = vadd.f32 %v1602_v5, %v1601_v2  ;;  %v1043_v7 = vpop.f32.mrb[76].mxu1  ;;  %v1304_v24 = vpop.f32.mrb[91].mxu0 }
 0x1ad   :  { %v1276_v8 = vadd.f32 %v1275_v19, %v1043_v7  ;;  %v1045_v9 = vpop.f32.mrb[77].mxu1 }
 0x1ae   :  { %v1046_v11 = vpop.f32.mrb[78].mxu1 }
 0x1af   :  { %1360 = vst.msk [vmem:[%s2768_s2 + $0x130] sm:$0xff] %vm1321_vm1, %v1276_v8  ;;  %v1452_v10 = vsel %vm1321_vm1, %v1276_v8, 0.0  ;;  %v1518_v12 = vmul.f32 %v1276_v8, %v1276_v8  ;;  %v1279_v13 = vadd.f32 %v1278_v25, %v1046_v11  ;;  %v1048_v14 = vpop.f32.mrb[79].mxu1 }
 0x1b0   :  { %v1453_v17 = vadd.f32 %v1452_v10, %v1451_v3 }
 0x1b1   :  { %v1604_v18 = vsel %vm1321_vm1, %v1518_v12, 0.0  ;;  %1361 = vst.msk [vmem:[%s2768_s2 + $0x138] sm:$0xff] %vm1321_vm1, %v1279_v13  ;;  %v1454_v19 = vsel %vm1321_vm1, %v1279_v13, 0.0  ;;  %v1519_v20 = vmul.f32 %v1279_v13, %v1279_v13  ;;  %v1307_v35 = vpop.f32.mrb[92].mxu0 }
 0x1b2   :  { %v1605_v22 = vadd.f32 %v1604_v18, %v1603_v6  ;;  %v1455_v23 = vadd.f32 %v1454_v19, %v1453_v17  ;;  %v1309_v36 = vpop.f32.mrb[93].mxu0 }
 0x1b3   :  { %v1606_v25 = vsel %vm1321_vm1, %v1519_v20, 0.0  ;;  %v1310_v41 = vpop.f32.mrb[94].mxu0 }
 0x1b4   :  { %v1607_v26 = vadd.f32 %v1606_v25, %v1605_v22  ;;  %v1051_v27 = vpop.f32.mrb[80].mxu1  ;;  %v1312_v44 = vpop.f32.mrb[95].mxu0 }
 0x1b5   :  { %v1284_v28 = vadd.f32 %v1283_v39, %v1051_v27  ;;  %v1053_v29 = vpop.f32.mrb[81].mxu1 }
 0x1b6   :  { %v1054_v31 = vpop.f32.mrb[82].mxu1 }
 0x1b7   :  { %1362 = vst.msk [vmem:[%s2768_s2 + $0x140] sm:$0xff] %vm1321_vm1, %v1284_v28  ;;  %v1456_v30 = vsel %vm1321_vm1, %v1284_v28, 0.0  ;;  %v1520_v32 = vmul.f32 %v1284_v28, %v1284_v28  ;;  %v1287_v33 = vadd.f32 %v1286_v45, %v1054_v31  ;;  %v1056_v34 = vpop.f32.mrb[83].mxu1 }
 0x1b8   :  { %v1457_v37 = vadd.f32 %v1456_v30, %v1455_v23 }
 0x1b9   :  { %v1608_v38 = vsel %vm1321_vm1, %v1520_v32, 0.0  ;;  %1363 = vst.msk [vmem:[%s2768_s2 + $0x148] sm:$0xff] %vm1321_vm1, %v1287_v33  ;;  %v1458_v39 = vsel %vm1321_vm1, %v1287_v33, 0.0  ;;  %v1521_v40 = vmul.f32 %v1287_v33, %v1287_v33  ;;  %v1315_v55 = vpop.f32.mrb[96].mxu0 }
 0x1ba   :  { %v1609_v42 = vadd.f32 %v1608_v38, %v1607_v26  ;;  %v1459_v43 = vadd.f32 %v1458_v39, %v1457_v37  ;;  %v1317_v56 = vpop.f32.mrb[97].mxu0 }
 0x1bb   :  { %v1610_v45 = vsel %vm1321_vm1, %v1521_v40, 0.0  ;;  %v1318_v61 = vpop.f32.mrb[98].mxu0  ;;  %v1632_v56 = vld [vmem:[%s2769_s3] sm:$0x3] }
 0x1bc   :  { %v1611_v46 = vadd.f32 %v1610_v45, %v1609_v42  ;;  %v1059_v47 = vpop.f32.mrb[84].mxu1  ;;  %v1319_v0 = vpop.f32.mrb[99].mxu0 }
 0x1bd   :  { %v1292_v48 = vadd.f32 %v1291_v59, %v1059_v47  ;;  %v1061_v49 = vpop.f32.mrb[85].mxu1 }
 0x1be   :  { %v1062_v51 = vpop.f32.mrb[86].mxu1 }
 0x1bf   :  { %1364 = vst.msk [vmem:[%s2768_s2 + $0x150] sm:$0xff] %vm1321_vm1, %v1292_v48  ;;  %v1460_v50 = vsel %vm1321_vm1, %v1292_v48, 0.0  ;;  %v1522_v52 = vmul.f32 %v1292_v48, %v1292_v48  ;;  %v1295_v53 = vadd.f32 %v1294_v1, %v1062_v51  ;;  %v1064_v54 = vpop.f32.mrb[87].mxu1 }
 0x1c0   :  { %v1461_v57 = vadd.f32 %v1460_v50, %v1459_v43 }
 0x1c1   :  { %v1612_v58 = vsel %vm1321_vm1, %v1522_v52, 0.0  ;;  %1365 = vst.msk [vmem:[%s2768_s2 + $0x158] sm:$0xff] %vm1321_vm1, %v1295_v53  ;;  %v1462_v59 = vsel %vm1321_vm1, %v1295_v53, 0.0  ;;  %v1523_v60 = vmul.f32 %v1295_v53, %v1295_v53 }
 0x1c2   :  { %v1613_v62 = vadd.f32 %v1612_v58, %v1611_v46  ;;  %v1463_v63 = vadd.f32 %v1462_v59, %v1461_v57 }
 0x1c3   :  { %v1614_v1 = vsel %vm1321_vm1, %v1523_v60, 0.0 }
 0x1c4   :  { %v1615_v2 = vadd.f32 %v1614_v1, %v1613_v62  ;;  %v1067_v3 = vpop.f32.mrb[88].mxu1 }
 0x1c5   :  { %v1300_v4 = vadd.f32 %v1299_v15, %v1067_v3  ;;  %v1069_v5 = vpop.f32.mrb[89].mxu1 }
 0x1c6   :  { %v1070_v6 = vpop.f32.mrb[90].mxu1 }
 0x1c7   :  { %1366 = vst.msk [vmem:[%s2768_s2 + $0x160] sm:$0xff] %vm1321_vm1, %v1300_v4  ;;  %v1464_v7 = vsel %vm1321_vm1, %v1300_v4, 0.0  ;;  %v1524_v8 = vmul.f32 %v1300_v4, %v1300_v4  ;;  %v1303_v9 = vadd.f32 %v1302_v21, %v1070_v6  ;;  %v1072_v11 = vpop.f32.mrb[91].mxu1 }
 0x1c8   :  { %v1465_v10 = vadd.f32 %v1464_v7, %v1463_v63 }
 0x1c9   :  { %v1616_v12 = vsel %vm1321_vm1, %v1524_v8, 0.0  ;;  %1367 = vst.msk [vmem:[%s2768_s2 + $0x168] sm:$0xff] %vm1321_vm1, %v1303_v9  ;;  %v1466_v13 = vsel %vm1321_vm1, %v1303_v9, 0.0  ;;  %v1525_v14 = vmul.f32 %v1303_v9, %v1303_v9 }
 0x1ca   :  { %v1617_v15 = vadd.f32 %v1616_v12, %v1615_v2  ;;  %v1467_v17 = vadd.f32 %v1466_v13, %v1465_v10 }
 0x1cb   :  { %v1618_v16 = vsel %vm1321_vm1, %v1525_v14, 0.0 }
 0x1cc   :  { %v1619_v18 = vadd.f32 %v1618_v16, %v1617_v15  ;;  %v1075_v19 = vpop.f32.mrb[92].mxu1 }
 0x1cd   :  { %v1308_v20 = vadd.f32 %v1307_v35, %v1075_v19  ;;  %v1077_v21 = vpop.f32.mrb[93].mxu1 }
 0x1ce   :  { %v1078_v22 = vpop.f32.mrb[94].mxu1 }
 0x1cf   :  { %1368 = vst.msk [vmem:[%s2768_s2 + $0x170] sm:$0xff] %vm1321_vm1, %v1308_v20  ;;  %v1468_v23 = vsel %vm1321_vm1, %v1308_v20, 0.0  ;;  %v1526_v24 = vmul.f32 %v1308_v20, %v1308_v20  ;;  %v1311_v25 = vadd.f32 %v1310_v41, %v1078_v22  ;;  %v1080_v26 = vpop.f32.mrb[95].mxu1 }
 0x1d0   :  { %v1469_v27 = vadd.f32 %v1468_v23, %v1467_v17 }
 0x1d1   :  { %v1620_v28 = vsel %vm1321_vm1, %v1526_v24, 0.0  ;;  %1369 = vst.msk [vmem:[%s2768_s2 + $0x178] sm:$0xff] %vm1321_vm1, %v1311_v25  ;;  %v1470_v29 = vsel %vm1321_vm1, %v1311_v25, 0.0  ;;  %v1527_v31 = vmul.f32 %v1311_v25, %v1311_v25 }
 0x1d2   :  { %v1621_v30 = vadd.f32 %v1620_v28, %v1619_v18  ;;  %v1471_v32 = vadd.f32 %v1470_v29, %v1469_v27 }
 0x1d3   :  { %v1622_v33 = vsel %vm1321_vm1, %v1527_v31, 0.0 }
 0x1d4   :  { %v1623_v34 = vadd.f32 %v1622_v33, %v1621_v30  ;;  %v1083_v35 = vpop.f32.mrb[96].mxu1 }
 0x1d5   :  { %v1316_v37 = vadd.f32 %v1315_v55, %v1083_v35  ;;  %v1085_v36 = vpop.f32.mrb[97].mxu1 }
 0x1d6   :  { %v1086_v38 = vpop.f32.mrb[98].mxu1 }
 0x1d7   :  { %1370 = vst.msk [vmem:[%s2768_s2 + $0x180] sm:$0xff] %vm1321_vm1, %v1316_v37  ;;  %v1472_v39 = vsel %vm1321_vm1, %v1316_v37, 0.0  ;;  %v1528_v40 = vmul.f32 %v1316_v37, %v1316_v37  ;;  %v1087_v41 = vpop.f32.mrb[99].mxu1 }
 0x1d8   :  { %v1473_v42 = vadd.f32 %v1472_v39, %v1471_v32 }
 0x1d9   :  { %v1624_v43 = vsel %vm1321_vm1, %v1528_v40, 0.0 }
 0x1da   :  { %v1474_v44 = vrot.slane %v1473_v42, 4  ;;  %v1625_v45 = vadd.f32 %v1624_v43, %v1623_v34 }
 0x1dc   :  { %v1475_v46 = vadd.f32 %v1474_v44, %v1473_v42  ;;  %v1626_v47 = vrot.slane %v1625_v45, 4 }
 0x1de   :  { %v1476_v48 = vrot.slane %v1475_v46, 2  ;;  %v1627_v49 = vadd.f32 %v1626_v47, %v1625_v45 }
 0x1e0   :  { %v1477_v51 = vadd.f32 %v1476_v48, %v1475_v46  ;;  %v1628_v50 = vrot.slane %v1627_v49, 2 }
 0x1e2   :  { %v1478_v52 = vrot.slane %v1477_v51, 1  ;;  %v1629_v53 = vadd.f32 %v1628_v50, %v1627_v49 }
 0x1e4   :  { %v1630_v54 = vrot.slane %v1629_v53, 1  ;;  %v1479_v55 = vadd.f32 %v1478_v52, %v1477_v51 }
 0x1e6   :  { %v1631_v57 = vadd.f32 %v1630_v54, %v1629_v53 }
 0x1e8   :  { %v1634_v58 = vsel %vm1633_vm3, %v1479_v55, %v1631_v57 }
 0x1e9   :  { %v1635_v59 = vadd.f32 %v1634_v58, %v1632_v56 }
 0x1eb   :  { %1637 = vst.msk [vmem:[%s2769_s3] sm:$0x3] %vm1375_vm2, %v1635_v59 }

// kernel: my_model_forward.8
= control target key start
LH: loop header
LB: loop body
LE: loop exit
PB: predicated region body
PF: predicated region fallthrough
CT: control target
= control target key end

     0   :  { %vm245_vm0 = vcmask 261120   ;;  %s622_s0 = inlined_call_operand.vmem [shape: f32[104,32], index: 0, kind: input, shape index: {}]   ;;  %s623_s1 = inlined_call_operand.vmem [shape: f32[104,32], index: 1, kind: input, shape index: {}]   ;;  %s624_s2 = inlined_call_operand.vmem [shape: f32[104,32], index: 2, kind: input, shape index: {}]   ;;  %s625_s3 = inlined_call_operand.vmem [shape: f32[104,32], index: 3, kind: input, shape index: {}]   ;;  %s626_s4 = inlined_call_operand.vmem [shape: f32[1,32], index: 4, kind: input, shape index: {}]   ;;  %s627_s5 = inlined_call_operand.vmem [shape: f32[1,32], index: 5, kind: input, shape index: {}]   ;;  %s628_s6 = inlined_call_operand.vmem [shape: f32[104,32], index: 6, kind: output, shape index: {}]  }
   0x1   :  { %v303_v0 = vld [vmem:[%s626_s4] ss:$0 sm:$0xff]  ;;  %v26_v10 = vld [vmem:[%s622_s0 + $0x8] sm:$0xff]  ;;  %v27_v18 = vld [vmem:[%s622_s0 + $0x10] sm:$0xff] }
   0x2   :  { %v308_v1 = vld [vmem:[%s627_s5] ss:$0 sm:$0xff]  ;;  %v77_v11 = vld [vmem:[%s623_s1 + $0x8] sm:$0xff]  ;;  %v45_v14 = vmul.f32 %v303_v0, %v26_v10  ;;  %v78_v19 = vld [vmem:[%s623_s1 + $0x10] sm:$0xff]  ;;  %v46_v29 = vmul.f32 %v303_v0, %v27_v18 }
   0x3   :  { %v25_v2 = vld [vmem:[%s622_s0] sm:$0xff]  ;;  %v116_v12 = vld [vmem:[%s624_s2 + $0x8] sm:$0xff]  ;;  %v90_v15 = vmul.f32 %v303_v0, %v77_v11  ;;  %v117_v24 = vld [vmem:[%s624_s2 + $0x10] sm:$0xff]  ;;  %v91_v34 = vmul.f32 %v303_v0, %v78_v19 }
   0x4   :  { %v44_v3 = vmul.f32 %v303_v0, %v25_v2  ;;  %v76_v4 = vld [vmem:[%s623_s1] sm:$0xff]  ;;  %v129_v16 = vmul.f32 %v303_v0, %v116_v12  ;;  %v155_v17 = vld [vmem:[%s625_s3 + $0x8] sm:$0xff]  ;;  %v156_v25 = vld [vmem:[%s625_s3 + $0x10] sm:$0xff]  ;;  %v64_v26 = vadd.f32 %v308_v1, %v45_v14  ;;  %v65_v38 = vadd.f32 %v308_v1, %v46_v29 }
   0x5   :  { %v115_v5 = vld [vmem:[%s624_s2] sm:$0xff]  ;;  %v89_v7 = vmul.f32 %v303_v0, %v76_v4  ;;  %v168_v23 = vmul.f32 %v303_v0, %v155_v17  ;;  %v103_v27 = vadd.f32 %v308_v1, %v90_v15  ;;  %v28_v30 = vld [vmem:[%s622_s0 + $0x18] sm:$0xff]  ;;  %v130_v39 = vmul.f32 %v303_v0, %v117_v24  ;;  %v30_v62 = vld [vmem:[%s622_s0 + $0x28] sm:$0xff] }
   0x6   :  { %v154_v6 = vld [vmem:[%s625_s3] sm:$0xff]  ;;  %v128_v8 = vmul.f32 %v303_v0, %v115_v5  ;;  %v63_v13 = vadd.f32 %v308_v1, %v44_v3  ;;  %v142_v28 = vadd.f32 %v308_v1, %v129_v16  ;;  %v79_v35 = vld [vmem:[%s623_s1 + $0x18] sm:$0xff]  ;;  %v169_v40 = vmul.f32 %v303_v0, %v156_v25  ;;  %v81_v5 = vld [vmem:[%s623_s1 + $0x28] sm:$0xff] }
   0x7   :  { %v167_v9 = vmul.f32 %v303_v0, %v154_v6  ;;  %v102_v20 = vadd.f32 %v308_v1, %v89_v7  ;;  %v181_v33 = vadd.f32 %v308_v1, %v168_v23  ;;  %v118_v36 = vld [vmem:[%s624_s2 + $0x18] sm:$0xff]  ;;  %v194_v37 = vmax.f32 %v64_v26, %v103_v27  ;;  %v29_v50 = vld [vmem:[%s622_s0 + $0x20] sm:$0xff]  ;;  %v120_v10 = vld [vmem:[%s624_s2 + $0x28] sm:$0xff] }
   0x8   :  { %v141_v21 = vadd.f32 %v308_v1, %v128_v8  ;;  %v104_v43 = vadd.f32 %v308_v1, %v91_v34  ;;  %v47_v44 = vmul.f32 %v303_v0, %v28_v30  ;;  %v157_v45 = vld [vmem:[%s625_s3 + $0x18] sm:$0xff]  ;;  %v143_v46 = vadd.f32 %v308_v1, %v130_v39  ;;  %v80_v51 = vld [vmem:[%s623_s1 + $0x20] sm:$0xff]  ;;  %v159_v11 = vld [vmem:[%s625_s3 + $0x28] sm:$0xff] }
   0x9   :  { %v180_v22 = vadd.f32 %v308_v1, %v167_v9  ;;  %v193_v31 = vmax.f32 %v63_v13, %v102_v20  ;;  %v207_v42 = vmax.f32 %v142_v28, %v181_v33  ;;  %v182_v47 = vadd.f32 %v308_v1, %v169_v40  ;;  %v119_v52 = vld [vmem:[%s624_s2 + $0x20] sm:$0xff]  ;;  %v31_v16 = vld [vmem:[%s622_s0 + $0x30] sm:$0xff] }
   0xa   :  { %v92_v48 = vmul.f32 %v303_v0, %v79_v35  ;;  %v131_v49 = vmul.f32 %v303_v0, %v118_v36  ;;  %v195_v55 = vmax.f32 %v65_v38, %v104_v43  ;;  %v66_v56 = vadd.f32 %v308_v1, %v47_v44  ;;  %v158_v57 = vld [vmem:[%s625_s3 + $0x20] sm:$0xff]  ;;  %v32_v36 = vld [vmem:[%s622_s0 + $0x38] sm:$0xff] }
   0xb   :  { %v206_v32 = vmax.f32 %v141_v21, %v180_v22  ;;  %v220_v54 = vmax.f32 %v194_v37, %v207_v42  ;;  %v208_v58 = vmax.f32 %v143_v46, %v182_v47  ;;  %v170_v61 = vmul.f32 %v303_v0, %v157_v45  ;;  %v82_v21 = vld [vmem:[%s623_s1 + $0x30] sm:$0xff]  ;;  %v83_v37 = vld [vmem:[%s623_s1 + $0x38] sm:$0xff] }
   0xc   :  { %v105_v59 = vadd.f32 %v308_v1, %v92_v48  ;;  %v144_v60 = vadd.f32 %v308_v1, %v131_v49  ;;  %v48_v2 = vmul.f32 %v303_v0, %v29_v50  ;;  %v93_v3 = vmul.f32 %v303_v0, %v80_v51  ;;  %v121_v22 = vld [vmem:[%s624_s2 + $0x30] sm:$0xff]  ;;  %v122_v38 = vld [vmem:[%s624_s2 + $0x38] sm:$0xff]  ;;  %v33_v48 = vld [vmem:[%s622_s0 + $0x40] sm:$0xff] }
   0xd   :  { %v219_v41 = vmax.f32 %v193_v31, %v206_v32  ;;  %v233_v63 = vmax.f32 %v220_v54, 0.0  ;;  %v132_v4 = vmul.f32 %v303_v0, %v119_v52  ;;  %v221_v6 = vmax.f32 %v195_v55, %v208_v58  ;;  %v160_v31 = vld [vmem:[%s625_s3 + $0x30] sm:$0xff]  ;;  %v161_v43 = vld [vmem:[%s625_s3 + $0x38] sm:$0xff]  ;;  %v123_v58 = vld [vmem:[%s624_s2 + $0x40] sm:$0xff] }
   0xe   :  { %v183_v7 = vadd.f32 %v308_v1, %v170_v61  ;;  %v196_v8 = vmax.f32 %v66_v56, %v105_v59  ;;  %v171_v9 = vmul.f32 %v303_v0, %v158_v57  ;;  %v67_v12 = vadd.f32 %v308_v1, %v48_v2  ;;  %v162_v59 = vld [vmem:[%s625_s3 + $0x40] sm:$0xff]  ;;  %v34_v2 = vld [vmem:[%s622_s0 + $0x48] sm:$0xff] }
   0xf   :  { %v232_v53 = vmax.f32 %v219_v41, 0.0  ;;  %247 = vst.msk [vmem:[%s628_s6 + $0x8] sm:$0xff] %vm245_vm0, %v233_v63  ;;  %v106_v13 = vadd.f32 %v308_v1, %v93_v3  ;;  %v145_v14 = vadd.f32 %v308_v1, %v132_v4  ;;  %v49_v15 = vmul.f32 %v303_v0, %v30_v62 }
  0x10   :  { %v234_v17 = vmax.f32 %v221_v6, 0.0  ;;  %v209_v18 = vmax.f32 %v144_v60, %v183_v7  ;;  %v184_v19 = vadd.f32 %v308_v1, %v171_v9  ;;  %v94_v20 = vmul.f32 %v303_v0, %v81_v5  ;;  %v85_v7 = vld [vmem:[%s623_s1 + $0x48] sm:$0xff] }
  0x11   :  { %246 = vst.msk [vmem:[%s628_s6] sm:$0xff] %vm245_vm0, %v232_v53  ;;  %v197_v23 = vmax.f32 %v67_v12, %v106_v13  ;;  %v68_v24 = vadd.f32 %v308_v1, %v49_v15  ;;  %v133_v25 = vmul.f32 %v303_v0, %v120_v10  ;;  %v172_v26 = vmul.f32 %v303_v0, %v159_v11  ;;  %v84_v53 = vld [vmem:[%s623_s1 + $0x40] sm:$0xff] }
  0x12   :  { %248 = vst.msk [vmem:[%s628_s6 + $0x10] sm:$0xff] %vm245_vm0, %v234_v17  ;;  %v222_v27 = vmax.f32 %v196_v8, %v209_v18  ;;  %v210_v28 = vmax.f32 %v145_v14, %v184_v19  ;;  %v107_v29 = vadd.f32 %v308_v1, %v94_v20  ;;  %v50_v30 = vmul.f32 %v303_v0, %v31_v16  ;;  %v124_v8 = vld [vmem:[%s624_s2 + $0x48] sm:$0xff] }
  0x13   :  { %v146_v32 = vadd.f32 %v308_v1, %v133_v25  ;;  %v185_v33 = vadd.f32 %v308_v1, %v172_v26  ;;  %v95_v34 = vmul.f32 %v303_v0, %v82_v21  ;;  %v134_v35 = vmul.f32 %v303_v0, %v121_v22  ;;  %v163_v17 = vld [vmem:[%s625_s3 + $0x48] sm:$0xff]  ;;  %v35_v22 = vld [vmem:[%s622_s0 + $0x50] sm:$0xff] }
  0x14   :  { %v235_v39 = vmax.f32 %v222_v27, 0.0  ;;  %v223_v40 = vmax.f32 %v197_v23, %v210_v28  ;;  %v198_v41 = vmax.f32 %v68_v24, %v107_v29  ;;  %v69_v42 = vadd.f32 %v308_v1, %v50_v30  ;;  %v86_v23 = vld [vmem:[%s623_s1 + $0x50] sm:$0xff] }
  0x15   :  { %v211_v44 = vmax.f32 %v146_v32, %v185_v33  ;;  %v108_v45 = vadd.f32 %v308_v1, %v95_v34  ;;  %v147_v46 = vadd.f32 %v308_v1, %v134_v35  ;;  %v173_v47 = vmul.f32 %v303_v0, %v160_v31  ;;  %v125_v24 = vld [vmem:[%s624_s2 + $0x50] sm:$0xff]  ;;  %v36_v34 = vld [vmem:[%s622_s0 + $0x58] sm:$0xff] }
  0x16   :  { %249 = vst.msk [vmem:[%s628_s6 + $0x18] sm:$0xff] %vm245_vm0, %v235_v39  ;;  %v236_v49 = vmax.f32 %v223_v40, 0.0  ;;  %v51_v50 = vmul.f32 %v303_v0, %v32_v36  ;;  %v96_v51 = vmul.f32 %v303_v0, %v83_v37  ;;  %v135_v52 = vmul.f32 %v303_v0, %v122_v38  ;;  %v164_v29 = vld [vmem:[%s625_s3 + $0x50] sm:$0xff]  ;;  %v87_v39 = vld [vmem:[%s623_s1 + $0x58] sm:$0xff] }
  0x17   :  { %v224_v54 = vmax.f32 %v198_v41, %v211_v44  ;;  %v186_v55 = vadd.f32 %v308_v1, %v173_v47  ;;  %v199_v56 = vmax.f32 %v69_v42, %v108_v45  ;;  %v174_v57 = vmul.f32 %v303_v0, %v161_v43  ;;  %v126_v44 = vld [vmem:[%s624_s2 + $0x58] sm:$0xff] }
  0x18   :  { %250 = vst.msk [vmem:[%s628_s6 + $0x20] sm:$0xff] %vm245_vm0, %v236_v49  ;;  %v70_v60 = vadd.f32 %v308_v1, %v51_v50  ;;  %v109_v61 = vadd.f32 %v308_v1, %v96_v51  ;;  %v148_v62 = vadd.f32 %v308_v1, %v135_v52  ;;  %v52_v63 = vmul.f32 %v303_v0, %v33_v48  ;;  %v165_v45 = vld [vmem:[%s625_s3 + $0x58] sm:$0xff]  ;;  %v37_v50 = vld [vmem:[%s622_s0 + $0x60] sm:$0xff] }
  0x19   :  { %v237_v3 = vmax.f32 %v224_v54, 0.0  ;;  %v212_v4 = vmax.f32 %v147_v46, %v186_v55  ;;  %v187_v5 = vadd.f32 %v308_v1, %v174_v57  ;;  %v97_v6 = vmul.f32 %v303_v0, %v84_v53  ;;  %v88_v55 = vld [vmem:[%s623_s1 + $0x60] sm:$0xff] }
  0x1a   :  { %v200_v9 = vmax.f32 %v70_v60, %v109_v61  ;;  %v71_v10 = vadd.f32 %v308_v1, %v52_v63  ;;  %v136_v11 = vmul.f32 %v303_v0, %v123_v58  ;;  %v175_v12 = vmul.f32 %v303_v0, %v162_v59 }
  0x1b   :  { %251 = vst.msk [vmem:[%s628_s6 + $0x28] sm:$0xff] %vm245_vm0, %v237_v3  ;;  %v225_v13 = vmax.f32 %v199_v56, %v212_v4  ;;  %v213_v14 = vmax.f32 %v148_v62, %v187_v5  ;;  %v110_v15 = vadd.f32 %v308_v1, %v97_v6  ;;  %v53_v16 = vmul.f32 %v303_v0, %v34_v2  ;;  %v127_v56 = vld [vmem:[%s624_s2 + $0x60] sm:$0xff] }
  0x1c   :  { %v149_v18 = vadd.f32 %v308_v1, %v136_v11  ;;  %v188_v19 = vadd.f32 %v308_v1, %v175_v12  ;;  %v98_v20 = vmul.f32 %v303_v0, %v85_v7  ;;  %v137_v21 = vmul.f32 %v303_v0, %v124_v8  ;;  %v166_v3 = vld [vmem:[%s625_s3 + $0x60] sm:$0xff] }
  0x1d   :  { %v238_v25 = vmax.f32 %v225_v13, 0.0  ;;  %v226_v26 = vmax.f32 %v200_v9, %v213_v14  ;;  %v201_v27 = vmax.f32 %v71_v10, %v110_v15  ;;  %v72_v28 = vadd.f32 %v308_v1, %v53_v16 }
  0x1e   :  { %v214_v30 = vmax.f32 %v149_v18, %v188_v19  ;;  %v111_v31 = vadd.f32 %v308_v1, %v98_v20  ;;  %v150_v32 = vadd.f32 %v308_v1, %v137_v21  ;;  %v176_v33 = vmul.f32 %v303_v0, %v163_v17 }
  0x1f   :  { %252 = vst.msk [vmem:[%s628_s6 + $0x30] sm:$0xff] %vm245_vm0, %v238_v25  ;;  %v239_v35 = vmax.f32 %v226_v26, 0.0  ;;  %v54_v36 = vmul.f32 %v303_v0, %v35_v22  ;;  %v99_v37 = vmul.f32 %v303_v0, %v86_v23  ;;  %v138_v38 = vmul.f32 %v303_v0, %v125_v24 }
  0x20   :  { %v227_v40 = vmax.f32 %v201_v27, %v214_v30  ;;  %v189_v41 = vadd.f32 %v308_v1, %v176_v33  ;;  %v202_v42 = vmax.f32 %v72_v28, %v111_v31  ;;  %v177_v43 = vmul.f32 %v303_v0, %v164_v29 }
  0x21   :  { %253 = vst.msk [vmem:[%s628_s6 + $0x38] sm:$0xff] %vm245_vm0, %v239_v35  ;;  %v73_v46 = vadd.f32 %v308_v1, %v54_v36  ;;  %v112_v47 = vadd.f32 %v308_v1, %v99_v37  ;;  %v151_v48 = vadd.f32 %v308_v1, %v138_v38  ;;  %v55_v49 = vmul.f32 %v303_v0, %v36_v34 }
  0x22   :  { %v240_v51 = vmax.f32 %v227_v40, 0.0  ;;  %v215_v52 = vmax.f32 %v150_v32, %v189_v41  ;;  %v190_v53 = vadd.f32 %v308_v1, %v177_v43  ;;  %v100_v54 = vmul.f32 %v303_v0, %v87_v39 }
  0x23   :  { %v203_v57 = vmax.f32 %v73_v46, %v112_v47  ;;  %v74_v58 = vadd.f32 %v308_v1, %v55_v49  ;;  %v139_v59 = vmul.f32 %v303_v0, %v126_v44  ;;  %v178_v60 = vmul.f32 %v303_v0, %v165_v45 }
  0x24   :  { %254 = vst.msk [vmem:[%s628_s6 + $0x40] sm:$0xff] %vm245_vm0, %v240_v51  ;;  %v228_v61 = vmax.f32 %v202_v42, %v215_v52  ;;  %v216_v62 = vmax.f32 %v151_v48, %v190_v53  ;;  %v113_v63 = vadd.f32 %v308_v1, %v100_v54  ;;  %v56_v2 = vmul.f32 %v303_v0, %v37_v50 }
  0x25   :  { %v152_v4 = vadd.f32 %v308_v1, %v139_v59  ;;  %v191_v5 = vadd.f32 %v308_v1, %v178_v60  ;;  %v101_v6 = vmul.f32 %v303_v0, %v88_v55  ;;  %v140_v7 = vmul.f32 %v303_v0, %v127_v56 }
  0x26   :  { %v241_v8 = vmax.f32 %v228_v61, 0.0  ;;  %v229_v9 = vmax.f32 %v203_v57, %v216_v62  ;;  %v204_v10 = vmax.f32 %v74_v58, %v113_v63  ;;  %v75_v11 = vadd.f32 %v308_v1, %v56_v2 }
  0x27   :  { %v217_v12 = vmax.f32 %v152_v4, %v191_v5  ;;  %v114_v13 = vadd.f32 %v308_v1, %v101_v6  ;;  %v153_v14 = vadd.f32 %v308_v1, %v140_v7  ;;  %v179_v15 = vmul.f32 %v303_v0, %v166_v3 }
  0x28   :  { %255 = vst.msk [vmem:[%s628_s6 + $0x48] sm:$0xff] %vm245_vm0, %v241_v8  ;;  %v242_v16 = vmax.f32 %v229_v9, 0.0 }
  0x29   :  { %v230_v17 = vmax.f32 %v204_v10, %v217_v12  ;;  %v192_v18 = vadd.f32 %v308_v1, %v179_v15  ;;  %v205_v19 = vmax.f32 %v75_v11, %v114_v13 }
  0x2a   :  { %256 = vst.msk [vmem:[%s628_s6 + $0x50] sm:$0xff] %vm245_vm0, %v242_v16 }
  0x2b   :  { %v243_v20 = vmax.f32 %v230_v17, 0.0  ;;  %v218_v21 = vmax.f32 %v153_v14, %v192_v18 }
  0x2d   :  { %257 = vst.msk [vmem:[%s628_s6 + $0x58] sm:$0xff] %vm245_vm0, %v243_v20  ;;  %v231_v0 = vmax.f32 %v205_v19, %v218_v21 }
  0x2f   :  { %v244_v22 = vmax.f32 %v231_v0, 0.0 }
  0x31   :  { %258 = vst.msk [vmem:[%s628_s6 + $0x60] sm:$0xff] %vm245_vm0, %v244_v22 }

// kernel: my_model_forward.9
= control target key start
LH: loop header
LB: loop body
LE: loop exit
PB: predicated region body
PF: predicated region fallthrough
CT: control target
= control target key end

     0   :  { %vm1517_vm0 = vmmov 0   ;;  %vm858_vm1 = vcmask 261120   ;;  %s1859_s1 = inlined_call_operand.vmem [shape: bf16[1568,128], index: 1, kind: input, shape index: {}]   ;;  %s1860_s0 = inlined_call_operand.vmem [shape: bf16[8,1568], index: 0, kind: input, shape index: {}]   ;;  %s1861_s2 = inlined_call_operand.vmem [shape: f32[1,128], index: 2, kind: input, shape index: {}]   ;;  %s1862_s3 = inlined_call_operand.vmem [shape: f32[8,128], index: 3, kind: output, shape index: {}]  }
   0x1   :  { %v1405_v0 = vld [vmem:[%s1859_s1 + $0x40] sm:$0xff]   ;;  %v1409_v4 = vld [vmem:[%s1859_s1 + $0x48] sm:$0xff]   ;;  %v1413_v8 = vld [vmem:[%s1859_s1 + $0x50] sm:$0xff]  }
   0x2   :  { %v1406_v1 = vld [vmem:[%s1859_s1] sm:$0xff]   ;;  %1260 = vmatprep.subr.bf16.mxu0 %v1405_v0  ;;  %v1410_v5 = vld [vmem:[%s1859_s1 + $0x8] sm:$0xff]   ;;  %v1414_v9 = vld [vmem:[%s1859_s1 + $0x10] sm:$0xff]  }
   0x3   :  { %v1407_v2 = vld [vmem:[%s1859_s1 + $0xc0] sm:$0xff]   ;;  %1261 = vmatpush3.bf16.msra.mxu0 %v1406_v1  ;;  %v1411_v6 = vld [vmem:[%s1859_s1 + $0xc8] sm:$0xff]   ;;  %v1415_v10 = vld [vmem:[%s1859_s1 + $0xd0] sm:$0xff]  }
   0x4   :  { %v1408_v3 = vld [vmem:[%s1859_s1 + $0x80] sm:$0xff]   ;;  %1282 = vmatprep.subr.bf16.mxu1 %v1407_v2  ;;  %1262 = vmatprep.subr.bf16.mxu0 %v1409_v4  ;;  %v1412_v7 = vld [vmem:[%s1859_s1 + $0x88] sm:$0xff]   ;;  %v1416_v11 = vld [vmem:[%s1859_s1 + $0x90] sm:$0xff]  }
   0x5   :  { %1283 = vmatpush3.bf16.msra.mxu1 %v1408_v3  ;;  %v1417_v12 = vld [vmem:[%s1859_s1 + $0x58] sm:$0xff]   ;;  %v1421_v16 = vld [vmem:[%s1859_s1 + $0x60] sm:$0xff]   ;;  %v1425_v20 = vld [vmem:[%s1859_s1 + $0x68] sm:$0xff]  }
   0x6   :  { %1284 = vmatprep.subr.bf16.mxu1 %v1411_v6  ;;  %v1418_v13 = vld [vmem:[%s1859_s1 + $0x18] sm:$0xff]   ;;  %v1422_v17 = vld [vmem:[%s1859_s1 + $0x20] sm:$0xff]   ;;  %v1426_v21 = vld [vmem:[%s1859_s1 + $0x28] sm:$0xff]  }
   0x7   :  { %1263 = vmatpush3.bf16.msra.mxu0 %v1410_v5  ;;  %v1419_v14 = vld [vmem:[%s1859_s1 + $0xd8] sm:$0xff]   ;;  %v1423_v18 = vld [vmem:[%s1859_s1 + $0xe0] sm:$0xff]   ;;  %v1427_v22 = vld [vmem:[%s1859_s1 + $0xe8] sm:$0xff]  }
   0x8   :  { %1264 = vmatprep.subr.bf16.mxu0 %v1413_v8  ;;  %v1420_v15 = vld [vmem:[%s1859_s1 + $0x98] sm:$0xff]   ;;  %v1424_v19 = vld [vmem:[%s1859_s1 + $0xa0] sm:$0xff]   ;;  %v1428_v23 = vld [vmem:[%s1859_s1 + $0xa8] sm:$0xff]  }
   0x9   :  { %1285 = vmatpush3.bf16.msra.mxu1 %v1412_v7  ;;  %v1429_v24 = vld [vmem:[%s1859_s1 + $0x70] sm:$0xff]   ;;  %v1433_v28 = vld [vmem:[%s1859_s1 + $0x78] sm:$0xff]   ;;  %v15_v32 = vld [vmem:[%s1860_s0] sm:$0xff] }
   0xa   :  { %1286 = vmatprep.subr.bf16.mxu1 %v1415_v10  ;;  %v1430_v25 = vld [vmem:[%s1859_s1 + $0x30] sm:$0xff]   ;;  %v1434_v29 = vld [vmem:[%s1859_s1 + $0x38] sm:$0xff]   ;;  %v1148_v33 = vcombine.low %v15_v32, %v15_v32  ;;  %v1149_v34 = vcombine.high %v15_v32, %v15_v32  ;;  %v1439_v35 = vld [vmem:[%s1859_s1 + $0x140] sm:$0xff]  }
   0xb   :  { %1265 = vmatpush3.bf16.msra.mxu0 %v1414_v9  ;;  %v1431_v26 = vld [vmem:[%s1859_s1 + $0xf0] sm:$0xff]   ;;  %v1435_v30 = vld [vmem:[%s1859_s1 + $0xf8] sm:$0xff]   ;;  %v16_v36 = vld [vmem:[%s1860_s0 + $0x8] sm:$0xff] }
   0xc   :  { %1266 = vmatprep.subr.bf16.mxu0 %v1417_v12  ;;  %v1432_v27 = vld [vmem:[%s1859_s1 + $0xb0] sm:$0xff]   ;;  %v1436_v31 = vld [vmem:[%s1859_s1 + $0xb8] sm:$0xff]   ;;  %v1150_v37 = vcombine.low %v16_v36, %v16_v36  ;;  %v1151_v38 = vcombine.high %v16_v36, %v16_v36  ;;  %v1442_v39 = vld [vmem:[%s1859_s1 + $0x100] sm:$0xff]   ;;  %894 = vmatprep.mubr.bf16.mxu0 %v1149_v34 }
   0xd   :  { %1287 = vmatpush3.bf16.msra.mxu1 %v1416_v11  ;;  %v1443_v40 = vld [vmem:[%s1859_s1 + $0x1c0] sm:$0xff]   ;;  %v1445_v42 = vld [vmem:[%s1859_s1 + $0x148] sm:$0xff]   ;;  %v1449_v46 = vld [vmem:[%s1859_s1 + $0x150] sm:$0xff]  }
   0xe   :  { %1288 = vmatprep.subr.bf16.mxu1 %v1419_v14  ;;  %934 = vmatprep.mubr.bf16.mxu1 %v1151_v38  ;;  %v1444_v41 = vld [vmem:[%s1859_s1 + $0x180] sm:$0xff]   ;;  %v1446_v43 = vld [vmem:[%s1859_s1 + $0x108] sm:$0xff]   ;;  %v1450_v47 = vld [vmem:[%s1859_s1 + $0x110] sm:$0xff]  }
   0xf   :  { %1267 = vmatpush3.bf16.msra.mxu0 %v1418_v13  ;;  %v1447_v44 = vld [vmem:[%s1859_s1 + $0x1c8] sm:$0xff]   ;;  %v1451_v48 = vld [vmem:[%s1859_s1 + $0x1d0] sm:$0xff]   ;;  %v1453_v50 = vld [vmem:[%s1859_s1 + $0x158] sm:$0xff]  }
  0x10   :  { %1268 = vmatprep.subr.bf16.mxu0 %v1421_v16  ;;  %v1448_v45 = vld [vmem:[%s1859_s1 + $0x188] sm:$0xff]   ;;  %v1452_v49 = vld [vmem:[%s1859_s1 + $0x190] sm:$0xff]   ;;  %v1454_v51 = vld [vmem:[%s1859_s1 + $0x118] sm:$0xff]  }
  0x11   :  { %1289 = vmatpush3.bf16.msra.mxu1 %v1420_v15  ;;  %v1455_v52 = vld [vmem:[%s1859_s1 + $0x1d8] sm:$0xff]   ;;  %v1457_v54 = vld [vmem:[%s1859_s1 + $0x160] sm:$0xff]   ;;  %v1461_v58 = vld [vmem:[%s1859_s1 + $0x168] sm:$0xff]  }
  0x12   :  { %1290 = vmatprep.subr.bf16.mxu1 %v1423_v18  ;;  %v1456_v53 = vld [vmem:[%s1859_s1 + $0x198] sm:$0xff]   ;;  %v1458_v55 = vld [vmem:[%s1859_s1 + $0x120] sm:$0xff]   ;;  %v1462_v59 = vld [vmem:[%s1859_s1 + $0x128] sm:$0xff]  }
  0x13   :  { %1269 = vmatpush3.bf16.msra.mxu0 %v1422_v17  ;;  %v1459_v56 = vld [vmem:[%s1859_s1 + $0x1e0] sm:$0xff]   ;;  %v1463_v60 = vld [vmem:[%s1859_s1 + $0x1e8] sm:$0xff]   ;;  %v1465_v62 = vld [vmem:[%s1859_s1 + $0x170] sm:$0xff]  }
  0x14   :  { %1270 = vmatprep.subr.bf16.mxu0 %v1425_v20  ;;  %v1460_v57 = vld [vmem:[%s1859_s1 + $0x1a0] sm:$0xff]   ;;  %v1464_v61 = vld [vmem:[%s1859_s1 + $0x1a8] sm:$0xff]   ;;  %v1466_v63 = vld [vmem:[%s1859_s1 + $0x130] sm:$0xff]  }
  0x15   :  { %1291 = vmatpush3.bf16.msra.mxu1 %v1424_v19  ;;  %v1467_v0 = vld [vmem:[%s1859_s1 + $0x1f0] sm:$0xff]   ;;  %v1469_v2 = vld [vmem:[%s1859_s1 + $0x178] sm:$0xff]   ;;  %v1475_v9 = vld [vmem:[%s1859_s1 + $0x240] sm:$0xff]  }
  0x16   :  { %1292 = vmatprep.subr.bf16.mxu1 %v1427_v22  ;;  %v1468_v1 = vld [vmem:[%s1859_s1 + $0x1b0] sm:$0xff]   ;;  %v1470_v3 = vld [vmem:[%s1859_s1 + $0x138] sm:$0xff]   ;;  %v1478_v13 = vld [vmem:[%s1859_s1 + $0x200] sm:$0xff]  }
  0x17   :  { %1271 = vmatpush3.bf16.msra.mxu0 %v1426_v21  ;;  %v1471_v4 = vld [vmem:[%s1859_s1 + $0x1f8] sm:$0xff]   ;;  %v17_v6 = vld [vmem:[%s1860_s0 + $0x10] sm:$0xff]  ;;  %v1479_v14 = vld [vmem:[%s1859_s1 + $0x2c0] sm:$0xff]  }
  0x18   :  { %1272 = vmatprep.subr.bf16.mxu0 %v1429_v24  ;;  %v1472_v5 = vld [vmem:[%s1859_s1 + $0x1b8] sm:$0xff]   ;;  %v1152_v7 = vcombine.low %v17_v6, %v17_v6  ;;  %v1153_v8 = vcombine.high %v17_v6, %v17_v6  ;;  %v1480_v15 = vld [vmem:[%s1859_s1 + $0x280] sm:$0xff]   ;;  %v1481_v16 = vld [vmem:[%s1859_s1 + $0x248] sm:$0xff]  }
  0x19   :  { %1293 = vmatpush3.bf16.msra.mxu1 %v1428_v23  ;;  %v18_v10 = vld [vmem:[%s1860_s0 + $0x18] sm:$0xff]  ;;  %v1482_v17 = vld [vmem:[%s1859_s1 + $0x208] sm:$0xff]   ;;  %v1485_v20 = vld [vmem:[%s1859_s1 + $0x250] sm:$0xff]  }
  0x1a   :  { %1294 = vmatprep.subr.bf16.mxu1 %v1431_v26  ;;  %v1154_v11 = vcombine.low %v18_v10, %v18_v10  ;;  %v1155_v12 = vcombine.high %v18_v10, %v18_v10  ;;  %v1483_v18 = vld [vmem:[%s1859_s1 + $0x2c8] sm:$0xff]   ;;  %v1486_v21 = vld [vmem:[%s1859_s1 + $0x210] sm:$0xff]   ;;  %v1489_v24 = vld [vmem:[%s1859_s1 + $0x258] sm:$0xff]  }
  0x1b   :  { %1273 = vmatpush3.bf16.msra.mxu0 %v1430_v25  ;;  %v1484_v19 = vld [vmem:[%s1859_s1 + $0x288] sm:$0xff]   ;;  %v1487_v22 = vld [vmem:[%s1859_s1 + $0x2d0] sm:$0xff]   ;;  %v1490_v25 = vld [vmem:[%s1859_s1 + $0x218] sm:$0xff]  }
  0x1c   :  { %1274 = vmatprep.subr.bf16.mxu0 %v1433_v28  ;;  %v1488_v23 = vld [vmem:[%s1859_s1 + $0x290] sm:$0xff]   ;;  %v1491_v26 = vld [vmem:[%s1859_s1 + $0x2d8] sm:$0xff]   ;;  %v1493_v28 = vld [vmem:[%s1859_s1 + $0x260] sm:$0xff]  }
  0x1d   :  { %1295 = vmatpush3.bf16.msra.mxu1 %v1432_v27  ;;  %v1492_v27 = vld [vmem:[%s1859_s1 + $0x298] sm:$0xff]   ;;  %v1497_v32 = vld [vmem:[%s1859_s1 + $0x268] sm:$0xff]   ;;  %v1501_v36 = vld [vmem:[%s1859_s1 + $0x270] sm:$0xff]  }
  0x1e   :  { %1296 = vmatprep.subr.bf16.mxu1 %v1435_v30  ;;  %v1495_v30 = vld [vmem:[%s1859_s1 + $0x2e0] sm:$0xff]   ;;  %v1499_v34 = vld [vmem:[%s1859_s1 + $0x2e8] sm:$0xff]   ;;  %v1503_v38 = vld [vmem:[%s1859_s1 + $0x2f0] sm:$0xff]  }
  0x1f   :  { %1275 = vmatpush3.bf16.msra.mxu0 %v1434_v29  ;;  %v1494_v29 = vld [vmem:[%s1859_s1 + $0x220] sm:$0xff]  }
  0x20   :  { %1304 = vmatprep.subr.bf16.mxu0 %v1439_v35  ;;  %v1500_v35 = vld [vmem:[%s1859_s1 + $0x2a8] sm:$0xff]  }
  0x21   :  { %1297 = vmatpush3.bf16.msra.mxu1 %v1436_v31  ;;  %v1496_v31 = vld [vmem:[%s1859_s1 + $0x2a0] sm:$0xff]  }
  0x22   :  { %895 = vmatmul.mubr.bf16.vlgmr.msra.gmra.mrb[0].mxu0 %v1148_v33  ;;  %1326 = vmatprep.subr.bf16.mxu1 %v1443_v40  ;;  %v1498_v33 = vld [vmem:[%s1859_s1 + $0x228] sm:$0xff]   ;;  %v1505_v40 = vld [vmem:[%s1859_s1 + $0x278] sm:$0xff]  }
  0x23   :  { %1305 = vmatpush3.bf16.msra.mxu0 %v1442_v39  ;;  %974 = vmatprep.mubr.bf16.mxu0 %v1153_v8  ;;  %v1504_v39 = vld [vmem:[%s1859_s1 + $0x2b0] sm:$0xff]  }
  0x24   :  { %935 = vmatmul.mubr.bf16.vlgmr.msra.gmra.mrb[0].mxu1 %v1150_v37  ;;  %1306 = vmatprep.subr.bf16.mxu0 %v1445_v42  ;;  %v1502_v37 = vld [vmem:[%s1859_s1 + $0x230] sm:$0xff]   ;;  %v1507_v42 = vld [vmem:[%s1859_s1 + $0x2f8] sm:$0xff]  }
  0x25   :  { %1327 = vmatpush3.bf16.msra.mxu1 %v1444_v41  ;;  %1014 = vmatprep.mubr.bf16.mxu1 %v1155_v12  ;;  %v1506_v41 = vld [vmem:[%s1859_s1 + $0x238] sm:$0xff]  }
  0x26   :  { %1328 = vmatprep.subr.bf16.mxu1 %v1447_v44  ;;  %v19_v44 = vld [vmem:[%s1860_s0 + $0x20] sm:$0xff] }
  0x27   :  { %1307 = vmatpush3.bf16.msra.mxu0 %v1446_v43  ;;  %v1508_v43 = vld [vmem:[%s1859_s1 + $0x2b8] sm:$0xff]  }
  0x28   :  { %1308 = vmatprep.subr.bf16.mxu0 %v1449_v46  ;;  %v1156_v46 = vcombine.low %v19_v44, %v19_v44 }
  0x29   :  { %1329 = vmatpush3.bf16.msra.mxu1 %v1448_v45  ;;  %v20_v45 = vld [vmem:[%s1860_s0 + $0x28] sm:$0xff] }
  0x2a   :  { %1330 = vmatprep.subr.bf16.mxu1 %v1451_v48  ;;  %v1158_v48 = vcombine.low %v20_v45, %v20_v45 }
  0x2b   :  { %1309 = vmatpush3.bf16.msra.mxu0 %v1450_v47  ;;  %v1157_v47 = vcombine.high %v19_v44, %v19_v44 }
  0x2c   :  { %1310 = vmatprep.subr.bf16.mxu0 %v1453_v50  ;;  %v1513_v50 = vld [vmem:[%s1859_s1 + $0x300] sm:$0xff]  }
  0x2d   :  { %1331 = vmatpush3.bf16.msra.mxu1 %v1452_v49  ;;  %v1159_v49 = vcombine.high %v20_v45, %v20_v45 }
  0x2e   :  { %1332 = vmatprep.subr.bf16.mxu1 %v1455_v52  ;;  %v1514_v52 = vld [vmem:[%s1859_s1 + $0x308] sm:$0xff]  }
  0x2f   :  { %1311 = vmatpush3.bf16.msra.mxu0 %v1454_v51  ;;  %v1516_v51 = vmov 0.0  }
  0x30   :  { %1312 = vmatprep.subr.bf16.mxu0 %v1457_v54 }
  0x31   :  { %1333 = vmatpush3.bf16.msra.mxu1 %v1456_v53  ;;  %v1515_v53 = vld [vmem:[%s1860_s0 + $0x30] ss:$0 sps:$4 sm:$0xff]  }
  0x32   :  { %1334 = vmatprep.subr.bf16.mxu1 %v1459_v56 }
  0x33   :  { %1313 = vmatpush3.bf16.msra.mxu0 %v1458_v55  ;;  %v1147_v55 = vld [vmem:[%s1861_s2] ss:$0 sm:$0xff] }
  0x34   :  { %1314 = vmatprep.subr.bf16.mxu0 %v1461_v58 }
  0x35   :  { %1335 = vmatpush3.bf16.msra.mxu1 %v1460_v57 }
  0x36   :  { %1336 = vmatprep.subr.bf16.mxu1 %v1463_v60 }
  0x37   :  { %1315 = vmatpush3.bf16.msra.mxu0 %v1462_v59 }
  0x38   :  { %1316 = vmatprep.subr.bf16.mxu0 %v1465_v62 }
  0x39   :  { %1337 = vmatpush3.bf16.msra.mxu1 %v1464_v61 }
  0x3a   :  { %1338 = vmatprep.subr.bf16.mxu1 %v1467_v0 }
  0x3b   :  { %1317 = vmatpush3.bf16.msra.mxu0 %v1466_v63 }
  0x3c   :  { %1318 = vmatprep.subr.bf16.mxu0 %v1469_v2 }
  0x3d   :  { %1339 = vmatpush3.bf16.msra.mxu1 %v1468_v1 }
  0x3e   :  { %1340 = vmatprep.subr.bf16.mxu1 %v1471_v4 }
  0x3f   :  { %1319 = vmatpush3.bf16.msra.mxu0 %v1470_v3 }
  0x40   :  { %1348 = vmatprep.subr.bf16.mxu0 %v1475_v9 }
  0x41   :  { %1341 = vmatpush3.bf16.msra.mxu1 %v1472_v5 }
  0x42   :  { %975 = vmatmul.mubr.bf16.vlgmr.msra.gmra.mrb[4].mxu0 %v1152_v7  ;;  %1370 = vmatprep.subr.bf16.mxu1 %v1479_v14 }
  0x43   :  { %1349 = vmatpush3.bf16.msra.mxu0 %v1478_v13  ;;  %1054 = vmatprep.mubr.bf16.mxu0 %v1157_v47 }
  0x44   :  { %1015 = vmatmul.mubr.bf16.vlgmr.msra.gmra.mrb[4].mxu1 %v1154_v11  ;;  %1350 = vmatprep.subr.bf16.mxu0 %v1481_v16 }
  0x45   :  { %1371 = vmatpush3.bf16.msra.mxu1 %v1480_v15  ;;  %1094 = vmatprep.mubr.bf16.mxu1 %v1159_v49 }
  0x46   :  { %1372 = vmatprep.subr.bf16.mxu1 %v1483_v18 }
  0x47   :  { %1351 = vmatpush3.bf16.msra.mxu0 %v1482_v17 }
  0x48   :  { %1352 = vmatprep.subr.bf16.mxu0 %v1485_v20 }
  0x49   :  { %1373 = vmatpush3.bf16.msra.mxu1 %v1484_v19 }
  0x4a   :  { %1374 = vmatprep.subr.bf16.mxu1 %v1487_v22 }
  0x4b   :  { %1353 = vmatpush3.bf16.msra.mxu0 %v1486_v21 }
  0x4c   :  { %1354 = vmatprep.subr.bf16.mxu0 %v1489_v24 }
  0x4d   :  { %1375 = vmatpush3.bf16.msra.mxu1 %v1488_v23 }
  0x4e   :  { %1376 = vmatprep.subr.bf16.mxu1 %v1491_v26 }
  0x4f   :  { %1355 = vmatpush3.bf16.msra.mxu0 %v1490_v25 }
  0x50   :  { %1356 = vmatprep.subr.bf16.mxu0 %v1493_v28 }
  0x51   :  { %1377 = vmatpush3.bf16.msra.mxu1 %v1492_v27 }
  0x52   :  { %1378 = vmatprep.subr.bf16.mxu1 %v1495_v30 }
  0x53   :  { %1357 = vmatpush3.bf16.msra.mxu0 %v1494_v29 }
  0x54   :  { %1358 = vmatprep.subr.bf16.mxu0 %v1497_v32 }
  0x55   :  { %1379 = vmatpush3.bf16.msra.mxu1 %v1496_v31 }
  0x56   :  { %1380 = vmatprep.subr.bf16.mxu1 %v1499_v34 }
  0x57   :  { %1359 = vmatpush3.bf16.msra.mxu0 %v1498_v33 }
  0x58   :  { %1360 = vmatprep.subr.bf16.mxu0 %v1501_v36 }
  0x59   :  { %1381 = vmatpush3.bf16.msra.mxu1 %v1500_v35 }
  0x5a   :  { %1382 = vmatprep.subr.bf16.mxu1 %v1503_v38 }
  0x5b   :  { %1361 = vmatpush3.bf16.msra.mxu0 %v1502_v37 }
  0x5c   :  { %1362 = vmatprep.subr.bf16.mxu0 %v1505_v40 }
  0x5d   :  { %1383 = vmatpush3.bf16.msra.mxu1 %v1504_v39 }
  0x5e   :  { %1384 = vmatprep.subr.bf16.mxu1 %v1507_v42 }
  0x5f   :  { %1363 = vmatpush3.bf16.msra.mxu0 %v1506_v41 }
  0x60   :  { %1395 = vmatprep.subr.bf16.mxu0 %v1516_v51 }
  0x61   :  { %1385 = vmatpush3.bf16.msra.mxu1 %v1508_v43 }
  0x62   :  { %1055 = vmatmul.mubr.bf16.vlgmr.msra.gmra.mrb[8].mxu0 %v1156_v46 }
  0x63   :  { %1396 = vmatpush3.bf16.msra.mxu0 %v1513_v50  ;;  %1399 = vmatprep.mubr.msk.bf16.mxu0 %vm1517_vm0, %v1516_v51 }
  0x64   :  { %1095 = vmatmul.mubr.bf16.vlgmr.msra.gmra.mrb[8].mxu1 %v1158_v48  ;;  %1397 = vmatprep.subr.bf16.mxu0 %v1516_v51 }
  0x67   :  { %1398 = vmatpush3.bf16.msra.mxu0 %v1514_v52 }
  0x6a   :  { %1400 = vmatmul.mubr.msk.bf16.vlgmr.msra.gmra.mrb[12].mxu0 %vm858_vm1, %v1515_v53 }
  0xf5   :  { %v1276_v54 = vpop.f32.mrb[0].mxu0 }
  0xf6   :  { %v1277_v56 = vpop.f32.mrb[1].mxu0 }
  0xf7   :  { %v1278_v57 = vadd.f32 %v1277_v56, %v1276_v54  ;;  %v1279_v58 = vpop.f32.mrb[2].mxu0  ;;  %v1298_v59 = vpop.f32.mrb[0].mxu1 }
  0xf8   :  { %v1280_v60 = vpop.f32.mrb[3].mxu0  ;;  %v1299_v61 = vpop.f32.mrb[1].mxu1 }
  0xf9   :  { %v897_v62 = vadd.f32 %v1278_v57, %v1147_v55  ;;  %v1300_v63 = vadd.f32 %v1299_v61, %v1298_v59  ;;  %v1301_v0 = vpop.f32.mrb[2].mxu1 }
  0xfa   :  { %v1302_v1 = vpop.f32.mrb[3].mxu1 }
  0xfb   :  { %v937_v2 = vadd.f32 %v1300_v63, %v897_v62 }
 0x115   :  { %v1320_v3 = vpop.f32.mrb[4].mxu0 }
 0x116   :  { %v1321_v4 = vpop.f32.mrb[5].mxu0 }
 0x117   :  { %v1322_v5 = vadd.f32 %v1321_v4, %v1320_v3  ;;  %v1323_v6 = vpop.f32.mrb[6].mxu0  ;;  %v1342_v7 = vpop.f32.mrb[4].mxu1 }
 0x118   :  { %v1324_v8 = vpop.f32.mrb[7].mxu0  ;;  %v1343_v9 = vpop.f32.mrb[5].mxu1 }
 0x119   :  { %v977_v10 = vadd.f32 %v1322_v5, %v937_v2  ;;  %v1344_v11 = vadd.f32 %v1343_v9, %v1342_v7  ;;  %v1345_v12 = vpop.f32.mrb[6].mxu1 }
 0x11a   :  { %v1346_v13 = vpop.f32.mrb[7].mxu1 }
 0x11b   :  { %v1017_v14 = vadd.f32 %v1344_v11, %v977_v10 }
 0x135   :  { %v1364_v15 = vpop.f32.mrb[8].mxu0 }
 0x136   :  { %v1365_v16 = vpop.f32.mrb[9].mxu0 }
 0x137   :  { %v1386_v17 = vpop.f32.mrb[8].mxu1  ;;  %v1366_v18 = vadd.f32 %v1365_v16, %v1364_v15  ;;  %v1367_v19 = vpop.f32.mrb[10].mxu0 }
 0x138   :  { %v1387_v20 = vpop.f32.mrb[9].mxu1  ;;  %v1368_v22 = vpop.f32.mrb[11].mxu0 }
 0x139   :  { %v1388_v21 = vadd.f32 %v1387_v20, %v1386_v17  ;;  %v1389_v23 = vpop.f32.mrb[10].mxu1  ;;  %v1057_v24 = vadd.f32 %v1366_v18, %v1017_v14 }
 0x13a   :  { %v1390_v25 = vpop.f32.mrb[11].mxu1 }
 0x13b   :  { %v1097_v26 = vadd.f32 %v1388_v21, %v1057_v24 }
 0x13d   :  { %v1136_v27 = vpop.f32.mrb[12].mxu0 }
 0x13e   :  { %v1137_v28 = vadd.f32 %v1136_v27, %v1097_v26  ;;  %v1401_v29 = vpop.f32.mrb[13].mxu0 }
 0x13f   :  { %v1139_v30 = vpop.f32.mrb[14].mxu0 }
 0x140   :  { %1142 = vst [vmem:[%s1862_s3] sm:$0xff] %v1137_v28  ;;  %v1402_v31 = vpop.f32.mrb[15].mxu0 }

</bundles_post_ra>
